<compile_context>
chip_gen: v7x
topology: tpu7x:2x2x1
jax: 0.10.0
libtpu: 0.0.40
codegen_flags: <defaults>
</compile_context>

<pallas_src>
import functools

import numpy as np

import jax
import jax.numpy as jnp
from jax.experimental import pallas as pl
from jax.experimental.pallas import tpu as pltpu

CP = 128  # channel padding = TPU lane width


def _fused_conv_kernel(x_ref, w1_ref, b1_ref, w2_ref, b2_ref, o_ref,
                       y1_ref, p2_ref, *, KH, KW, OH1, OW1, OH2, OW2):
    """Fused conv1 -> conv2 (valid, stride 1) for the whole batch.

    x_ref : (N, H, W)                      input image (Cin == 1)
    w1_ref: (KH, W, OW1*CP)                conv1 "band" weights (padded)
    b1_ref: (1, CP)                        conv1 bias (padded)
    w2_ref: (KH*KW*CP, CP)                 conv2 weights, im2col layout (padded)
    b2_ref: (1, CP)                        conv2 bias (padded)
    o_ref : (N*OH2*OW2, CP)                output (lane-dense, padded channels)
    y1_ref: (N, OH1, OW1, CP)   scratch    conv1 activations
    p2_ref: (N*OH2*OW2, KH*KW*CP) scratch  conv2 im2col slab
    """
    N, H, W = x_ref.shape
    M1 = N * OH1
    M2 = N * OH2 * OW2

    # ---- conv1: contraction over W (natural lane axis), one matmul per kh ----
    acc = jnp.zeros((M1, OW1 * CP), dtype=jnp.float32)
    for kh in range(KH):
        rows = x_ref[:, kh:kh + OH1, :].reshape(M1, W)            # (M1, W)
        acc = acc + jnp.dot(rows, w1_ref[kh],
                            preferred_element_type=jnp.float32)   # (M1, OW1*CP)

    # Scatter (with bias) into (N, OH1, OW1, CP); each chunk is a 128-lane
    # aligned slab so all stores are full-lane writes.
    for ow in range(OW1):
        chunk = acc[:, ow * CP:(ow + 1) * CP] + b1_ref[...]        # (M1, CP)
        y1_ref[:, :, ow, :] = chunk.reshape(N, OH1, CP)

    # ---- conv2: im2col into scratch, then ONE big MXU matmul ----
    for kh in range(KH):
        for kw in range(KW):
            t = kh * KW + kw
            tap = y1_ref[:, kh:kh + OH2, kw:kw + OW2, :]           # (N,OH2,OW2,CP)
            p2_ref[:, t * CP:(t + 1) * CP] = tap.reshape(M2, CP)

    y2 = jnp.dot(p2_ref[...], w2_ref[...],
                 preferred_element_type=jnp.float32)               # (M2, CP)
    o_ref[...] = (y2 + b2_ref[...]).astype(o_ref.dtype)


def _pad_channels(v, cp=CP):
    out = np.zeros(v.shape[:-1] + (cp,), np.float32)
    out[..., :v.shape[-1]] = v
    return out


def init_conv_params(key, cin, cout, k):
    """Deterministic init mimicking PyTorch Conv2d default (uniform bound)."""
    kw_key, kb_key = jax.random.split(key)
    fan_in = cin * k * k
    bound = float(1.0 / np.sqrt(fan_in))
    w = jax.random.uniform(kw_key, (k, k, cin, cout), jnp.float32,
                           minval=-bound, maxval=bound)
    b = jax.random.uniform(kb_key, (cout,), jnp.float32,
                           minval=-bound, maxval=bound)
    return w, b


class PallasModel:
    """conv1(1->20, 5x5, valid) -> conv2(20->20, 5x5, valid); NCHW in/out."""

    def __init__(self, key, input_hw=(16, 16)):
        k1, k2 = jax.random.split(key)
        self.w1, self.b1 = init_conv_params(k1, 1, 20, 5)    # (5,5,1,20), (20,)
        self.w2, self.b2 = init_conv_params(k2, 20, 20, 5)   # (5,5,20,20), (20,)

        KH, KW, _, C1 = self.w1.shape
        C2 = self.w2.shape[3]
        H, W = input_hw
        OH1, OW1 = H - KH + 1, W - KW + 1
        OH2, OW2 = OH1 - KH + 1, OW1 - KW + 1
        self.dims = dict(H=H, W=W, KH=KH, KW=KW,
                         OH1=OH1, OW1=OW1, OH2=OH2, OW2=OW2)
        self.c_out = C2

        # conv1 "band" weights: band[kh, ow+kw, ow*CP + c] = w1[kh, kw, 0, c]
        w1np = np.asarray(self.w1)
        band = np.zeros((KH, W, OW1, CP), np.float32)
        for kh in range(KH):
            for kw in range(KW):
                for ow in range(OW1):
                    band[kh, ow + kw, ow, :C1] = w1np[kh, kw, 0, :]
        self.w1_band = jnp.asarray(band.reshape(KH, W, OW1 * CP))
        self.b1_pad = jnp.asarray(_pad_channels(np.asarray(self.b1))[None, :])

        # conv2 weights in (KH*KW*CP, CP) im2col layout (zero-padded channels).
        w2np = np.asarray(self.w2)
        w2f = np.zeros((KH * KW * CP, CP), np.float32)
        for kh in range(KH):
            for kw in range(KW):
                t = kh * KW + kw
                w2f[t * CP:t * CP + w2np.shape[2], :C2] = w2np[kh, kw]
        self.w2_flat = jnp.asarray(w2f)
        self.b2_pad = jnp.asarray(_pad_channels(np.asarray(self.b2))[None, :])

    def __call__(self, x_nchw):
        N, Cin, H, W = x_nchw.shape
        d = self.dims
        assert Cin == 1 and (H, W) == (d["H"], d["W"])
        KH, KW = d["KH"], d["KW"]
        OH1, OW1, OH2, OW2 = d["OH1"], d["OW1"], d["OH2"], d["OW2"]
        M2 = N * OH2 * OW2

        x3 = x_nchw.reshape(N, H, W)   # Cin == 1: pure reshape, no transpose.

        kernel = functools.partial(_fused_conv_kernel, KH=KH, KW=KW,
                                   OH1=OH1, OW1=OW1, OH2=OH2, OW2=OW2)
        vmem = pltpu.MemorySpace.VMEM
        out = pl.pallas_call(
            kernel,
            out_shape=jax.ShapeDtypeStruct((M2, CP), jnp.float32),
            in_specs=[pl.BlockSpec(memory_space=vmem)] * 5,
            out_specs=pl.BlockSpec(memory_space=vmem),
            scratch_shapes=[
                pltpu.VMEM((N, OH1, OW1, CP), jnp.float32),       # conv1 acts
                pltpu.VMEM((M2, KH * KW * CP), jnp.float32),      # im2col slab
            ],
        )(x3, self.w1_band, self.b1_pad, self.w2_flat, self.b2_pad)

        # (N*OH2*OW2, CP) -> NCHW with the 20 real channels (tiny fused epilogue).
        out = out.reshape(N, OH2, OW2, CP)[..., :self.c_out]
        return jnp.transpose(out, (0, 3, 1, 2))


if __name__ == "__main__":
    key = jax.random.PRNGKey(0)
    k_model, k_input = jax.random.split(key)

    model = PallasModel(k_model, input_hw=(16, 16))

    # Input: batch=2, channels=1 (required by conv1), spatial=16x16.
    x = jax.random.normal(k_input, (2, 1, 16, 16), dtype=jnp.float32)

    out = jax.block_until_ready(model(x))
    assert out.shape == (2, 20, 8, 8), out.shape

    # Sanity check against lax.conv_general_dilated.
    ref = jax.lax.conv_general_dilated(
        jnp.transpose(x, (0, 2, 3, 1)), model.w1, (1, 1), "VALID",
        dimension_numbers=("NHWC", "HWIO", "NHWC")) + model.b1
    ref = jax.lax.conv_general_dilated(
        ref, model.w2, (1, 1), "VALID",
        dimension_numbers=("NHWC", "HWIO", "NHWC")) + model.b2
    ref = jnp.transpose(ref, (0, 3, 1, 2))
    assert jnp.allclose(out, ref, atol=1e-4, rtol=1e-4), (
        float(jnp.max(jnp.abs(out - ref))))

    # TODO(synk): the reference forward ends with `x.nn.Conv2d(20, 20, 5)`,
    # an invalid Tensor attribute access that raises in PyTorch; it has no
    # equivalent and is not implemented.
    print("KERNEL_OK")
</pallas_src>

<mosaic_0001>
module attributes {stable_mosaic.version = 11 : i64} {
  func.func @_fused_conv_kernel(%arg0: memref<2x16x16xf32, #tpu.memory_space<vmem>>, %arg1: memref<5x16x1536xf32, #tpu.memory_space<vmem>>, %arg2: memref<1x128xf32, #tpu.memory_space<vmem>>, %arg3: memref<3200x128xf32, #tpu.memory_space<vmem>>, %arg4: memref<1x128xf32, #tpu.memory_space<vmem>>, %arg5: memref<128x128xf32, #tpu.memory_space<vmem>>, %arg6: memref<2x12x12x128xf32, #tpu.memory_space<vmem>>, %arg7: memref<128x3200xf32, #tpu.memory_space<vmem>>) attributes {dimension_semantics = [], scalar_prefetch = 0 : i64, scratch_operands = 2 : i64, tpu.core_type = #tpu.core_type<tc>} {
    %cst = arith.constant 0.000000e+00 : f32
    %0 = vector.broadcast %cst : f32 to vector<24x1536xf32>
    %c0 = arith.constant 0 : index
    %c0_0 = arith.constant 0 : index
    %c0_1 = arith.constant 0 : index
    %1 = vector.load %arg0[%c0, %c0_0, %c0_1] : memref<2x16x16xf32, #tpu.memory_space<vmem>>, vector<2x12x16xf32>
    %2 = vector.shape_cast %1 : vector<2x12x16xf32> to vector<24x16xf32>
    %c0_2 = arith.constant 0 : index
    %c0_3 = arith.constant 0 : index
    %c0_4 = arith.constant 0 : index
    %3 = vector.load %arg1[%c0_2, %c0_3, %c0_4] : memref<5x16x1536xf32, #tpu.memory_space<vmem>>, vector<1x16x1536xf32>
    %4 = vector.shape_cast %3 : vector<1x16x1536xf32> to vector<16x1536xf32>
    %cst_5 = arith.constant dense<0.000000e+00> : vector<24x1536xf32>
    %5 = tpu.matmul %2, %4, %cst_5 {dimension_numbers = #tpu.dot_dimension_numbers<[1], [0], [0], [1], [0, 0, 1, 1], [], []>} : vector<24x16xf32>, vector<16x1536xf32>, vector<24x1536xf32> -> vector<24x1536xf32>
    %6 = arith.addf %0, %5 : vector<24x1536xf32>
    %c0_6 = arith.constant 0 : index
    %c1 = arith.constant 1 : index
    %c0_7 = arith.constant 0 : index
    %7 = vector.load %arg0[%c0_6, %c1, %c0_7] : memref<2x16x16xf32, #tpu.memory_space<vmem>>, vector<2x12x16xf32>
    %8 = vector.shape_cast %7 : vector<2x12x16xf32> to vector<24x16xf32>
    %c1_8 = arith.constant 1 : index
    %c0_9 = arith.constant 0 : index
    %c0_10 = arith.constant 0 : index
    %9 = vector.load %arg1[%c1_8, %c0_9, %c0_10] : memref<5x16x1536xf32, #tpu.memory_space<vmem>>, vector<1x16x1536xf32>
    %10 = vector.shape_cast %9 : vector<1x16x1536xf32> to vector<16x1536xf32>
    %cst_11 = arith.constant dense<0.000000e+00> : vector<24x1536xf32>
    %11 = tpu.matmul %8, %10, %cst_11 {dimension_numbers = #tpu.dot_dimension_numbers<[1], [0], [0], [1], [0, 0, 1, 1], [], []>} : vector<24x16xf32>, vector<16x1536xf32>, vector<24x1536xf32> -> vector<24x1536xf32>
    %12 = arith.addf %6, %11 : vector<24x1536xf32>
    %c0_12 = arith.constant 0 : index
    %c2 = arith.constant 2 : index
    %c0_13 = arith.constant 0 : index
    %13 = vector.load %arg0[%c0_12, %c2, %c0_13] : memref<2x16x16xf32, #tpu.memory_space<vmem>>, vector<2x12x16xf32>
    %14 = vector.shape_cast %13 : vector<2x12x16xf32> to vector<24x16xf32>
    %c2_14 = arith.constant 2 : index
    %c0_15 = arith.constant 0 : index
    %c0_16 = arith.constant 0 : index
    %15 = vector.load %arg1[%c2_14, %c0_15, %c0_16] : memref<5x16x1536xf32, #tpu.memory_space<vmem>>, vector<1x16x1536xf32>
    %16 = vector.shape_cast %15 : vector<1x16x1536xf32> to vector<16x1536xf32>
    %cst_17 = arith.constant dense<0.000000e+00> : vector<24x1536xf32>
    %17 = tpu.matmul %14, %16, %cst_17 {dimension_numbers = #tpu.dot_dimension_numbers<[1], [0], [0], [1], [0, 0, 1, 1], [], []>} : vector<24x16xf32>, vector<16x1536xf32>, vector<24x1536xf32> -> vector<24x1536xf32>
    %18 = arith.addf %12, %17 : vector<24x1536xf32>
    %c0_18 = arith.constant 0 : index
    %c3 = arith.constant 3 : index
    %c0_19 = arith.constant 0 : index
    %19 = vector.load %arg0[%c0_18, %c3, %c0_19] : memref<2x16x16xf32, #tpu.memory_space<vmem>>, vector<2x12x16xf32>
    %20 = vector.shape_cast %19 : vector<2x12x16xf32> to vector<24x16xf32>
    %c3_20 = arith.constant 3 : index
    %c0_21 = arith.constant 0 : index
    %c0_22 = arith.constant 0 : index
    %21 = vector.load %arg1[%c3_20, %c0_21, %c0_22] : memref<5x16x1536xf32, #tpu.memory_space<vmem>>, vector<1x16x1536xf32>
    %22 = vector.shape_cast %21 : vector<1x16x1536xf32> to vector<16x1536xf32>
    %cst_23 = arith.constant dense<0.000000e+00> : vector<24x1536xf32>
    %23 = tpu.matmul %20, %22, %cst_23 {dimension_numbers = #tpu.dot_dimension_numbers<[1], [0], [0], [1], [0, 0, 1, 1], [], []>} : vector<24x16xf32>, vector<16x1536xf32>, vector<24x1536xf32> -> vector<24x1536xf32>
    %24 = arith.addf %18, %23 : vector<24x1536xf32>
    %c0_24 = arith.constant 0 : index
    %c4 = arith.constant 4 : index
    %c0_25 = arith.constant 0 : index
    %25 = vector.load %arg0[%c0_24, %c4, %c0_25] : memref<2x16x16xf32, #tpu.memory_space<vmem>>, vector<2x12x16xf32>
    %26 = vector.shape_cast %25 : vector<2x12x16xf32> to vector<24x16xf32>
    %c4_26 = arith.constant 4 : index
    %c0_27 = arith.constant 0 : index
    %c0_28 = arith.constant 0 : index
    %27 = vector.load %arg1[%c4_26, %c0_27, %c0_28] : memref<5x16x1536xf32, #tpu.memory_space<vmem>>, vector<1x16x1536xf32>
    %28 = vector.shape_cast %27 : vector<1x16x1536xf32> to vector<16x1536xf32>
    %cst_29 = arith.constant dense<0.000000e+00> : vector<24x1536xf32>
    %29 = tpu.matmul %26, %28, %cst_29 {dimension_numbers = #tpu.dot_dimension_numbers<[1], [0], [0], [1], [0, 0, 1, 1], [], []>} : vector<24x16xf32>, vector<16x1536xf32>, vector<24x1536xf32> -> vector<24x1536xf32>
    %30 = arith.addf %24, %29 : vector<24x1536xf32>
    %31 = vector.extract_strided_slice %30 {offsets = [0, 0], sizes = [24, 128], strides = [1, 1]} : vector<24x1536xf32> to vector<24x128xf32>
    %c0_30 = arith.constant 0 : index
    %c0_31 = arith.constant 0 : index
    %32 = vector.load %arg2[%c0_30, %c0_31] : memref<1x128xf32, #tpu.memory_space<vmem>>, vector<1x128xf32>
    %33 = vector.broadcast %32 : vector<1x128xf32> to vector<24x128xf32>
    %34 = arith.addf %31, %33 : vector<24x128xf32>
    %35 = vector.shape_cast %34 : vector<24x128xf32> to vector<2x12x128xf32>
    %c0_32 = arith.constant 0 : index
    %c0_33 = arith.constant 0 : index
    %c0_34 = arith.constant 0 : index
    %c0_35 = arith.constant 0 : index
    %36 = vector.load %arg6[%c0_32, %c0_33, %c0_34, %c0_35] : memref<2x12x12x128xf32, #tpu.memory_space<vmem>>, vector<2x12x1x128xf32>
    %37 = vector.shape_cast %36 : vector<2x12x1x128xf32> to vector<2x12x128xf32>
    %38 = vector.shape_cast %35 : vector<2x12x128xf32> to vector<2x12x1x128xf32>
    tpu.vector_store %arg6[%c0_32, %c0_33, %c0_34, %c0_35], %38 {strides = array<i32>} : memref<2x12x12x128xf32, #tpu.memory_space<vmem>>, vector<2x12x1x128xf32>,
    %39 = vector.extract_strided_slice %30 {offsets = [0, 128], sizes = [24, 128], strides = [1, 1]} : vector<24x1536xf32> to vector<24x128xf32>
    %c0_36 = arith.constant 0 : index
    %c0_37 = arith.constant 0 : index
    %40 = vector.load %arg2[%c0_36, %c0_37] : memref<1x128xf32, #tpu.memory_space<vmem>>, vector<1x128xf32>
    %41 = vector.broadcast %40 : vector<1x128xf32> to vector<24x128xf32>
    %42 = arith.addf %39, %41 : vector<24x128xf32>
    %43 = vector.shape_cast %42 : vector<24x128xf32> to vector<2x12x128xf32>
    %c0_38 = arith.constant 0 : index
    %c0_39 = arith.constant 0 : index
    %c1_40 = arith.constant 1 : index
    %c0_41 = arith.constant 0 : index
    %44 = vector.load %arg6[%c0_38, %c0_39, %c1_40, %c0_41] : memref<2x12x12x128xf32, #tpu.memory_space<vmem>>, vector<2x12x1x128xf32>
    %45 = vector.shape_cast %44 : vector<2x12x1x128xf32> to vector<2x12x128xf32>
    %46 = vector.shape_cast %43 : vector<2x12x128xf32> to vector<2x12x1x128xf32>
    tpu.vector_store %arg6[%c0_38, %c0_39, %c1_40, %c0_41], %46 {strides = array<i32>} : memref<2x12x12x128xf32, #tpu.memory_space<vmem>>, vector<2x12x1x128xf32>,
    %47 = vector.extract_strided_slice %30 {offsets = [0, 256], sizes = [24, 128], strides = [1, 1]} : vector<24x1536xf32> to vector<24x128xf32>
    %c0_42 = arith.constant 0 : index
    %c0_43 = arith.constant 0 : index
    %48 = vector.load %arg2[%c0_42, %c0_43] : memref<1x128xf32, #tpu.memory_space<vmem>>, vector<1x128xf32>
    %49 = vector.broadcast %48 : vector<1x128xf32> to vector<24x128xf32>
    %50 = arith.addf %47, %49 : vector<24x128xf32>
    %51 = vector.shape_cast %50 : vector<24x128xf32> to vector<2x12x128xf32>
    %c0_44 = arith.constant 0 : index
    %c0_45 = arith.constant 0 : index
    %c2_46 = arith.constant 2 : index
    %c0_47 = arith.constant 0 : index
    %52 = vector.load %arg6[%c0_44, %c0_45, %c2_46, %c0_47] : memref<2x12x12x128xf32, #tpu.memory_space<vmem>>, vector<2x12x1x128xf32>
    %53 = vector.shape_cast %52 : vector<2x12x1x128xf32> to vector<2x12x128xf32>
    %54 = vector.shape_cast %51 : vector<2x12x128xf32> to vector<2x12x1x128xf32>
    tpu.vector_store %arg6[%c0_44, %c0_45, %c2_46, %c0_47], %54 {strides = array<i32>} : memref<2x12x12x128xf32, #tpu.memory_space<vmem>>, vector<2x12x1x128xf32>,
    %55 = vector.extract_strided_slice %30 {offsets = [0, 384], sizes = [24, 128], strides = [1, 1]} : vector<24x1536xf32> to vector<24x128xf32>
    %c0_48 = arith.constant 0 : index
    %c0_49 = arith.constant 0 : index
    %56 = vector.load %arg2[%c0_48, %c0_49] : memref<1x128xf32, #tpu.memory_space<vmem>>, vector<1x128xf32>
    %57 = vector.broadcast %56 : vector<1x128xf32> to vector<24x128xf32>
    %58 = arith.addf %55, %57 : vector<24x128xf32>
    %59 = vector.shape_cast %58 : vector<24x128xf32> to vector<2x12x128xf32>
    %c0_50 = arith.constant 0 : index
    %c0_51 = arith.constant 0 : index
    %c3_52 = arith.constant 3 : index
    %c0_53 = arith.constant 0 : index
    %60 = vector.load %arg6[%c0_50, %c0_51, %c3_52, %c0_53] : memref<2x12x12x128xf32, #tpu.memory_space<vmem>>, vector<2x12x1x128xf32>
    %61 = vector.shape_cast %60 : vector<2x12x1x128xf32> to vector<2x12x128xf32>
    %62 = vector.shape_cast %59 : vector<2x12x128xf32> to vector<2x12x1x128xf32>
    tpu.vector_store %arg6[%c0_50, %c0_51, %c3_52, %c0_53], %62 {strides = array<i32>} : memref<2x12x12x128xf32, #tpu.memory_space<vmem>>, vector<2x12x1x128xf32>,
    %63 = vector.extract_strided_slice %30 {offsets = [0, 512], sizes = [24, 128], strides = [1, 1]} : vector<24x1536xf32> to vector<24x128xf32>
    %c0_54 = arith.constant 0 : index
    %c0_55 = arith.constant 0 : index
    %64 = vector.load %arg2[%c0_54, %c0_55] : memref<1x128xf32, #tpu.memory_space<vmem>>, vector<1x128xf32>
    %65 = vector.broadcast %64 : vector<1x128xf32> to vector<24x128xf32>
    %66 = arith.addf %63, %65 : vector<24x128xf32>
    %67 = vector.shape_cast %66 : vector<24x128xf32> to vector<2x12x128xf32>
    %c0_56 = arith.constant 0 : index
    %c0_57 = arith.constant 0 : index
    %c4_58 = arith.constant 4 : index
    %c0_59 = arith.constant 0 : index
    %68 = vector.load %arg6[%c0_56, %c0_57, %c4_58, %c0_59] : memref<2x12x12x128xf32, #tpu.memory_space<vmem>>, vector<2x12x1x128xf32>
    %69 = vector.shape_cast %68 : vector<2x12x1x128xf32> to vector<2x12x128xf32>
    %70 = vector.shape_cast %67 : vector<2x12x128xf32> to vector<2x12x1x128xf32>
    tpu.vector_store %arg6[%c0_56, %c0_57, %c4_58, %c0_59], %70 {strides = array<i32>} : memref<2x12x12x128xf32, #tpu.memory_space<vmem>>, vector<2x12x1x128xf32>,
    %71 = vector.extract_strided_slice %30 {offsets = [0, 640], sizes = [24, 128], strides = [1, 1]} : vector<24x1536xf32> to vector<24x128xf32>
    %c0_60 = arith.constant 0 : index
    %c0_61 = arith.constant 0 : index
    %72 = vector.load %arg2[%c0_60, %c0_61] : memref<1x128xf32, #tpu.memory_space<vmem>>, vector<1x128xf32>
    %73 = vector.broadcast %72 : vector<1x128xf32> to vector<24x128xf32>
    %74 = arith.addf %71, %73 : vector<24x128xf32>
    %75 = vector.shape_cast %74 : vector<24x128xf32> to vector<2x12x128xf32>
    %c0_62 = arith.constant 0 : index
    %c0_63 = arith.constant 0 : index
    %c5 = arith.constant 5 : index
    %c0_64 = arith.constant 0 : index
    %76 = vector.load %arg6[%c0_62, %c0_63, %c5, %c0_64] : memref<2x12x12x128xf32, #tpu.memory_space<vmem>>, vector<2x12x1x128xf32>
    %77 = vector.shape_cast %76 : vector<2x12x1x128xf32> to vector<2x12x128xf32>
    %78 = vector.shape_cast %75 : vector<2x12x128xf32> to vector<2x12x1x128xf32>
    tpu.vector_store %arg6[%c0_62, %c0_63, %c5, %c0_64], %78 {strides = array<i32>} : memref<2x12x12x128xf32, #tpu.memory_space<vmem>>, vector<2x12x1x128xf32>,
    %79 = vector.extract_strided_slice %30 {offsets = [0, 768], sizes = [24, 128], strides = [1, 1]} : vector<24x1536xf32> to vector<24x128xf32>
    %c0_65 = arith.constant 0 : index
    %c0_66 = arith.constant 0 : index
    %80 = vector.load %arg2[%c0_65, %c0_66] : memref<1x128xf32, #tpu.memory_space<vmem>>, vector<1x128xf32>
    %81 = vector.broadcast %80 : vector<1x128xf32> to vector<24x128xf32>
    %82 = arith.addf %79, %81 : vector<24x128xf32>
    %83 = vector.shape_cast %82 : vector<24x128xf32> to vector<2x12x128xf32>
    %c0_67 = arith.constant 0 : index
    %c0_68 = arith.constant 0 : index
    %c6 = arith.constant 6 : index
    %c0_69 = arith.constant 0 : index
    %84 = vector.load %arg6[%c0_67, %c0_68, %c6, %c0_69] : memref<2x12x12x128xf32, #tpu.memory_space<vmem>>, vector<2x12x1x128xf32>
    %85 = vector.shape_cast %84 : vector<2x12x1x128xf32> to vector<2x12x128xf32>
    %86 = vector.shape_cast %83 : vector<2x12x128xf32> to vector<2x12x1x128xf32>
    tpu.vector_store %arg6[%c0_67, %c0_68, %c6, %c0_69], %86 {strides = array<i32>} : memref<2x12x12x128xf32, #tpu.memory_space<vmem>>, vector<2x12x1x128xf32>,
    %87 = vector.extract_strided_slice %30 {offsets = [0, 896], sizes = [24, 128], strides = [1, 1]} : vector<24x1536xf32> to vector<24x128xf32>
    %c0_70 = arith.constant 0 : index
    %c0_71 = arith.constant 0 : index
    %88 = vector.load %arg2[%c0_70, %c0_71] : memref<1x128xf32, #tpu.memory_space<vmem>>, vector<1x128xf32>
    %89 = vector.broadcast %88 : vector<1x128xf32> to vector<24x128xf32>
    %90 = arith.addf %87, %89 : vector<24x128xf32>
    %91 = vector.shape_cast %90 : vector<24x128xf32> to vector<2x12x128xf32>
    %c0_72 = arith.constant 0 : index
    %c0_73 = arith.constant 0 : index
    %c7 = arith.constant 7 : index
    %c0_74 = arith.constant 0 : index
    %92 = vector.load %arg6[%c0_72, %c0_73, %c7, %c0_74] : memref<2x12x12x128xf32, #tpu.memory_space<vmem>>, vector<2x12x1x128xf32>
    %93 = vector.shape_cast %92 : vector<2x12x1x128xf32> to vector<2x12x128xf32>
    %94 = vector.shape_cast %91 : vector<2x12x128xf32> to vector<2x12x1x128xf32>
    tpu.vector_store %arg6[%c0_72, %c0_73, %c7, %c0_74], %94 {strides = array<i32>} : memref<2x12x12x128xf32, #tpu.memory_space<vmem>>, vector<2x12x1x128xf32>,
    %95 = vector.extract_strided_slice %30 {offsets = [0, 1024], sizes = [24, 128], strides = [1, 1]} : vector<24x1536xf32> to vector<24x128xf32>
    %c0_75 = arith.constant 0 : index
    %c0_76 = arith.constant 0 : index
    %96 = vector.load %arg2[%c0_75, %c0_76] : memref<1x128xf32, #tpu.memory_space<vmem>>, vector<1x128xf32>
    %97 = vector.broadcast %96 : vector<1x128xf32> to vector<24x128xf32>
    %98 = arith.addf %95, %97 : vector<24x128xf32>
    %99 = vector.shape_cast %98 : vector<24x128xf32> to vector<2x12x128xf32>
    %c0_77 = arith.constant 0 : index
    %c0_78 = arith.constant 0 : index
    %c8 = arith.constant 8 : index
    %c0_79 = arith.constant 0 : index
    %100 = vector.load %arg6[%c0_77, %c0_78, %c8, %c0_79] : memref<2x12x12x128xf32, #tpu.memory_space<vmem>>, vector<2x12x1x128xf32>
    %101 = vector.shape_cast %100 : vector<2x12x1x128xf32> to vector<2x12x128xf32>
    %102 = vector.shape_cast %99 : vector<2x12x128xf32> to vector<2x12x1x128xf32>
    tpu.vector_store %arg6[%c0_77, %c0_78, %c8, %c0_79], %102 {strides = array<i32>} : memref<2x12x12x128xf32, #tpu.memory_space<vmem>>, vector<2x12x1x128xf32>,
    %103 = vector.extract_strided_slice %30 {offsets = [0, 1152], sizes = [24, 128], strides = [1, 1]} : vector<24x1536xf32> to vector<24x128xf32>
    %c0_80 = arith.constant 0 : index
    %c0_81 = arith.constant 0 : index
    %104 = vector.load %arg2[%c0_80, %c0_81] : memref<1x128xf32, #tpu.memory_space<vmem>>, vector<1x128xf32>
    %105 = vector.broadcast %104 : vector<1x128xf32> to vector<24x128xf32>
    %106 = arith.addf %103, %105 : vector<24x128xf32>
    %107 = vector.shape_cast %106 : vector<24x128xf32> to vector<2x12x128xf32>
    %c0_82 = arith.constant 0 : index
    %c0_83 = arith.constant 0 : index
    %c9 = arith.constant 9 : index
    %c0_84 = arith.constant 0 : index
    %108 = vector.load %arg6[%c0_82, %c0_83, %c9, %c0_84] : memref<2x12x12x128xf32, #tpu.memory_space<vmem>>, vector<2x12x1x128xf32>
    %109 = vector.shape_cast %108 : vector<2x12x1x128xf32> to vector<2x12x128xf32>
    %110 = vector.shape_cast %107 : vector<2x12x128xf32> to vector<2x12x1x128xf32>
    tpu.vector_store %arg6[%c0_82, %c0_83, %c9, %c0_84], %110 {strides = array<i32>} : memref<2x12x12x128xf32, #tpu.memory_space<vmem>>, vector<2x12x1x128xf32>,
    %111 = vector.extract_strided_slice %30 {offsets = [0, 1280], sizes = [24, 128], strides = [1, 1]} : vector<24x1536xf32> to vector<24x128xf32>
    %c0_85 = arith.constant 0 : index
    %c0_86 = arith.constant 0 : index
    %112 = vector.load %arg2[%c0_85, %c0_86] : memref<1x128xf32, #tpu.memory_space<vmem>>, vector<1x128xf32>
    %113 = vector.broadcast %112 : vector<1x128xf32> to vector<24x128xf32>
    %114 = arith.addf %111, %113 : vector<24x128xf32>
    %115 = vector.shape_cast %114 : vector<24x128xf32> to vector<2x12x128xf32>
    %c0_87 = arith.constant 0 : index
    %c0_88 = arith.constant 0 : index
    %c10 = arith.constant 10 : index
    %c0_89 = arith.constant 0 : index
    %116 = vector.load %arg6[%c0_87, %c0_88, %c10, %c0_89] : memref<2x12x12x128xf32, #tpu.memory_space<vmem>>, vector<2x12x1x128xf32>
    %117 = vector.shape_cast %116 : vector<2x12x1x128xf32> to vector<2x12x128xf32>
    %118 = vector.shape_cast %115 : vector<2x12x128xf32> to vector<2x12x1x128xf32>
    tpu.vector_store %arg6[%c0_87, %c0_88, %c10, %c0_89], %118 {strides = array<i32>} : memref<2x12x12x128xf32, #tpu.memory_space<vmem>>, vector<2x12x1x128xf32>,
    %119 = vector.extract_strided_slice %30 {offsets = [0, 1408], sizes = [24, 128], strides = [1, 1]} : vector<24x1536xf32> to vector<24x128xf32>
    %c0_90 = arith.constant 0 : index
    %c0_91 = arith.constant 0 : index
    %120 = vector.load %arg2[%c0_90, %c0_91] : memref<1x128xf32, #tpu.memory_space<vmem>>, vector<1x128xf32>
    %121 = vector.broadcast %120 : vector<1x128xf32> to vector<24x128xf32>
    %122 = arith.addf %119, %121 : vector<24x128xf32>
    %123 = vector.shape_cast %122 : vector<24x128xf32> to vector<2x12x128xf32>
    %c0_92 = arith.constant 0 : index
    %c0_93 = arith.constant 0 : index
    %c11 = arith.constant 11 : index
    %c0_94 = arith.constant 0 : index
    %124 = vector.load %arg6[%c0_92, %c0_93, %c11, %c0_94] : memref<2x12x12x128xf32, #tpu.memory_space<vmem>>, vector<2x12x1x128xf32>
    %125 = vector.shape_cast %124 : vector<2x12x1x128xf32> to vector<2x12x128xf32>
    %126 = vector.shape_cast %123 : vector<2x12x128xf32> to vector<2x12x1x128xf32>
    tpu.vector_store %arg6[%c0_92, %c0_93, %c11, %c0_94], %126 {strides = array<i32>} : memref<2x12x12x128xf32, #tpu.memory_space<vmem>>, vector<2x12x1x128xf32>,
    %c0_95 = arith.constant 0 : index
    %c0_96 = arith.constant 0 : index
    %c0_97 = arith.constant 0 : index
    %c0_98 = arith.constant 0 : index
    %127 = vector.load %arg6[%c0_95, %c0_96, %c0_97, %c0_98] : memref<2x12x12x128xf32, #tpu.memory_space<vmem>>, vector<2x8x8x128xf32>
    %128 = vector.shape_cast %127 : vector<2x8x8x128xf32> to vector<128x128xf32>
    %c0_99 = arith.constant 0 : index
    %c0_100 = arith.constant 0 : index
    %129 = vector.load %arg7[%c0_99, %c0_100] : memref<128x3200xf32, #tpu.memory_space<vmem>>, vector<128x128xf32>
    tpu.vector_store %arg7[%c0_99, %c0_100], %128 {strides = array<i32>} : memref<128x3200xf32, #tpu.memory_space<vmem>>, vector<128x128xf32>,
    %c0_101 = arith.constant 0 : index
    %c0_102 = arith.constant 0 : index
    %c1_103 = arith.constant 1 : index
    %c0_104 = arith.constant 0 : index
    %130 = vector.load %arg6[%c0_101, %c0_102, %c1_103, %c0_104] : memref<2x12x12x128xf32, #tpu.memory_space<vmem>>, vector<2x8x8x128xf32>
    %131 = vector.shape_cast %130 : vector<2x8x8x128xf32> to vector<128x128xf32>
    %c0_105 = arith.constant 0 : index
    %c128 = arith.constant 128 : index
    %132 = vector.load %arg7[%c0_105, %c128] : memref<128x3200xf32, #tpu.memory_space<vmem>>, vector<128x128xf32>
    tpu.vector_store %arg7[%c0_105, %c128], %131 {strides = array<i32>} : memref<128x3200xf32, #tpu.memory_space<vmem>>, vector<128x128xf32>,
    %c0_106 = arith.constant 0 : index
    %c0_107 = arith.constant 0 : index
    %c2_108 = arith.constant 2 : index
    %c0_109 = arith.constant 0 : index
    %133 = vector.load %arg6[%c0_106, %c0_107, %c2_108, %c0_109] : memref<2x12x12x128xf32, #tpu.memory_space<vmem>>, vector<2x8x8x128xf32>
    %134 = vector.shape_cast %133 : vector<2x8x8x128xf32> to vector<128x128xf32>
    %c0_110 = arith.constant 0 : index
    %c256 = arith.constant 256 : index
    %135 = vector.load %arg7[%c0_110, %c256] : memref<128x3200xf32, #tpu.memory_space<vmem>>, vector<128x128xf32>
    tpu.vector_store %arg7[%c0_110, %c256], %134 {strides = array<i32>} : memref<128x3200xf32, #tpu.memory_space<vmem>>, vector<128x128xf32>,
    %c0_111 = arith.constant 0 : index
    %c0_112 = arith.constant 0 : index
    %c3_113 = arith.constant 3 : index
    %c0_114 = arith.constant 0 : index
    %136 = vector.load %arg6[%c0_111, %c0_112, %c3_113, %c0_114] : memref<2x12x12x128xf32, #tpu.memory_space<vmem>>, vector<2x8x8x128xf32>
    %137 = vector.shape_cast %136 : vector<2x8x8x128xf32> to vector<128x128xf32>
    %c0_115 = arith.constant 0 : index
    %c384 = arith.constant 384 : index
    %138 = vector.load %arg7[%c0_115, %c384] : memref<128x3200xf32, #tpu.memory_space<vmem>>, vector<128x128xf32>
    tpu.vector_store %arg7[%c0_115, %c384], %137 {strides = array<i32>} : memref<128x3200xf32, #tpu.memory_space<vmem>>, vector<128x128xf32>,
    %c0_116 = arith.constant 0 : index
    %c0_117 = arith.constant 0 : index
    %c4_118 = arith.constant 4 : index
    %c0_119 = arith.constant 0 : index
    %139 = vector.load %arg6[%c0_116, %c0_117, %c4_118, %c0_119] : memref<2x12x12x128xf32, #tpu.memory_space<vmem>>, vector<2x8x8x128xf32>
    %140 = vector.shape_cast %139 : vector<2x8x8x128xf32> to vector<128x128xf32>
    %c0_120 = arith.constant 0 : index
    %c512 = arith.constant 512 : index
    %141 = vector.load %arg7[%c0_120, %c512] : memref<128x3200xf32, #tpu.memory_space<vmem>>, vector<128x128xf32>
    tpu.vector_store %arg7[%c0_120, %c512], %140 {strides = array<i32>} : memref<128x3200xf32, #tpu.memory_space<vmem>>, vector<128x128xf32>,
    %c0_121 = arith.constant 0 : index
    %c1_122 = arith.constant 1 : index
    %c0_123 = arith.constant 0 : index
    %c0_124 = arith.constant 0 : index
    %142 = vector.load %arg6[%c0_121, %c1_122, %c0_123, %c0_124] : memref<2x12x12x128xf32, #tpu.memory_space<vmem>>, vector<2x8x8x128xf32>
    %143 = vector.shape_cast %142 : vector<2x8x8x128xf32> to vector<128x128xf32>
    %c0_125 = arith.constant 0 : index
    %c640 = arith.constant 640 : index
    %144 = vector.load %arg7[%c0_125, %c640] : memref<128x3200xf32, #tpu.memory_space<vmem>>, vector<128x128xf32>
    tpu.vector_store %arg7[%c0_125, %c640], %143 {strides = array<i32>} : memref<128x3200xf32, #tpu.memory_space<vmem>>, vector<128x128xf32>,
    %c0_126 = arith.constant 0 : index
    %c1_127 = arith.constant 1 : index
    %c1_128 = arith.constant 1 : index
    %c0_129 = arith.constant 0 : index
    %145 = vector.load %arg6[%c0_126, %c1_127, %c1_128, %c0_129] : memref<2x12x12x128xf32, #tpu.memory_space<vmem>>, vector<2x8x8x128xf32>
    %146 = vector.shape_cast %145 : vector<2x8x8x128xf32> to vector<128x128xf32>
    %c0_130 = arith.constant 0 : index
    %c768 = arith.constant 768 : index
    %147 = vector.load %arg7[%c0_130, %c768] : memref<128x3200xf32, #tpu.memory_space<vmem>>, vector<128x128xf32>
    tpu.vector_store %arg7[%c0_130, %c768], %146 {strides = array<i32>} : memref<128x3200xf32, #tpu.memory_space<vmem>>, vector<128x128xf32>,
    %c0_131 = arith.constant 0 : index
    %c1_132 = arith.constant 1 : index
    %c2_133 = arith.constant 2 : index
    %c0_134 = arith.constant 0 : index
    %148 = vector.load %arg6[%c0_131, %c1_132, %c2_133, %c0_134] : memref<2x12x12x128xf32, #tpu.memory_space<vmem>>, vector<2x8x8x128xf32>
    %149 = vector.shape_cast %148 : vector<2x8x8x128xf32> to vector<128x128xf32>
    %c0_135 = arith.constant 0 : index
    %c896 = arith.constant 896 : index
    %150 = vector.load %arg7[%c0_135, %c896] : memref<128x3200xf32, #tpu.memory_space<vmem>>, vector<128x128xf32>
    tpu.vector_store %arg7[%c0_135, %c896], %149 {strides = array<i32>} : memref<128x3200xf32, #tpu.memory_space<vmem>>, vector<128x128xf32>,
    %c0_136 = arith.constant 0 : index
    %c1_137 = arith.constant 1 : index
    %c3_138 = arith.constant 3 : index
    %c0_139 = arith.constant 0 : index
    %151 = vector.load %arg6[%c0_136, %c1_137, %c3_138, %c0_139] : memref<2x12x12x128xf32, #tpu.memory_space<vmem>>, vector<2x8x8x128xf32>
    %152 = vector.shape_cast %151 : vector<2x8x8x128xf32> to vector<128x128xf32>
    %c0_140 = arith.constant 0 : index
    %c1024 = arith.constant 1024 : index
    %153 = vector.load %arg7[%c0_140, %c1024] : memref<128x3200xf32, #tpu.memory_space<vmem>>, vector<128x128xf32>
    tpu.vector_store %arg7[%c0_140, %c1024], %152 {strides = array<i32>} : memref<128x3200xf32, #tpu.memory_space<vmem>>, vector<128x128xf32>,
    %c0_141 = arith.constant 0 : index
    %c1_142 = arith.constant 1 : index
    %c4_143 = arith.constant 4 : index
    %c0_144 = arith.constant 0 : index
    %154 = vector.load %arg6[%c0_141, %c1_142, %c4_143, %c0_144] : memref<2x12x12x128xf32, #tpu.memory_space<vmem>>, vector<2x8x8x128xf32>
    %155 = vector.shape_cast %154 : vector<2x8x8x128xf32> to vector<128x128xf32>
    %c0_145 = arith.constant 0 : index
    %c1152 = arith.constant 1152 : index
    %156 = vector.load %arg7[%c0_145, %c1152] : memref<128x3200xf32, #tpu.memory_space<vmem>>, vector<128x128xf32>
    tpu.vector_store %arg7[%c0_145, %c1152], %155 {strides = array<i32>} : memref<128x3200xf32, #tpu.memory_space<vmem>>, vector<128x128xf32>,
    %c0_146 = arith.constant 0 : index
    %c2_147 = arith.constant 2 : index
    %c0_148 = arith.constant 0 : index
    %c0_149 = arith.constant 0 : index
    %157 = vector.load %arg6[%c0_146, %c2_147, %c0_148, %c0_149] : memref<2x12x12x128xf32, #tpu.memory_space<vmem>>, vector<2x8x8x128xf32>
    %158 = vector.shape_cast %157 : vector<2x8x8x128xf32> to vector<128x128xf32>
    %c0_150 = arith.constant 0 : index
    %c1280 = arith.constant 1280 : index
    %159 = vector.load %arg7[%c0_150, %c1280] : memref<128x3200xf32, #tpu.memory_space<vmem>>, vector<128x128xf32>
    tpu.vector_store %arg7[%c0_150, %c1280], %158 {strides = array<i32>} : memref<128x3200xf32, #tpu.memory_space<vmem>>, vector<128x128xf32>,
    %c0_151 = arith.constant 0 : index
    %c2_152 = arith.constant 2 : index
    %c1_153 = arith.constant 1 : index
    %c0_154 = arith.constant 0 : index
    %160 = vector.load %arg6[%c0_151, %c2_152, %c1_153, %c0_154] : memref<2x12x12x128xf32, #tpu.memory_space<vmem>>, vector<2x8x8x128xf32>
    %161 = vector.shape_cast %160 : vector<2x8x8x128xf32> to vector<128x128xf32>
    %c0_155 = arith.constant 0 : index
    %c1408 = arith.constant 1408 : index
    %162 = vector.load %arg7[%c0_155, %c1408] : memref<128x3200xf32, #tpu.memory_space<vmem>>, vector<128x128xf32>
    tpu.vector_store %arg7[%c0_155, %c1408], %161 {strides = array<i32>} : memref<128x3200xf32, #tpu.memory_space<vmem>>, vector<128x128xf32>,
    %c0_156 = arith.constant 0 : index
    %c2_157 = arith.constant 2 : index
    %c2_158 = arith.constant 2 : index
    %c0_159 = arith.constant 0 : index
    %163 = vector.load %arg6[%c0_156, %c2_157, %c2_158, %c0_159] : memref<2x12x12x128xf32, #tpu.memory_space<vmem>>, vector<2x8x8x128xf32>
    %164 = vector.shape_cast %163 : vector<2x8x8x128xf32> to vector<128x128xf32>
    %c0_160 = arith.constant 0 : index
    %c1536 = arith.constant 1536 : index
    %165 = vector.load %arg7[%c0_160, %c1536] : memref<128x3200xf32, #tpu.memory_space<vmem>>, vector<128x128xf32>
    tpu.vector_store %arg7[%c0_160, %c1536], %164 {strides = array<i32>} : memref<128x3200xf32, #tpu.memory_space<vmem>>, vector<128x128xf32>,
    %c0_161 = arith.constant 0 : index
    %c2_162 = arith.constant 2 : index
    %c3_163 = arith.constant 3 : index
    %c0_164 = arith.constant 0 : index
    %166 = vector.load %arg6[%c0_161, %c2_162, %c3_163, %c0_164] : memref<2x12x12x128xf32, #tpu.memory_space<vmem>>, vector<2x8x8x128xf32>
    %167 = vector.shape_cast %166 : vector<2x8x8x128xf32> to vector<128x128xf32>
    %c0_165 = arith.constant 0 : index
    %c1664 = arith.constant 1664 : index
    %168 = vector.load %arg7[%c0_165, %c1664] : memref<128x3200xf32, #tpu.memory_space<vmem>>, vector<128x128xf32>
    tpu.vector_store %arg7[%c0_165, %c1664], %167 {strides = array<i32>} : memref<128x3200xf32, #tpu.memory_space<vmem>>, vector<128x128xf32>,
    %c0_166 = arith.constant 0 : index
    %c2_167 = arith.constant 2 : index
    %c4_168 = arith.constant 4 : index
    %c0_169 = arith.constant 0 : index
    %169 = vector.load %arg6[%c0_166, %c2_167, %c4_168, %c0_169] : memref<2x12x12x128xf32, #tpu.memory_space<vmem>>, vector<2x8x8x128xf32>
    %170 = vector.shape_cast %169 : vector<2x8x8x128xf32> to vector<128x128xf32>
    %c0_170 = arith.constant 0 : index
    %c1792 = arith.constant 1792 : index
    %171 = vector.load %arg7[%c0_170, %c1792] : memref<128x3200xf32, #tpu.memory_space<vmem>>, vector<128x128xf32>
    tpu.vector_store %arg7[%c0_170, %c1792], %170 {strides = array<i32>} : memref<128x3200xf32, #tpu.memory_space<vmem>>, vector<128x128xf32>,
    %c0_171 = arith.constant 0 : index
    %c3_172 = arith.constant 3 : index
    %c0_173 = arith.constant 0 : index
    %c0_174 = arith.constant 0 : index
    %172 = vector.load %arg6[%c0_171, %c3_172, %c0_173, %c0_174] : memref<2x12x12x128xf32, #tpu.memory_space<vmem>>, vector<2x8x8x128xf32>
    %173 = vector.shape_cast %172 : vector<2x8x8x128xf32> to vector<128x128xf32>
    %c0_175 = arith.constant 0 : index
    %c1920 = arith.constant 1920 : index
    %174 = vector.load %arg7[%c0_175, %c1920] : memref<128x3200xf32, #tpu.memory_space<vmem>>, vector<128x128xf32>
    tpu.vector_store %arg7[%c0_175, %c1920], %173 {strides = array<i32>} : memref<128x3200xf32, #tpu.memory_space<vmem>>, vector<128x128xf32>,
    %c0_176 = arith.constant 0 : index
    %c3_177 = arith.constant 3 : index
    %c1_178 = arith.constant 1 : index
    %c0_179 = arith.constant 0 : index
    %175 = vector.load %arg6[%c0_176, %c3_177, %c1_178, %c0_179] : memref<2x12x12x128xf32, #tpu.memory_space<vmem>>, vector<2x8x8x128xf32>
    %176 = vector.shape_cast %175 : vector<2x8x8x128xf32> to vector<128x128xf32>
    %c0_180 = arith.constant 0 : index
    %c2048 = arith.constant 2048 : index
    %177 = vector.load %arg7[%c0_180, %c2048] : memref<128x3200xf32, #tpu.memory_space<vmem>>, vector<128x128xf32>
    tpu.vector_store %arg7[%c0_180, %c2048], %176 {strides = array<i32>} : memref<128x3200xf32, #tpu.memory_space<vmem>>, vector<128x128xf32>,
    %c0_181 = arith.constant 0 : index
    %c3_182 = arith.constant 3 : index
    %c2_183 = arith.constant 2 : index
    %c0_184 = arith.constant 0 : index
    %178 = vector.load %arg6[%c0_181, %c3_182, %c2_183, %c0_184] : memref<2x12x12x128xf32, #tpu.memory_space<vmem>>, vector<2x8x8x128xf32>
    %179 = vector.shape_cast %178 : vector<2x8x8x128xf32> to vector<128x128xf32>
    %c0_185 = arith.constant 0 : index
    %c2176 = arith.constant 2176 : index
    %180 = vector.load %arg7[%c0_185, %c2176] : memref<128x3200xf32, #tpu.memory_space<vmem>>, vector<128x128xf32>
    tpu.vector_store %arg7[%c0_185, %c2176], %179 {strides = array<i32>} : memref<128x3200xf32, #tpu.memory_space<vmem>>, vector<128x128xf32>,
    %c0_186 = arith.constant 0 : index
    %c3_187 = arith.constant 3 : index
    %c3_188 = arith.constant 3 : index
    %c0_189 = arith.constant 0 : index
    %181 = vector.load %arg6[%c0_186, %c3_187, %c3_188, %c0_189] : memref<2x12x12x128xf32, #tpu.memory_space<vmem>>, vector<2x8x8x128xf32>
    %182 = vector.shape_cast %181 : vector<2x8x8x128xf32> to vector<128x128xf32>
    %c0_190 = arith.constant 0 : index
    %c2304 = arith.constant 2304 : index
    %183 = vector.load %arg7[%c0_190, %c2304] : memref<128x3200xf32, #tpu.memory_space<vmem>>, vector<128x128xf32>
    tpu.vector_store %arg7[%c0_190, %c2304], %182 {strides = array<i32>} : memref<128x3200xf32, #tpu.memory_space<vmem>>, vector<128x128xf32>,
    %c0_191 = arith.constant 0 : index
    %c3_192 = arith.constant 3 : index
    %c4_193 = arith.constant 4 : index
    %c0_194 = arith.constant 0 : index
    %184 = vector.load %arg6[%c0_191, %c3_192, %c4_193, %c0_194] : memref<2x12x12x128xf32, #tpu.memory_space<vmem>>, vector<2x8x8x128xf32>
    %185 = vector.shape_cast %184 : vector<2x8x8x128xf32> to vector<128x128xf32>
    %c0_195 = arith.constant 0 : index
    %c2432 = arith.constant 2432 : index
    %186 = vector.load %arg7[%c0_195, %c2432] : memref<128x3200xf32, #tpu.memory_space<vmem>>, vector<128x128xf32>
    tpu.vector_store %arg7[%c0_195, %c2432], %185 {strides = array<i32>} : memref<128x3200xf32, #tpu.memory_space<vmem>>, vector<128x128xf32>,
    %c0_196 = arith.constant 0 : index
    %c4_197 = arith.constant 4 : index
    %c0_198 = arith.constant 0 : index
    %c0_199 = arith.constant 0 : index
    %187 = vector.load %arg6[%c0_196, %c4_197, %c0_198, %c0_199] : memref<2x12x12x128xf32, #tpu.memory_space<vmem>>, vector<2x8x8x128xf32>
    %188 = vector.shape_cast %187 : vector<2x8x8x128xf32> to vector<128x128xf32>
    %c0_200 = arith.constant 0 : index
    %c2560 = arith.constant 2560 : index
    %189 = vector.load %arg7[%c0_200, %c2560] : memref<128x3200xf32, #tpu.memory_space<vmem>>, vector<128x128xf32>
    tpu.vector_store %arg7[%c0_200, %c2560], %188 {strides = array<i32>} : memref<128x3200xf32, #tpu.memory_space<vmem>>, vector<128x128xf32>,
    %c0_201 = arith.constant 0 : index
    %c4_202 = arith.constant 4 : index
    %c1_203 = arith.constant 1 : index
    %c0_204 = arith.constant 0 : index
    %190 = vector.load %arg6[%c0_201, %c4_202, %c1_203, %c0_204] : memref<2x12x12x128xf32, #tpu.memory_space<vmem>>, vector<2x8x8x128xf32>
    %191 = vector.shape_cast %190 : vector<2x8x8x128xf32> to vector<128x128xf32>
    %c0_205 = arith.constant 0 : index
    %c2688 = arith.constant 2688 : index
    %192 = vector.load %arg7[%c0_205, %c2688] : memref<128x3200xf32, #tpu.memory_space<vmem>>, vector<128x128xf32>
    tpu.vector_store %arg7[%c0_205, %c2688], %191 {strides = array<i32>} : memref<128x3200xf32, #tpu.memory_space<vmem>>, vector<128x128xf32>,
    %c0_206 = arith.constant 0 : index
    %c4_207 = arith.constant 4 : index
    %c2_208 = arith.constant 2 : index
    %c0_209 = arith.constant 0 : index
    %193 = vector.load %arg6[%c0_206, %c4_207, %c2_208, %c0_209] : memref<2x12x12x128xf32, #tpu.memory_space<vmem>>, vector<2x8x8x128xf32>
    %194 = vector.shape_cast %193 : vector<2x8x8x128xf32> to vector<128x128xf32>
    %c0_210 = arith.constant 0 : index
    %c2816 = arith.constant 2816 : index
    %195 = vector.load %arg7[%c0_210, %c2816] : memref<128x3200xf32, #tpu.memory_space<vmem>>, vector<128x128xf32>
    tpu.vector_store %arg7[%c0_210, %c2816], %194 {strides = array<i32>} : memref<128x3200xf32, #tpu.memory_space<vmem>>, vector<128x128xf32>,
    %c0_211 = arith.constant 0 : index
    %c4_212 = arith.constant 4 : index
    %c3_213 = arith.constant 3 : index
    %c0_214 = arith.constant 0 : index
    %196 = vector.load %arg6[%c0_211, %c4_212, %c3_213, %c0_214] : memref<2x12x12x128xf32, #tpu.memory_space<vmem>>, vector<2x8x8x128xf32>
    %197 = vector.shape_cast %196 : vector<2x8x8x128xf32> to vector<128x128xf32>
    %c0_215 = arith.constant 0 : index
    %c2944 = arith.constant 2944 : index
    %198 = vector.load %arg7[%c0_215, %c2944] : memref<128x3200xf32, #tpu.memory_space<vmem>>, vector<128x128xf32>
    tpu.vector_store %arg7[%c0_215, %c2944], %197 {strides = array<i32>} : memref<128x3200xf32, #tpu.memory_space<vmem>>, vector<128x128xf32>,
    %c0_216 = arith.constant 0 : index
    %c4_217 = arith.constant 4 : index
    %c4_218 = arith.constant 4 : index
    %c0_219 = arith.constant 0 : index
    %199 = vector.load %arg6[%c0_216, %c4_217, %c4_218, %c0_219] : memref<2x12x12x128xf32, #tpu.memory_space<vmem>>, vector<2x8x8x128xf32>
    %200 = vector.shape_cast %199 : vector<2x8x8x128xf32> to vector<128x128xf32>
    %c0_220 = arith.constant 0 : index
    %c3072 = arith.constant 3072 : index
    %201 = vector.load %arg7[%c0_220, %c3072] : memref<128x3200xf32, #tpu.memory_space<vmem>>, vector<128x128xf32>
    tpu.vector_store %arg7[%c0_220, %c3072], %200 {strides = array<i32>} : memref<128x3200xf32, #tpu.memory_space<vmem>>, vector<128x128xf32>,
    %c0_221 = arith.constant 0 : index
    %c0_222 = arith.constant 0 : index
    %202 = vector.load %arg7[%c0_221, %c0_222] : memref<128x3200xf32, #tpu.memory_space<vmem>>, vector<128x3200xf32>
    %c0_223 = arith.constant 0 : index
    %c0_224 = arith.constant 0 : index
    %203 = vector.load %arg3[%c0_223, %c0_224] : memref<3200x128xf32, #tpu.memory_space<vmem>>, vector<3200x128xf32>
    %cst_225 = arith.constant dense<0.000000e+00> : vector<128x128xf32>
    %204 = tpu.matmul %202, %203, %cst_225 {dimension_numbers = #tpu.dot_dimension_numbers<[1], [0], [0], [1], [0, 0, 1, 1], [], []>} : vector<128x3200xf32>, vector<3200x128xf32>, vector<128x128xf32> -> vector<128x128xf32>
    %c0_226 = arith.constant 0 : index
    %c0_227 = arith.constant 0 : index
    %205 = vector.load %arg4[%c0_226, %c0_227] : memref<1x128xf32, #tpu.memory_space<vmem>>, vector<1x128xf32>
    %206 = vector.broadcast %205 : vector<1x128xf32> to vector<128x128xf32>
    %207 = arith.addf %204, %206 : vector<128x128xf32>
    %c0_228 = arith.constant 0 : index
    %c0_229 = arith.constant 0 : index
    %208 = vector.load %arg5[%c0_228, %c0_229] : memref<128x128xf32, #tpu.memory_space<vmem>>, vector<128x128xf32>
    tpu.vector_store %arg5[%c0_228, %c0_229], %207 {strides = array<i32>} : memref<128x128xf32, #tpu.memory_space<vmem>>, vector<128x128xf32>,
    return
  }
}

</mosaic_0001>

<bundles_post_ra>
// kernel: tpu_custom_call.1
= control target key start
LH: loop header
LB: loop body
LE: loop exit
PB: predicated region body
PF: predicated region fallthrough
CT: control target
= control target key end

     0   :  { %10 = vsyncpa [#allocation5], 0  ;;  %s12699_s0 = inlined_call_operand.hbm [shape: f32[2,16,16], index: 0, kind: input, shape index: {}]   ;;  %s12700_s1 = inlined_call_operand.hbm [shape: f32[5,16,1536], index: 1, kind: input, shape index: {}]   ;;  %s12701_s2 = inlined_call_operand.hbm [shape: f32[1,128], index: 2, kind: input, shape index: {}]   ;;  %s12702_s3 = inlined_call_operand.hbm [shape: f32[3200,128], index: 3, kind: input, shape index: {}]   ;;  %s12703_s4 = inlined_call_operand.hbm [shape: f32[1,128], index: 4, kind: input, shape index: {}]   ;;  %s12704_s5 = inlined_call_operand.hbm [shape: f32[128,128], index: 5, kind: output, shape index: {}]  }
   0x1   :  { %11 = vsyncpa [#allocation8], 0 }
   0x2   :  { %12 = vsyncpa [#allocation11], 0 }
   0x3   :  { %13 = vsyncpa [#allocation6], 0  ;;  %s11106_s18 = smov [#allocation7]   ;;  %s10966_s22 = scalar_lea.hbm %s12700_s1, 15360 }
   0x4   :  { %s31_s19 = sshll.u32 %s11106_s18, 4  ;;  %p10967_p0 = scmp.ne.s32.totalorder %s12700_s1, %s10966_s22  ;;  %s32_s19 = int_to_ptr.vmem [resolvable:$true] %s31_s19 }
   0x5   :  { %p10970_p1 = scmp.lt.u32.totalorder %s10966_s22, %s12700_s1 }
   0x7   :  { %p10972_p2 = pnand %p10970_p1, %p10967_p0 }
   0x9   :  { %10975 = shalt.err (!%p10972_p2)
}
   0xa   :  { %s10976_s27 = scalar_lea.vmem %s32_s19, 15360  ;;  %p10981_p4 = scmp.lt.s32.totalorder %s32_s19, %s32_s19 }
   0xb   :  { %p10977_p3 = scmp.ne.s32.totalorder %s32_s19, %s10976_s27  ;;  %p10982_p5 = scmp.lt.s32.totalorder %s10976_s27, %s10976_s27 }
   0xd   :  { %p10983_p6 = por %p10982_p5, %p10981_p4 }
   0xf   :  { %p10984_p7 = pnand %p10983_p6, %p10977_p3 }
  0x11   :  { %10987 = shalt.err (!%p10984_p7)
}
  0x12   :  { %s11107_s28 = smov 1536   ;;  %s11108_s29 = smov 96  }
  0x13   :  { %37 = dma.hbm_to_vmem [thread:$0]  %s12700_s1, 15360, %s32_s19, [#allocation8], %s11107_s28, %s11107_s28, %s11108_s29  }
  0x14   :  { %s11109_s7 = smov [#allocation10]   ;;  %s11110_s9 = smov [#allocation4]  }
  0x15   :  { %s53_s8 = sshll.u32 %s11109_s7, 4  ;;  %s19_s10 = sshll.u32 %s11110_s9, 4  ;;  %s54_s8 = int_to_ptr.vmem [resolvable:$true] %s53_s8  ;;  %s20_s10 = int_to_ptr.vmem [resolvable:$true] %s19_s10 }
  0x16   :  { %s10988_s13 = scalar_lea.hbm %s12702_s3, 51200 }
  0x17   :  { %p10989_p8 = scmp.ne.s32.totalorder %s12702_s3, %s10988_s13  ;;  %p10992_p9 = scmp.lt.u32.totalorder %s10988_s13, %s12702_s3 }
  0x19   :  { %p10994_p10 = pnand %p10992_p9, %p10989_p8 }
  0x1b   :  { %10997 = shalt.err (!%p10994_p10)
}
  0x1c   :  { %s10998_s1 = scalar_lea.vmem %s54_s8, 51200  ;;  %p11003_p12 = scmp.lt.s32.totalorder %s54_s8, %s54_s8 }
  0x1d   :  { %p10999_p11 = scmp.ne.s32.totalorder %s54_s8, %s10998_s1  ;;  %p11004_p13 = scmp.lt.s32.totalorder %s10998_s1, %s10998_s1 }
  0x1f   :  { %p11005_p0 = por %p11004_p13, %p11003_p12 }
  0x21   :  { %p11006_p1 = pnand %p11005_p0, %p10999_p11 }
  0x23   :  { %11009 = shalt.err (!%p11006_p1)
}
  0x24   :  { %s11111_s18 = smov 128   ;;  %s11112_s19 = smov 8  }
  0x25   :  { %59 = dma.hbm_to_vmem [thread:$0]  %s12702_s3, 51200, %s54_s8, [#allocation11], %s11111_s18, %s11111_s18, %s11112_s19  }
  0x26   :  { %s11010_s24 = scalar_lea.hbm %s12699_s0, 512 }
  0x27   :  { %p11011_p2 = scmp.ne.s32.totalorder %s12699_s0, %s11010_s24  ;;  %p11014_p3 = scmp.lt.u32.totalorder %s11010_s24, %s12699_s0 }
  0x29   :  { %p11016_p4 = pnand %p11014_p3, %p11011_p2 }
  0x2b   :  { %11019 = shalt.err (!%p11016_p4)
}
  0x2c   :  { %s11020_s29 = scalar_lea.vmem %s20_s10, 512  ;;  %p11025_p6 = scmp.lt.s32.totalorder %s20_s10, %s20_s10 }
  0x2d   :  { %p11021_p5 = scmp.ne.s32.totalorder %s20_s10, %s11020_s29  ;;  %p11026_p7 = scmp.lt.s32.totalorder %s11020_s29, %s11020_s29 }
  0x2f   :  { %p11027_p8 = por %p11026_p7, %p11025_p6 }
  0x31   :  { %p11028_p9 = pnand %p11027_p8, %p11021_p5 }
  0x33   :  { %11031 = shalt.err (!%p11028_p9)
}
  0x34   :  { %25 = dma.hbm_to_vmem [thread:$0]  %s12699_s0, 512, %s20_s10, [#allocation5], %s11111_s18, %s11111_s18, %s11112_s19  }
  0x35   :  { %s11113_s6 = smov [#allocation9]   ;;  %s11114_s8 = smov [#allocation12]  }
  0x36   :  { %s44_s7 = sshll.u32 %s11113_s6, 4  ;;  %s66_s9 = sshll.u32 %s11114_s8, 4  ;;  %s45_s7 = int_to_ptr.vmem [resolvable:$true] %s44_s7  ;;  %s67_s9 = int_to_ptr.vmem [resolvable:$true] %s66_s9 }
  0x37   :  { %s11032_s13 = scalar_lea.hbm %s12701_s2, 16 }
  0x38   :  { %p11033_p10 = scmp.ne.s32.totalorder %s12701_s2, %s11032_s13  ;;  %p11036_p11 = scmp.lt.u32.totalorder %s11032_s13, %s12701_s2 }
  0x3a   :  { %p11038_p12 = pnand %p11036_p11, %p11033_p10 }
  0x3c   :  { %11041 = shalt.err (!%p11038_p12)
}
  0x3d   :  { %s11042_s0 = scalar_lea.vmem %s45_s7, 16  ;;  %s11046_s10 = scalar_lea.vmem %s45_s7, 32 }
  0x3e   :  { %p11043_p13 = scmp.ne.s32.totalorder %s45_s7, %s11042_s0  ;;  %p11047_p0 = scmp.lt.s32.totalorder %s45_s7, %s45_s7 }
  0x3f   :  { %p11048_p1 = scmp.lt.s32.totalorder %s11046_s10, %s11042_s0 }
  0x41   :  { %p11049_p2 = por %p11048_p1, %p11047_p0 }
  0x43   :  { %p11050_p3 = pnand %p11049_p2, %p11043_p13 }
  0x45   :  { %11053 = shalt.err (!%p11050_p3)
}
  0x46   :  { %47 = dma.hbm_to_vmem [thread:$0]  %s12701_s2, 16, %s45_s7, [#allocation8]  }
  0x47   :  { %s11054_s23 = scalar_lea.hbm %s12703_s4, 16 }
  0x48   :  { %p11055_p4 = scmp.ne.s32.totalorder %s12703_s4, %s11054_s23  ;;  %p11058_p5 = scmp.lt.u32.totalorder %s11054_s23, %s12703_s4 }
  0x4a   :  { %p11060_p6 = pnand %p11058_p5, %p11055_p4 }
  0x4c   :  { %11063 = shalt.err (!%p11060_p6)
}
  0x4d   :  { %s11064_s28 = scalar_lea.vmem %s67_s9, 16  ;;  %s11068_s29 = scalar_lea.vmem %s67_s9, 32 }
  0x4e   :  { %p11065_p7 = scmp.ne.s32.totalorder %s67_s9, %s11064_s28  ;;  %p11069_p8 = scmp.lt.s32.totalorder %s67_s9, %s67_s9 }
  0x4f   :  { %p11070_p9 = scmp.lt.s32.totalorder %s11068_s29, %s11064_s28 }
  0x51   :  { %p11071_p10 = por %p11070_p9, %p11069_p8 }
  0x53   :  { %p11072_p11 = pnand %p11071_p10, %p11065_p7 }
  0x55   :  { %11075 = shalt.err (!%p11072_p11)
}
  0x56   :  { %69 = dma.hbm_to_vmem [thread:$0]  %s12703_s4, 16, %s67_s9, [#allocation11]  }
  0x57   :  { %11098 = dma.done.wait [#allocation5], 512  }
  0x58   :  { %11099 = vsyncadd [#allocation5], 4294966784 }
  0x59   :  { %11100 = dma.done.wait [#allocation8], 15376  }
  0x5a   :  { %11101 = vsyncadd [#allocation8], 4294951920 }
  0x5b   :  { %11102 = dma.done.wait [#allocation11], 51216  }
  0x5c   :  { %11103 = vsyncadd [#allocation11], 4294916080  ;;  %v11115_v0 = vmov 0.0   ;;  %v131_v1 = vld [vmem:[#allocation7 + $0xc8] sm:$0xff]  ;;  %v133_v3 = vld [vmem:[#allocation7 + $0xd8] sm:$0xff]  ;;  %vm157_vm0 = vcmask 130048  }
  0x5d   :  { %228 = vmatprep.mubr.f32.mxu0 %v11115_v0  ;;  %311 = vmatprep.mubr.f32.mxu1 %v11115_v0  ;;  %v143_v2 = vld [vmem:[#allocation7 + $0x128] sm:$0xff]  ;;  %v145_v5 = vld [vmem:[#allocation7 + $0x138] sm:$0xff]  ;;  %v130_v6 = vld [vmem:[#allocation7 + $0xc0] sm:$0xff]  ;;  %s11117_s4 = smov [#allocation13]  }
  0x5e   :  { %v10225_v4 = vpack.c.bf16 %v143_v2, %v131_v1  ;;  %v142_v7 = vld [vmem:[#allocation7 + $0x120] sm:$0xff]  ;;  %v10229_v8 = vpack.c.bf16 %v145_v5, %v133_v3  ;;  %v132_v10 = vld [vmem:[#allocation7 + $0xd0] sm:$0xff]  ;;  %v135_v15 = vld [vmem:[#allocation7 + $0xe8] sm:$0xff]  ;;  %s8916_s30 = sshll.u32 %s11117_s4, 4  ;;  %s8917_s30 = int_to_ptr.vmem [resolvable:$true] %s8916_s30 }
  0x5f   :  { %v10227_v9 = vpack.c.bf16 %v142_v7, %v130_v6  ;;  %v144_v11 = vld [vmem:[#allocation7 + $0x130] sm:$0xff]  ;;  %v119_v12 = vld [vmem:[#allocation4 + $0x1] sm:$0xff]  ;;  %v137_v20 = vld [vmem:[#allocation7 + $0xf8] sm:$0xff]  ;;  %s11076_s6 = scalar_lea.vmem %s8917_s30, 2048  ;;  %p11081_p13 = scmp.lt.s32.totalorder %s8917_s30, %s8917_s30 }
  0x60   :  { %10226 = vmatprep.subr.bf16.mxu0 %v10225_v4  ;;  %v10231_v13 = vpack.c.bf16 %v144_v11, %v132_v10  ;;  %v127_v14 = vcombine.high %v119_v12, %v119_v12  ;;  %v147_v16 = vld [vmem:[#allocation7 + $0x148] sm:$0xff]  ;;  %v134_v17 = vld [vmem:[#allocation7 + $0xe0] sm:$0xff]  ;;  %10230 = vmatprep.subr.bf16.mxu1 %v10229_v8  ;;  %v149_v21 = vld [vmem:[#allocation7 + $0x158] sm:$0xff]  ;;  %p11077_p12 = scmp.ne.s32.totalorder %s8917_s30, %s11076_s6  ;;  %p11082_p0 = scmp.lt.s32.totalorder %s11076_s6, %s11076_s6 }
  0x61   :  { %10228 = vmatpush1.bf16.msra.mxu0 %v10227_v9  ;;  %v10233_v18 = vpack.c.bf16 %v147_v16, %v135_v15  ;;  %v146_v19 = vld [vmem:[#allocation7 + $0x140] sm:$0xff]  ;;  %v10237_v24 = vpack.c.bf16 %v149_v21, %v137_v20  ;;  %v136_v25 = vld [vmem:[#allocation7 + $0xf0] sm:$0xff]  ;;  %v120_v27 = vld [vmem:[#allocation4 + $0x9] sm:$0xf] }
  0x62   :  { %10232 = vmatpush1.bf16.msra.mxu1 %v10231_v13  ;;  %v11216_v22 = vcombine.low %v119_v12, %v127_v14  ;;  %v10235_v23 = vpack.c.bf16 %v146_v19, %v134_v17  ;;  %v148_v26 = vld [vmem:[#allocation7 + $0x150] sm:$0xff]  ;;  %v139_v30 = vld [vmem:[#allocation7 + $0x108] sm:$0xff]  ;;  %v122_v34 = vld [vmem:[#allocation4 + $0x19] sm:$0xf]  ;;  %p11083_p1 = por %p11082_p0, %p11081_p13 }
  0x63   :  { %10234 = vmatprep.subr.bf16.mxu0 %v10233_v18  ;;  %v10239_v28 = vpack.c.bf16 %v148_v26, %v136_v25  ;;  %v121_v29 = vld [vmem:[#allocation4 + $0x11] sm:$0xff]  ;;  %10238 = vmatprep.subr.bf16.mxu1 %v10237_v24  ;;  %v151_v33 = vld [vmem:[#allocation7 + $0x168] sm:$0xff]  ;;  %v138_v40 = vld [vmem:[#allocation7 + $0x100] sm:$0xff] }
  0x64   :  { %8930 = vmatmul.mubr.msk.f32.vlgmr.msra.gmra.mrb[0].mxu0 %vm157_vm0, %v11216_v22  ;;  %v11220_v31 = vcombine.low %v120_v27, %v121_v29  ;;  %v128_v32 = vcombine.high %v121_v29, %v121_v29  ;;  %v10241_v35 = vpack.c.bf16 %v151_v33, %v139_v30  ;;  %v141_v36 = vld [vmem:[#allocation7 + $0x118] sm:$0xff]  ;;  %v150_v41 = vld [vmem:[#allocation7 + $0x160] sm:$0xff]  ;;  %v140_v42 = vld [vmem:[#allocation7 + $0x110] sm:$0xff]  ;;  %p11084_p2 = pnand %p11083_p1, %p11077_p12 }
  0x65   :  { %8933 = vmatmul.mubr.msk.f32.vlgmr.msra.gmra.mrb[0].mxu1 %vm157_vm0, %v11216_v22  ;;  %10236 = vmatpush1.bf16.msra.mxu0 %v10235_v23  ;;  %v153_v37 = vld [vmem:[#allocation7 + $0x178] sm:$0xff]  ;;  %v152_v43 = vld [vmem:[#allocation7 + $0x170] sm:$0xff]  ;;  %v96_v44 = vld [vmem:[#allocation7 + $0x8] sm:$0xff]  ;;  %v10243_v46 = vpack.c.bf16 %v150_v41, %v138_v40 }
  0x66   :  { %10240 = vmatpush1.bf16.msra.mxu1 %v10239_v28  ;;  %234 = vmatprep.mubr.f32.mxu0 %v11115_v0  ;;  %v10245_v38 = vpack.c.bf16 %v153_v37, %v141_v36  ;;  %v11228_v39 = vcombine.low %v128_v32, %v122_v34  ;;  %v108_v45 = vld [vmem:[#allocation7 + $0x68] sm:$0xff]  ;;  %v98_v47 = vld [vmem:[#allocation7 + $0x18] sm:$0xff]  ;;  %v10247_v49 = vpack.c.bf16 %v152_v43, %v140_v42  ;;  %v95_v52 = vld [vmem:[#allocation7] sm:$0xff] }
  0x67   :  { %317 = vmatprep.mubr.f32.mxu1 %v11115_v0  ;;  %10242 = vmatprep.subr.bf16.mxu0 %v10241_v35  ;;  %v110_v48 = vld [vmem:[#allocation7 + $0x78] sm:$0xff]  ;;  %v10249_v50 = vpack.c.bf16 %v108_v45, %v96_v44  ;;  %v107_v53 = vld [vmem:[#allocation7 + $0x60] sm:$0xff]  ;;  %v97_v54 = vld [vmem:[#allocation7 + $0x10] sm:$0xff] }
  0x68   :  { %8931 = vmatmul.mubr.msk.f32.gmra.mrb[2].mxu0 %vm157_vm0, %v11220_v31  ;;  %10246 = vmatprep.subr.bf16.mxu1 %v10245_v38  ;;  %v10253_v51 = vpack.c.bf16 %v110_v48, %v98_v47  ;;  %v109_v55 = vld [vmem:[#allocation7 + $0x70] sm:$0xff]  ;;  %v100_v56 = vld [vmem:[#allocation7 + $0x28] sm:$0xff]  ;;  %v10251_v58 = vpack.c.bf16 %v107_v53, %v95_v52  ;;  %v102_v59 = vld [vmem:[#allocation7 + $0x38] sm:$0xff] }
  0x69   :  { %8934 = vmatmul.mubr.msk.f32.gmra.mrb[2].mxu1 %vm157_vm0, %v11220_v31  ;;  %240 = vmatprep.mubr.f32.mxu0 %v11115_v0  ;;  %v112_v57 = vld [vmem:[#allocation7 + $0x88] sm:$0xff]  ;;  %v114_v60 = vld [vmem:[#allocation7 + $0x98] sm:$0xff]  ;;  %v10255_v61 = vpack.c.bf16 %v109_v55, %v97_v54  ;;  %v85_v1 = vld [vmem:[#allocation4] sm:$0xff] }
  0x6a   :  { %323 = vmatprep.mubr.f32.mxu1 %v11115_v0  ;;  %v10257_v62 = vpack.c.bf16 %v112_v57, %v100_v56  ;;  %v10261_v63 = vpack.c.bf16 %v114_v60, %v102_v59  ;;  %v93_v2 = vcombine.high %v85_v1, %v85_v1  ;;  %v99_v3 = vld [vmem:[#allocation7 + $0x20] sm:$0xff]  ;;  %v101_v5 = vld [vmem:[#allocation7 + $0x30] sm:$0xff]  ;;  %v86_v8 = vld [vmem:[#allocation4 + $0x8] sm:$0xf] }
  0x6b   :  { %v111_v4 = vld [vmem:[#allocation7 + $0x80] sm:$0xff]  ;;  %v113_v6 = vld [vmem:[#allocation7 + $0x90] sm:$0xff]  ;;  %v104_v9 = vld [vmem:[#allocation7 + $0x48] sm:$0xff] }
  0x6c   :  { %8932 = vmatmul.mubr.msk.f32.gmra.mrb[4].mxu0 %vm157_vm0, %v11228_v39  ;;  %v11272_v7 = vcombine.low %v85_v1, %v93_v2  ;;  %v116_v10 = vld [vmem:[#allocation7 + $0xa8] sm:$0xff]  ;;  %v10259_v11 = vpack.c.bf16 %v111_v4, %v99_v3  ;;  %v87_v12 = vld [vmem:[#allocation4 + $0x10] sm:$0xff]  ;;  %v106_v13 = vld [vmem:[#allocation7 + $0x58] sm:$0xff]  ;;  %v10263_v15 = vpack.c.bf16 %v113_v6, %v101_v5 }
  0x6d   :  { %8935 = vmatmul.mubr.msk.f32.gmra.mrb[4].mxu1 %vm157_vm0, %v11228_v39  ;;  %394 = vmatprep.mubr.f32.mxu0 %v11115_v0  ;;  %v118_v14 = vld [vmem:[#allocation7 + $0xb8] sm:$0xff]  ;;  %v10265_v16 = vpack.c.bf16 %v116_v10, %v104_v9  ;;  %v11280_v17 = vcombine.low %v86_v8, %v87_v12  ;;  %v94_v18 = vcombine.high %v87_v12, %v87_v12  ;;  %v115_v23 = vld [vmem:[#allocation7 + $0xa0] sm:$0xff]  ;;  %v105_v24 = vld [vmem:[#allocation7 + $0x50] sm:$0xff] }
  0x6e   :  { %477 = vmatprep.mubr.f32.mxu1 %v11115_v0  ;;  %v10269_v19 = vpack.c.bf16 %v118_v14, %v106_v13  ;;  %v88_v20 = vld [vmem:[#allocation4 + $0x18] sm:$0xf]  ;;  %v117_v25 = vld [vmem:[#allocation7 + $0xb0] sm:$0xff]  ;;  %v1181_v26 = vld [vmem:[#allocation7 + $0x188] sm:$0xff] }
  0x6f   :  { %v11288_v21 = vcombine.low %v94_v18, %v88_v20  ;;  %v1193_v27 = vld [vmem:[#allocation7 + $0x1e8] sm:$0xff]  ;;  %v1183_v29 = vld [vmem:[#allocation7 + $0x198] sm:$0xff]  ;;  %v1180_v34 = vld [vmem:[#allocation7 + $0x180] sm:$0xff] }
  0x70   :  { %8936 = vmatmul.mubr.msk.f32.vlgmr.msra.gmra.mrb[6].mxu0 %vm157_vm0, %v11216_v22  ;;  %v1195_v30 = vld [vmem:[#allocation7 + $0x1f8] sm:$0xff]  ;;  %v10273_v32 = vpack.c.bf16 %v1193_v27, %v1181_v26  ;;  %v1192_v35 = vld [vmem:[#allocation7 + $0x1e0] sm:$0xff]  ;;  %v1182_v36 = vld [vmem:[#allocation7 + $0x190] sm:$0xff] }
  0x71   :  { %8939 = vmatmul.mubr.msk.f32.vlgmr.msra.gmra.mrb[6].mxu1 %vm157_vm0, %v11216_v22  ;;  %10244 = vmatpush1.bf16.msra.mxu0 %v10243_v46  ;;  %v10277_v33 = vpack.c.bf16 %v1195_v30, %v1183_v29  ;;  %v1194_v37 = vld [vmem:[#allocation7 + $0x1f0] sm:$0xff]  ;;  %v1185_v38 = vld [vmem:[#allocation7 + $0x1a8] sm:$0xff]  ;;  %v10275_v40 = vpack.c.bf16 %v1192_v35, %v1180_v34  ;;  %v1187_v41 = vld [vmem:[#allocation7 + $0x1b8] sm:$0xff] }
  0x72   :  { %10248 = vmatpush1.bf16.msra.mxu1 %v10247_v49  ;;  %400 = vmatprep.mubr.f32.mxu0 %v11115_v0  ;;  %v1199_v42 = vld [vmem:[#allocation7 + $0x218] sm:$0xff]  ;;  %v10279_v43 = vpack.c.bf16 %v1194_v37, %v1182_v36  ;;  %v1169_v46 = vld [vmem:[#allocation4 + $0x2] sm:$0xff]  ;;  %v1170_v53 = vld [vmem:[#allocation4 + $0xa] sm:$0xf] }
  0x73   :  { %483 = vmatprep.mubr.f32.mxu1 %v11115_v0  ;;  %10250 = vmatprep.subr.bf16.mxu0 %v10249_v50  ;;  %v10285_v45 = vpack.c.bf16 %v1199_v42, %v1187_v41  ;;  %v1177_v47 = vcombine.high %v1169_v46, %v1169_v46  ;;  %v1184_v48 = vld [vmem:[#allocation7 + $0x1a0] sm:$0xff]  ;;  %v1186_v50 = vld [vmem:[#allocation7 + $0x1b0] sm:$0xff]  ;;  %v1189_v54 = vld [vmem:[#allocation7 + $0x1c8] sm:$0xff] }
  0x74   :  { %8937 = vmatmul.mubr.msk.f32.gmra.mrb[8].mxu0 %vm157_vm0, %v11220_v31  ;;  %10254 = vmatprep.subr.bf16.mxu1 %v10253_v51  ;;  %v1196_v49 = vld [vmem:[#allocation7 + $0x200] sm:$0xff]  ;;  %v1198_v51 = vld [vmem:[#allocation7 + $0x210] sm:$0xff]  ;;  %v1201_v55 = vld [vmem:[#allocation7 + $0x228] sm:$0xff] }
  0x75   :  { %8940 = vmatmul.mubr.msk.f32.gmra.mrb[8].mxu1 %vm157_vm0, %v11220_v31  ;;  %406 = vmatprep.mubr.f32.mxu0 %v11115_v0  ;;  %v11332_v52 = vcombine.low %v1169_v46, %v1177_v47  ;;  %v10283_v56 = vpack.c.bf16 %v1196_v49, %v1184_v48  ;;  %v1171_v57 = vld [vmem:[#allocation4 + $0x12] sm:$0xff]  ;;  %v10287_v60 = vpack.c.bf16 %v1198_v51, %v1186_v50  ;;  %v1172_v2 = vld [vmem:[#allocation4 + $0x1a] sm:$0xf]  ;;  %v1188_v4 = vld [vmem:[#allocation7 + $0x1c0] sm:$0xff] }
  0x76   :  { %489 = vmatprep.mubr.f32.mxu1 %v11115_v0  ;;  %v1203_v59 = vld [vmem:[#allocation7 + $0x238] sm:$0xff]  ;;  %v1200_v5 = vld [vmem:[#allocation7 + $0x220] sm:$0xff]  ;;  %v1190_v6 = vld [vmem:[#allocation7 + $0x1d0] sm:$0xff] }
  0x77   :  { %v1759_v8 = vld [vmem:[#allocation7 + $0x248] sm:$0xff]  ;;  %v10291_v10 = vpack.c.bf16 %v1200_v5, %v1188_v4  ;;  %v1773_v12 = vld [vmem:[#allocation7 + $0x2b8] sm:$0xff]  ;;  %v1760_v18 = vld [vmem:[#allocation7 + $0x250] sm:$0xff] }
  0x78   :  { %8938 = vmatmul.mubr.msk.f32.gmra.mrb[10].mxu0 %vm157_vm0, %v11228_v39  ;;  %v1771_v9 = vld [vmem:[#allocation7 + $0x2a8] sm:$0xff]  ;;  %v1762_v30 = vld [vmem:[#allocation7 + $0x260] sm:$0xff]  ;;  %v1781_v41 = vld [vmem:[#allocation7 + $0x2f8] sm:$0xff] }
  0x79   :  { %8941 = vmatmul.mubr.msk.f32.gmra.mrb[10].mxu1 %vm157_vm0, %v11228_v39  ;;  %560 = vmatprep.mubr.f32.mxu0 %v11115_v0  ;;  %v10297_v14 = vpack.c.bf16 %v1771_v9, %v1759_v8  ;;  %v1763_v20 = vld [vmem:[#allocation7 + $0x268] sm:$0xff]  ;;  %v1750_v47 = vld [vmem:[#allocation4 + $0x1b] sm:$0xf]  ;;  %v1766_v49 = vld [vmem:[#allocation7 + $0x280] sm:$0xff] }
  0x7a   :  { %643 = vmatprep.mubr.f32.mxu1 %v11115_v0  ;;  %v1748_v35 = vld [vmem:[#allocation4 + $0xb] sm:$0xf]  ;;  %v1778_v50 = vld [vmem:[#allocation7 + $0x2e0] sm:$0xff]  ;;  %v1768_v51 = vld [vmem:[#allocation7 + $0x290] sm:$0xff] }
  0x7b   :  { %v1767_v36 = vld [vmem:[#allocation7 + $0x288] sm:$0xff]  ;;  %v2343_v5 = vld [vmem:[#allocation7 + $0x338] sm:$0xff] }
  0x7c   :  { %8942 = vmatmul.mubr.msk.f32.vlgmr.msra.gmra.mrb[12].mxu0 %vm157_vm0, %v11216_v22  ;;  %v1779_v37 = vld [vmem:[#allocation7 + $0x2e8] sm:$0xff] }
  0x7d   :  { %8945 = vmatmul.mubr.msk.f32.vlgmr.msra.gmra.mrb[12].mxu1 %vm157_vm0, %v11216_v22  ;;  %10252 = vmatpush1.bf16.msra.mxu0 %v10251_v58  ;;  %v103_v22 = vld [vmem:[#allocation7 + $0x40] sm:$0xff]  ;;  %v1191_v58 = vld [vmem:[#allocation7 + $0x1d8] sm:$0xff] }
  0x7e   :  { %10256 = vmatpush1.bf16.msra.mxu1 %v10255_v61  ;;  %566 = vmatprep.mubr.f32.mxu0 %v11115_v0  ;;  %v10267_v28 = vpack.c.bf16 %v115_v23, %v103_v22  ;;  %v10289_v61 = vpack.c.bf16 %v1201_v55, %v1189_v54  ;;  %v10293_v1 = vpack.c.bf16 %v1203_v59, %v1191_v58  ;;  %v1765_v23 = vld [vmem:[#allocation7 + $0x278] sm:$0xff]  ;;  %v2349_v54 = vld [vmem:[#allocation7 + $0x368] sm:$0xff] }
  0x7f   :  { %649 = vmatprep.mubr.f32.mxu1 %v11115_v0  ;;  %10258 = vmatprep.subr.bf16.mxu0 %v10257_v62  ;;  %v11340_v62 = vcombine.low %v1170_v53, %v1171_v57  ;;  %v2337_v53 = vld [vmem:[#allocation7 + $0x308] sm:$0xff]  ;;  %v10315_v55 = vpack.c.bf16 %v1778_v50, %v1766_v49  ;;  %v6622_v49 = vld [vmem:[#allocation10 + $0x98] sm:$0xff] }
  0x80   :  { %8943 = vmatmul.mubr.msk.f32.gmra.mrb[14].mxu0 %vm157_vm0, %v11220_v31  ;;  %10262 = vmatprep.subr.bf16.mxu1 %v10261_v63  ;;  %v1178_v63 = vcombine.high %v1171_v57, %v1171_v57  ;;  %v2351_v57 = vld [vmem:[#allocation7 + $0x378] sm:$0xff]  ;;  %v10321_v59 = vpack.c.bf16 %v2349_v54, %v2337_v53 }
  0x81   :  { %8946 = vmatmul.mubr.msk.f32.gmra.mrb[14].mxu1 %vm157_vm0, %v11220_v31  ;;  %572 = vmatprep.mubr.f32.mxu0 %v11115_v0  ;;  %v10271_v31 = vpack.c.bf16 %v117_v25, %v105_v24  ;;  %v1777_v24 = vld [vmem:[#allocation7 + $0x2d8] sm:$0xff] }
  0x82   :  { %655 = vmatprep.mubr.f32.mxu1 %v11115_v0  ;;  %v11348_v3 = vcombine.low %v1178_v63, %v1172_v2  ;;  %v10309_v27 = vpack.c.bf16 %v1777_v24, %v1765_v23  ;;  %v2338_v63 = vld [vmem:[#allocation7 + $0x310] sm:$0xff]  ;;  %v2341_v2 = vld [vmem:[#allocation7 + $0x328] sm:$0xff]  ;;  %v2359_v23 = vld [vmem:[#allocation7 + $0x3b8] sm:$0xff] }
  0x83   :  { %v6653_v53 = vld [vmem:[#allocation10 + $0x190] sm:$0xff] }
  0x84   :  { %8944 = vmatmul.mubr.msk.f32.gmra.mrb[16].mxu0 %vm157_vm0, %v11228_v39 }
  0x85   :  { %8947 = vmatmul.mubr.msk.f32.gmra.mrb[16].mxu1 %vm157_vm0, %v11228_v39  ;;  %735 = vmatprep.mubr.f32.mxu0 %v11115_v0  ;;  %v1197_v39 = vld [vmem:[#allocation7 + $0x208] sm:$0xff] }
  0x86   :  { %818 = vmatprep.mubr.f32.mxu1 %v11115_v0  ;;  %v10281_v44 = vpack.c.bf16 %v1197_v39, %v1185_v38  ;;  %v1749_v39 = vld [vmem:[#allocation4 + $0x13] sm:$0xff] }
  0x88   :  { %8948 = vmatmul.mubr.msk.f32.vlgmr.msra.gmra.mrb[0].mxu0 %vm157_vm0, %v11272_v7 }
  0x89   :  { %8951 = vmatmul.mubr.msk.f32.vlgmr.msra.gmra.mrb[0].mxu1 %vm157_vm0, %v11272_v7  ;;  %10260 = vmatpush1.bf16.msra.mxu0 %v10259_v11  ;;  %v1761_v11 = vld [vmem:[#allocation7 + $0x258] sm:$0xff] }
  0x8a   :  { %10264 = vmatpush1.bf16.msra.mxu1 %v10263_v15  ;;  %741 = vmatprep.mubr.f32.mxu0 %v11115_v0  ;;  %v10301_v15 = vpack.c.bf16 %v1773_v12, %v1761_v11  ;;  %v2340_v12 = vld [vmem:[#allocation7 + $0x320] sm:$0xff] }
  0x8b   :  { %824 = vmatprep.mubr.f32.mxu1 %v11115_v0  ;;  %10266 = vmatprep.subr.bf16.mxu0 %v10265_v16  ;;  %v1758_v16 = vld [vmem:[#allocation7 + $0x240] sm:$0xff] }
  0x8c   :  { %8949 = vmatmul.mubr.msk.f32.gmra.mrb[2].mxu0 %vm157_vm0, %v11280_v17  ;;  %10270 = vmatprep.subr.bf16.mxu1 %v10269_v19  ;;  %v1772_v19 = vld [vmem:[#allocation7 + $0x2b0] sm:$0xff] }
  0x8d   :  { %8952 = vmatmul.mubr.msk.f32.gmra.mrb[2].mxu1 %vm157_vm0, %v11280_v17  ;;  %747 = vmatprep.mubr.f32.mxu0 %v11115_v0  ;;  %v10303_v25 = vpack.c.bf16 %v1772_v19, %v1760_v18  ;;  %v2345_v18 = vld [vmem:[#allocation7 + $0x348] sm:$0xff] }
  0x8e   :  { %830 = vmatprep.mubr.f32.mxu1 %v11115_v0  ;;  %v2357_v19 = vld [vmem:[#allocation7 + $0x3a8] sm:$0xff] }
  0x90   :  { %8950 = vmatmul.mubr.msk.f32.gmra.mrb[4].mxu0 %vm157_vm0, %v11288_v21 }
  0x91   :  { %8953 = vmatmul.mubr.msk.f32.gmra.mrb[4].mxu1 %vm157_vm0, %v11288_v21  ;;  %901 = vmatprep.mubr.f32.mxu0 %v11115_v0 }
  0x92   :  { %984 = vmatprep.mubr.f32.mxu1 %v11115_v0 }
  0x94   :  { %8954 = vmatmul.mubr.msk.f32.vlgmr.msra.gmra.mrb[6].mxu0 %vm157_vm0, %v11272_v7 }
  0x95   :  { %8957 = vmatmul.mubr.msk.f32.vlgmr.msra.gmra.mrb[6].mxu1 %vm157_vm0, %v11272_v7  ;;  %10268 = vmatpush1.bf16.msra.mxu0 %v10267_v28  ;;  %v1747_v28 = vld [vmem:[#allocation4 + $0x3] sm:$0xff] }
  0x96   :  { %10272 = vmatpush1.bf16.msra.mxu1 %v10271_v31  ;;  %907 = vmatprep.mubr.f32.mxu0 %v11115_v0  ;;  %v1755_v29 = vcombine.high %v1747_v28, %v1747_v28  ;;  %v1774_v31 = vld [vmem:[#allocation7 + $0x2c0] sm:$0xff] }
  0x97   :  { %990 = vmatprep.mubr.f32.mxu1 %v11115_v0  ;;  %10274 = vmatprep.subr.bf16.mxu0 %v10273_v32  ;;  %v1764_v32 = vld [vmem:[#allocation7 + $0x270] sm:$0xff]  ;;  %v10307_v38 = vpack.c.bf16 %v1774_v31, %v1762_v30  ;;  %v2344_v31 = vld [vmem:[#allocation7 + $0x340] sm:$0xff] }
  0x98   :  { %8955 = vmatmul.mubr.msk.f32.gmra.mrb[8].mxu0 %vm157_vm0, %v11280_v17  ;;  %10278 = vmatprep.subr.bf16.mxu1 %v10277_v33  ;;  %v1776_v33 = vld [vmem:[#allocation7 + $0x2d0] sm:$0xff]  ;;  %v11392_v34 = vcombine.low %v1747_v28, %v1755_v29  ;;  %v2328_v29 = vld [vmem:[#allocation4 + $0x1c] sm:$0xf] }
  0x99   :  { %8958 = vmatmul.mubr.msk.f32.gmra.mrb[8].mxu1 %vm157_vm0, %v11280_v17  ;;  %913 = vmatprep.mubr.f32.mxu0 %v11115_v0  ;;  %v10311_v42 = vpack.c.bf16 %v1776_v33, %v1764_v32  ;;  %v2356_v32 = vld [vmem:[#allocation7 + $0x3a0] sm:$0xff]  ;;  %v2346_v33 = vld [vmem:[#allocation7 + $0x350] sm:$0xff] }
  0x9a   :  { %996 = vmatprep.mubr.f32.mxu1 %v11115_v0 }
  0x9c   :  { %8956 = vmatmul.mubr.msk.f32.gmra.mrb[10].mxu0 %vm157_vm0, %v11288_v21 }
  0x9d   :  { %8959 = vmatmul.mubr.msk.f32.gmra.mrb[10].mxu1 %vm157_vm0, %v11288_v21  ;;  %1067 = vmatprep.mubr.f32.mxu0 %v11115_v0 }
  0x9e   :  { %1150 = vmatprep.mubr.f32.mxu1 %v11115_v0 }
  0xa0   :  { %8960 = vmatmul.mubr.msk.f32.vlgmr.msra.gmra.mrb[12].mxu0 %vm157_vm0, %v11272_v7 }
  0xa1   :  { %8963 = vmatmul.mubr.msk.f32.vlgmr.msra.gmra.mrb[12].mxu1 %vm157_vm0, %v11272_v7  ;;  %10276 = vmatpush1.bf16.msra.mxu0 %v10275_v40  ;;  %v1202_v7 = vld [vmem:[#allocation7 + $0x230] sm:$0xff]  ;;  %v1769_v40 = vld [vmem:[#allocation7 + $0x298] sm:$0xff] }
  0xa2   :  { %10280 = vmatpush1.bf16.msra.mxu1 %v10279_v43  ;;  %1073 = vmatprep.mubr.f32.mxu0 %v11115_v0  ;;  %v10295_v13 = vpack.c.bf16 %v1202_v7, %v1190_v6  ;;  %v10313_v43 = vpack.c.bf16 %v1779_v37, %v1767_v36  ;;  %v10317_v46 = vpack.c.bf16 %v1781_v41, %v1769_v40  ;;  %v2355_v6 = vld [vmem:[#allocation7 + $0x398] sm:$0xff]  ;;  %v6619_v37 = vld [vmem:[#allocation10 + $0x80] sm:$0xff]  ;;  %v6604_v41 = vld [vmem:[#allocation10 + $0x8] sm:$0xff] }
  0xa3   :  { %1156 = vmatprep.mubr.f32.mxu1 %v11115_v0  ;;  %10282 = vmatprep.subr.bf16.mxu0 %v10281_v44  ;;  %v11400_v44 = vcombine.low %v1748_v35, %v1749_v39  ;;  %v10333_v9 = vpack.c.bf16 %v2355_v6, %v2343_v5  ;;  %v10339_v35 = vpack.c.bf16 %v2356_v32, %v2344_v31  ;;  %v6603_v40 = vld [vmem:[#allocation10] sm:$0xff]  ;;  %v6644_v31 = vld [vmem:[#allocation10 + $0x148] sm:$0xff] }
  0xa4   :  { %8961 = vmatmul.mubr.msk.f32.gmra.mrb[14].mxu0 %vm157_vm0, %v11280_v17  ;;  %10286 = vmatprep.subr.bf16.mxu1 %v10285_v45  ;;  %v1756_v45 = vcombine.high %v1749_v39, %v1749_v39  ;;  %v6639_v6 = vld [vmem:[#allocation10 + $0x120] sm:$0xff] }
  0xa5   :  { %8964 = vmatmul.mubr.msk.f32.gmra.mrb[14].mxu1 %vm157_vm0, %v11280_v17  ;;  %1079 = vmatprep.mubr.f32.mxu0 %v11115_v0  ;;  %v1770_v17 = vld [vmem:[#allocation7 + $0x2a0] sm:$0xff] }
  0xa6   :  { %1162 = vmatprep.mubr.f32.mxu1 %v11115_v0  ;;  %v10299_v22 = vpack.c.bf16 %v1770_v17, %v1758_v16  ;;  %v11408_v48 = vcombine.low %v1756_v45, %v1750_v47  ;;  %v2326_v17 = vld [vmem:[#allocation4 + $0xc] sm:$0xf] }
  0xa7   :  { %v6636_v47 = vld [vmem:[#allocation10 + $0x108] sm:$0xff] }
  0xa8   :  { %8962 = vmatmul.mubr.msk.f32.gmra.mrb[16].mxu0 %vm157_vm0, %v11288_v21 }
  0xa9   :  { %8965 = vmatmul.mubr.msk.f32.gmra.mrb[16].mxu1 %vm157_vm0, %v11288_v21  ;;  %1277 = vmatprep.mubr.f32.mxu0 %v11115_v0  ;;  %v1775_v21 = vld [vmem:[#allocation7 + $0x2c8] sm:$0xff] }
  0xaa   :  { %1360 = vmatprep.mubr.f32.mxu1 %v11115_v0  ;;  %v10305_v26 = vpack.c.bf16 %v1775_v21, %v1763_v20  ;;  %v2327_v21 = vld [vmem:[#allocation4 + $0x14] sm:$0xff] }
  0xac   :  { %8966 = vmatmul.mubr.msk.f32.vlgmr.msra.gmra.mrb[0].mxu0 %vm157_vm0, %v11332_v52 }
  0xad   :  { %8969 = vmatmul.mubr.msk.f32.vlgmr.msra.gmra.mrb[0].mxu1 %vm157_vm0, %v11332_v52  ;;  %10284 = vmatpush1.bf16.msra.mxu0 %v10283_v56  ;;  %v2339_v56 = vld [vmem:[#allocation7 + $0x318] sm:$0xff] }
  0xae   :  { %10288 = vmatpush1.bf16.msra.mxu1 %v10287_v60  ;;  %1283 = vmatprep.mubr.f32.mxu0 %v11115_v0  ;;  %v10325_v60 = vpack.c.bf16 %v2351_v57, %v2339_v56  ;;  %v6637_v57 = vld [vmem:[#allocation10 + $0x110] sm:$0xff] }
  0xaf   :  { %1366 = vmatprep.mubr.f32.mxu1 %v11115_v0  ;;  %10290 = vmatprep.subr.bf16.mxu0 %v10289_v61  ;;  %v2336_v61 = vld [vmem:[#allocation7 + $0x300] sm:$0xff] }
  0xb0   :  { %8967 = vmatmul.mubr.msk.f32.gmra.mrb[2].mxu0 %vm157_vm0, %v11340_v62  ;;  %10294 = vmatprep.subr.bf16.mxu1 %v10293_v1  ;;  %v2350_v1 = vld [vmem:[#allocation7 + $0x370] sm:$0xff] }
  0xb1   :  { %8970 = vmatmul.mubr.msk.f32.gmra.mrb[2].mxu1 %vm157_vm0, %v11340_v62  ;;  %1289 = vmatprep.mubr.f32.mxu0 %v11115_v0  ;;  %v10327_v7 = vpack.c.bf16 %v2350_v1, %v2338_v63  ;;  %v6607_v63 = vld [vmem:[#allocation10 + $0x20] sm:$0xff]  ;;  %v6608_v1 = vld [vmem:[#allocation10 + $0x28] sm:$0xff] }
  0xb2   :  { %1372 = vmatprep.mubr.f32.mxu1 %v11115_v0 }
  0xb4   :  { %8968 = vmatmul.mubr.msk.f32.gmra.mrb[4].mxu0 %vm157_vm0, %v11348_v3 }
  0xb5   :  { %8971 = vmatmul.mubr.msk.f32.gmra.mrb[4].mxu1 %vm157_vm0, %v11348_v3  ;;  %1443 = vmatprep.mubr.f32.mxu0 %v11115_v0 }
  0xb6   :  { %1526 = vmatprep.mubr.f32.mxu1 %v11115_v0 }
  0xb8   :  { %8972 = vmatmul.mubr.msk.f32.vlgmr.msra.gmra.mrb[6].mxu0 %vm157_vm0, %v11332_v52 }
  0xb9   :  { %8975 = vmatmul.mubr.msk.f32.vlgmr.msra.gmra.mrb[6].mxu1 %vm157_vm0, %v11332_v52  ;;  %10292 = vmatpush1.bf16.msra.mxu0 %v10291_v10  ;;  %v2325_v10 = vld [vmem:[#allocation4 + $0x4] sm:$0xff] }
  0xba   :  { %10296 = vmatpush1.bf16.msra.mxu1 %v10295_v13  ;;  %1449 = vmatprep.mubr.f32.mxu0 %v11115_v0  ;;  %v2333_v11 = vcombine.high %v2325_v10, %v2325_v10  ;;  %v2352_v13 = vld [vmem:[#allocation7 + $0x380] sm:$0xff] }
  0xbb   :  { %1532 = vmatprep.mubr.f32.mxu1 %v11115_v0  ;;  %10298 = vmatprep.subr.bf16.mxu0 %v10297_v14  ;;  %v2342_v14 = vld [vmem:[#allocation7 + $0x330] sm:$0xff]  ;;  %v10331_v20 = vpack.c.bf16 %v2352_v13, %v2340_v12  ;;  %v6610_v13 = vld [vmem:[#allocation10 + $0x38] sm:$0xff] }
  0xbc   :  { %8973 = vmatmul.mubr.msk.f32.gmra.mrb[8].mxu0 %vm157_vm0, %v11340_v62  ;;  %10302 = vmatprep.subr.bf16.mxu1 %v10301_v15  ;;  %v2354_v15 = vld [vmem:[#allocation7 + $0x390] sm:$0xff]  ;;  %v2360_v16 = vcombine.low %v2325_v10, %v2333_v11  ;;  %v6626_v10 = vld [vmem:[#allocation10 + $0xb8] sm:$0xff] }
  0xbd   :  { %8976 = vmatmul.mubr.msk.f32.gmra.mrb[8].mxu1 %vm157_vm0, %v11340_v62  ;;  %1455 = vmatprep.mubr.f32.mxu0 %v11115_v0  ;;  %v10335_v24 = vpack.c.bf16 %v2354_v15, %v2342_v14  ;;  %v6609_v12 = vld [vmem:[#allocation10 + $0x30] sm:$0xff] }
  0xbe   :  { %1538 = vmatprep.mubr.f32.mxu1 %v11115_v0  ;;  %v6657_v14 = vld [vmem:[#allocation10 + $0x1b0] sm:$0xff]  ;;  %v10359_v15 = vpack.c.bf16 %v6610_v13, %v6609_v12 }
  0xc0   :  { %8974 = vmatmul.mubr.msk.f32.gmra.mrb[10].mxu0 %vm157_vm0, %v11348_v3 }
  0xc1   :  { %8977 = vmatmul.mubr.msk.f32.gmra.mrb[10].mxu1 %vm157_vm0, %v11348_v3  ;;  %1609 = vmatprep.mubr.f32.mxu0 %v11115_v0 }
  0xc2   :  { %1692 = vmatprep.mubr.f32.mxu1 %v11115_v0 }
  0xc4   :  { %8978 = vmatmul.mubr.msk.f32.vlgmr.msra.gmra.mrb[12].mxu0 %vm157_vm0, %v11332_v52 }
  0xc5   :  { %8981 = vmatmul.mubr.msk.f32.vlgmr.msra.gmra.mrb[12].mxu1 %vm157_vm0, %v11332_v52  ;;  %10300 = vmatpush1.bf16.msra.mxu0 %v10299_v22  ;;  %v1780_v52 = vld [vmem:[#allocation7 + $0x2f0] sm:$0xff]  ;;  %v2347_v22 = vld [vmem:[#allocation7 + $0x358] sm:$0xff] }
  0xc6   :  { %10304 = vmatpush1.bf16.msra.mxu1 %v10303_v25  ;;  %1615 = vmatprep.mubr.f32.mxu0 %v11115_v0  ;;  %v10319_v58 = vpack.c.bf16 %v1780_v52, %v1768_v51  ;;  %v10337_v25 = vpack.c.bf16 %v2357_v19, %v2345_v18  ;;  %v10341_v28 = vpack.c.bf16 %v2359_v23, %v2347_v22  ;;  %v6605_v51 = vld [vmem:[#allocation10 + $0x10] sm:$0xff]  ;;  %v6606_v52 = vld [vmem:[#allocation10 + $0x18] sm:$0xff]  ;;  %v6628_v22 = vld [vmem:[#allocation10 + $0xc8] sm:$0xff] }
  0xc7   :  { %1698 = vmatprep.mubr.f32.mxu1 %v11115_v0  ;;  %10306 = vmatprep.subr.bf16.mxu0 %v10305_v26  ;;  %v2361_v26 = vcombine.low %v2326_v17, %v2327_v21  ;;  %v10351_v54 = vpack.c.bf16 %v6606_v52, %v6605_v51  ;;  %v6641_v18 = vld [vmem:[#allocation10 + $0x130] sm:$0xff]  ;;  %v6642_v19 = vld [vmem:[#allocation10 + $0x138] sm:$0xff]  ;;  %v6664_v51 = vld [vmem:[#allocation10 + $0x1e8] sm:$0xff] }
  0xc8   :  { %8979 = vmatmul.mubr.msk.f32.gmra.mrb[14].mxu0 %vm157_vm0, %v11340_v62  ;;  %10310 = vmatprep.subr.bf16.mxu1 %v10309_v27  ;;  %v2334_v27 = vcombine.high %v2327_v21, %v2327_v21  ;;  %v6627_v21 = vld [vmem:[#allocation10 + $0xc0] sm:$0xff] }
  0xc9   :  { %8982 = vmatmul.mubr.msk.f32.gmra.mrb[14].mxu1 %vm157_vm0, %v11340_v62  ;;  %1621 = vmatprep.mubr.f32.mxu0 %v11115_v0  ;;  %v2348_v62 = vld [vmem:[#allocation7 + $0x360] sm:$0xff]  ;;  %v10361_v23 = vpack.c.bf16 %v6628_v22, %v6627_v21 }
  0xca   :  { %1704 = vmatprep.mubr.f32.mxu1 %v11115_v0  ;;  %v10323_v4 = vpack.c.bf16 %v2348_v62, %v2336_v61  ;;  %v2362_v30 = vcombine.low %v2334_v27, %v2328_v29  ;;  %v6624_v61 = vld [vmem:[#allocation10 + $0xa8] sm:$0xff] }
  0xcc   :  { %8980 = vmatmul.mubr.msk.f32.gmra.mrb[16].mxu0 %vm157_vm0, %v11348_v3 }
  0xcd   :  { %8983 = vmatmul.mubr.msk.f32.gmra.mrb[16].mxu1 %vm157_vm0, %v11348_v3  ;;  %1855 = vmatprep.mubr.f32.mxu0 %v11115_v0  ;;  %v2353_v3 = vld [vmem:[#allocation7 + $0x388] sm:$0xff] }
  0xce   :  { %1938 = vmatprep.mubr.f32.mxu1 %v11115_v0  ;;  %v10329_v8 = vpack.c.bf16 %v2353_v3, %v2341_v2  ;;  %v6655_v2 = vld [vmem:[#allocation10 + $0x1a0] sm:$0xff]  ;;  %v10355_v3 = vpack.c.bf16 %v6608_v1, %v6607_v63  ;;  %v6618_v63 = vld [vmem:[#allocation10 + $0x78] sm:$0xff]  ;;  %v6665_v1 = vld [vmem:[#allocation10 + $0x1f0] sm:$0xff] }
  0xd0   :  { %8984 = vmatmul.mubr.msk.f32.vlgmr.msra.gmra.mrb[0].mxu0 %vm157_vm0, %v11392_v34 }
  0xd1   :  { %8987 = vmatmul.mubr.msk.f32.vlgmr.msra.gmra.mrb[0].mxu1 %vm157_vm0, %v11392_v34  ;;  %10308 = vmatpush1.bf16.msra.mxu0 %v10307_v38  ;;  %v6620_v38 = vld [vmem:[#allocation10 + $0x88] sm:$0xff] }
  0xd2   :  { %10312 = vmatpush1.bf16.msra.mxu1 %v10311_v42  ;;  %1861 = vmatprep.mubr.f32.mxu0 %v11115_v0  ;;  %v10345_v39 = vpack.c.bf16 %v6620_v38, %v6619_v37  ;;  %v6651_v42 = vld [vmem:[#allocation10 + $0x180] sm:$0xff]  ;;  %v6614_v37 = vld [vmem:[#allocation10 + $0x58] sm:$0xff]  ;;  %v6661_v38 = vld [vmem:[#allocation10 + $0x1d0] sm:$0xff] }
  0xd3   :  { %1944 = vmatprep.mubr.f32.mxu1 %v11115_v0  ;;  %10314 = vmatprep.subr.bf16.mxu0 %v10313_v43  ;;  %v10347_v43 = vpack.c.bf16 %v6604_v41, %v6603_v40  ;;  %v6662_v40 = vld [vmem:[#allocation10 + $0x1d8] sm:$0xff] }
  0xd4   :  { %8985 = vmatmul.mubr.msk.f32.gmra.mrb[2].mxu0 %vm157_vm0, %v11400_v44  ;;  %10318 = vmatprep.subr.bf16.mxu1 %v10317_v46  ;;  %v6635_v46 = vld [vmem:[#allocation10 + $0x100] sm:$0xff]  ;;  %v10397_v41 = vpack.c.bf16 %v6662_v40, %v6661_v38 }
  0xd5   :  { %8988 = vmatmul.mubr.msk.f32.gmra.mrb[2].mxu1 %vm157_vm0, %v11400_v44  ;;  %1867 = vmatprep.mubr.f32.mxu0 %v11115_v0 }
  0xd6   :  { %1950 = vmatprep.mubr.f32.mxu1 %v11115_v0 }
  0xd8   :  { %8986 = vmatmul.mubr.msk.f32.gmra.mrb[4].mxu0 %vm157_vm0, %v11408_v48 }
  0xd9   :  { %8989 = vmatmul.mubr.msk.f32.gmra.mrb[4].mxu1 %vm157_vm0, %v11408_v48  ;;  %2021 = vmatprep.mubr.f32.mxu0 %v11115_v0 }
  0xda   :  { %2104 = vmatprep.mubr.f32.mxu1 %v11115_v0 }
  0xdc   :  { %8990 = vmatmul.mubr.msk.f32.vlgmr.msra.gmra.mrb[6].mxu0 %vm157_vm0, %v11392_v34 }
  0xdd   :  { %8993 = vmatmul.mubr.msk.f32.vlgmr.msra.gmra.mrb[6].mxu1 %vm157_vm0, %v11392_v34  ;;  %10316 = vmatpush1.bf16.msra.mxu0 %v10315_v55  ;;  %v6654_v55 = vld [vmem:[#allocation10 + $0x198] sm:$0xff] }
  0xde   :  { %10320 = vmatpush1.bf16.msra.mxu1 %v10319_v58  ;;  %2027 = vmatprep.mubr.f32.mxu0 %v11115_v0  ;;  %v10381_v56 = vpack.c.bf16 %v6654_v55, %v6653_v53  ;;  %v6638_v58 = vld [vmem:[#allocation10 + $0x118] sm:$0xff]  ;;  %v6647_v53 = vld [vmem:[#allocation10 + $0x160] sm:$0xff] }
  0xdf   :  { %2110 = vmatprep.mubr.f32.mxu1 %v11115_v0  ;;  %10322 = vmatprep.subr.bf16.mxu0 %v10321_v59  ;;  %v10383_v59 = vpack.c.bf16 %v6638_v58, %v6637_v57  ;;  %v6634_v57 = vld [vmem:[#allocation10 + $0xf8] sm:$0xff]  ;;  %v11116_v58 = vmov 1966171168  }
  0xe0   :  { %8991 = vmatmul.mubr.msk.f32.gmra.mrb[8].mxu0 %vm157_vm0, %v11400_v44  ;;  %10326 = vmatprep.subr.bf16.mxu1 %v10325_v60  ;;  %v6623_v60 = vld [vmem:[#allocation10 + $0xa0] sm:$0xff] }
  0xe1   :  { %8994 = vmatmul.mubr.msk.f32.gmra.mrb[8].mxu1 %vm157_vm0, %v11400_v44  ;;  %2033 = vmatprep.mubr.f32.mxu0 %v11115_v0  ;;  %v10353_v62 = vpack.c.bf16 %v6624_v61, %v6623_v60  ;;  %v2920_v60 = vlaneseq }
  0xe2   :  { %2116 = vmatprep.mubr.f32.mxu1 %v11115_v0 }
  0xe4   :  { %8992 = vmatmul.mubr.msk.f32.gmra.mrb[10].mxu0 %vm157_vm0, %v11408_v48 }
  0xe5   :  { %8995 = vmatmul.mubr.msk.f32.gmra.mrb[10].mxu1 %vm157_vm0, %v11408_v48  ;;  %2187 = vmatprep.mubr.f32.mxu0 %v11115_v0 }
  0xe6   :  { %2270 = vmatprep.mubr.f32.mxu1 %v11115_v0 }
  0xe8   :  { %8996 = vmatmul.mubr.msk.f32.vlgmr.msra.gmra.mrb[12].mxu0 %vm157_vm0, %v11392_v34 }
  0xe9   :  { %8999 = vmatmul.mubr.msk.f32.vlgmr.msra.gmra.mrb[12].mxu1 %vm157_vm0, %v11392_v34  ;;  %10324 = vmatpush1.bf16.msra.mxu0 %v10323_v4  ;;  %v2358_v34 = vld [vmem:[#allocation7 + $0x3b0] sm:$0xff] }
  0xea   :  { %10328 = vmatpush1.bf16.msra.mxu1 %v10327_v7  ;;  %2193 = vmatprep.mubr.f32.mxu0 %v11115_v0  ;;  %v10343_v36 = vpack.c.bf16 %v2358_v34, %v2346_v33  ;;  %v6656_v4 = vld [vmem:[#allocation10 + $0x1a8] sm:$0xff]  ;;  %v6629_v33 = vld [vmem:[#allocation10 + $0xd0] sm:$0xff]  ;;  %v6630_v34 = vld [vmem:[#allocation10 + $0xd8] sm:$0xff] }
  0xeb   :  { %2276 = vmatprep.mubr.f32.mxu1 %v11115_v0  ;;  %10330 = vmatprep.subr.bf16.mxu0 %v10329_v8  ;;  %v10385_v5 = vpack.c.bf16 %v6656_v4, %v6655_v2  ;;  %v6640_v7 = vld [vmem:[#allocation10 + $0x128] sm:$0xff]  ;;  %v6649_v4 = vld [vmem:[#allocation10 + $0x170] sm:$0xff] }
  0xec   :  { %8997 = vmatmul.mubr.msk.f32.gmra.mrb[14].mxu0 %vm157_vm0, %v11400_v44  ;;  %10334 = vmatprep.subr.bf16.mxu1 %v10333_v9  ;;  %v10387_v8 = vpack.c.bf16 %v6640_v7, %v6639_v6  ;;  %v6625_v9 = vld [vmem:[#allocation10 + $0xb0] sm:$0xff] }
  0xed   :  { %9000 = vmatmul.mubr.msk.f32.gmra.mrb[14].mxu1 %vm157_vm0, %v11400_v44  ;;  %2199 = vmatprep.mubr.f32.mxu0 %v11115_v0  ;;  %v6652_v44 = vld [vmem:[#allocation10 + $0x188] sm:$0xff]  ;;  %v10357_v11 = vpack.c.bf16 %v6626_v10, %v6625_v9  ;;  %v2921_v9 = vshrl.u32 %v2920_v60, 7  ;;  %v11490_v10 = vld [vmem:[#allocation9] ss:$0 sm:$0xff] }
  0xee   :  { %2282 = vmatprep.mubr.f32.mxu1 %v11115_v0  ;;  %v10377_v45 = vpack.c.bf16 %v6652_v44, %v6651_v42  ;;  %v6645_v42 = vld [vmem:[#allocation10 + $0x150] sm:$0xff] }
  0xf0   :  { %8998 = vmatmul.mubr.msk.f32.gmra.mrb[16].mxu0 %vm157_vm0, %v11408_v48 }
  0xf1   :  { %9001 = vmatmul.mubr.msk.f32.gmra.mrb[16].mxu1 %vm157_vm0, %v11408_v48  ;;  %2433 = vmatprep.mubr.f32.mxu0 %v11115_v0  ;;  %v10379_v48 = vpack.c.bf16 %v6636_v47, %v6635_v46  ;;  %v6632_v46 = vld [vmem:[#allocation10 + $0xe8] sm:$0xff] }
  0xf2   :  { %2516 = vmatprep.mubr.f32.mxu1 %v11115_v0 }
  0xf4   :  { %9002 = vmatmul.mubr.msk.f32.vlgmr.msra.gmra.mrb[0].mxu0 %vm157_vm0, %v2360_v16 }
  0xf5   :  { %9005 = vmatmul.mubr.msk.f32.vlgmr.msra.gmra.mrb[0].mxu1 %vm157_vm0, %v2360_v16  ;;  %10332 = vmatpush1.bf16.msra.mxu0 %v10331_v20  ;;  %v10391_v20 = vpack.c.bf16 %v6642_v19, %v6641_v18 }
  0xf6   :  { %10336 = vmatpush1.bf16.msra.mxu1 %v10335_v24  ;;  %2439 = vmatprep.mubr.f32.mxu0 %v11115_v0  ;;  %v6611_v24 = vld [vmem:[#allocation10 + $0x40] sm:$0xff] }
  0xf7   :  { %2522 = vmatprep.mubr.f32.mxu1 %v11115_v0  ;;  %10338 = vmatprep.subr.bf16.mxu0 %v10337_v25  ;;  %v6612_v25 = vld [vmem:[#allocation10 + $0x48] sm:$0xff] }
  0xf8   :  { %9003 = vmatmul.mubr.msk.f32.gmra.mrb[2].mxu0 %vm157_vm0, %v2361_v26  ;;  %10342 = vmatprep.subr.bf16.mxu1 %v10341_v28  ;;  %v10363_v27 = vpack.c.bf16 %v6612_v25, %v6611_v24  ;;  %v6660_v28 = vld [vmem:[#allocation10 + $0x1c8] sm:$0xff] }
  0xf9   :  { %9006 = vmatmul.mubr.msk.f32.gmra.mrb[2].mxu1 %vm157_vm0, %v2361_v26  ;;  %2445 = vmatprep.mubr.f32.mxu0 %v11115_v0 }
  0xfa   :  { %2528 = vmatprep.mubr.f32.mxu1 %v11115_v0 }
  0xfc   :  { %9004 = vmatmul.mubr.msk.f32.gmra.mrb[4].mxu0 %vm157_vm0, %v2362_v30 }
  0xfd   :  { %9007 = vmatmul.mubr.msk.f32.gmra.mrb[4].mxu1 %vm157_vm0, %v2362_v30  ;;  %2599 = vmatprep.mubr.f32.mxu0 %v11115_v0 }
  0xfe   :  { %2682 = vmatprep.mubr.f32.mxu1 %v11115_v0 }
 0x100   :  { %9008 = vmatmul.mubr.msk.f32.vlgmr.msra.gmra.mrb[6].mxu0 %vm157_vm0, %v2360_v16 }
 0x101   :  { %9011 = vmatmul.mubr.msk.f32.vlgmr.msra.gmra.mrb[6].mxu1 %vm157_vm0, %v2360_v16  ;;  %10340 = vmatpush1.bf16.msra.mxu0 %v10339_v35  ;;  %v10365_v35 = vpack.c.bf16 %v6630_v34, %v6629_v33 }
 0x102   :  { %10344 = vmatpush1.bf16.msra.mxu1 %v10343_v36  ;;  %2605 = vmatprep.mubr.f32.mxu0 %v11115_v0  ;;  %v6613_v36 = vld [vmem:[#allocation10 + $0x50] sm:$0xff] }
 0x103   :  { %2688 = vmatprep.mubr.f32.mxu1 %v11115_v0  ;;  %10346 = vmatprep.subr.bf16.mxu0 %v10345_v39  ;;  %v10367_v39 = vpack.c.bf16 %v6614_v37, %v6613_v36 }
 0x104   :  { %9009 = vmatmul.mubr.msk.f32.gmra.mrb[8].mxu0 %vm157_vm0, %v2361_v26  ;;  %10378 = vmatprep.subr.bf16.mxu1 %v10377_v45  ;;  %v6631_v45 = vld [vmem:[#allocation10 + $0xe0] sm:$0xff] }
 0x105   :  { %9012 = vmatmul.mubr.msk.f32.gmra.mrb[8].mxu1 %vm157_vm0, %v2361_v26  ;;  %2611 = vmatprep.mubr.f32.mxu0 %v11115_v0  ;;  %v10369_v47 = vpack.c.bf16 %v6632_v46, %v6631_v45 }
 0x106   :  { %2694 = vmatprep.mubr.f32.mxu1 %v11115_v0 }
 0x108   :  { %9010 = vmatmul.mubr.msk.f32.gmra.mrb[10].mxu0 %vm157_vm0, %v2362_v30 }
 0x109   :  { %9013 = vmatmul.mubr.msk.f32.gmra.mrb[10].mxu1 %vm157_vm0, %v2362_v30  ;;  %2765 = vmatprep.mubr.f32.mxu0 %v11115_v0 }
 0x10a   :  { %2848 = vmatprep.mubr.f32.mxu1 %v11115_v0 }
 0x10c   :  { %9014 = vmatmul.mubr.msk.f32.vlgmr.msra.gmra.mrb[12].mxu0 %vm157_vm0, %v2360_v16 }
 0x10d   :  { %9017 = vmatmul.mubr.msk.f32.vlgmr.msra.gmra.mrb[12].mxu1 %vm157_vm0, %v2360_v16  ;;  %2771 = vmatprep.mubr.f32.mxu0 %v11115_v0  ;;  %v6658_v16 = vld [vmem:[#allocation10 + $0x1b8] sm:$0xff] }
 0x10e   :  { %2854 = vmatprep.mubr.f32.mxu1 %v11115_v0  ;;  %10348 = vmatpush3.bf16.msra.mxu0 %v10347_v43  ;;  %v10389_v17 = vpack.c.bf16 %v6658_v16, %v6657_v14  ;;  %v6646_v43 = vld [vmem:[#allocation10 + $0x158] sm:$0xff] }
 0x10f   :  { %10380 = vmatpush3.bf16.msra.mxu1 %v10379_v48  ;;  %v10399_v44 = vpack.c.bf16 %v6646_v43, %v6645_v42  ;;  %v6615_v48 = vld [vmem:[#allocation10 + $0x60] sm:$0xff] }
 0x110   :  { %9015 = vmatmul.mubr.msk.f32.gmra.mrb[14].mxu0 %vm157_vm0, %v2361_v26  ;;  %10382 = vmatprep.subr.bf16.mxu1 %v10381_v56  ;;  %v6633_v56 = vld [vmem:[#allocation10 + $0xf0] sm:$0xff] }
 0x111   :  { %9018 = vmatmul.mubr.msk.f32.gmra.mrb[14].mxu1 %vm157_vm0, %v2361_v26  ;;  %2777 = vmatprep.mubr.f32.mxu0 %v11115_v0  ;;  %v6659_v26 = vld [vmem:[#allocation10 + $0x1c0] sm:$0xff]  ;;  %v10373_v61 = vpack.c.bf16 %v6634_v57, %v6633_v56 }
 0x112   :  { %2860 = vmatprep.mubr.f32.mxu1 %v11115_v0  ;;  %v6621_v0 = vld [vmem:[#allocation10 + $0x90] sm:$0xff]  ;;  %v10393_v29 = vpack.c.bf16 %v6660_v28, %v6659_v26 }
 0x113   :  { %v10349_v50 = vpack.c.bf16 %v6622_v49, %v6621_v0  ;;  %10384 = vmatpush3.bf16.msra.mxu1 %v10383_v59  ;;  %v6616_v0 = vld [vmem:[#allocation10 + $0x68] sm:$0xff]  ;;  %v6663_v49 = vld [vmem:[#allocation10 + $0x1e0] sm:$0xff]  ;;  %v2918_v59 = vunpack.c.l.s4 %v11116_v58 }
 0x114   :  { %9016 = vmatmul.mubr.msk.f32.gmra.mrb[16].mxu0 %vm157_vm0, %v2362_v30  ;;  %10386 = vmatprep.subr.bf16.mxu1 %v10385_v5  ;;  %v10401_v52 = vpack.c.bf16 %v6664_v51, %v6663_v49  ;;  %v6650_v5 = vld [vmem:[#allocation10 + $0x178] sm:$0xff] }
 0x115   :  { %9019 = vmatmul.mubr.msk.f32.gmra.mrb[16].mxu1 %vm157_vm0, %v2362_v30  ;;  %10350 = vmatprep.subr.bf16.mxu0 %v10349_v50  ;;  %v6643_v30 = vld [vmem:[#allocation10 + $0x140] sm:$0xff]  ;;  %v10371_v50 = vpack.c.bf16 %v6616_v0, %v6615_v48  ;;  %v10407_v7 = vpack.c.bf16 %v6650_v5, %v6649_v4 }
 0x116   :  { %10352 = vmatpush3.bf16.msra.mxu0 %v10351_v54  ;;  %v10395_v32 = vpack.c.bf16 %v6644_v31, %v6643_v30  ;;  %v6648_v54 = vld [vmem:[#allocation10 + $0x168] sm:$0xff] }
 0x117   :  { %10354 = vmatprep.subr.bf16.mxu0 %v10353_v62  ;;  %10388 = vmatpush3.bf16.msra.mxu1 %v10387_v8  ;;  %v10403_v55 = vpack.c.bf16 %v6648_v54, %v6647_v53  ;;  %v6617_v62 = vld [vmem:[#allocation10 + $0x70] sm:$0xff]  ;;  %v2919_v8 = vunpack.c.0.s8 %v2918_v59 }
 0x118   :  { %10390 = vmatprep.subr.bf16.mxu1 %v10389_v17  ;;  %v10375_v2 = vpack.c.bf16 %v6618_v63, %v6617_v62 }
 0x11a   :  { %10356 = vmatpush3.bf16.msra.mxu0 %v10355_v3  ;;  %v6666_v3 = vld [vmem:[#allocation10 + $0x1f8] sm:$0xff] }
 0x11b   :  { %10358 = vmatprep.subr.bf16.mxu0 %v10357_v11  ;;  %10392 = vmatpush3.bf16.msra.mxu1 %v10391_v20  ;;  %v10405_v6 = vpack.c.bf16 %v6666_v3, %v6665_v1  ;;  %v11492_v11 = vsub.s32 %v2919_v8, %v2921_v9 }
 0x11c   :  { %10394 = vmatprep.subr.bf16.mxu1 %v10393_v29 }
 0x11e   :  { %10360 = vmatpush3.bf16.msra.mxu0 %v10359_v15 }
 0x11f   :  { %10362 = vmatprep.subr.bf16.mxu0 %v10361_v23  ;;  %10396 = vmatpush3.bf16.msra.mxu1 %v10395_v32 }
 0x120   :  { %10398 = vmatprep.subr.bf16.mxu1 %v10397_v41 }
 0x122   :  { %10364 = vmatpush3.bf16.msra.mxu0 %v10363_v27 }
 0x123   :  { %10366 = vmatprep.subr.bf16.mxu0 %v10365_v35  ;;  %10400 = vmatpush3.bf16.msra.mxu1 %v10399_v44 }
 0x124   :  { %10402 = vmatprep.subr.bf16.mxu1 %v10401_v52 }
 0x126   :  { %10368 = vmatpush3.bf16.msra.mxu0 %v10367_v39 }
 0x127   :  { %10370 = vmatprep.subr.bf16.mxu0 %v10369_v47  ;;  %10404 = vmatpush3.bf16.msra.mxu1 %v10403_v55 }
 0x128   :  { %10406 = vmatprep.subr.bf16.mxu1 %v10405_v6 }
 0x12a   :  { %10372 = vmatpush3.bf16.msra.mxu0 %v10371_v50 }
 0x12b   :  { %10374 = vmatprep.subr.bf16.mxu0 %v10373_v61  ;;  %10408 = vmatpush3.bf16.msra.mxu1 %v10407_v7 }
 0x12e   :  { %10376 = vmatpush3.bf16.msra.mxu0 %v10375_v2 }
 0x1c7   :  { %v2435_v12 = vpop.f32.mrb[0].mxu0 }
 0x1c8   :  { %v2910_v13 = vadd.f32 %v11490_v10, %v2435_v12  ;;  %v2518_v14 = vpop.f32.mrb[0].mxu1  ;;  %v2437_v15 = vpop.f32.mrb[1].mxu0 }
 0x1c9   :  { %v3326_v16 = vadd.f32 %v11490_v10, %v2518_v14  ;;  %v3118_v17 = vadd.f32 %v11490_v10, %v2437_v15  ;;  %v2520_v18 = vpop.f32.mrb[1].mxu1 }
 0x1ca   :  { %v2916_v19 = vcombine.high %v2910_v13, %v2910_v13  ;;  %v2923_v20 = vrot.slane %v2910_v13, %v11492_v11  ;;  %v11499_v21 = vadd.f32 %v11490_v10, %v2520_v18 }
 0x1cb   :  { %v3332_v22 = vcombine.high %v3326_v16, %v3326_v16  ;;  %v3339_v23 = vrot.slane %v3326_v16, %v11492_v11  ;;  %v3124_v24 = vcombine.high %v3118_v17, %v3118_v17  ;;  %v3131_v25 = vrot.slane %v3118_v17, %v11492_v11  ;;  %v11503_v26 = vpop.f32.mrb[2].mxu0 }
 0x1cc   :  { %v2930_v27 = vrot.slane %v2916_v19, %v11492_v11  ;;  %v2931_v28 = vcombine.high %v2923_v20, %v2923_v20  ;;  %v2939_v29 = vrot.slane %v2923_v20, %v11492_v11  ;;  %9021 = vst.sshfl [vmem:[#allocation2] sm:$0x1 pattern:$0x73625140] %v2923_v20  ;;  %v3540_v30 = vcombine.high %v11499_v21, %v11499_v21  ;;  %v11509_v31 = vpop.f32.mrb[2].mxu1  ;;  %v11511_v32 = vpop.f32.mrb[3].mxu0 }
 0x1cd   :  { %v3346_v33 = vrot.slane %v3332_v22, %v11492_v11  ;;  %v3347_v34 = vcombine.high %v3339_v23, %v3339_v23  ;;  %v3355_v35 = vrot.slane %v3339_v23, %v11492_v11  ;;  %9047 = vst.sshfl [vmem:[#allocation2 + $0x2] sm:$0x1 pattern:$0x73625140] %v3339_v23  ;;  %v3138_v36 = vrot.slane %v3124_v24, %v11492_v11  ;;  %v11516_v37 = vpop.f32.mrb[3].mxu1 }
 0x1ce   :  { %9034 = vst.sshfl [vmem:[#allocation2 + $0x1] sm:$0x1 pattern:$0x73625140] %v3131_v25  ;;  %v2932_v38 = vcombine.high %v2930_v27, %v2930_v27  ;;  %v2946_v39 = vrot.slane %v2930_v27, %v11492_v11  ;;  %v2953_v40 = vrot.slane %v2931_v28, %v11492_v11  ;;  %v2961_v41 = vcombine.high %v2939_v29, %v2939_v29 }
 0x1cf   :  { %9022 = vst.sshfl [vmem:[#allocation2 + $0x10] sm:$0x1 pattern:$0x73625140] %v2931_v28  ;;  %v3348_v42 = vcombine.high %v3346_v33, %v3346_v33  ;;  %v3362_v43 = vrot.slane %v3346_v33, %v11492_v11  ;;  %v3369_v44 = vrot.slane %v3347_v34, %v11492_v11  ;;  %v3377_v45 = vcombine.high %v3355_v35, %v3355_v35  ;;  %v11522_v46 = vpop.f32.mrb[4].mxu0 }
 0x1d0   :  { %9023 = vst.sshfl [vmem:[#allocation2 + $0x40] sm:$0x1 pattern:$0x73625140] %v2930_v27  ;;  %v2960_v47 = vrot.slane %v2932_v38, %v11492_v11  ;;  %v2962_v48 = vcombine.high %v2946_v39, %v2946_v39  ;;  %v2963_v0 = vcombine.high %v2953_v40, %v2953_v40  ;;  %3089 = vst [vmem:[#allocation2 + $0x20] sm:$0x1] %v2961_v41 }
 0x1d1   :  { %9048 = vst.sshfl [vmem:[#allocation2 + $0x12] sm:$0x1 pattern:$0x73625140] %v3347_v34  ;;  %v3139_v49 = vcombine.high %v3131_v25, %v3131_v25  ;;  %v11525_v50 = vpop.f32.mrb[4].mxu1  ;;  %v11527_v51 = vpop.f32.mrb[5].mxu0  ;;  %v3376_v52 = vrot.slane %v3348_v42, %v11492_v11  ;;  %v3378_v53 = vcombine.high %v3362_v43, %v3362_v43  ;;  %v3379_v54 = vcombine.high %v3369_v44, %v3369_v44 }
 0x1d2   :  { %9049 = vst.sshfl [vmem:[#allocation2 + $0x42] sm:$0x1 pattern:$0x73625140] %v3346_v33  ;;  %3505 = vst [vmem:[#allocation2 + $0x22] sm:$0x1] %v3377_v45  ;;  %v3140_v55 = vcombine.high %v3138_v36, %v3138_v36  ;;  %v2964_v57 = vcombine.high %v2960_v47, %v2960_v47  ;;  %v3147_v58 = vrot.slane %v3131_v25, %v11492_v11 }
 0x1d3   :  { %9036 = vst.sshfl [vmem:[#allocation2 + $0x41] sm:$0x1 pattern:$0x73625140] %v3138_v36  ;;  %v11530_v56 = vpop.f32.mrb[5].mxu1  ;;  %v3154_v59 = vrot.slane %v3138_v36, %v11492_v11  ;;  %v3161_v60 = vrot.slane %v3139_v49, %v11492_v11  ;;  %v3380_v61 = vcombine.high %v3376_v52, %v3376_v52  ;;  %v3547_v63 = vrot.slane %v11499_v21, %v11492_v11  ;;  %v11539_v2 = vpop.f32.mrb[6].mxu0 }
 0x1d4   :  { %9024 = vst.sshfl [vmem:[#allocation2 + $0x50] sm:$0x1 pattern:$0x73625140] %v2932_v38  ;;  %3090 = vst [vmem:[#allocation2 + $0x30] sm:$0x1] %v2963_v0  ;;  %v3168_v62 = vrot.slane %v3140_v55, %v11492_v11  ;;  %v3554_v1 = vrot.slane %v3540_v30, %v11492_v11  ;;  %v3169_v3 = vcombine.high %v3147_v58, %v3147_v58 }
 0x1d5   :  { %9050 = vst.sshfl [vmem:[#allocation2 + $0x52] sm:$0x1 pattern:$0x73625140] %v3348_v42  ;;  %3093 = vst [vmem:[#allocation2 + $0x60] sm:$0x1] %v2962_v48  ;;  %v3170_v4 = vcombine.high %v3154_v59, %v3154_v59  ;;  %v3171_v5 = vcombine.high %v3161_v60, %v3161_v60  ;;  %v2911_v6 = vadd.f32 %v11490_v10, %v11503_v26 }
 0x1d6   :  { %9035 = vst.sshfl [vmem:[#allocation2 + $0x11] sm:$0x1 pattern:$0x73625140] %v3139_v49  ;;  %3506 = vst [vmem:[#allocation2 + $0x32] sm:$0x1] %v3379_v54  ;;  %v3172_v9 = vcombine.high %v3168_v62, %v3168_v62  ;;  %v3555_v12 = vcombine.high %v3547_v63, %v3547_v63  ;;  %v3556_v13 = vcombine.high %v3554_v1, %v3554_v1 }
 0x1d7   :  { %3509 = vst [vmem:[#allocation2 + $0x62] sm:$0x1] %v3378_v53  ;;  %9037 = vst.sshfl [vmem:[#allocation2 + $0x51] sm:$0x1 pattern:$0x73625140] %v3140_v55  ;;  %v3563_v14 = vrot.slane %v3547_v63, %v11492_v11  ;;  %v3570_v16 = vrot.slane %v3554_v1, %v11492_v11  ;;  %v2965_v17 = vcombine.high %v2911_v6, %v2911_v6 }
 0x1d8   :  { %3094 = vst [vmem:[#allocation2 + $0x70] sm:$0x1] %v2964_v57  ;;  %v11543_v7 = vpop.f32.mrb[6].mxu1  ;;  %v11545_v8 = vpop.f32.mrb[7].mxu0  ;;  %3510 = vst [vmem:[#allocation2 + $0x72] sm:$0x1] %v3380_v61  ;;  %v2972_v18 = vrot.slane %v2911_v6, %v11492_v11  ;;  %v3327_v19 = vadd.f32 %v11490_v10, %v11509_v31  ;;  %v3577_v20 = vrot.slane %v3555_v12, %v11492_v11 }
 0x1d9   :  { %9060 = vst.sshfl [vmem:[#allocation2 + $0x3] sm:$0x1 pattern:$0x73625140] %v3547_v63  ;;  %v11548_v15 = vpop.f32.mrb[7].mxu1  ;;  %v3584_v21 = vrot.slane %v3556_v13, %v11492_v11  ;;  %v3585_v22 = vcombine.high %v3563_v14, %v3563_v14  ;;  %v3119_v23 = vadd.f32 %v11490_v10, %v11511_v32  ;;  %v11558_v24 = vpop.f32.mrb[8].mxu0  ;;  %v3586_v25 = vcombine.high %v3570_v16, %v3570_v16 }
 0x1da   :  { %9062 = vst.sshfl [vmem:[#allocation2 + $0x43] sm:$0x1 pattern:$0x73625140] %v3554_v1  ;;  %3297 = vst [vmem:[#allocation2 + $0x21] sm:$0x1] %v3169_v3  ;;  %v2979_v26 = vrot.slane %v2965_v17, %v11492_v11  ;;  %v2980_v27 = vcombine.high %v2972_v18, %v2972_v18  ;;  %v2988_v28 = vrot.slane %v2972_v18, %v11492_v11 }
 0x1db   :  { %3298 = vst [vmem:[#allocation2 + $0x31] sm:$0x1] %v3171_v5  ;;  %3301 = vst [vmem:[#allocation2 + $0x61] sm:$0x1] %v3170_v4  ;;  %v11562_v29 = vpop.f32.mrb[8].mxu1  ;;  %v11564_v30 = vpop.f32.mrb[9].mxu0  ;;  %v3587_v31 = vcombine.high %v3577_v20, %v3577_v20  ;;  %v3588_v33 = vcombine.high %v3584_v21, %v3584_v21  ;;  %v3381_v34 = vcombine.high %v3327_v19, %v3327_v19 }
 0x1dc   :  { %3302 = vst [vmem:[#allocation2 + $0x71] sm:$0x1] %v3172_v9  ;;  %9061 = vst.sshfl [vmem:[#allocation2 + $0x13] sm:$0x1 pattern:$0x73625140] %v3555_v12  ;;  %v3388_v35 = vrot.slane %v3327_v19, %v11492_v11  ;;  %v2981_v36 = vcombine.high %v2979_v26, %v2979_v26  ;;  %v2995_v38 = vrot.slane %v2979_v26, %v11492_v11 }
 0x1dd   :  { %9063 = vst.sshfl [vmem:[#allocation2 + $0x53] sm:$0x1 pattern:$0x73625140] %v3556_v13  ;;  %3713 = vst [vmem:[#allocation2 + $0x23] sm:$0x1] %v3585_v22  ;;  %v3002_v39 = vrot.slane %v2980_v27, %v11492_v11  ;;  %v3010_v40 = vcombine.high %v2988_v28, %v2988_v28  ;;  %v3395_v41 = vrot.slane %v3381_v34, %v11492_v11 }
 0x1de   :  { %9025 = vst.sshfl [vmem:[#allocation2 + $0x80] sm:$0x1 pattern:$0x73625140] %v2972_v18  ;;  %v11567_v32 = vpop.f32.mrb[9].mxu1  ;;  %v3396_v42 = vcombine.high %v3388_v35, %v3388_v35  ;;  %v3404_v43 = vrot.slane %v3388_v35, %v11492_v11  ;;  %v3173_v44 = vcombine.high %v3119_v23, %v3119_v23  ;;  %v11573_v45 = vpop.f32.mrb[10].mxu0  ;;  %v3009_v47 = vrot.slane %v2981_v36, %v11492_v11 }
 0x1df   :  { %3717 = vst [vmem:[#allocation2 + $0x63] sm:$0x1] %v3586_v25  ;;  %9026 = vst.sshfl [vmem:[#allocation2 + $0x90] sm:$0x1 pattern:$0x73625140] %v2980_v27  ;;  %v3011_v48 = vcombine.high %v2995_v38, %v2995_v38  ;;  %v3012_v0 = vcombine.high %v3002_v39, %v3002_v39  ;;  %v3180_v49 = vrot.slane %v3119_v23, %v11492_v11 }
 0x1e0   :  { %9027 = vst.sshfl [vmem:[#allocation2 + $0xc0] sm:$0x1 pattern:$0x73625140] %v2979_v26  ;;  %3714 = vst [vmem:[#allocation2 + $0x33] sm:$0x1] %v3587_v31  ;;  %v3397_v54 = vcombine.high %v3395_v41, %v3395_v41  ;;  %v3411_v55 = vrot.slane %v3395_v41, %v11492_v11  ;;  %v3418_v57 = vrot.slane %v3396_v42, %v11492_v11 }
 0x1e1   :  { %3718 = vst [vmem:[#allocation2 + $0x73] sm:$0x1] %v3588_v33  ;;  %9051 = vst.sshfl [vmem:[#allocation2 + $0x82] sm:$0x1 pattern:$0x73625140] %v3388_v35  ;;  %v3426_v58 = vcombine.high %v3404_v43, %v3404_v43  ;;  %v3013_v60 = vcombine.high %v3009_v47, %v3009_v47  ;;  %v3187_v61 = vrot.slane %v3173_v44, %v11492_v11 }
 0x1e2   :  { %3097 = vst [vmem:[#allocation2 + $0xa0] sm:$0x1] %v3010_v40  ;;  %9028 = vst.sshfl [vmem:[#allocation2 + $0xd0] sm:$0x1 pattern:$0x73625140] %v2981_v36  ;;  %v3188_v62 = vcombine.high %v3180_v49, %v3180_v49  ;;  %v3196_v63 = vrot.slane %v3180_v49, %v11492_v11  ;;  %v3425_v1 = vrot.slane %v3397_v54, %v11492_v11 }
 0x1e3   :  { %v11577_v52 = vpop.f32.mrb[10].mxu1  ;;  %v11579_v53 = vpop.f32.mrb[11].mxu0  ;;  %9052 = vst.sshfl [vmem:[#allocation2 + $0x92] sm:$0x1 pattern:$0x73625140] %v3396_v42  ;;  %v3427_v3 = vcombine.high %v3411_v55, %v3411_v55  ;;  %v3428_v4 = vcombine.high %v3418_v57, %v3418_v57  ;;  %v3535_v5 = vadd.f32 %v11490_v10, %v11516_v37  ;;  %v3189_v9 = vcombine.high %v3187_v61, %v3187_v61 }
 0x1e4   :  { %9053 = vst.sshfl [vmem:[#allocation2 + $0xc2] sm:$0x1 pattern:$0x73625140] %v3395_v41  ;;  %v11583_v59 = vpop.f32.mrb[11].mxu1  ;;  %v11590_v6 = vpop.f32.mrb[12].mxu0  ;;  %v3203_v12 = vrot.slane %v3187_v61, %v11492_v11  ;;  %v3210_v13 = vrot.slane %v3188_v62, %v11492_v11  ;;  %v3218_v14 = vcombine.high %v3196_v63, %v3196_v63  ;;  %v3429_v18 = vcombine.high %v3425_v1, %v3425_v1 }
 0x1e5   :  { %3098 = vst [vmem:[#allocation2 + $0xb0] sm:$0x1] %v3012_v0  ;;  %3101 = vst [vmem:[#allocation2 + $0xe0] sm:$0x1] %v3011_v48  ;;  %v11594_v16 = vpop.f32.mrb[12].mxu1  ;;  %v11596_v17 = vpop.f32.mrb[13].mxu0  ;;  %v3589_v19 = vcombine.high %v3535_v5, %v3535_v5  ;;  %v3596_v37 = vrot.slane %v3535_v5, %v11492_v11  ;;  %v2912_v20 = vadd.f32 %v11490_v10, %v11522_v46 }
 0x1e6   :  { %9038 = vst.sshfl [vmem:[#allocation2 + $0x81] sm:$0x1 pattern:$0x73625140] %v3180_v49  ;;  %3513 = vst [vmem:[#allocation2 + $0xa2] sm:$0x1] %v3426_v58  ;;  %v3217_v22 = vrot.slane %v3189_v9, %v11492_v11  ;;  %v3219_v23 = vcombine.high %v3203_v12, %v3203_v12  ;;  %v3220_v25 = vcombine.high %v3210_v13, %v3210_v13 }
 0x1e7   :  { %9054 = vst.sshfl [vmem:[#allocation2 + $0xd2] sm:$0x1 pattern:$0x73625140] %v3397_v54  ;;  %3102 = vst [vmem:[#allocation2 + $0xf0] sm:$0x1] %v3013_v60  ;;  %v3328_v26 = vadd.f32 %v11490_v10, %v11525_v50  ;;  %v3603_v27 = vrot.slane %v3589_v19, %v11492_v11  ;;  %v3604_v28 = vcombine.high %v3596_v37, %v3596_v37 }
 0x1e8   :  { %9039 = vst.sshfl [vmem:[#allocation2 + $0x91] sm:$0x1 pattern:$0x73625140] %v3188_v62  ;;  %3514 = vst [vmem:[#allocation2 + $0xb2] sm:$0x1] %v3428_v4  ;;  %v3612_v31 = vrot.slane %v3596_v37, %v11492_v11  ;;  %v3014_v33 = vcombine.high %v2912_v20, %v2912_v20  ;;  %v3221_v34 = vcombine.high %v3217_v22, %v3217_v22 }
 0x1e9   :  { %9040 = vst.sshfl [vmem:[#allocation2 + $0xc1] sm:$0x1 pattern:$0x73625140] %v3187_v61  ;;  %3517 = vst [vmem:[#allocation2 + $0xe2] sm:$0x1] %v3427_v3  ;;  %v3021_v35 = vrot.slane %v2912_v20, %v11492_v11  ;;  %v3430_v36 = vcombine.high %v3328_v26, %v3328_v26  ;;  %v3437_v38 = vrot.slane %v3328_v26, %v11492_v11 }
 0x1ea   :  { %v11601_v21 = vpop.f32.mrb[13].mxu1  ;;  %3305 = vst [vmem:[#allocation2 + $0xa1] sm:$0x1] %v3218_v14  ;;  %3518 = vst [vmem:[#allocation2 + $0xf2] sm:$0x1] %v3429_v18  ;;  %v11608_v46 = vpop.f32.mrb[14].mxu0  ;;  %v3605_v40 = vcombine.high %v3603_v27, %v3603_v27  ;;  %v3619_v41 = vrot.slane %v3603_v27, %v11492_v11  ;;  %v3626_v42 = vrot.slane %v3604_v28, %v11492_v11 }
 0x1eb   :  { %9041 = vst.sshfl [vmem:[#allocation2 + $0xd1] sm:$0x1 pattern:$0x73625140] %v3189_v9  ;;  %3306 = vst [vmem:[#allocation2 + $0xb1] sm:$0x1] %v3220_v25  ;;  %v3634_v43 = vcombine.high %v3612_v31, %v3612_v31  ;;  %v3028_v47 = vrot.slane %v3014_v33, %v11492_v11  ;;  %v3029_v48 = vcombine.high %v3021_v35, %v3021_v35 }
 0x1ec   :  { %9064 = vst.sshfl [vmem:[#allocation2 + $0x83] sm:$0x1 pattern:$0x73625140] %v3596_v37  ;;  %3309 = vst [vmem:[#allocation2 + $0xe1] sm:$0x1] %v3219_v23  ;;  %v3037_v0 = vrot.slane %v3021_v35, %v11492_v11  ;;  %v3444_v49 = vrot.slane %v3430_v36, %v11492_v11  ;;  %v3633_v54 = vrot.slane %v3605_v40, %v11492_v11 }
 0x1ed   :  { %v11612_v39 = vpop.f32.mrb[14].mxu1  ;;  %v11614_v50 = vpop.f32.mrb[15].mxu0  ;;  %9065 = vst.sshfl [vmem:[#allocation2 + $0x93] sm:$0x1 pattern:$0x73625140] %v3604_v28  ;;  %v3635_v55 = vcombine.high %v3619_v41, %v3619_v41  ;;  %v3636_v57 = vcombine.high %v3626_v42, %v3626_v42  ;;  %v3445_v58 = vcombine.high %v3437_v38, %v3437_v38  ;;  %v3030_v61 = vcombine.high %v3028_v47, %v3028_v47 }
 0x1ee   :  { %9066 = vst.sshfl [vmem:[#allocation2 + $0xc3] sm:$0x1 pattern:$0x73625140] %v3603_v27  ;;  %v11618_v44 = vpop.f32.mrb[15].mxu1  ;;  %v11624_v60 = vpop.f32.mrb[16].mxu0  ;;  %v3044_v62 = vrot.slane %v3028_v47, %v11492_v11  ;;  %v3051_v63 = vrot.slane %v3029_v48, %v11492_v11  ;;  %v3059_v1 = vcombine.high %v3037_v0, %v3037_v0  ;;  %v3637_v5 = vcombine.high %v3633_v54, %v3633_v54 }
 0x1ef   :  { %3310 = vst [vmem:[#allocation2 + $0xf1] sm:$0x1] %v3221_v34  ;;  %9029 = vst.sshfl [vmem:[#allocation2 + $0x100] sm:$0x1 pattern:$0x73625140] %v3021_v35  ;;  %v3446_v9 = vcombine.high %v3444_v49, %v3444_v49  ;;  %v3453_v12 = vrot.slane %v3437_v38, %v11492_v11  ;;  %v3460_v13 = vrot.slane %v3444_v49, %v11492_v11 }
 0x1f0   :  { %9055 = vst.sshfl [vmem:[#allocation2 + $0x102] sm:$0x1 pattern:$0x73625140] %v3437_v38  ;;  %3721 = vst [vmem:[#allocation2 + $0xa3] sm:$0x1] %v3634_v43  ;;  %v3058_v18 = vrot.slane %v3030_v61, %v11492_v11  ;;  %v3060_v19 = vcombine.high %v3044_v62, %v3044_v62  ;;  %v3061_v37 = vcombine.high %v3051_v63, %v3051_v63 }
 0x1f1   :  { %9067 = vst.sshfl [vmem:[#allocation2 + $0xd3] sm:$0x1 pattern:$0x73625140] %v3605_v40  ;;  %v11628_v3 = vpop.f32.mrb[16].mxu1  ;;  %v11630_v4 = vpop.f32.mrb[17].mxu0  ;;  %v3467_v20 = vrot.slane %v3445_v58, %v11492_v11  ;;  %v3474_v22 = vrot.slane %v3446_v9, %v11492_v11  ;;  %v3475_v23 = vcombine.high %v3453_v12, %v3453_v12  ;;  %v3476_v25 = vcombine.high %v3460_v13, %v3460_v13 }
 0x1f2   :  { %9030 = vst.sshfl [vmem:[#allocation2 + $0x110] sm:$0x1 pattern:$0x73625140] %v3029_v48  ;;  %3722 = vst [vmem:[#allocation2 + $0xb3] sm:$0x1] %v3636_v57  ;;  %v3120_v26 = vadd.f32 %v11490_v10, %v11527_v51  ;;  %v3062_v27 = vcombine.high %v3058_v18, %v3058_v18  ;;  %v3536_v31 = vadd.f32 %v11490_v10, %v11530_v56 }
 0x1f3   :  { %9031 = vst.sshfl [vmem:[#allocation2 + $0x140] sm:$0x1 pattern:$0x73625140] %v3028_v47  ;;  %3725 = vst [vmem:[#allocation2 + $0xe3] sm:$0x1] %v3635_v55  ;;  %v3477_v28 = vcombine.high %v3467_v20, %v3467_v20  ;;  %v3742_v33 = vadd.f32 %v11490_v10, %v11539_v2  ;;  %v3478_v34 = vcombine.high %v3474_v22, %v3474_v22 }
 0x1f4   :  { %9057 = vst.sshfl [vmem:[#allocation2 + $0x142] sm:$0x1 pattern:$0x73625140] %v3444_v49  ;;  %v11634_v14 = vpop.f32.mrb[17].mxu1  ;;  %v3222_v35 = vcombine.high %v3120_v26, %v3120_v26  ;;  %v3229_v36 = vrot.slane %v3120_v26, %v11492_v11  ;;  %v4158_v38 = vadd.f32 %v11490_v10, %v11543_v7  ;;  %v3638_v51 = vcombine.high %v3536_v31, %v3536_v31 }
 0x1f5   :  { %9056 = vst.sshfl [vmem:[#allocation2 + $0x112] sm:$0x1 pattern:$0x73625140] %v3445_v58  ;;  %3105 = vst [vmem:[#allocation2 + $0x120] sm:$0x1] %v3059_v1  ;;  %v3645_v40 = vrot.slane %v3536_v31, %v11492_v11  ;;  %v3748_v41 = vcombine.high %v3742_v33, %v3742_v33  ;;  %v3755_v56 = vrot.slane %v3742_v33, %v11492_v11 }
 0x1f6   :  { %9032 = vst.sshfl [vmem:[#allocation2 + $0x150] sm:$0x1 pattern:$0x73625140] %v3030_v61  ;;  %3726 = vst [vmem:[#allocation2 + $0xf3] sm:$0x1] %v3637_v5  ;;  %v3236_v2 = vrot.slane %v3222_v35, %v11492_v11  ;;  %v3237_v42 = vcombine.high %v3229_v36, %v3229_v36  ;;  %v3245_v43 = vrot.slane %v3229_v36, %v11492_v11 }
 0x1f7   :  { %9058 = vst.sshfl [vmem:[#allocation2 + $0x152] sm:$0x1 pattern:$0x73625140] %v3446_v9  ;;  %3106 = vst [vmem:[#allocation2 + $0x130] sm:$0x1] %v3061_v37  ;;  %v4164_v47 = vcombine.high %v4158_v38, %v4158_v38  ;;  %v3652_v48 = vrot.slane %v3638_v51, %v11492_v11  ;;  %v3653_v0 = vcombine.high %v3645_v40, %v3645_v40 }
 0x1f8   :  { %3109 = vst [vmem:[#allocation2 + $0x160] sm:$0x1] %v3060_v19  ;;  %3521 = vst [vmem:[#allocation2 + $0x122] sm:$0x1] %v3475_v23  ;;  %v3661_v7 = vrot.slane %v3645_v40, %v11492_v11  ;;  %v3762_v49 = vrot.slane %v3748_v41, %v11492_v11  ;;  %v3238_v54 = vcombine.high %v3236_v2, %v3236_v2 }
 0x1f9   :  { %3525 = vst [vmem:[#allocation2 + $0x162] sm:$0x1] %v3476_v25  ;;  %3110 = vst [vmem:[#allocation2 + $0x170] sm:$0x1] %v3062_v27  ;;  %v3252_v55 = vrot.slane %v3236_v2, %v11492_v11  ;;  %v3259_v57 = vrot.slane %v3237_v42, %v11492_v11  ;;  %v3267_v58 = vcombine.high %v3245_v43, %v3245_v43 }
 0x1fa   :  { %3522 = vst [vmem:[#allocation2 + $0x132] sm:$0x1] %v3477_v28  ;;  %3526 = vst [vmem:[#allocation2 + $0x172] sm:$0x1] %v3478_v34  ;;  %v3654_v61 = vcombine.high %v3652_v48, %v3652_v48  ;;  %v3668_v62 = vrot.slane %v3652_v48, %v11492_v11  ;;  %v3675_v63 = vrot.slane %v3653_v0, %v11492_v11 }
 0x1fb   :  { %9042 = vst.sshfl [vmem:[#allocation2 + $0x101] sm:$0x1 pattern:$0x73625140] %v3229_v36  ;;  %v3683_v1 = vcombine.high %v3661_v7, %v3661_v7  ;;  %v3266_v5 = vrot.slane %v3238_v54, %v11492_v11  ;;  %v3268_v9 = vcombine.high %v3252_v55, %v3252_v55  ;;  %v3269_v12 = vcombine.high %v3259_v57, %v3259_v57 }
 0x1fc   :  { %9068 = vst.sshfl [vmem:[#allocation2 + $0x103] sm:$0x1 pattern:$0x73625140] %v3645_v40  ;;  %3313 = vst [vmem:[#allocation2 + $0x121] sm:$0x1] %v3267_v58  ;;  %v3763_v13 = vcombine.high %v3755_v56, %v3755_v56  ;;  %v3682_v18 = vrot.slane %v3654_v61, %v11492_v11  ;;  %v3684_v19 = vcombine.high %v3668_v62, %v3668_v62 }
 0x1fd   :  { %9073 = vst.sshfl [vmem:[#allocation2 + $0x4] sm:$0x1 pattern:$0x73625140] %v3755_v56  ;;  %v3685_v37 = vcombine.high %v3675_v63, %v3675_v63  ;;  %3729 = vst [vmem:[#allocation2 + $0x123] sm:$0x1] %v3683_v1  ;;  %v3764_v20 = vcombine.high %v3762_v49, %v3762_v49  ;;  %v3270_v22 = vcombine.high %v3266_v5, %v3266_v5 }
 0x1fe   :  { %9043 = vst.sshfl [vmem:[#allocation2 + $0x111] sm:$0x1 pattern:$0x73625140] %v3237_v42  ;;  %3314 = vst [vmem:[#allocation2 + $0x131] sm:$0x1] %v3269_v12  ;;  %v3771_v23 = vrot.slane %v3755_v56, %v11492_v11  ;;  %v3778_v25 = vrot.slane %v3762_v49, %v11492_v11  ;;  %v3785_v26 = vrot.slane %v3763_v13, %v11492_v11 }
 0x1ff   :  { %9044 = vst.sshfl [vmem:[#allocation2 + $0x141] sm:$0x1 pattern:$0x73625140] %v3236_v2  ;;  %3317 = vst [vmem:[#allocation2 + $0x161] sm:$0x1] %v3268_v9  ;;  %v3686_v27 = vcombine.high %v3682_v18, %v3682_v18  ;;  %v3792_v28 = vrot.slane %v3764_v20, %v11492_v11  ;;  %v4171_v31 = vrot.slane %v4158_v38, %v11492_v11 }
 0x200   :  { %9069 = vst.sshfl [vmem:[#allocation2 + $0x113] sm:$0x1 pattern:$0x73625140] %v3653_v0  ;;  %3730 = vst [vmem:[#allocation2 + $0x133] sm:$0x1] %v3685_v37  ;;  %v4178_v33 = vrot.slane %v4164_v47, %v11492_v11  ;;  %v3793_v34 = vcombine.high %v3771_v23, %v3771_v23  ;;  %v3794_v35 = vcombine.high %v3778_v25, %v3778_v25 }
 0x201   :  { %9070 = vst.sshfl [vmem:[#allocation2 + $0x143] sm:$0x1 pattern:$0x73625140] %v3652_v48  ;;  %3733 = vst [vmem:[#allocation2 + $0x163] sm:$0x1] %v3684_v19  ;;  %v3795_v36 = vcombine.high %v3785_v26, %v3785_v26  ;;  %v3950_v51 = vadd.f32 %v11490_v10, %v11545_v8  ;;  %v3796_v40 = vcombine.high %v3792_v28, %v3792_v28 }
 0x202   :  { %9075 = vst.sshfl [vmem:[#allocation2 + $0x44] sm:$0x1 pattern:$0x73625140] %v3762_v49  ;;  %3318 = vst [vmem:[#allocation2 + $0x171] sm:$0x1] %v3270_v22  ;;  %v4179_v41 = vcombine.high %v4171_v31, %v4171_v31  ;;  %v4180_v56 = vcombine.high %v4178_v33, %v4178_v33  ;;  %v4187_v2 = vrot.slane %v4171_v31, %v11492_v11 }
 0x203   :  { %9045 = vst.sshfl [vmem:[#allocation2 + $0x151] sm:$0x1 pattern:$0x73625140] %v3238_v54  ;;  %3734 = vst [vmem:[#allocation2 + $0x173] sm:$0x1] %v3686_v27  ;;  %v4194_v38 = vrot.slane %v4178_v33, %v11492_v11  ;;  %v3956_v42 = vcombine.high %v3950_v51, %v3950_v51  ;;  %v3963_v43 = vrot.slane %v3950_v51, %v11492_v11 }
 0x204   :  { %9071 = vst.sshfl [vmem:[#allocation2 + $0x153] sm:$0x1 pattern:$0x73625140] %v3654_v61  ;;  %3921 = vst [vmem:[#allocation2 + $0x24] sm:$0x1] %v3793_v34  ;;  %v4366_v47 = vadd.f32 %v11490_v10, %v11548_v15  ;;  %v4201_v8 = vrot.slane %v4179_v41, %v11492_v11  ;;  %v4208_v48 = vrot.slane %v4180_v56, %v11492_v11 }
 0x205   :  { %9074 = vst.sshfl [vmem:[#allocation2 + $0x14] sm:$0x1 pattern:$0x73625140] %v3763_v13  ;;  %3922 = vst [vmem:[#allocation2 + $0x34] sm:$0x1] %v3795_v36  ;;  %v4209_v0 = vcombine.high %v4187_v2, %v4187_v2  ;;  %v3743_v7 = vadd.f32 %v11490_v10, %v11558_v24  ;;  %v4210_v49 = vcombine.high %v4194_v38, %v4194_v38 }
 0x206   :  { %9076 = vst.sshfl [vmem:[#allocation2 + $0x54] sm:$0x1 pattern:$0x73625140] %v3764_v20  ;;  %3925 = vst [vmem:[#allocation2 + $0x64] sm:$0x1] %v3794_v35  ;;  %v3970_v54 = vrot.slane %v3956_v42, %v11492_v11  ;;  %v3971_v55 = vcombine.high %v3963_v43, %v3963_v43  ;;  %v3979_v57 = vrot.slane %v3963_v43, %v11492_v11 }
 0x207   :  { %9099 = vst.sshfl [vmem:[#allocation2 + $0x6] sm:$0x1 pattern:$0x73625140] %v4171_v31  ;;  %3926 = vst [vmem:[#allocation2 + $0x74] sm:$0x1] %v3796_v40  ;;  %v4211_v58 = vcombine.high %v4201_v8, %v4201_v8  ;;  %v4212_v15 = vcombine.high %v4208_v48, %v4208_v48  ;;  %v4372_v61 = vcombine.high %v4366_v47, %v4366_v47 }
 0x208   :  { %9101 = vst.sshfl [vmem:[#allocation2 + $0x46] sm:$0x1 pattern:$0x73625140] %v4178_v33  ;;  %4337 = vst [vmem:[#allocation2 + $0x26] sm:$0x1] %v4209_v0  ;;  %v4379_v62 = vrot.slane %v4366_v47, %v11492_v11  ;;  %v3972_v63 = vcombine.high %v3970_v54, %v3970_v54  ;;  %v3986_v1 = vrot.slane %v3970_v54, %v11492_v11 }
 0x209   :  { %9100 = vst.sshfl [vmem:[#allocation2 + $0x16] sm:$0x1 pattern:$0x73625140] %v4179_v41  ;;  %4341 = vst [vmem:[#allocation2 + $0x66] sm:$0x1] %v4210_v49  ;;  %v3993_v5 = vrot.slane %v3971_v55, %v11492_v11  ;;  %v4001_v24 = vcombine.high %v3979_v57, %v3979_v57  ;;  %v4386_v9 = vrot.slane %v4372_v61, %v11492_v11 }
 0x20a   :  { %9102 = vst.sshfl [vmem:[#allocation2 + $0x56] sm:$0x1 pattern:$0x73625140] %v4180_v56  ;;  %4338 = vst [vmem:[#allocation2 + $0x36] sm:$0x1] %v4211_v58  ;;  %v4387_v12 = vcombine.high %v4379_v62, %v4379_v62  ;;  %v4395_v13 = vrot.slane %v4379_v62, %v11492_v11  ;;  %v3797_v18 = vcombine.high %v3743_v7, %v3743_v7 }
 0x20b   :  { %9086 = vst.sshfl [vmem:[#allocation2 + $0x5] sm:$0x1 pattern:$0x73625140] %v3963_v43  ;;  %4342 = vst [vmem:[#allocation2 + $0x76] sm:$0x1] %v4212_v15  ;;  %v4000_v19 = vrot.slane %v3972_v63, %v11492_v11  ;;  %v4002_v37 = vcombine.high %v3986_v1, %v3986_v1  ;;  %v4003_v20 = vcombine.high %v3993_v5, %v3993_v5 }
 0x20c   :  { %9087 = vst.sshfl [vmem:[#allocation2 + $0x15] sm:$0x1 pattern:$0x73625140] %v3971_v55  ;;  %4129 = vst [vmem:[#allocation2 + $0x25] sm:$0x1] %v4001_v24  ;;  %v3804_v22 = vrot.slane %v3743_v7, %v11492_v11  ;;  %v4388_v23 = vcombine.high %v4386_v9, %v4386_v9  ;;  %v4402_v25 = vrot.slane %v4386_v9, %v11492_v11 }
 0x20d   :  { %9088 = vst.sshfl [vmem:[#allocation2 + $0x45] sm:$0x1 pattern:$0x73625140] %v3970_v54  ;;  %v4409_v26 = vrot.slane %v4387_v12, %v11492_v11  ;;  %v4417_v27 = vcombine.high %v4395_v13, %v4395_v13  ;;  %v4004_v28 = vcombine.high %v4000_v19, %v4000_v19  ;;  %4130 = vst [vmem:[#allocation2 + $0x35] sm:$0x1] %v4003_v20 }
 0x20e   :  { %9112 = vst.sshfl [vmem:[#allocation2 + $0x7] sm:$0x1 pattern:$0x73625140] %v4379_v62  ;;  %4133 = vst [vmem:[#allocation2 + $0x65] sm:$0x1] %v4002_v37  ;;  %v3811_v31 = vrot.slane %v3797_v18, %v11492_v11  ;;  %v3812_v33 = vcombine.high %v3804_v22, %v3804_v22  ;;  %v3820_v34 = vrot.slane %v3804_v22, %v11492_v11 }
 0x20f   :  { %9089 = vst.sshfl [vmem:[#allocation2 + $0x55] sm:$0x1 pattern:$0x73625140] %v3972_v63  ;;  %v4416_v35 = vrot.slane %v4388_v23, %v11492_v11  ;;  %v4418_v36 = vcombine.high %v4402_v25, %v4402_v25  ;;  %v4419_v51 = vcombine.high %v4409_v26, %v4409_v26  ;;  %4545 = vst [vmem:[#allocation2 + $0x27] sm:$0x1] %v4417_v27 }
 0x210   :  { %9113 = vst.sshfl [vmem:[#allocation2 + $0x17] sm:$0x1 pattern:$0x73625140] %v4387_v12  ;;  %v4159_v40 = vadd.f32 %v11490_v10, %v11562_v29  ;;  %4134 = vst [vmem:[#allocation2 + $0x75] sm:$0x1] %v4004_v28  ;;  %v3813_v41 = vcombine.high %v3811_v31, %v3811_v31  ;;  %v3827_v56 = vrot.slane %v3811_v31, %v11492_v11 }
 0x211   :  { %9114 = vst.sshfl [vmem:[#allocation2 + $0x47] sm:$0x1 pattern:$0x73625140] %v4386_v9  ;;  %v3834_v2 = vrot.slane %v3812_v33, %v11492_v11  ;;  %v3842_v38 = vcombine.high %v3820_v34, %v3820_v34  ;;  %v4420_v42 = vcombine.high %v4416_v35, %v4416_v35  ;;  %4546 = vst [vmem:[#allocation2 + $0x37] sm:$0x1] %v4419_v51 }
 0x212   :  { %9077 = vst.sshfl [vmem:[#allocation2 + $0x84] sm:$0x1 pattern:$0x73625140] %v3804_v22  ;;  %4549 = vst [vmem:[#allocation2 + $0x67] sm:$0x1] %v4418_v36  ;;  %v4213_v43 = vcombine.high %v4159_v40, %v4159_v40  ;;  %v4220_v47 = vrot.slane %v4159_v40, %v11492_v11  ;;  %v3951_v8 = vadd.f32 %v11490_v10, %v11564_v30 }
 0x213   :  { %9115 = vst.sshfl [vmem:[#allocation2 + $0x57] sm:$0x1 pattern:$0x73625140] %v4388_v23  ;;  %v3841_v29 = vrot.slane %v3813_v41, %v11492_v11  ;;  %v3843_v48 = vcombine.high %v3827_v56, %v3827_v56  ;;  %v3844_v0 = vcombine.high %v3834_v2, %v3834_v2  ;;  %3929 = vst [vmem:[#allocation2 + $0xa4] sm:$0x1] %v3842_v38 }
 0x214   :  { %9078 = vst.sshfl [vmem:[#allocation2 + $0x94] sm:$0x1 pattern:$0x73625140] %v3812_v33  ;;  %v4367_v7 = vadd.f32 %v11490_v10, %v11567_v32  ;;  %4550 = vst [vmem:[#allocation2 + $0x77] sm:$0x1] %v4420_v42  ;;  %v4227_v49 = vrot.slane %v4213_v43, %v11492_v11  ;;  %v4228_v54 = vcombine.high %v4220_v47, %v4220_v47 }
 0x215   :  { %9079 = vst.sshfl [vmem:[#allocation2 + $0xc4] sm:$0x1 pattern:$0x73625140] %v3811_v31  ;;  %v4236_v55 = vrot.slane %v4220_v47, %v11492_v11  ;;  %v4005_v57 = vcombine.high %v3951_v8, %v3951_v8  ;;  %v3845_v58 = vcombine.high %v3841_v29, %v3841_v29  ;;  %3930 = vst [vmem:[#allocation2 + $0xb4] sm:$0x1] %v3844_v0 }
 0x216   :  { %9080 = vst.sshfl [vmem:[#allocation2 + $0xd4] sm:$0x1 pattern:$0x73625140] %v3813_v41  ;;  %3933 = vst [vmem:[#allocation2 + $0xe4] sm:$0x1] %v3843_v48  ;;  %v4012_v30 = vrot.slane %v3951_v8, %v11492_v11  ;;  %v4421_v15 = vcombine.high %v4367_v7, %v4367_v7  ;;  %v4428_v61 = vrot.slane %v4367_v7, %v11492_v11 }
 0x217   :  { %9103 = vst.sshfl [vmem:[#allocation2 + $0x86] sm:$0x1 pattern:$0x73625140] %v4220_v47  ;;  %v4229_v62 = vcombine.high %v4227_v49, %v4227_v49  ;;  %v4243_v63 = vrot.slane %v4227_v49, %v11492_v11  ;;  %v4250_v32 = vrot.slane %v4228_v54, %v11492_v11  ;;  %v4258_v1 = vcombine.high %v4236_v55, %v4236_v55 }
 0x218   :  { %9104 = vst.sshfl [vmem:[#allocation2 + $0x96] sm:$0x1 pattern:$0x73625140] %v4228_v54  ;;  %3934 = vst [vmem:[#allocation2 + $0xf4] sm:$0x1] %v3845_v58  ;;  %v4019_v5 = vrot.slane %v4005_v57, %v11492_v11  ;;  %v4020_v24 = vcombine.high %v4012_v30, %v4012_v30  ;;  %v4028_v9 = vrot.slane %v4012_v30, %v11492_v11 }
 0x219   :  { %9105 = vst.sshfl [vmem:[#allocation2 + $0xc6] sm:$0x1 pattern:$0x73625140] %v4227_v49  ;;  %v4435_v12 = vrot.slane %v4421_v15, %v11492_v11  ;;  %v4257_v13 = vrot.slane %v4229_v62, %v11492_v11  ;;  %v4259_v18 = vcombine.high %v4243_v63, %v4243_v63  ;;  %v4260_v19 = vcombine.high %v4250_v32, %v4250_v32 }
 0x21a   :  { %9090 = vst.sshfl [vmem:[#allocation2 + $0x85] sm:$0x1 pattern:$0x73625140] %v4012_v30  ;;  %4345 = vst [vmem:[#allocation2 + $0xa6] sm:$0x1] %v4258_v1  ;;  %v4436_v37 = vcombine.high %v4428_v61, %v4428_v61  ;;  %v4021_v20 = vcombine.high %v4019_v5, %v4019_v5  ;;  %v4035_v22 = vrot.slane %v4019_v5, %v11492_v11 }
 0x21b   :  { %9116 = vst.sshfl [vmem:[#allocation2 + $0x87] sm:$0x1 pattern:$0x73625140] %v4428_v61  ;;  %v4042_v23 = vrot.slane %v4020_v24, %v11492_v11  ;;  %v4050_v25 = vcombine.high %v4028_v9, %v4028_v9  ;;  %v4261_v26 = vcombine.high %v4257_v13, %v4257_v13  ;;  %4346 = vst [vmem:[#allocation2 + $0xb6] sm:$0x1] %v4260_v19 }
 0x21c   :  { %9106 = vst.sshfl [vmem:[#allocation2 + $0xd6] sm:$0x1 pattern:$0x73625140] %v4229_v62  ;;  %4349 = vst [vmem:[#allocation2 + $0xe6] sm:$0x1] %v4259_v18  ;;  %v4437_v27 = vcombine.high %v4435_v12, %v4435_v12  ;;  %v4444_v28 = vrot.slane %v4428_v61, %v11492_v11  ;;  %v4451_v31 = vrot.slane %v4435_v12, %v11492_v11 }
 0x21d   :  { %9091 = vst.sshfl [vmem:[#allocation2 + $0x95] sm:$0x1 pattern:$0x73625140] %v4020_v24  ;;  %v4049_v33 = vrot.slane %v4021_v20, %v11492_v11  ;;  %v4051_v34 = vcombine.high %v4035_v22, %v4035_v22  ;;  %v4052_v35 = vcombine.high %v4042_v23, %v4042_v23  ;;  %4137 = vst [vmem:[#allocation2 + $0xa5] sm:$0x1] %v4050_v25 }
 0x21e   :  { %9092 = vst.sshfl [vmem:[#allocation2 + $0xc5] sm:$0x1 pattern:$0x73625140] %v4019_v5  ;;  %v4458_v36 = vrot.slane %v4436_v37, %v11492_v11  ;;  %4350 = vst [vmem:[#allocation2 + $0xf6] sm:$0x1] %v4261_v26  ;;  %v4465_v51 = vrot.slane %v4437_v27, %v11492_v11  ;;  %v4466_v40 = vcombine.high %v4444_v28, %v4444_v28 }
 0x21f   :  { %9118 = vst.sshfl [vmem:[#allocation2 + $0xc7] sm:$0x1 pattern:$0x73625140] %v4435_v12  ;;  %v4467_v41 = vcombine.high %v4451_v31, %v4451_v31  ;;  %v3744_v56 = vadd.f32 %v11490_v10, %v11573_v45  ;;  %v4053_v2 = vcombine.high %v4049_v33, %v4049_v33  ;;  %4138 = vst [vmem:[#allocation2 + $0xb5] sm:$0x1] %v4052_v35 }
 0x220   :  { %9117 = vst.sshfl [vmem:[#allocation2 + $0x97] sm:$0x1 pattern:$0x73625140] %v4436_v37  ;;  %4141 = vst [vmem:[#allocation2 + $0xe5] sm:$0x1] %v4051_v34  ;;  %v4468_v38 = vcombine.high %v4458_v36, %v4458_v36  ;;  %v4160_v42 = vadd.f32 %v11490_v10, %v11577_v52  ;;  %v3952_v43 = vadd.f32 %v11490_v10, %v11579_v53 }
 0x221   :  { %9093 = vst.sshfl [vmem:[#allocation2 + $0xd5] sm:$0x1 pattern:$0x73625140] %v4021_v20  ;;  %v4469_v47 = vcombine.high %v4465_v51, %v4465_v51  ;;  %4553 = vst [vmem:[#allocation2 + $0xa7] sm:$0x1] %v4466_v40  ;;  %v3846_v8 = vcombine.high %v3744_v56, %v3744_v56  ;;  %v3853_v29 = vrot.slane %v3744_v56, %v11492_v11 }
 0x222   :  { %9119 = vst.sshfl [vmem:[#allocation2 + $0xd7] sm:$0x1 pattern:$0x73625140] %v4437_v27  ;;  %4557 = vst [vmem:[#allocation2 + $0xe7] sm:$0x1] %v4467_v41  ;;  %v4368_v48 = vadd.f32 %v11490_v10, %v11583_v59  ;;  %v4262_v45 = vcombine.high %v4160_v42, %v4160_v42  ;;  %v4269_v0 = vrot.slane %v4160_v42, %v11492_v11 }
 0x223   :  { %4142 = vst [vmem:[#allocation2 + $0xf5] sm:$0x1] %v4053_v2  ;;  %4554 = vst [vmem:[#allocation2 + $0xb7] sm:$0x1] %v4468_v38  ;;  %v4054_v7 = vcombine.high %v3952_v43, %v3952_v43  ;;  %v4061_v52 = vrot.slane %v3952_v43, %v11492_v11  ;;  %v3860_v53 = vrot.slane %v3846_v8, %v11492_v11  ;;  %v11741_v22 = vld [vmem:[#allocation9] ss:$0 sm:$0xff] }
 0x224   :  { %4558 = vst [vmem:[#allocation2 + $0xf7] sm:$0x1] %v4469_v47  ;;  %v3861_v49 = vcombine.high %v3853_v29, %v3853_v29  ;;  %v3869_v54 = vrot.slane %v3853_v29, %v11492_v11  ;;  %9081 = vst.sshfl [vmem:[#allocation2 + $0x104] sm:$0x1 pattern:$0x73625140] %v3853_v29  ;;  %v4470_v55 = vcombine.high %v4368_v48, %v4368_v48 }
 0x225   :  { %v4276_v57 = vrot.slane %v4262_v45, %v11492_v11  ;;  %v4277_v58 = vcombine.high %v4269_v0, %v4269_v0  ;;  %v4285_v10 = vrot.slane %v4269_v0, %v11492_v11  ;;  %9107 = vst.sshfl [vmem:[#allocation2 + $0x106] sm:$0x1 pattern:$0x73625140] %v4269_v0  ;;  %v4068_v59 = vrot.slane %v4054_v7, %v11492_v11 }
 0x226   :  { %9094 = vst.sshfl [vmem:[#allocation2 + $0x105] sm:$0x1 pattern:$0x73625140] %v4061_v52  ;;  %v3862_v30 = vcombine.high %v3860_v53, %v3860_v53  ;;  %v3876_v15 = vrot.slane %v3860_v53, %v11492_v11  ;;  %v3883_v61 = vrot.slane %v3861_v49, %v11492_v11  ;;  %v3891_v62 = vcombine.high %v3869_v54, %v3869_v54 }
 0x227   :  { %9082 = vst.sshfl [vmem:[#allocation2 + $0x114] sm:$0x1 pattern:$0x73625140] %v3861_v49  ;;  %v4278_v63 = vcombine.high %v4276_v57, %v4276_v57  ;;  %v4292_v32 = vrot.slane %v4276_v57, %v11492_v11  ;;  %v4299_v1 = vrot.slane %v4277_v58, %v11492_v11  ;;  %v4307_v5 = vcombine.high %v4285_v10, %v4285_v10 }
 0x228   :  { %9083 = vst.sshfl [vmem:[#allocation2 + $0x144] sm:$0x1 pattern:$0x73625140] %v3860_v53  ;;  %v3890_v24 = vrot.slane %v3862_v30, %v11492_v11  ;;  %v3892_v9 = vcombine.high %v3876_v15, %v3876_v15  ;;  %v3893_v12 = vcombine.high %v3883_v61, %v3883_v61  ;;  %3937 = vst [vmem:[#allocation2 + $0x124] sm:$0x1] %v3891_v62 }
 0x229   :  { %9108 = vst.sshfl [vmem:[#allocation2 + $0x116] sm:$0x1 pattern:$0x73625140] %v4277_v58  ;;  %v4069_v13 = vcombine.high %v4061_v52, %v4061_v52  ;;  %v4306_v18 = vrot.slane %v4278_v63, %v11492_v11  ;;  %v4308_v19 = vcombine.high %v4292_v32, %v4292_v32  ;;  %v4309_v37 = vcombine.high %v4299_v1, %v4299_v1 }
 0x22a   :  { %9109 = vst.sshfl [vmem:[#allocation2 + $0x146] sm:$0x1 pattern:$0x73625140] %v4276_v57  ;;  %4353 = vst [vmem:[#allocation2 + $0x126] sm:$0x1] %v4307_v5  ;;  %v4070_v20 = vcombine.high %v4068_v59, %v4068_v59  ;;  %v3894_v23 = vcombine.high %v3890_v24, %v3890_v24  ;;  %v4077_v25 = vrot.slane %v4061_v52, %v11492_v11 }
 0x22b   :  { %9096 = vst.sshfl [vmem:[#allocation2 + $0x145] sm:$0x1 pattern:$0x73625140] %v4068_v59  ;;  %3938 = vst [vmem:[#allocation2 + $0x134] sm:$0x1] %v3893_v12  ;;  %v4084_v26 = vrot.slane %v4068_v59, %v11492_v11  ;;  %v4091_v27 = vrot.slane %v4069_v13, %v11492_v11  ;;  %v4310_v28 = vcombine.high %v4306_v18, %v4306_v18 }
 0x22c   :  { %9084 = vst.sshfl [vmem:[#allocation2 + $0x154] sm:$0x1 pattern:$0x73625140] %v3862_v30  ;;  %3941 = vst [vmem:[#allocation2 + $0x164] sm:$0x1] %v3892_v9  ;;  %v4098_v31 = vrot.slane %v4070_v20, %v11492_v11  ;;  %v4477_v33 = vrot.slane %v4368_v48, %v11492_v11  ;;  %v4484_v34 = vrot.slane %v4470_v55, %v11492_v11 }
 0x22d   :  { %9110 = vst.sshfl [vmem:[#allocation2 + $0x156] sm:$0x1 pattern:$0x73625140] %v4278_v63  ;;  %4354 = vst [vmem:[#allocation2 + $0x136] sm:$0x1] %v4309_v37  ;;  %v4099_v35 = vcombine.high %v4077_v25, %v4077_v25  ;;  %v4100_v36 = vcombine.high %v4084_v26, %v4084_v26  ;;  %v4101_v51 = vcombine.high %v4091_v27, %v4091_v27 }
 0x22e   :  { %9095 = vst.sshfl [vmem:[#allocation2 + $0x115] sm:$0x1 pattern:$0x73625140] %v4069_v13  ;;  %4357 = vst [vmem:[#allocation2 + $0x166] sm:$0x1] %v4308_v19  ;;  %v4574_v40 = vadd.f32 %v11741_v22, %v11590_v6  ;;  %v4102_v41 = vcombine.high %v4098_v31, %v4098_v31  ;;  %v4485_v56 = vcombine.high %v4477_v33, %v4477_v33 }
 0x22f   :  { %9097 = vst.sshfl [vmem:[#allocation2 + $0x155] sm:$0x1 pattern:$0x73625140] %v4070_v20  ;;  %3942 = vst [vmem:[#allocation2 + $0x174] sm:$0x1] %v3894_v23  ;;  %v4486_v2 = vcombine.high %v4484_v34, %v4484_v34  ;;  %v4493_v38 = vrot.slane %v4477_v33, %v11492_v11  ;;  %v4500_v42 = vrot.slane %v4484_v34, %v11492_v11 }
 0x230   :  { %4358 = vst [vmem:[#allocation2 + $0x176] sm:$0x1] %v4310_v28  ;;  %9120 = vst.sshfl [vmem:[#allocation2 + $0x107] sm:$0x1 pattern:$0x73625140] %v4477_v33  ;;  %v4580_v43 = vcombine.high %v4574_v40, %v4574_v40  ;;  %v4587_v47 = vrot.slane %v4574_v40, %v11492_v11  ;;  %v4990_v8 = vadd.f32 %v11741_v22, %v11594_v16 }
 0x231   :  { %9122 = vst.sshfl [vmem:[#allocation2 + $0x147] sm:$0x1 pattern:$0x73625140] %v4484_v34  ;;  %4145 = vst [vmem:[#allocation2 + $0x125] sm:$0x1] %v4099_v35  ;;  %v4507_v6 = vrot.slane %v4485_v56, %v11492_v11  ;;  %v4514_v29 = vrot.slane %v4486_v2, %v11492_v11  ;;  %v4515_v48 = vcombine.high %v4493_v38, %v4493_v38 }
 0x232   :  { %4146 = vst [vmem:[#allocation2 + $0x135] sm:$0x1] %v4101_v51  ;;  %4149 = vst [vmem:[#allocation2 + $0x165] sm:$0x1] %v4100_v36  ;;  %v4782_v45 = vadd.f32 %v11741_v22, %v11596_v17  ;;  %v4516_v0 = vcombine.high %v4500_v42, %v4500_v42  ;;  %v4594_v7 = vrot.slane %v4580_v43, %v11492_v11  ;;  %v5399_v35 = vld [vmem:[#allocation2] sm:$0xff] }
 0x233   :  { %4150 = vst [vmem:[#allocation2 + $0x175] sm:$0x1] %v4102_v41  ;;  %9121 = vst.sshfl [vmem:[#allocation2 + $0x117] sm:$0x1 pattern:$0x73625140] %v4485_v56  ;;  %v4595_v52 = vcombine.high %v4587_v47, %v4587_v47  ;;  %v4603_v53 = vrot.slane %v4587_v47, %v11492_v11  ;;  %v4517_v49 = vcombine.high %v4507_v6, %v4507_v6 }
 0x234   :  { %9123 = vst.sshfl [vmem:[#allocation2 + $0x157] sm:$0x1 pattern:$0x73625140] %v4486_v2  ;;  %v4518_v16 = vcombine.high %v4514_v29, %v4514_v29  ;;  %4561 = vst [vmem:[#allocation2 + $0x127] sm:$0x1] %v4515_v48  ;;  %v4996_v54 = vcombine.high %v4990_v8, %v4990_v8  ;;  %v5003_v55 = vrot.slane %v4990_v8, %v11492_v11 }
 0x235   :  { %9125 = vst.sshfl [vmem:[#allocation2 + $0x8] sm:$0x1 pattern:$0x73625140] %v4587_v47  ;;  %4565 = vst [vmem:[#allocation2 + $0x167] sm:$0x1] %v4516_v0  ;;  %v4596_v57 = vcombine.high %v4594_v7, %v4594_v7  ;;  %v4610_v58 = vrot.slane %v4594_v7, %v11492_v11  ;;  %v4617_v10 = vrot.slane %v4595_v52, %v11492_v11 }
 0x236   :  { %v4625_v17 = vcombine.high %v4603_v53, %v4603_v53  ;;  %9126 = vst.sshfl [vmem:[#allocation2 + $0x18] sm:$0x1 pattern:$0x73625140] %v4595_v52  ;;  %4562 = vst [vmem:[#allocation2 + $0x137] sm:$0x1] %v4517_v49  ;;  %v5010_v59 = vrot.slane %v4996_v54, %v11492_v11  ;;  %v5011_v30 = vcombine.high %v5003_v55, %v5003_v55 }
 0x237   :  { %9127 = vst.sshfl [vmem:[#allocation2 + $0x48] sm:$0x1 pattern:$0x73625140] %v4594_v7  ;;  %4566 = vst [vmem:[#allocation2 + $0x177] sm:$0x1] %v4518_v16  ;;  %v5019_v15 = vrot.slane %v5003_v55, %v11492_v11  ;;  %v4788_v61 = vcombine.high %v4782_v45, %v4782_v45  ;;  %v4624_v62 = vrot.slane %v4596_v57, %v11492_v11 }
 0x238   :  { %9151 = vst.sshfl [vmem:[#allocation2 + $0xa] sm:$0x1 pattern:$0x73625140] %v5003_v55  ;;  %v4626_v63 = vcombine.high %v4610_v58, %v4610_v58  ;;  %v4627_v32 = vcombine.high %v4617_v10, %v4617_v10  ;;  %4753 = vst [vmem:[#allocation2 + $0x28] sm:$0x1] %v4625_v17  ;;  %v4795_v1 = vrot.slane %v4782_v45, %v11492_v11 }
 0x239   :  { %9128 = vst.sshfl [vmem:[#allocation2 + $0x58] sm:$0x1 pattern:$0x73625140] %v4596_v57  ;;  %v5012_v5 = vcombine.high %v5010_v59, %v5010_v59  ;;  %v5026_v24 = vrot.slane %v5010_v59, %v11492_v11  ;;  %v5033_v9 = vrot.slane %v5011_v30, %v11492_v11  ;;  %v5041_v12 = vcombine.high %v5019_v15, %v5019_v15  ;;  %v11791_v0 = vld [vmem:[#allocation2 + $0x10] sm:$0xff] }
 0x23a   :  { %9152 = vst.sshfl [vmem:[#allocation2 + $0x1a] sm:$0x1 pattern:$0x73625140] %v5011_v30  ;;  %v4628_v13 = vcombine.high %v4624_v62, %v4624_v62  ;;  %4754 = vst [vmem:[#allocation2 + $0x38] sm:$0x1] %v4627_v32  ;;  %v4802_v18 = vrot.slane %v4788_v61, %v11492_v11  ;;  %v4803_v19 = vcombine.high %v4795_v1, %v4795_v1 }
 0x23b   :  { %9153 = vst.sshfl [vmem:[#allocation2 + $0x4a] sm:$0x1 pattern:$0x73625140] %v5010_v59  ;;  %4757 = vst [vmem:[#allocation2 + $0x68] sm:$0x1] %v4626_v63  ;;  %v4811_v37 = vrot.slane %v4795_v1, %v11492_v11  ;;  %v5040_v20 = vrot.slane %v5012_v5, %v11492_v11  ;;  %v5042_v23 = vcombine.high %v5026_v24, %v5026_v24 }
 0x23c   :  { %9138 = vst.sshfl [vmem:[#allocation2 + $0x9] sm:$0x1 pattern:$0x73625140] %v4795_v1  ;;  %v5043_v25 = vcombine.high %v5033_v9, %v5033_v9  ;;  %5169 = vst [vmem:[#allocation2 + $0x2a] sm:$0x1] %v5041_v12  ;;  %v5198_v26 = vadd.f32 %v11741_v22, %v11601_v21  ;;  %v4804_v28 = vcombine.high %v4802_v18, %v4802_v18 }
 0x23d   :  { %9154 = vst.sshfl [vmem:[#allocation2 + $0x5a] sm:$0x1 pattern:$0x73625140] %v5012_v5  ;;  %v5431_v27 = vld [vmem:[#allocation2 + $0x1] sm:$0xff]  ;;  %v4818_v31 = vrot.slane %v4802_v18, %v11492_v11  ;;  %v4825_v33 = vrot.slane %v4803_v19, %v11492_v11  ;;  %v4833_v34 = vcombine.high %v4811_v37, %v4811_v37  ;;  %v5044_v36 = vcombine.high %v5040_v20, %v5040_v20  ;;  %v11781_v41 = vld [vmem:[#allocation2 + $0x11] sm:$0xff] }
 0x23e   :  { %4758 = vst [vmem:[#allocation2 + $0x78] sm:$0x1] %v4628_v13  ;;  %9139 = vst.sshfl [vmem:[#allocation2 + $0x19] sm:$0x1 pattern:$0x73625140] %v4803_v19  ;;  %7074 = vmatprep.mubr.f32.mxu0 %v5431_v27  ;;  %v5204_v51 = vcombine.high %v5198_v26, %v5198_v26  ;;  %v5211_v40 = vrot.slane %v5198_v26, %v11492_v11  ;;  %v4575_v21 = vadd.f32 %v11741_v22, %v11608_v46 }
 0x23f   :  { %9140 = vst.sshfl [vmem:[#allocation2 + $0x49] sm:$0x1 pattern:$0x73625140] %v4802_v18  ;;  %5170 = vst [vmem:[#allocation2 + $0x3a] sm:$0x1] %v5043_v25  ;;  %7075 = vmatmul.mubr.f32.vlgmr.msra.gmra.mrb[18].mxu0 %v5399_v35  ;;  %v4832_v56 = vrot.slane %v4804_v28, %v11492_v11  ;;  %v4834_v2 = vcombine.high %v4818_v31, %v4818_v31  ;;  %v4835_v38 = vcombine.high %v4825_v33, %v4825_v33 }
 0x240   :  { %5173 = vst [vmem:[#allocation2 + $0x6a] sm:$0x1] %v5042_v23  ;;  %4961 = vst [vmem:[#allocation2 + $0x29] sm:$0x1] %v4833_v34  ;;  %v4991_v42 = vadd.f32 %v11741_v22, %v11612_v39  ;;  %7079 = vmatprep.mubr.f32.mxu0 %v11781_v41  ;;  %v5218_v43 = vrot.slane %v5204_v51, %v11492_v11  ;;  %v5219_v47 = vcombine.high %v5211_v40, %v5211_v40  ;;  %v11802_v1 = vld [vmem:[#allocation2 + $0x21] sm:$0xff] }
 0x241   :  { %9141 = vst.sshfl [vmem:[#allocation2 + $0x59] sm:$0x1 pattern:$0x73625140] %v4804_v28  ;;  %5174 = vst [vmem:[#allocation2 + $0x7a] sm:$0x1] %v5044_v36  ;;  %v5227_v46 = vrot.slane %v5211_v40, %v11492_v11  ;;  %v4629_v8 = vcombine.high %v4575_v21, %v4575_v21  ;;  %v4836_v6 = vcombine.high %v4832_v56, %v4832_v56 }
 0x242   :  { %9164 = vst.sshfl [vmem:[#allocation2 + $0xb] sm:$0x1 pattern:$0x73625140] %v5211_v40  ;;  %4962 = vst [vmem:[#allocation2 + $0x39] sm:$0x1] %v4835_v38  ;;  %v4636_v29 = vrot.slane %v4575_v21, %v11492_v11  ;;  %v5045_v48 = vcombine.high %v4991_v42, %v4991_v42  ;;  %v5052_v45 = vrot.slane %v4991_v42, %v11492_v11 }
 0x243   :  { %4965 = vst [vmem:[#allocation2 + $0x69] sm:$0x1] %v4834_v2  ;;  %v5220_v39 = vcombine.high %v5218_v43, %v5218_v43  ;;  %v5234_v7 = vrot.slane %v5218_v43, %v11492_v11  ;;  %v5241_v52 = vrot.slane %v5219_v47, %v11492_v11  ;;  %v5249_v53 = vcombine.high %v5227_v46, %v5227_v46  ;;  %v5495_v49 = vld [vmem:[#allocation2 + $0x3] sm:$0xff]  ;;  %v11822_v51 = vld [vmem:[#allocation2 + $0x31] sm:$0xff] }
 0x244   :  { %9165 = vst.sshfl [vmem:[#allocation2 + $0x1b] sm:$0x1 pattern:$0x73625140] %v5219_v47  ;;  %v5463_v16 = vld [vmem:[#allocation2 + $0x2] sm:$0xff]  ;;  %7080 = vmatmul.mubr.f32.gmra.mrb[20].mxu0 %v11791_v0  ;;  %v4643_v54 = vrot.slane %v4629_v8, %v11492_v11  ;;  %v4644_v55 = vcombine.high %v4636_v29, %v4636_v29  ;;  %v4652_v57 = vrot.slane %v4636_v29, %v11492_v11  ;;  %v11830_v2 = vld [vmem:[#allocation2 + $0x30] sm:$0xff] }
 0x245   :  { %9166 = vst.sshfl [vmem:[#allocation2 + $0x4b] sm:$0x1 pattern:$0x73625140] %v5218_v43  ;;  %4966 = vst [vmem:[#allocation2 + $0x79] sm:$0x1] %v4836_v6  ;;  %v5059_v58 = vrot.slane %v5045_v48, %v11492_v11  ;;  %7219 = vmatprep.mubr.f32.mxu1 %v5495_v49  ;;  %v5248_v10 = vrot.slane %v5220_v39, %v11492_v11  ;;  %v5250_v17 = vcombine.high %v5234_v7, %v5234_v7 }
 0x246   :  { %9129 = vst.sshfl [vmem:[#allocation2 + $0x88] sm:$0x1 pattern:$0x73625140] %v4636_v29  ;;  %v5251_v59 = vcombine.high %v5241_v52, %v5241_v52  ;;  %5377 = vst [vmem:[#allocation2 + $0x2b] sm:$0x1] %v5249_v53  ;;  %v5060_v30 = vcombine.high %v5052_v45, %v5052_v45  ;;  %7220 = vmatmul.mubr.f32.vlgmr.msra.gmra.mrb[18].mxu1 %v5463_v16  ;;  %v4645_v61 = vcombine.high %v4643_v54, %v4643_v54 }
 0x247   :  { %9155 = vst.sshfl [vmem:[#allocation2 + $0x8a] sm:$0x1 pattern:$0x73625140] %v5052_v45  ;;  %v5496_v15 = vld [vmem:[#allocation2 + $0x13] sm:$0xff]  ;;  %v4659_v62 = vrot.slane %v4643_v54, %v11492_v11  ;;  %v4666_v63 = vrot.slane %v4644_v55, %v11492_v11  ;;  %v4674_v32 = vcombine.high %v4652_v57, %v4652_v57  ;;  %v5252_v5 = vcombine.high %v5248_v10, %v5248_v10  ;;  %v11807_v13 = vld [vmem:[#allocation2 + $0x20] sm:$0xff] }
 0x248   :  { %9167 = vst.sshfl [vmem:[#allocation2 + $0x5b] sm:$0x1 pattern:$0x73625140] %v5220_v39  ;;  %7224 = vmatprep.mubr.f32.mxu1 %v5496_v15  ;;  %5378 = vst [vmem:[#allocation2 + $0x3b] sm:$0x1] %v5251_v59  ;;  %v5061_v24 = vcombine.high %v5059_v58, %v5059_v58  ;;  %v5068_v9 = vrot.slane %v5052_v45, %v11492_v11  ;;  %v5075_v12 = vrot.slane %v5059_v58, %v11492_v11 }
 0x249   :  { %9130 = vst.sshfl [vmem:[#allocation2 + $0x98] sm:$0x1 pattern:$0x73625140] %v4644_v55  ;;  %5381 = vst [vmem:[#allocation2 + $0x6b] sm:$0x1] %v5250_v17  ;;  %7084 = vmatprep.mubr.f32.mxu0 %v11802_v1  ;;  %v4673_v18 = vrot.slane %v4645_v61, %v11492_v11  ;;  %v4675_v19 = vcombine.high %v4659_v62, %v4659_v62  ;;  %v4676_v37 = vcombine.high %v4666_v63, %v4666_v63 }
 0x24a   :  { %9131 = vst.sshfl [vmem:[#allocation2 + $0xc8] sm:$0x1 pattern:$0x73625140] %v4643_v54  ;;  %4761 = vst [vmem:[#allocation2 + $0xa8] sm:$0x1] %v4674_v32  ;;  %v5082_v20 = vrot.slane %v5060_v30, %v11492_v11  ;;  %7085 = vmatmul.mubr.f32.gmra.mrb[22].mxu0 %v11807_v13  ;;  %v5089_v25 = vrot.slane %v5061_v24, %v11492_v11  ;;  %v5090_v26 = vcombine.high %v5068_v9, %v5068_v9 }
 0x24b   :  { %9157 = vst.sshfl [vmem:[#allocation2 + $0xca] sm:$0x1 pattern:$0x73625140] %v5059_v58  ;;  %v11811_v23 = vld [vmem:[#allocation2 + $0x12] sm:$0xff]  ;;  %v5091_v27 = vcombine.high %v5075_v12, %v5075_v12  ;;  %v4783_v28 = vadd.f32 %v11741_v22, %v11614_v50  ;;  %v5497_v31 = vld [vmem:[#allocation2 + $0x23] sm:$0xff]  ;;  %v4677_v33 = vcombine.high %v4673_v18, %v4673_v18  ;;  %v5199_v35 = vadd.f32 %v11741_v22, %v11618_v44 }
 0x24c   :  { %9156 = vst.sshfl [vmem:[#allocation2 + $0x9a] sm:$0x1 pattern:$0x73625140] %v5060_v30  ;;  %5382 = vst [vmem:[#allocation2 + $0x7b] sm:$0x1] %v5252_v5  ;;  %7225 = vmatmul.mubr.f32.gmra.mrb[20].mxu1 %v11811_v23  ;;  %v5092_v34 = vcombine.high %v5082_v20, %v5082_v20  ;;  %v4576_v36 = vadd.f32 %v11741_v22, %v11624_v60  ;;  %v5093_v40 = vcombine.high %v5089_v25, %v5089_v25 }
 0x24d   :  { %9132 = vst.sshfl [vmem:[#allocation2 + $0xd8] sm:$0x1 pattern:$0x73625140] %v4645_v61  ;;  %4762 = vst [vmem:[#allocation2 + $0xb8] sm:$0x1] %v4676_v37  ;;  %7229 = vmatprep.mubr.f32.mxu1 %v5497_v31  ;;  %v4837_v50 = vcombine.high %v4783_v28, %v4783_v28  ;;  %v4844_v21 = vrot.slane %v4783_v28, %v11492_v11  ;;  %v11827_v56 = vadd.f32 %v11741_v22, %v11628_v3 }
 0x24e   :  { %9158 = vst.sshfl [vmem:[#allocation2 + $0xda] sm:$0x1 pattern:$0x73625140] %v5061_v24  ;;  %4765 = vst [vmem:[#allocation2 + $0xe8] sm:$0x1] %v4675_v19  ;;  %7089 = vmatprep.mubr.f32.mxu0 %v11822_v51  ;;  %v5253_v44 = vcombine.high %v5199_v35, %v5199_v35  ;;  %v5260_v60 = vrot.slane %v5199_v35, %v11492_v11  ;;  %v4678_v38 = vcombine.high %v4576_v36, %v4576_v36 }
 0x24f   :  { %5177 = vst [vmem:[#allocation2 + $0xaa] sm:$0x1] %v5090_v26  ;;  %5181 = vst [vmem:[#allocation2 + $0xea] sm:$0x1] %v5091_v27  ;;  %v4685_v42 = vrot.slane %v4576_v36, %v11492_v11  ;;  %v11834_v43 = vld [vmem:[#allocation2 + $0x22] sm:$0xff]  ;;  %7090 = vmatmul.mubr.f32.gmra.mrb[24].mxu0 %v11830_v2  ;;  %v4851_v3 = vrot.slane %v4837_v50, %v11492_v11  ;;  %v4852_v47 = vcombine.high %v4844_v21, %v4844_v21  ;;  %v5498_v6 = vld [vmem:[#allocation2 + $0x33] sm:$0xff] }
 0x250   :  { %4766 = vst [vmem:[#allocation2 + $0xf8] sm:$0x1] %v4677_v33  ;;  %5178 = vst [vmem:[#allocation2 + $0xba] sm:$0x1] %v5092_v34  ;;  %v4860_v46 = vrot.slane %v4844_v21, %v11492_v11  ;;  %v5094_v8 = vcombine.high %v11827_v56, %v11827_v56  ;;  %7230 = vmatmul.mubr.f32.gmra.mrb[22].mxu1 %v11834_v43  ;;  %v5267_v29 = vrot.slane %v5253_v44, %v11492_v11  ;;  %v11845_v7 = vld [vmem:[#allocation2 + $0x41] sm:$0xff]  ;;  %v11854_v17 = vld [vmem:[#allocation2 + $0x32] sm:$0xff] }
 0x251   :  { %5182 = vst [vmem:[#allocation2 + $0xfa] sm:$0x1] %v5093_v40  ;;  %9142 = vst.sshfl [vmem:[#allocation2 + $0x89] sm:$0x1 pattern:$0x73625140] %v4844_v21  ;;  %v5268_v48 = vcombine.high %v5260_v60, %v5260_v60  ;;  %v5276_v45 = vrot.slane %v5260_v60, %v11492_v11  ;;  %v4692_v39 = vrot.slane %v4678_v38, %v11492_v11  ;;  %7234 = vmatprep.mubr.f32.mxu1 %v5498_v6 }
 0x252   :  { %9168 = vst.sshfl [vmem:[#allocation2 + $0x8b] sm:$0x1 pattern:$0x73625140] %v5260_v60  ;;  %v4853_v52 = vcombine.high %v4851_v3, %v4851_v3  ;;  %v4867_v53 = vrot.slane %v4851_v3, %v11492_v11  ;;  %v4874_v49 = vrot.slane %v4852_v47, %v11492_v11  ;;  %v4882_v16 = vcombine.high %v4860_v46, %v4860_v46  ;;  %v11850_v54 = vld [vmem:[#allocation2 + $0x40] sm:$0xff]  ;;  %v11860_v9 = vld [vmem:[#allocation2 + $0x51] sm:$0xff] }
 0x253   :  { %9133 = vst.sshfl [vmem:[#allocation2 + $0x108] sm:$0x1 pattern:$0x73625140] %v4685_v42  ;;  %7094 = vmatprep.mubr.f32.mxu0 %v11845_v7  ;;  %v5269_v55 = vcombine.high %v5267_v29, %v5267_v29  ;;  %v5283_v57 = vrot.slane %v5267_v29, %v11492_v11  ;;  %v5290_v58 = vrot.slane %v5268_v48, %v11492_v11  ;;  %v5499_v62 = vld [vmem:[#allocation2 + $0x43] sm:$0xff]  ;;  %v11866_v20 = vld [vmem:[#allocation2 + $0x50] sm:$0xff] }
 0x254   :  { %9143 = vst.sshfl [vmem:[#allocation2 + $0x99] sm:$0x1 pattern:$0x73625140] %v4852_v47  ;;  %v5298_v10 = vcombine.high %v5276_v45, %v5276_v45  ;;  %7095 = vmatmul.mubr.f32.gmra.mrb[26].mxu0 %v11850_v54  ;;  %v4881_v59 = vrot.slane %v4853_v52, %v11492_v11  ;;  %v4883_v30 = vcombine.high %v4867_v53, %v4867_v53  ;;  %4969 = vst [vmem:[#allocation2 + $0xa9] sm:$0x1] %v4882_v16 }
 0x255   :  { %9144 = vst.sshfl [vmem:[#allocation2 + $0xc9] sm:$0x1 pattern:$0x73625140] %v4851_v3  ;;  %v4884_v15 = vcombine.high %v4874_v49, %v4874_v49  ;;  %v4693_v61 = vcombine.high %v4685_v42, %v4685_v42  ;;  %7235 = vmatmul.mubr.f32.gmra.mrb[24].mxu1 %v11854_v17  ;;  %v5297_v63 = vrot.slane %v5269_v55, %v11492_v11  ;;  %v11872_v31 = vld [vmem:[#allocation2 + $0x42] sm:$0xff]  ;;  %v6684_v50 = vld [vmem:[#allocation10 + $0x288] sm:$0xff] }
 0x256   :  { %9169 = vst.sshfl [vmem:[#allocation2 + $0x9b] sm:$0x1 pattern:$0x73625140] %v5268_v48  ;;  %v5299_v32 = vcombine.high %v5283_v57, %v5283_v57  ;;  %v5300_v5 = vcombine.high %v5290_v58, %v5290_v58  ;;  %5385 = vst [vmem:[#allocation2 + $0xab] sm:$0x1] %v5298_v10  ;;  %v4694_v24 = vcombine.high %v4692_v39, %v4692_v39  ;;  %7239 = vmatprep.mubr.f32.mxu1 %v5499_v62 }
 0x257   :  { %9170 = vst.sshfl [vmem:[#allocation2 + $0xcb] sm:$0x1 pattern:$0x73625140] %v5267_v29  ;;  %v4885_v12 = vcombine.high %v4881_v59, %v4881_v59  ;;  %4970 = vst [vmem:[#allocation2 + $0xb9] sm:$0x1] %v4884_v15  ;;  %v4701_v18 = vrot.slane %v4685_v42, %v11492_v11  ;;  %v4708_v19 = vrot.slane %v4692_v39, %v11492_v11  ;;  %7099 = vmatprep.mubr.f32.mxu0 %v11860_v9 }
 0x258   :  { %9135 = vst.sshfl [vmem:[#allocation2 + $0x148] sm:$0x1 pattern:$0x73625140] %v4692_v39  ;;  %4973 = vst [vmem:[#allocation2 + $0xe9] sm:$0x1] %v4883_v30  ;;  %v4715_v37 = vrot.slane %v4693_v61, %v11492_v11  ;;  %v5301_v25 = vcombine.high %v5297_v63, %v5297_v63  ;;  %v4722_v26 = vrot.slane %v4694_v24, %v11492_v11  ;;  %7100 = vmatmul.mubr.f32.gmra.mrb[28].mxu0 %v11866_v20 }
 0x259   :  { %9145 = vst.sshfl [vmem:[#allocation2 + $0xd9] sm:$0x1 pattern:$0x73625140] %v4853_v52  ;;  %5386 = vst [vmem:[#allocation2 + $0xbb] sm:$0x1] %v5300_v5  ;;  %v5101_v27 = vrot.slane %v11827_v56, %v11492_v11  ;;  %v5108_v28 = vrot.slane %v5094_v8, %v11492_v11  ;;  %v4723_v33 = vcombine.high %v4701_v18, %v4701_v18  ;;  %7240 = vmatmul.mubr.f32.gmra.mrb[26].mxu1 %v11872_v31 }
 0x25a   :  { %9171 = vst.sshfl [vmem:[#allocation2 + $0xdb] sm:$0x1 pattern:$0x73625140] %v5269_v55  ;;  %5389 = vst [vmem:[#allocation2 + $0xeb] sm:$0x1] %v5299_v32  ;;  %v4724_v34 = vcombine.high %v4708_v19, %v4708_v19  ;;  %v4725_v35 = vcombine.high %v4715_v37, %v4715_v37  ;;  %v4784_v36 = vadd.f32 %v11741_v22, %v11630_v4 }
 0x25b   :  { %9134 = vst.sshfl [vmem:[#allocation2 + $0x118] sm:$0x1 pattern:$0x73625140] %v4693_v61  ;;  %4974 = vst [vmem:[#allocation2 + $0xf9] sm:$0x1] %v4885_v12  ;;  %v4726_v56 = vcombine.high %v4722_v26, %v4722_v26  ;;  %v5109_v44 = vcombine.high %v5101_v27, %v5101_v27  ;;  %v5110_v60 = vcombine.high %v5108_v28, %v5108_v28 }
 0x25c   :  { %9136 = vst.sshfl [vmem:[#allocation2 + $0x158] sm:$0x1 pattern:$0x73625140] %v4694_v24  ;;  %v6683_v40 = vld [vmem:[#allocation10 + $0x280] sm:$0xff]  ;;  %v5500_v21 = vld [vmem:[#allocation2 + $0x53] sm:$0xff]  ;;  %v5117_v38 = vrot.slane %v5101_v27, %v11492_v11  ;;  %v5124_v4 = vrot.slane %v5108_v28, %v11492_v11  ;;  %v4886_v3 = vcombine.high %v4784_v36, %v4784_v36  ;;  %v4893_v47 = vrot.slane %v4784_v36, %v11492_v11 }
 0x25d   :  { %5390 = vst [vmem:[#allocation2 + $0xfb] sm:$0x1] %v5301_v25  ;;  %9159 = vst.sshfl [vmem:[#allocation2 + $0x10a] sm:$0x1 pattern:$0x73625140] %v5101_v27  ;;  %7244 = vmatprep.mubr.f32.mxu1 %v5500_v21  ;;  %v5200_v46 = vadd.f32 %v11741_v22, %v11634_v14  ;;  %v5131_v6 = vrot.slane %v5109_v44, %v11492_v11  ;;  %v5138_v29 = vrot.slane %v5110_v60, %v11492_v11 }
 0x25e   :  { %9161 = vst.sshfl [vmem:[#allocation2 + $0x14a] sm:$0x1 pattern:$0x73625140] %v5108_v28  ;;  %v11879_v42 = vld [vmem:[#allocation2 + $0x61] sm:$0xff]  ;;  %v5139_v48 = vcombine.high %v5117_v38, %v5117_v38  ;;  %v10409_v45 = vpack.c.bf16 %v6684_v50, %v6683_v40  ;;  %v11890_v52 = vld [vmem:[#allocation2 + $0x52] sm:$0xff]  ;;  %v5140_v53 = vcombine.high %v5124_v4, %v5124_v4  ;;  %v4900_v14 = vrot.slane %v4886_v3, %v11492_v11 }
 0x25f   :  { %4769 = vst [vmem:[#allocation2 + $0x128] sm:$0x1] %v4723_v33  ;;  %4770 = vst [vmem:[#allocation2 + $0x138] sm:$0x1] %v4725_v35  ;;  %7104 = vmatprep.mubr.f32.mxu0 %v11879_v42  ;;  %v11886_v8 = vld [vmem:[#allocation2 + $0x60] sm:$0xff]  ;;  %v4901_v22 = vcombine.high %v4893_v47, %v4893_v47  ;;  %v4909_v49 = vrot.slane %v4893_v47, %v11492_v11  ;;  %v6716_v16 = vld [vmem:[#allocation10 + $0x388] sm:$0xff]  ;;  %7245 = vmatmul.mubr.f32.gmra.mrb[28].mxu1 %v11890_v52 }
 0x260   :  { %4773 = vst [vmem:[#allocation2 + $0x168] sm:$0x1] %v4724_v34  ;;  %4774 = vst [vmem:[#allocation2 + $0x178] sm:$0x1] %v4726_v56  ;;  %v6715_v39 = vld [vmem:[#allocation10 + $0x380] sm:$0xff]  ;;  %7105 = vmatmul.mubr.f32.gmra.mrb[30].mxu0 %v11886_v8  ;;  %v6668_v57 = vld [vmem:[#allocation10 + $0x208] sm:$0xff]  ;;  %v5141_v58 = vcombine.high %v5131_v6, %v5131_v6  ;;  %v5142_v10 = vcombine.high %v5138_v29, %v5138_v29  ;;  %v5302_v59 = vcombine.high %v5200_v46, %v5200_v46 }
 0x261   :  { %9160 = vst.sshfl [vmem:[#allocation2 + $0x11a] sm:$0x1 pattern:$0x73625140] %v5109_v44  ;;  %v6667_v55 = vld [vmem:[#allocation10 + $0x200] sm:$0xff]  ;;  %v5309_v30 = vrot.slane %v5200_v46, %v11492_v11  ;;  %10410 = vmatprep.subr.bf16.mxu0 %v10409_v45  ;;  %v11899_v61 = vld [vmem:[#allocation10 + $0x308] sm:$0xff]  ;;  %v4902_v63 = vcombine.high %v4900_v14, %v4900_v14  ;;  %v4916_v32 = vrot.slane %v4900_v14, %v11492_v11 }
 0x262   :  { %9162 = vst.sshfl [vmem:[#allocation2 + $0x15a] sm:$0x1 pattern:$0x73625140] %v5110_v60  ;;  %5185 = vst [vmem:[#allocation2 + $0x12a] sm:$0x1] %v5139_v48  ;;  %v4923_v5 = vrot.slane %v4901_v22, %v11492_v11  ;;  %v4931_v24 = vcombine.high %v4909_v49, %v4909_v49  ;;  %v5316_v37 = vrot.slane %v5302_v59, %v11492_v11 }
 0x263   :  { %9146 = vst.sshfl [vmem:[#allocation2 + $0x109] sm:$0x1 pattern:$0x73625140] %v4893_v47  ;;  %v11897_v15 = vld [vmem:[#allocation10 + $0x300] sm:$0xff]  ;;  %v6685_v12 = vld [vmem:[#allocation10 + $0x290] sm:$0xff]  ;;  %v5317_v25 = vcombine.high %v5309_v30, %v5309_v30  ;;  %v5325_v26 = vrot.slane %v5309_v30, %v11492_v11  ;;  %v10441_v27 = vpack.c.bf16 %v6716_v16, %v6715_v39  ;;  %v4930_v35 = vrot.slane %v4902_v63, %v11492_v11 }
 0x264   :  { %v5501_v62 = vld [vmem:[#allocation2 + $0x63] sm:$0xff]  ;;  %5189 = vst [vmem:[#allocation2 + $0x16a] sm:$0x1] %v5140_v53  ;;  %v6686_v18 = vld [vmem:[#allocation10 + $0x298] sm:$0xff]  ;;  %v11903_v19 = vld [vmem:[#allocation2 + $0x71] sm:$0xff]  ;;  %v4932_v36 = vcombine.high %v4916_v32, %v4916_v32  ;;  %v4933_v40 = vcombine.high %v4923_v5, %v4923_v5  ;;  %v10411_v50 = vpack.c.bf16 %v6668_v57, %v6667_v55  ;;  %v5318_v60 = vcombine.high %v5316_v37, %v5316_v37 }
 0x265   :  { %9147 = vst.sshfl [vmem:[#allocation2 + $0x119] sm:$0x1 pattern:$0x73625140] %v4901_v22  ;;  %7249 = vmatprep.mubr.f32.mxu1 %v5501_v62  ;;  %5186 = vst [vmem:[#allocation2 + $0x13a] sm:$0x1] %v5141_v58  ;;  %7109 = vmatprep.mubr.f32.mxu0 %v11903_v19  ;;  %v5332_v38 = vrot.slane %v5316_v37, %v11492_v11  ;;  %v5339_v4 = vrot.slane %v5317_v25, %v11492_v11 }
 0x266   :  { %9148 = vst.sshfl [vmem:[#allocation2 + $0x149] sm:$0x1 pattern:$0x73625140] %v4900_v14  ;;  %5190 = vst [vmem:[#allocation2 + $0x17a] sm:$0x1] %v5142_v10  ;;  %v5347_v3 = vcombine.high %v5325_v26, %v5325_v26  ;;  %10442 = vmatprep.subr.bf16.mxu1 %v10441_v27  ;;  %v4934_v29 = vcombine.high %v4930_v35, %v4930_v35  ;;  %10412 = vmatpush3.bf16.msra.mxu0 %v10411_v50 }
 0x267   :  { %9172 = vst.sshfl [vmem:[#allocation2 + $0x10b] sm:$0x1 pattern:$0x73625140] %v5309_v30  ;;  %v6717_v28 = vld [vmem:[#allocation10 + $0x390] sm:$0xff]  ;;  %v6718_v33 = vld [vmem:[#allocation10 + $0x398] sm:$0xff]  ;;  %v10443_v48 = vpack.c.bf16 %v11899_v61, %v11897_v15  ;;  %v10413_v45 = vpack.c.bf16 %v6686_v18, %v6685_v12  ;;  %v5346_v49 = vrot.slane %v5318_v60, %v11492_v11  ;;  %v5348_v16 = vcombine.high %v5332_v38, %v5332_v38 }
 0x268   :  { %v11908_v34 = vld [vmem:[#allocation2 + $0x62] sm:$0xff]  ;;  %4977 = vst [vmem:[#allocation2 + $0x129] sm:$0x1] %v4931_v24  ;;  %v6669_v21 = vld [vmem:[#allocation10 + $0x210] sm:$0xff]  ;;  %v6670_v56 = vld [vmem:[#allocation10 + $0x218] sm:$0xff]  ;;  %v10445_v39 = vpack.c.bf16 %v6718_v33, %v6717_v28  ;;  %v5349_v55 = vcombine.high %v5339_v4, %v5339_v4 }
 0x269   :  { %9149 = vst.sshfl [vmem:[#allocation2 + $0x159] sm:$0x1 pattern:$0x73625140] %v4902_v63  ;;  %v6701_v44 = vld [vmem:[#allocation10 + $0x310] sm:$0xff]  ;;  %7250 = vmatmul.mubr.f32.gmra.mrb[30].mxu1 %v11908_v34  ;;  %v6702_v47 = vld [vmem:[#allocation10 + $0x318] sm:$0xff]  ;;  %v10415_v57 = vpack.c.bf16 %v6670_v56, %v6669_v21  ;;  %10414 = vmatprep.subr.bf16.mxu0 %v10413_v45  ;;  %v5350_v63 = vcombine.high %v5346_v49, %v5346_v49 }
 0x26a   :  { %9173 = vst.sshfl [vmem:[#allocation2 + $0x11b] sm:$0x1 pattern:$0x73625140] %v5317_v25  ;;  %v6687_v46 = vld [vmem:[#allocation10 + $0x2a0] sm:$0xff]  ;;  %v6688_v6 = vld [vmem:[#allocation10 + $0x2a8] sm:$0xff]  ;;  %10444 = vmatpush3.bf16.msra.mxu1 %v10443_v48  ;;  %v10447_v59 = vpack.c.bf16 %v6702_v47, %v6701_v44 }
 0x26b   :  { %9174 = vst.sshfl [vmem:[#allocation2 + $0x14b] sm:$0x1 pattern:$0x73625140] %v5316_v37  ;;  %4978 = vst [vmem:[#allocation2 + $0x139] sm:$0x1] %v4933_v40  ;;  %v10417_v30 = vpack.c.bf16 %v6688_v6, %v6687_v46  ;;  %10446 = vmatprep.subr.bf16.mxu1 %v10445_v39  ;;  %10416 = vmatpush3.bf16.msra.mxu0 %v10415_v57 }
 0x26c   :  { %4981 = vst [vmem:[#allocation2 + $0x169] sm:$0x1] %v4932_v36  ;;  %v6719_v53 = vld [vmem:[#allocation10 + $0x3a0] sm:$0xff]  ;;  %v6720_v14 = vld [vmem:[#allocation10 + $0x3a8] sm:$0xff]  ;;  %v5502_v22 = vld [vmem:[#allocation2 + $0x73] sm:$0xff] }
 0x26d   :  { %5393 = vst [vmem:[#allocation2 + $0x12b] sm:$0x1] %v5347_v3  ;;  %9175 = vst.sshfl [vmem:[#allocation2 + $0x15b] sm:$0x1 pattern:$0x73625140] %v5318_v60  ;;  %7254 = vmatprep.mubr.f32.mxu1 %v5502_v22  ;;  %v10449_v11 = vpack.c.bf16 %v6720_v14, %v6719_v53  ;;  %10418 = vmatprep.subr.bf16.mxu0 %v10417_v30 }
 0x26e   :  { %v6671_v58 = vld [vmem:[#allocation10 + $0x220] sm:$0xff]  ;;  %v6672_v10 = vld [vmem:[#allocation10 + $0x228] sm:$0xff]  ;;  %4982 = vst [vmem:[#allocation2 + $0x179] sm:$0x1] %v4934_v29  ;;  %v6689_v61 = vld [vmem:[#allocation10 + $0x2b0] sm:$0xff]  ;;  %10448 = vmatpush3.bf16.msra.mxu1 %v10447_v59 }
 0x26f   :  { %v6703_v15 = vld [vmem:[#allocation10 + $0x320] sm:$0xff]  ;;  %v6690_v62 = vld [vmem:[#allocation10 + $0x2b8] sm:$0xff]  ;;  %5394 = vst [vmem:[#allocation2 + $0x13b] sm:$0x1] %v5349_v55  ;;  %5397 = vst [vmem:[#allocation2 + $0x16b] sm:$0x1] %v5348_v16  ;;  %v10419_v12 = vpack.c.bf16 %v6672_v10, %v6671_v58  ;;  %10450 = vmatprep.subr.bf16.mxu1 %v10449_v11 }
 0x270   :  { %v6704_v32 = vld [vmem:[#allocation10 + $0x328] sm:$0xff]  ;;  %v6721_v5 = vld [vmem:[#allocation10 + $0x3b0] sm:$0xff]  ;;  %v6722_v18 = vld [vmem:[#allocation10 + $0x3b8] sm:$0xff]  ;;  %5398 = vst [vmem:[#allocation2 + $0x17b] sm:$0x1] %v5350_v63  ;;  %v10421_v26 = vpack.c.bf16 %v6690_v62, %v6689_v61 }
 0x271   :  { %v11917_v24 = vld [vmem:[#allocation2 + $0x72] sm:$0xff]  ;;  %v6674_v27 = vld [vmem:[#allocation10 + $0x238] sm:$0xff]  ;;  %v10451_v35 = vpack.c.bf16 %v6704_v32, %v6703_v15  ;;  %v5503_v36 = vld [vmem:[#allocation2 + $0xc3] sm:$0xff]  ;;  %v10453_v21 = vpack.c.bf16 %v6722_v18, %v6721_v5  ;;  %10420 = vmatpush3.bf16.msra.mxu0 %v10419_v12 }
 0x272   :  { %v6673_v37 = vld [vmem:[#allocation10 + $0x230] sm:$0xff]  ;;  %7255 = vmatmul.mubr.f32.gmra.mrb[32].mxu1 %v11917_v24  ;;  %v5439_v33 = vld [vmem:[#allocation2 + $0xc1] sm:$0xff]  ;;  %v6692_v50 = vld [vmem:[#allocation10 + $0x2c8] sm:$0xff]  ;;  %10422 = vmatprep.subr.bf16.mxu0 %v10421_v26 }
 0x273   :  { %v11919_v25 = vld [vmem:[#allocation2 + $0x70] sm:$0xff]  ;;  %v6691_v40 = vld [vmem:[#allocation10 + $0x2c0] sm:$0xff]  ;;  %v6706_v56 = vld [vmem:[#allocation10 + $0x338] sm:$0xff]  ;;  %7259 = vmatprep.mubr.f32.mxu1 %v5503_v36  ;;  %v10423_v38 = vpack.c.bf16 %v6674_v27, %v6673_v37  ;;  %10452 = vmatpush3.bf16.msra.mxu1 %v10451_v35 }
 0x274   :  { %v6705_v28 = vld [vmem:[#allocation10 + $0x330] sm:$0xff]  ;;  %7110 = vmatmul.mubr.f32.gmra.mrb[32].mxu0 %v11919_v25  ;;  %v5471_v44 = vld [vmem:[#allocation2 + $0xc2] sm:$0xff]  ;;  %v6724_v3 = vld [vmem:[#allocation10 + $0x3c8] sm:$0xff]  ;;  %v10425_v6 = vpack.c.bf16 %v6692_v50, %v6691_v40  ;;  %10454 = vmatprep.subr.bf16.mxu1 %v10453_v21 }
 0x275   :  { %7114 = vmatprep.mubr.f32.mxu0 %v5439_v33  ;;  %v6723_v60 = vld [vmem:[#allocation10 + $0x3c0] sm:$0xff]  ;;  %v11923_v46 = vld [vmem:[#allocation2 + $0xd1] sm:$0xff]  ;;  %v10455_v45 = vpack.c.bf16 %v6706_v56, %v6705_v28  ;;  %v6694_v14 = vld [vmem:[#allocation10 + $0x2d8] sm:$0xff]  ;;  %10424 = vmatpush3.bf16.msra.mxu0 %v10423_v38 }
 0x276   :  { %v5407_v4 = vld [vmem:[#allocation2 + $0xc0] sm:$0xff]  ;;  %7260 = vmatmul.mubr.f32.gmra.mrb[34].mxu1 %v5471_v44  ;;  %v6676_v29 = vld [vmem:[#allocation10 + $0x248] sm:$0xff]  ;;  %v11926_v39 = vld [vmem:[#allocation2 + $0xd3] sm:$0xff]  ;;  %v10457_v22 = vpack.c.bf16 %v6724_v3, %v6723_v60  ;;  %10426 = vmatprep.subr.bf16.mxu0 %v10425_v6 }
 0x277   :  { %v6675_v47 = vld [vmem:[#allocation10 + $0x240] sm:$0xff]  ;;  %v6693_v53 = vld [vmem:[#allocation10 + $0x2d0] sm:$0xff]  ;;  %7264 = vmatprep.mubr.f32.mxu1 %v11926_v39  ;;  %v6708_v49 = vld [vmem:[#allocation10 + $0x348] sm:$0xff]  ;;  %10456 = vmatpush3.bf16.msra.mxu1 %v10455_v45 }
 0x278   :  { %7115 = vmatmul.mubr.f32.gmra.mrb[34].mxu0 %v5407_v4  ;;  %v6707_v48 = vld [vmem:[#allocation10 + $0x340] sm:$0xff]  ;;  %v11929_v16 = vld [vmem:[#allocation2 + $0xd2] sm:$0xff]  ;;  %v10427_v57 = vpack.c.bf16 %v6676_v29, %v6675_v47  ;;  %v6726_v10 = vld [vmem:[#allocation10 + $0x3d8] sm:$0xff]  ;;  %v10429_v15 = vpack.c.bf16 %v6694_v14, %v6693_v53  ;;  %10458 = vmatprep.subr.bf16.mxu1 %v10457_v22 }
 0x279   :  { %7119 = vmatprep.mubr.f32.mxu0 %v11923_v46  ;;  %v6725_v55 = vld [vmem:[#allocation10 + $0x3d0] sm:$0xff]  ;;  %v11935_v30 = vld [vmem:[#allocation2 + $0xe1] sm:$0xff]  ;;  %v10459_v63 = vpack.c.bf16 %v6708_v49, %v6707_v48  ;;  %v6696_v37 = vld [vmem:[#allocation10 + $0x2e8] sm:$0xff] }
 0x27a   :  { %v11931_v58 = vld [vmem:[#allocation2 + $0xd0] sm:$0xff]  ;;  %7265 = vmatmul.mubr.f32.gmra.mrb[36].mxu1 %v11929_v16  ;;  %v6678_v61 = vld [vmem:[#allocation10 + $0x258] sm:$0xff]  ;;  %v11938_v11 = vld [vmem:[#allocation2 + $0xe3] sm:$0xff]  ;;  %v10461_v18 = vpack.c.bf16 %v6726_v10, %v6725_v55  ;;  %10428 = vmatpush3.bf16.msra.mxu0 %v10427_v57 }
 0x27b   :  { %v6677_v59 = vld [vmem:[#allocation10 + $0x250] sm:$0xff]  ;;  %v6710_v32 = vld [vmem:[#allocation10 + $0x358] sm:$0xff]  ;;  %v6695_v5 = vld [vmem:[#allocation10 + $0x2e0] sm:$0xff]  ;;  %7269 = vmatprep.mubr.f32.mxu1 %v11938_v11  ;;  %10430 = vmatprep.subr.bf16.mxu0 %v10429_v15 }
 0x27c   :  { %7120 = vmatmul.mubr.f32.gmra.mrb[36].mxu0 %v11931_v58  ;;  %v6709_v62 = vld [vmem:[#allocation10 + $0x350] sm:$0xff]  ;;  %v11941_v12 = vld [vmem:[#allocation2 + $0xe2] sm:$0xff]  ;;  %v10431_v28 = vpack.c.bf16 %v6678_v61, %v6677_v59  ;;  %v6728_v33 = vld [vmem:[#allocation10 + $0x3e8] sm:$0xff]  ;;  %10460 = vmatpush3.bf16.msra.mxu1 %v10459_v63  ;;  %v10433_v4 = vpack.c.bf16 %v6696_v37, %v6695_v5 }
 0x27d   :  { %7124 = vmatprep.mubr.f32.mxu0 %v11935_v30  ;;  %v6727_v26 = vld [vmem:[#allocation10 + $0x3e0] sm:$0xff]  ;;  %v11947_v36 = vld [vmem:[#allocation2 + $0xf1] sm:$0xff]  ;;  %v10463_v56 = vpack.c.bf16 %v6710_v32, %v6709_v62  ;;  %10462 = vmatprep.subr.bf16.mxu1 %v10461_v18  ;;  %v6698_v47 = vld [vmem:[#allocation10 + $0x2f8] sm:$0xff] }
 0x27e   :  { %v11943_v27 = vld [vmem:[#allocation2 + $0xe0] sm:$0xff]  ;;  %7270 = vmatmul.mubr.f32.gmra.mrb[38].mxu1 %v11941_v12  ;;  %v6680_v40 = vld [vmem:[#allocation10 + $0x268] sm:$0xff]  ;;  %v11950_v21 = vld [vmem:[#allocation2 + $0xf3] sm:$0xff]  ;;  %v10465_v3 = vpack.c.bf16 %v6728_v33, %v6727_v26  ;;  %10432 = vmatpush3.bf16.msra.mxu0 %v10431_v28 }
 0x27f   :  { %v6679_v35 = vld [vmem:[#allocation10 + $0x260] sm:$0xff]  ;;  %12715 = vst [vmem:[#allocation18_spill] sm:$0xff] %v11950_v21  ;;  %v6712_v44 = vld [vmem:[#allocation10 + $0x368] sm:$0xff]  ;;  %v6697_v60 = vld [vmem:[#allocation10 + $0x2f0] sm:$0xff]  ;;  %7274 = vmatprep.mubr.f32.mxu1 %v11950_v21  ;;  %10434 = vmatprep.subr.bf16.mxu0 %v10433_v4 }
 0x280   :  { %7125 = vmatmul.mubr.f32.gmra.mrb[38].mxu0 %v11943_v27  ;;  %v6711_v50 = vld [vmem:[#allocation10 + $0x360] sm:$0xff]  ;;  %v11953_v38 = vld [vmem:[#allocation2 + $0xf2] sm:$0xff]  ;;  %v10435_v45 = vpack.c.bf16 %v6680_v40, %v6679_v35  ;;  %v6730_v53 = vld [vmem:[#allocation10 + $0x3f8] sm:$0xff]  ;;  %10464 = vmatpush3.bf16.msra.mxu1 %v10463_v56  ;;  %v10437_v61 = vpack.c.bf16 %v6698_v47, %v6697_v60 }
 0x281   :  { %7129 = vmatprep.mubr.f32.mxu0 %v11947_v36  ;;  %v6729_v6 = vld [vmem:[#allocation10 + $0x3f0] sm:$0xff]  ;;  %v11958_v48 = vld [vmem:[#allocation2 + $0x103] sm:$0xff]  ;;  %v6682_v49 = vld [vmem:[#allocation10 + $0x278] sm:$0xff]  ;;  %v10467_v55 = vpack.c.bf16 %v6712_v44, %v6711_v50  ;;  %10466 = vmatprep.subr.bf16.mxu1 %v10465_v3 }
 0x282   :  { %v11955_v29 = vld [vmem:[#allocation2 + $0xf0] sm:$0xff]  ;;  %7275 = vmatmul.mubr.f32.gmra.mrb[40].mxu1 %v11953_v38  ;;  %12716 = vst [vmem:[#allocation19_spill] sm:$0xff] %v11958_v48  ;;  %v11961_v14 = vld [vmem:[#allocation2 + $0x101] sm:$0xff]  ;;  %v10469_v62 = vpack.c.bf16 %v6730_v53, %v6729_v6  ;;  %10436 = vmatpush3.bf16.msra.mxu0 %v10435_v45 }
 0x283   :  { %7279 = vmatprep.mubr.f32.mxu1 %v11958_v48  ;;  %v6681_v22 = vld [vmem:[#allocation10 + $0x270] sm:$0xff]  ;;  %v6714_v10 = vld [vmem:[#allocation10 + $0x378] sm:$0xff]  ;;  %v6747_v59 = vld [vmem:[#allocation10 + $0x480] sm:$0xff]  ;;  %10438 = vmatprep.subr.bf16.mxu0 %v10437_v61 }
 0x284   :  { %7130 = vmatmul.mubr.f32.gmra.mrb[40].mxu0 %v11955_v29  ;;  %v6713_v57 = vld [vmem:[#allocation10 + $0x370] sm:$0xff]  ;;  %v11965_v15 = vld [vmem:[#allocation2 + $0x102] sm:$0xff]  ;;  %v6748_v63 = vld [vmem:[#allocation10 + $0x488] sm:$0xff]  ;;  %v10439_v37 = vpack.c.bf16 %v6682_v49, %v6681_v22  ;;  %10468 = vmatpush3.bf16.msra.mxu1 %v10467_v55 }
 0x285   :  { %7134 = vmatprep.mubr.f32.mxu0 %v11961_v14  ;;  %v6779_v32 = vld [vmem:[#allocation10 + $0x580] sm:$0xff]  ;;  %v11970_v18 = vld [vmem:[#allocation2 + $0x113] sm:$0xff]  ;;  %v6780_v26 = vld [vmem:[#allocation10 + $0x588] sm:$0xff]  ;;  %v10471_v33 = vpack.c.bf16 %v6714_v10, %v6713_v57  ;;  %10470 = vmatprep.subr.bf16.mxu1 %v10469_v62  ;;  %v10473_v40 = vpack.c.bf16 %v6748_v63, %v6747_v59 }
 0x286   :  { %v11967_v5 = vld [vmem:[#allocation2 + $0x100] sm:$0xff]  ;;  %7280 = vmatmul.mubr.f32.gmra.mrb[42].mxu1 %v11965_v15  ;;  %12717 = vst [vmem:[#allocation20_spill] sm:$0xff] %v11970_v18  ;;  %v11973_v28 = vld [vmem:[#allocation2 + $0x111] sm:$0xff]  ;;  %v10505_v50 = vpack.c.bf16 %v6780_v26, %v6779_v32  ;;  %10440 = vmatpush3.bf16.msra.mxu0 %v10439_v37 }
 0x287   :  { %7284 = vmatprep.mubr.f32.mxu1 %v11970_v18  ;;  %v11977_v35 = vld [vmem:[#allocation2 + $0x112] sm:$0xff]  ;;  %v11982_v44 = vld [vmem:[#allocation2 + $0x123] sm:$0xff]  ;;  %10474 = vmatprep.subr.bf16.mxu0 %v10473_v40  ;;  %v6750_v59 = vld [vmem:[#allocation10 + $0x498] sm:$0xff] }
 0x288   :  { %7135 = vmatmul.mubr.f32.gmra.mrb[42].mxu0 %v11967_v5  ;;  %v11979_v56 = vld [vmem:[#allocation2 + $0x110] sm:$0xff]  ;;  %12718 = vst [vmem:[#allocation21_spill] sm:$0xff] %v11982_v44  ;;  %v11985_v60 = vld [vmem:[#allocation2 + $0x121] sm:$0xff]  ;;  %10472 = vmatpush3.bf16.msra.mxu1 %v10471_v33 }
 0x289   :  { %7139 = vmatprep.mubr.f32.mxu0 %v11973_v28  ;;  %v11989_v4 = vld [vmem:[#allocation2 + $0x122] sm:$0xff]  ;;  %10506 = vmatprep.subr.bf16.mxu1 %v10505_v50  ;;  %v11994_v47 = vld [vmem:[#allocation2 + $0x133] sm:$0xff]  ;;  %v6732_v53 = vld [vmem:[#allocation10 + $0x408] sm:$0xff] }
 0x28a   :  { %7285 = vmatmul.mubr.f32.gmra.mrb[44].mxu1 %v11977_v35  ;;  %v11991_v3 = vld [vmem:[#allocation2 + $0x120] sm:$0xff]  ;;  %12719 = vst [vmem:[#allocation22_spill] sm:$0xff] %v11994_v47  ;;  %v11997_v6 = vld [vmem:[#allocation2 + $0x131] sm:$0xff] }
 0x28b   :  { %7289 = vmatprep.mubr.f32.mxu1 %v11982_v44  ;;  %v6731_v45 = vld [vmem:[#allocation10 + $0x400] sm:$0xff]  ;;  %v12001_v22 = vld [vmem:[#allocation2 + $0x132] sm:$0xff]  ;;  %v6764_v55 = vld [vmem:[#allocation10 + $0x508] sm:$0xff] }
 0x28c   :  { %7140 = vmatmul.mubr.f32.gmra.mrb[44].mxu0 %v11979_v56  ;;  %v6763_v49 = vld [vmem:[#allocation10 + $0x500] sm:$0xff]  ;;  %v12003_v57 = vld [vmem:[#allocation2 + $0x130] sm:$0xff]  ;;  %v6782_v62 = vld [vmem:[#allocation10 + $0x598] sm:$0xff]  ;;  %v10475_v63 = vpack.c.bf16 %v6732_v53, %v6731_v45 }
 0x28d   :  { %7144 = vmatprep.mubr.f32.mxu0 %v11985_v60  ;;  %v6749_v10 = vld [vmem:[#allocation10 + $0x490] sm:$0xff]  ;;  %v10507_v37 = vpack.c.bf16 %v6764_v55, %v6763_v49  ;;  %v6734_v33 = vld [vmem:[#allocation10 + $0x418] sm:$0xff]  ;;  %v6751_v18 = vld [vmem:[#allocation10 + $0x4a0] sm:$0xff] }
 0x28e   :  { %7290 = vmatmul.mubr.f32.gmra.mrb[46].mxu1 %v11989_v4  ;;  %v6781_v61 = vld [vmem:[#allocation10 + $0x590] sm:$0xff]  ;;  %v10477_v26 = vpack.c.bf16 %v6750_v59, %v6749_v10  ;;  %v6766_v50 = vld [vmem:[#allocation10 + $0x518] sm:$0xff]  ;;  %v6752_v48 = vld [vmem:[#allocation10 + $0x4a8] sm:$0xff] }
 0x28f   :  { %7294 = vmatprep.mubr.f32.mxu1 %v11994_v47  ;;  %v6733_v32 = vld [vmem:[#allocation10 + $0x410] sm:$0xff]  ;;  %v5527_v47 = vld [vmem:[#allocation2 + $0x4] sm:$0xff]  ;;  %v10509_v44 = vpack.c.bf16 %v6782_v62, %v6781_v61  ;;  %v10481_v49 = vpack.c.bf16 %v6752_v48, %v6751_v18  ;;  %v6754_v61 = vld [vmem:[#allocation10 + $0x4b8] sm:$0xff] }
 0x290   :  { %7145 = vmatmul.mubr.f32.gmra.mrb[46].mxu0 %v11991_v3  ;;  %v6765_v40 = vld [vmem:[#allocation10 + $0x510] sm:$0xff]  ;;  %v6784_v21 = vld [vmem:[#allocation10 + $0x5a8] sm:$0xff]  ;;  %v6735_v45 = vld [vmem:[#allocation10 + $0x420] sm:$0xff] }
 0x291   :  { %7149 = vmatprep.mubr.f32.mxu0 %v11997_v6  ;;  %v10511_v53 = vpack.c.bf16 %v6766_v50, %v6765_v40  ;;  %v6736_v55 = vld [vmem:[#allocation10 + $0x428] sm:$0xff]  ;;  %v6767_v10 = vld [vmem:[#allocation10 + $0x520] sm:$0xff]  ;;  %v12012_v59 = vld [vmem:[#allocation2 + $0x14] sm:$0xff] }
 0x292   :  { %7295 = vmatmul.mubr.f32.gmra.mrb[48].mxu1 %v12001_v22  ;;  %v6786_v62 = vld [vmem:[#allocation10 + $0x5b8] sm:$0xff]  ;;  %v10483_v48 = vpack.c.bf16 %v6736_v55, %v6735_v45  ;;  %v6737_v18 = vld [vmem:[#allocation10 + $0x430] sm:$0xff]  ;;  %v6788_v40 = vld [vmem:[#allocation10 + $0x5c8] sm:$0xff] }
 0x293   :  { %7509 = vmatprep.mubr.f32.mxu1 %v11811_v23  ;;  %v6783_v23 = vld [vmem:[#allocation10 + $0x5a0] sm:$0xff]  ;;  %v12024_v55 = vld [vmem:[#allocation2 + $0x34] sm:$0xff] }
 0x294   :  { %7150 = vmatmul.mubr.f32.gmra.mrb[48].mxu0 %v12003_v57 }
 0x295   :  { %7364 = vmatprep.mubr.f32.mxu0 %v11791_v0  ;;  %v10479_v0 = vpack.c.bf16 %v6734_v33, %v6733_v32  ;;  %v6756_v33 = vld [vmem:[#allocation10 + $0x4c8] sm:$0xff] }
 0x296   :  { %7510 = vmatmul.mubr.f32.vlgmr.msra.gmra.mrb[50].mxu1 %v11781_v41  ;;  %v6768_v41 = vld [vmem:[#allocation10 + $0x528] sm:$0xff] }
 0x297   :  { %7514 = vmatprep.mubr.f32.mxu1 %v11834_v43  ;;  %10508 = vmatpush3.bf16.msra.mxu1 %v10507_v37  ;;  %v10513_v43 = vpack.c.bf16 %v6784_v21, %v6783_v23  ;;  %v6770_v21 = vld [vmem:[#allocation10 + $0x538] sm:$0xff]  ;;  %v12018_v37 = vld [vmem:[#allocation2 + $0x24] sm:$0xff] }
 0x298   :  { %7365 = vmatmul.mubr.f32.vlgmr.msra.gmra.mrb[50].mxu0 %v5527_v47  ;;  %10510 = vmatprep.subr.bf16.mxu1 %v10509_v44  ;;  %v6753_v47 = vld [vmem:[#allocation10 + $0x4b0] sm:$0xff]  ;;  %v6739_v23 = vld [vmem:[#allocation10 + $0x440] sm:$0xff] }
 0x299   :  { %7369 = vmatprep.mubr.f32.mxu0 %v11807_v13  ;;  %10476 = vmatpush3.bf16.msra.mxu0 %v10475_v63  ;;  %v6785_v13 = vld [vmem:[#allocation10 + $0x5b0] sm:$0xff]  ;;  %v10515_v63 = vpack.c.bf16 %v6768_v41, %v6767_v10  ;;  %v10485_v32 = vpack.c.bf16 %v6754_v61, %v6753_v47  ;;  %v6758_v41 = vld [vmem:[#allocation10 + $0x4d8] sm:$0xff] }
 0x29a   :  { %10478 = vmatprep.subr.bf16.mxu0 %v10477_v26  ;;  %7515 = vmatmul.mubr.f32.gmra.mrb[52].mxu1 %v11802_v1  ;;  %v6738_v1 = vld [vmem:[#allocation10 + $0x438] sm:$0xff]  ;;  %v6769_v44 = vld [vmem:[#allocation10 + $0x530] sm:$0xff]  ;;  %v6755_v26 = vld [vmem:[#allocation10 + $0x4c0] sm:$0xff] }
 0x29b   :  { %7519 = vmatprep.mubr.f32.mxu1 %v11854_v17  ;;  %10512 = vmatpush3.bf16.msra.mxu1 %v10511_v53  ;;  %v10517_v17 = vpack.c.bf16 %v6786_v62, %v6785_v13  ;;  %v10487_v50 = vpack.c.bf16 %v6738_v1, %v6737_v18  ;;  %v10489_v45 = vpack.c.bf16 %v6756_v33, %v6755_v26  ;;  %v6771_v53 = vld [vmem:[#allocation10 + $0x540] sm:$0xff]  ;;  %v6757_v10 = vld [vmem:[#allocation10 + $0x4d0] sm:$0xff]  ;;  %v6774_v18 = vld [vmem:[#allocation10 + $0x558] sm:$0xff] }
 0x29c   :  { %7370 = vmatmul.mubr.f32.gmra.mrb[52].mxu0 %v12012_v59  ;;  %10514 = vmatprep.subr.bf16.mxu1 %v10513_v43  ;;  %v6790_v43 = vld [vmem:[#allocation10 + $0x5d8] sm:$0xff]  ;;  %v6741_v61 = vld [vmem:[#allocation10 + $0x450] sm:$0xff]  ;;  %v10493_v62 = vpack.c.bf16 %v6758_v41, %v6757_v10  ;;  %v6760_v1 = vld [vmem:[#allocation10 + $0x4e8] sm:$0xff] }
 0x29d   :  { %7374 = vmatprep.mubr.f32.mxu0 %v11830_v2  ;;  %10480 = vmatpush3.bf16.msra.mxu0 %v10479_v0  ;;  %v6787_v2 = vld [vmem:[#allocation10 + $0x5c0] sm:$0xff]  ;;  %v10519_v0 = vpack.c.bf16 %v6770_v21, %v6769_v44  ;;  %v6792_v44 = vld [vmem:[#allocation10 + $0x5e8] sm:$0xff]  ;;  %v6777_v10 = vld [vmem:[#allocation10 + $0x570] sm:$0xff] }
 0x29e   :  { %10482 = vmatprep.subr.bf16.mxu0 %v10481_v49  ;;  %7520 = vmatmul.mubr.f32.gmra.mrb[54].mxu1 %v11822_v51  ;;  %v6740_v51 = vld [vmem:[#allocation10 + $0x448] sm:$0xff]  ;;  %v6778_v41 = vld [vmem:[#allocation10 + $0x578] sm:$0xff] }
 0x29f   :  { %7524 = vmatprep.mubr.f32.mxu1 %v11872_v31  ;;  %10516 = vmatpush3.bf16.msra.mxu1 %v10515_v63  ;;  %v6772_v49 = vld [vmem:[#allocation10 + $0x548] sm:$0xff]  ;;  %v10521_v31 = vpack.c.bf16 %v6788_v40, %v6787_v2  ;;  %v10491_v47 = vpack.c.bf16 %v6740_v51, %v6739_v23  ;;  %v6775_v2 = vld [vmem:[#allocation10 + $0x560] sm:$0xff]  ;;  %v6761_v23 = vld [vmem:[#allocation10 + $0x4f0] sm:$0xff] }
 0x2a0   :  { %7375 = vmatmul.mubr.f32.gmra.mrb[54].mxu0 %v12018_v37  ;;  %10518 = vmatprep.subr.bf16.mxu1 %v10517_v17  ;;  %v10523_v13 = vpack.c.bf16 %v6772_v49, %v6771_v53  ;;  %v12030_v63 = vld [vmem:[#allocation2 + $0x44] sm:$0xff]  ;;  %v6745_v53 = vld [vmem:[#allocation10 + $0x470] sm:$0xff]  ;;  %v6746_v49 = vld [vmem:[#allocation10 + $0x478] sm:$0xff] }
 0x2a1   :  { %7379 = vmatprep.mubr.f32.mxu0 %v11850_v54  ;;  %10484 = vmatpush3.bf16.msra.mxu0 %v10483_v48  ;;  %v6789_v54 = vld [vmem:[#allocation10 + $0x5d0] sm:$0xff]  ;;  %v6743_v17 = vld [vmem:[#allocation10 + $0x460] sm:$0xff]  ;;  %v6776_v40 = vld [vmem:[#allocation10 + $0x568] sm:$0xff] }
 0x2a2   :  { %10486 = vmatprep.subr.bf16.mxu0 %v10485_v32  ;;  %7525 = vmatmul.mubr.f32.gmra.mrb[56].mxu1 %v11845_v7  ;;  %v6742_v7 = vld [vmem:[#allocation10 + $0x458] sm:$0xff]  ;;  %v6773_v48 = vld [vmem:[#allocation10 + $0x550] sm:$0xff]  ;;  %v6759_v32 = vld [vmem:[#allocation10 + $0x4e0] sm:$0xff] }
 0x2a3   :  { %7529 = vmatprep.mubr.f32.mxu1 %v11890_v52  ;;  %10520 = vmatpush3.bf16.msra.mxu1 %v10519_v0  ;;  %v10525_v52 = vpack.c.bf16 %v6790_v43, %v6789_v54  ;;  %v10495_v21 = vpack.c.bf16 %v6742_v7, %v6741_v61  ;;  %v10527_v26 = vpack.c.bf16 %v6774_v18, %v6773_v48  ;;  %v6762_v0 = vld [vmem:[#allocation10 + $0x4f8] sm:$0xff]  ;;  %v6811_v54 = vld [vmem:[#allocation10 + $0x680] sm:$0xff]  ;;  %v6812_v61 = vld [vmem:[#allocation10 + $0x688] sm:$0xff] }
 0x2a4   :  { %7380 = vmatmul.mubr.f32.gmra.mrb[56].mxu0 %v12024_v55  ;;  %10522 = vmatprep.subr.bf16.mxu1 %v10521_v31  ;;  %v10497_v33 = vpack.c.bf16 %v6760_v1, %v6759_v32  ;;  %v10531_v31 = vpack.c.bf16 %v6776_v40, %v6775_v2  ;;  %v12042_v43 = vld [vmem:[#allocation2 + $0x64] sm:$0xff]  ;;  %v10503_v48 = vpack.c.bf16 %v6746_v49, %v6745_v53  ;;  %v12054_v32 = vld [vmem:[#allocation2 + $0x74] sm:$0xff] }
 0x2a5   :  { %7384 = vmatprep.mubr.f32.mxu0 %v11866_v20  ;;  %10488 = vmatpush3.bf16.msra.mxu0 %v10487_v50  ;;  %v6791_v20 = vld [vmem:[#allocation10 + $0x5e0] sm:$0xff]  ;;  %v12036_v50 = vld [vmem:[#allocation2 + $0x54] sm:$0xff]  ;;  %v6844_v7 = vld [vmem:[#allocation10 + $0x788] sm:$0xff] }
 0x2a6   :  { %10490 = vmatprep.subr.bf16.mxu0 %v10489_v45  ;;  %7530 = vmatmul.mubr.f32.gmra.mrb[58].mxu1 %v11860_v9  ;;  %v6744_v9 = vld [vmem:[#allocation10 + $0x468] sm:$0xff]  ;;  %v6794_v45 = vld [vmem:[#allocation10 + $0x5f8] sm:$0xff]  ;;  %v6829_v49 = vld [vmem:[#allocation10 + $0x710] sm:$0xff] }
 0x2a7   :  { %7534 = vmatprep.mubr.f32.mxu1 %v11908_v34  ;;  %10524 = vmatpush3.bf16.msra.mxu1 %v10523_v13  ;;  %v10529_v34 = vpack.c.bf16 %v6792_v44, %v6791_v20  ;;  %v10499_v51 = vpack.c.bf16 %v6744_v9, %v6743_v17  ;;  %v12048_v13 = vld [vmem:[#allocation2 + $0x80] sm:$0xff]  ;;  %v12063_v44 = vld [vmem:[#allocation2 + $0xd4] sm:$0xff] }
 0x2a8   :  { %7385 = vmatmul.mubr.f32.gmra.mrb[58].mxu0 %v12030_v63  ;;  %10526 = vmatprep.subr.bf16.mxu1 %v10525_v52  ;;  %v12052_v18 = vld [vmem:[#allocation2 + $0x81] sm:$0xff]  ;;  %v10537_v52 = vpack.c.bf16 %v6812_v61, %v6811_v54  ;;  %v6813_v9 = vld [vmem:[#allocation10 + $0x690] sm:$0xff]  ;;  %v6816_v54 = vld [vmem:[#allocation10 + $0x6a8] sm:$0xff] }
 0x2a9   :  { %7389 = vmatprep.mubr.f32.mxu0 %v11886_v8  ;;  %10492 = vmatpush3.bf16.msra.mxu0 %v10491_v47  ;;  %v6793_v8 = vld [vmem:[#allocation10 + $0x5f0] sm:$0xff]  ;;  %v5535_v20 = vld [vmem:[#allocation2 + $0xc4] sm:$0xff]  ;;  %v6814_v2 = vld [vmem:[#allocation10 + $0x698] sm:$0xff] }
 0x2aa   :  { %10494 = vmatprep.subr.bf16.mxu0 %v10493_v62  ;;  %7535 = vmatmul.mubr.f32.gmra.mrb[60].mxu1 %v11879_v42  ;;  %v10501_v42 = vpack.c.bf16 %v6762_v0, %v6761_v23  ;;  %v10533_v47 = vpack.c.bf16 %v6794_v45, %v6793_v8  ;;  %v6843_v62 = vld [vmem:[#allocation10 + $0x780] sm:$0xff]  ;;  %v6846_v23 = vld [vmem:[#allocation10 + $0x798] sm:$0xff]  ;;  %v10541_v45 = vpack.c.bf16 %v6814_v2, %v6813_v9  ;;  %v10951_v61 = vld [vmem:[#allocation2 + $0x31] sm:$0xff] }
 0x2ab   :  { %7539 = vmatprep.mubr.f32.mxu1 %v11917_v24  ;;  %10528 = vmatpush3.bf16.msra.mxu1 %v10527_v26  ;;  %v12045_v24 = vld [vmem:[#allocation2 + $0x82] sm:$0xff]  ;;  %v10569_v1 = vpack.c.bf16 %v6844_v7, %v6843_v62  ;;  %v6798_v53 = vld [vmem:[#allocation10 + $0x618] sm:$0xff]  ;;  %v6848_v7 = vld [vmem:[#allocation10 + $0x7a8] sm:$0xff] }
 0x2ac   :  { %7390 = vmatmul.mubr.f32.gmra.mrb[60].mxu0 %v12036_v50  ;;  %10530 = vmatprep.subr.bf16.mxu1 %v10529_v34  ;;  %v12100_v17 = vld [vmem:[#allocation2 + $0x141] sm:$0xff]  ;;  %v6845_v34 = vld [vmem:[#allocation10 + $0x790] sm:$0xff] }
 0x2ad   :  { %7394 = vmatprep.mubr.f32.mxu0 %v11919_v25  ;;  %10496 = vmatpush3.bf16.msra.mxu0 %v10495_v21  ;;  %v6796_v21 = vld [vmem:[#allocation10 + $0x608] sm:$0xff]  ;;  %v6827_v26 = vld [vmem:[#allocation10 + $0x700] sm:$0xff] }
 0x2ae   :  { %10498 = vmatprep.subr.bf16.mxu0 %v10497_v33  ;;  %7540 = vmatmul.mubr.f32.gmra.mrb[62].mxu1 %v11903_v19  ;;  %v10535_v19 = vpack.c.bf16 %v6778_v41, %v6777_v10  ;;  %v12102_v33 = vld [vmem:[#allocation2 + $0x134] sm:$0xff]  ;;  %v10948_v40 = vld [vmem:[#allocation2 + $0x21] sm:$0xff] }
 0x2af   :  { %7544 = vmatprep.mubr.f32.mxu1 %v12045_v24  ;;  %10532 = vmatpush3.bf16.msra.mxu1 %v10531_v31  ;;  %v10949_v31 = vld [vmem:[#allocation2 + $0x20] sm:$0xff] }
 0x2b0   :  { %7395 = vmatmul.mubr.f32.gmra.mrb[62].mxu0 %v12042_v43  ;;  %10534 = vmatprep.subr.bf16.mxu1 %v10533_v47  ;;  %v6830_v10 = vld [vmem:[#allocation10 + $0x718] sm:$0xff]  ;;  %v6815_v41 = vld [vmem:[#allocation10 + $0x6a0] sm:$0xff] }
 0x2b1   :  { %7399 = vmatprep.mubr.f32.mxu0 %v12048_v13  ;;  %10500 = vmatpush3.bf16.msra.mxu0 %v10499_v51  ;;  %v6797_v51 = vld [vmem:[#allocation10 + $0x610] sm:$0xff]  ;;  %v6847_v62 = vld [vmem:[#allocation10 + $0x7a0] sm:$0xff] }
 0x2b2   :  { %10502 = vmatprep.subr.bf16.mxu0 %v10501_v42  ;;  %7545 = vmatmul.mubr.f32.gmra.mrb[64].mxu1 %v12052_v18  ;;  %v10573_v42 = vpack.c.bf16 %v6846_v23, %v6845_v34  ;;  %v10950_v47 = vld [vmem:[#allocation2 + $0x13] sm:$0xff]  ;;  %v10953_v9 = vld [vmem:[#allocation2 + $0x23] sm:$0xff] }
 0x2b3   :  { %7549 = vmatprep.mubr.f32.mxu1 %v11929_v16  ;;  %10536 = vmatpush3.bf16.msra.mxu1 %v10535_v19  ;;  %v12069_v16 = vld [vmem:[#allocation2 + $0xe4] sm:$0xff]  ;;  %v10545_v19 = vpack.c.bf16 %v6816_v54, %v6815_v41  ;;  %v6850_v34 = vld [vmem:[#allocation10 + $0x7b8] sm:$0xff] }
 0x2b4   :  { %7400 = vmatmul.mubr.f32.gmra.mrb[64].mxu0 %v12054_v32  ;;  %10570 = vmatprep.subr.bf16.mxu1 %v10569_v1  ;;  %v6800_v1 = vld [vmem:[#allocation10 + $0x628] sm:$0xff]  ;;  %v10954_v2 = vld [vmem:[#allocation2 + $0x41] sm:$0xff]  ;;  %v10956_v54 = vld [vmem:[#allocation2 + $0x33] sm:$0xff] }
 0x2b5   :  { %7404 = vmatprep.mubr.f32.mxu0 %v11931_v58  ;;  %10504 = vmatpush3.bf16.msra.mxu0 %v10503_v48  ;;  %v12081_v58 = vld [vmem:[#allocation2 + $0x104] sm:$0xff]  ;;  %v10575_v48 = vpack.c.bf16 %v6830_v10, %v6829_v49 }
 0x2b6   :  { %10538 = vmatprep.subr.bf16.mxu0 %v10537_v52  ;;  %7550 = vmatmul.mubr.f32.gmra.mrb[66].mxu1 %v11923_v46  ;;  %v12075_v46 = vld [vmem:[#allocation2 + $0xf4] sm:$0xff]  ;;  %v6799_v52 = vld [vmem:[#allocation10 + $0x620] sm:$0xff]  ;;  %v6820_v41 = vld [vmem:[#allocation10 + $0x6c8] sm:$0xff] }
 0x2b7   :  { %7554 = vmatprep.mubr.f32.mxu1 %v11941_v12  ;;  %v12087_v12 = vld [vmem:[#allocation2 + $0x114] sm:$0xff]  ;;  %v10547_v23 = vpack.c.bf16 %v6800_v1, %v6799_v52  ;;  %v10955_v49 = vld [vmem:[#allocation2 + $0x40] sm:$0xff]  ;;  %v6804_v52 = vld [vmem:[#allocation10 + $0x648] sm:$0xff] }
 0x2b8   :  { %7405 = vmatmul.mubr.f32.gmra.mrb[66].mxu0 %v5535_v20  ;;  %v6831_v20 = vld [vmem:[#allocation10 + $0x720] sm:$0xff] }
 0x2b9   :  { %7409 = vmatprep.mubr.f32.mxu0 %v11943_v27  ;;  %v6819_v10 = vld [vmem:[#allocation10 + $0x6c0] sm:$0xff] }
 0x2ba   :  { %7555 = vmatmul.mubr.f32.gmra.mrb[68].mxu1 %v11935_v30  ;;  %v6835_v1 = vld [vmem:[#allocation10 + $0x740] sm:$0xff] }
 0x2bb   :  { %7559 = vmatprep.mubr.f32.mxu1 %v11953_v38  ;;  %v12093_v38 = vld [vmem:[#allocation2 + $0x124] sm:$0xff] }
 0x2bc   :  { %7410 = vmatmul.mubr.f32.gmra.mrb[68].mxu0 %v12063_v44 }
 0x2bd   :  { %7414 = vmatprep.mubr.f32.mxu0 %v11955_v29 }
 0x2be   :  { %7560 = vmatmul.mubr.f32.gmra.mrb[70].mxu1 %v11947_v36 }
 0x2bf   :  { %7564 = vmatprep.mubr.f32.mxu1 %v11965_v15  ;;  %v5639_v15 = vld [vmem:[#allocation2 + $0x142] sm:$0xff] }
 0x2c0   :  { %7415 = vmatmul.mubr.f32.gmra.mrb[70].mxu0 %v12069_v16 }
 0x2c1   :  { %7419 = vmatprep.mubr.f32.mxu0 %v11967_v5 }
 0x2c2   :  { %7565 = vmatmul.mubr.f32.gmra.mrb[72].mxu1 %v11961_v14 }
 0x2c3   :  { %7569 = vmatprep.mubr.f32.mxu1 %v11977_v35  ;;  %v12097_v35 = vld [vmem:[#allocation2 + $0x140] sm:$0xff] }
 0x2c4   :  { %7420 = vmatmul.mubr.f32.gmra.mrb[72].mxu0 %v12075_v46 }
 0x2c5   :  { %7424 = vmatprep.mubr.f32.mxu0 %v11979_v56 }
 0x2c6   :  { %7570 = vmatmul.mubr.f32.gmra.mrb[74].mxu1 %v11973_v28 }
 0x2c7   :  { %7574 = vmatprep.mubr.f32.mxu1 %v11989_v4  ;;  %v6795_v4 = vld [vmem:[#allocation10 + $0x600] sm:$0xff] }
 0x2c8   :  { %7425 = vmatmul.mubr.f32.gmra.mrb[74].mxu0 %v12081_v58  ;;  %v10539_v0 = vpack.c.bf16 %v6796_v21, %v6795_v4  ;;  %v10577_v4 = vpack.c.bf16 %v6848_v7, %v6847_v62  ;;  %v6832_v21 = vld [vmem:[#allocation10 + $0x728] sm:$0xff] }
 0x2c9   :  { %7429 = vmatprep.mubr.f32.mxu0 %v11991_v3  ;;  %v6852_v62 = vld [vmem:[#allocation10 + $0x7c8] sm:$0xff] }
 0x2ca   :  { %7575 = vmatmul.mubr.f32.gmra.mrb[76].mxu1 %v11985_v60 }
 0x2cb   :  { %7579 = vmatprep.mubr.f32.mxu1 %v12001_v22  ;;  %v6828_v22 = vld [vmem:[#allocation10 + $0x708] sm:$0xff] }
 0x2cc   :  { %7430 = vmatmul.mubr.f32.gmra.mrb[76].mxu0 %v12087_v12  ;;  %v10571_v8 = vpack.c.bf16 %v6828_v22, %v6827_v26  ;;  %v6817_v26 = vld [vmem:[#allocation10 + $0x6b0] sm:$0xff]  ;;  %v6818_v22 = vld [vmem:[#allocation10 + $0x6b8] sm:$0xff] }
 0x2cd   :  { %7434 = vmatprep.mubr.f32.mxu0 %v12003_v57 }
 0x2ce   :  { %7580 = vmatmul.mubr.f32.gmra.mrb[78].mxu1 %v11997_v6 }
 0x2cf   :  { %7584 = vmatprep.mubr.f32.mxu1 %v5639_v15  ;;  %v10952_v15 = vld [vmem:[#allocation2 + $0x30] sm:$0xff] }
 0x2d0   :  { %7435 = vmatmul.mubr.f32.gmra.mrb[78].mxu0 %v12093_v38 }
 0x2d1   :  { %7439 = vmatprep.mubr.f32.mxu0 %v12097_v35 }
 0x2d2   :  { %7585 = vmatmul.mubr.f32.gmra.mrb[80].mxu1 %v12100_v17 }
 0x2d3   :  { %7799 = vmatprep.mubr.f32.mxu1 %v10948_v40  ;;  %v6849_v40 = vld [vmem:[#allocation10 + $0x7b0] sm:$0xff] }
 0x2d4   :  { %7440 = vmatmul.mubr.f32.gmra.mrb[80].mxu0 %v12102_v33 }
 0x2d5   :  { %7654 = vmatprep.mubr.f32.mxu0 %v12012_v59  ;;  %v10543_v59 = vpack.c.bf16 %v6798_v53, %v6797_v51  ;;  %v6802_v51 = vld [vmem:[#allocation10 + $0x638] sm:$0xff]  ;;  %v6833_v53 = vld [vmem:[#allocation10 + $0x730] sm:$0xff] }
 0x2d6   :  { %7800 = vmatmul.mubr.f32.vlgmr.msra.gmra.mrb[82].mxu1 %v10949_v31  ;;  %v10581_v31 = vpack.c.bf16 %v6850_v34, %v6849_v40  ;;  %v6854_v40 = vld [vmem:[#allocation10 + $0x7d8] sm:$0xff] }
 0x2d7   :  { %7804 = vmatprep.mubr.f32.mxu1 %v10951_v61  ;;  %10572 = vmatpush3.bf16.msra.mxu1 %v10571_v8  ;;  %v10549_v8 = vpack.c.bf16 %v6818_v22, %v6817_v26  ;;  %v6851_v61 = vld [vmem:[#allocation10 + $0x7c0] sm:$0xff]  ;;  %v6822_v26 = vld [vmem:[#allocation10 + $0x6d8] sm:$0xff] }
 0x2d8   :  { %7655 = vmatmul.mubr.f32.vlgmr.msra.gmra.mrb[82].mxu0 %v10950_v47  ;;  %10574 = vmatprep.subr.bf16.mxu1 %v10573_v42  ;;  %v6834_v42 = vld [vmem:[#allocation10 + $0x738] sm:$0xff]  ;;  %v10957_v47 = vld [vmem:[#allocation2 + $0x51] sm:$0xff]  ;;  %v10959_v22 = vld [vmem:[#allocation2 + $0x43] sm:$0xff] }
 0x2d9   :  { %7659 = vmatprep.mubr.f32.mxu0 %v12018_v37  ;;  %10540 = vmatpush3.bf16.msra.mxu0 %v10539_v0  ;;  %v10579_v0 = vpack.c.bf16 %v6832_v21, %v6831_v20  ;;  %v10958_v20 = vld [vmem:[#allocation2 + $0x50] sm:$0xff] }
 0x2da   :  { %10542 = vmatprep.subr.bf16.mxu0 %v10541_v45  ;;  %7805 = vmatmul.mubr.f32.gmra.mrb[84].mxu1 %v10952_v15  ;;  %v6801_v45 = vld [vmem:[#allocation10 + $0x630] sm:$0xff]  ;;  %v10585_v15 = vpack.c.bf16 %v6852_v62, %v6851_v61  ;;  %v6856_v61 = vld [vmem:[#allocation10 + $0x7e8] sm:$0xff] }
 0x2db   :  { %7809 = vmatprep.mubr.f32.mxu1 %v10954_v2  ;;  %10576 = vmatpush3.bf16.msra.mxu1 %v10575_v48  ;;  %v10551_v7 = vpack.c.bf16 %v6802_v51, %v6801_v45  ;;  %v10553_v48 = vpack.c.bf16 %v6820_v41, %v6819_v10  ;;  %v6821_v21 = vld [vmem:[#allocation10 + $0x6d0] sm:$0xff]  ;;  %v6806_v45 = vld [vmem:[#allocation10 + $0x658] sm:$0xff]  ;;  %v6824_v10 = vld [vmem:[#allocation10 + $0x6e8] sm:$0xff] }
 0x2dc   :  { %7660 = vmatmul.mubr.f32.gmra.mrb[84].mxu0 %v10953_v9  ;;  %10578 = vmatprep.subr.bf16.mxu1 %v10577_v4  ;;  %v6836_v4 = vld [vmem:[#allocation10 + $0x748] sm:$0xff]  ;;  %v10960_v9 = vld [vmem:[#allocation2 + $0x61] sm:$0xff]  ;;  %v6853_v2 = vld [vmem:[#allocation10 + $0x7d0] sm:$0xff] }
 0x2dd   :  { %7664 = vmatprep.mubr.f32.mxu0 %v12024_v55  ;;  %10544 = vmatpush3.bf16.msra.mxu0 %v10543_v59  ;;  %v10583_v59 = vpack.c.bf16 %v6834_v42, %v6833_v53  ;;  %v6837_v51 = vld [vmem:[#allocation10 + $0x750] sm:$0xff]  ;;  %v10961_v53 = vld [vmem:[#allocation2 + $0x60] sm:$0xff] }
 0x2de   :  { %10546 = vmatprep.subr.bf16.mxu0 %v10545_v19  ;;  %7810 = vmatmul.mubr.f32.gmra.mrb[86].mxu1 %v10955_v49  ;;  %v6803_v19 = vld [vmem:[#allocation10 + $0x640] sm:$0xff]  ;;  %v10589_v49 = vpack.c.bf16 %v6854_v40, %v6853_v2  ;;  %v10962_v41 = vld [vmem:[#allocation2 + $0x53] sm:$0xff] }
 0x2df   :  { %7814 = vmatprep.mubr.f32.mxu1 %v10957_v47  ;;  %10580 = vmatpush3.bf16.msra.mxu1 %v10579_v0  ;;  %v10555_v34 = vpack.c.bf16 %v6804_v52, %v6803_v19  ;;  %v10557_v0 = vpack.c.bf16 %v6822_v26, %v6821_v21  ;;  %v6823_v42 = vld [vmem:[#allocation10 + $0x6e0] sm:$0xff]  ;;  %v6808_v19 = vld [vmem:[#allocation10 + $0x668] sm:$0xff]  ;;  %v6857_v26 = vld [vmem:[#allocation10 + $0x7f0] sm:$0xff] }
 0x2e0   :  { %7665 = vmatmul.mubr.f32.gmra.mrb[86].mxu0 %v10956_v54  ;;  %10582 = vmatprep.subr.bf16.mxu1 %v10581_v31  ;;  %v6838_v31 = vld [vmem:[#allocation10 + $0x758] sm:$0xff]  ;;  %v10963_v54 = vld [vmem:[#allocation2 + $0x71] sm:$0xff]  ;;  %v6855_v47 = vld [vmem:[#allocation10 + $0x7e0] sm:$0xff] }
 0x2e1   :  { %7669 = vmatprep.mubr.f32.mxu0 %v12030_v63  ;;  %10548 = vmatpush3.bf16.msra.mxu0 %v10547_v23  ;;  %v10587_v23 = vpack.c.bf16 %v6836_v4, %v6835_v1  ;;  %v6839_v52 = vld [vmem:[#allocation10 + $0x760] sm:$0xff]  ;;  %v10593_v1 = vpack.c.bf16 %v6856_v61, %v6855_v47  ;;  %v6826_v4 = vld [vmem:[#allocation10 + $0x6f8] sm:$0xff] }
 0x2e2   :  { %10550 = vmatprep.subr.bf16.mxu0 %v10549_v8  ;;  %7815 = vmatmul.mubr.f32.gmra.mrb[88].mxu1 %v10958_v20  ;;  %v6805_v8 = vld [vmem:[#allocation10 + $0x650] sm:$0xff]  ;;  %v6840_v20 = vld [vmem:[#allocation10 + $0x768] sm:$0xff] }
 0x2e3   :  { %7819 = vmatprep.mubr.f32.mxu1 %v10960_v9  ;;  %10584 = vmatpush3.bf16.msra.mxu1 %v10583_v59  ;;  %v10559_v62 = vpack.c.bf16 %v6806_v45, %v6805_v8  ;;  %v10561_v59 = vpack.c.bf16 %v6824_v10, %v6823_v42  ;;  %v10964_v21 = vld [vmem:[#allocation2 + $0x63] sm:$0xff]  ;;  %v5760_v9 = vld [vmem:[#allocation2 + $0x91] sm:$0xff]  ;;  %v10595_v40 = vpack.c.bf16 %v6840_v20, %v6839_v52  ;;  %v6842_v45 = vld [vmem:[#allocation10 + $0x778] sm:$0xff] }
 0x2e4   :  { %7670 = vmatmul.mubr.f32.gmra.mrb[88].mxu0 %v10959_v22  ;;  %10586 = vmatprep.subr.bf16.mxu1 %v10585_v15  ;;  %v6825_v15 = vld [vmem:[#allocation10 + $0x6f0] sm:$0xff]  ;;  %v6858_v22 = vld [vmem:[#allocation10 + $0x7f8] sm:$0xff]  ;;  %v6908_v42 = vld [vmem:[#allocation10 + $0x988] sm:$0xff] }
 0x2e5   :  { %7674 = vmatprep.mubr.f32.mxu0 %v12036_v50  ;;  %10552 = vmatpush3.bf16.msra.mxu0 %v10551_v7  ;;  %v10591_v7 = vpack.c.bf16 %v6838_v31, %v6837_v51  ;;  %v10597_v8 = vpack.c.bf16 %v6858_v22, %v6857_v26  ;;  %v6876_v51 = vld [vmem:[#allocation10 + $0x888] sm:$0xff]  ;;  %v6907_v31 = vld [vmem:[#allocation10 + $0x980] sm:$0xff]  ;;  %v12166_v22 = vld [vmem:[#allocation2 + $0x32] sm:$0xff] }
 0x2e6   :  { %10554 = vmatprep.subr.bf16.mxu0 %v10553_v48  ;;  %7820 = vmatmul.mubr.f32.gmra.mrb[90].mxu1 %v10961_v53  ;;  %v6807_v48 = vld [vmem:[#allocation10 + $0x660] sm:$0xff]  ;;  %v10965_v53 = vld [vmem:[#allocation2 + $0x73] sm:$0xff]  ;;  %v6912_v26 = vld [vmem:[#allocation10 + $0x9a8] sm:$0xff] }
 0x2e7   :  { %7824 = vmatprep.mubr.f32.mxu1 %v10963_v54  ;;  %10588 = vmatpush3.bf16.msra.mxu1 %v10587_v23  ;;  %v10563_v2 = vpack.c.bf16 %v6808_v19, %v6807_v48  ;;  %v6810_v23 = vld [vmem:[#allocation10 + $0x678] sm:$0xff]  ;;  %v12121_v61 = vld [vmem:[#allocation2 + $0x83] sm:$0xff]  ;;  %v6893_v19 = vld [vmem:[#allocation10 + $0x910] sm:$0xff] }
 0x2e8   :  { %7675 = vmatmul.mubr.f32.gmra.mrb[90].mxu0 %v10962_v41  ;;  %10590 = vmatprep.subr.bf16.mxu1 %v10589_v49  ;;  %v12116_v49 = vld [vmem:[#allocation2 + $0x84] sm:$0xff]  ;;  %v12119_v41 = vld [vmem:[#allocation2 + $0x90] sm:$0xff]  ;;  %v6862_v48 = vld [vmem:[#allocation10 + $0x818] sm:$0xff] }
 0x2e9   :  { %7679 = vmatprep.mubr.f32.mxu0 %v12042_v43  ;;  %10556 = vmatpush3.bf16.msra.mxu0 %v10555_v34  ;;  %v6809_v34 = vld [vmem:[#allocation10 + $0x670] sm:$0xff]  ;;  %v6879_v20 = vld [vmem:[#allocation10 + $0x8a0] sm:$0xff] }
 0x2ea   :  { %10558 = vmatprep.subr.bf16.mxu0 %v10557_v0  ;;  %7825 = vmatmul.mubr.f32.gmra.mrb[92].mxu1 %v11919_v25  ;;  %v10565_v25 = vpack.c.bf16 %v6826_v4, %v6825_v15  ;;  %v6841_v0 = vld [vmem:[#allocation10 + $0x770] sm:$0xff]  ;;  %v10567_v10 = vpack.c.bf16 %v6810_v23, %v6809_v34  ;;  %v6880_v15 = vld [vmem:[#allocation10 + $0x8a8] sm:$0xff]  ;;  %v6895_v23 = vld [vmem:[#allocation10 + $0x920] sm:$0xff] }
 0x2eb   :  { %7829 = vmatprep.mubr.f32.mxu1 %v12052_v18  ;;  %10592 = vmatpush3.bf16.msra.mxu1 %v10591_v7  ;;  %v6875_v18 = vld [vmem:[#allocation10 + $0x880] sm:$0xff]  ;;  %v10599_v54 = vpack.c.bf16 %v6842_v45, %v6841_v0  ;;  %v12163_v4 = vld [vmem:[#allocation2 + $0x33] sm:$0xff]  ;;  %v6864_v34 = vld [vmem:[#allocation10 + $0x828] sm:$0xff] }
 0x2ec   :  { %7680 = vmatmul.mubr.f32.gmra.mrb[92].mxu0 %v10964_v21  ;;  %10594 = vmatprep.subr.bf16.mxu1 %v10593_v1  ;;  %v10601_v47 = vpack.c.bf16 %v6876_v51, %v6875_v18  ;;  %v6894_v1 = vld [vmem:[#allocation10 + $0x918] sm:$0xff]  ;;  %v6911_v21 = vld [vmem:[#allocation10 + $0x9a0] sm:$0xff]  ;;  %v6881_v45 = vld [vmem:[#allocation10 + $0x8b0] sm:$0xff] }
 0x2ed   :  { %7684 = vmatprep.mubr.f32.mxu0 %v12054_v32  ;;  %10560 = vmatpush3.bf16.msra.mxu0 %v10559_v62  ;;  %v10633_v62 = vpack.c.bf16 %v6908_v42, %v6907_v31  ;;  %v10641_v0 = vpack.c.bf16 %v6912_v26, %v6911_v21  ;;  %v6882_v18 = vld [vmem:[#allocation10 + $0x8b8] sm:$0xff]  ;;  %v12170_v51 = vld [vmem:[#allocation2 + $0x43] sm:$0xff] }
 0x2ee   :  { %10562 = vmatprep.subr.bf16.mxu0 %v10561_v59  ;;  %7830 = vmatmul.mubr.f32.gmra.mrb[94].mxu1 %v12048_v13  ;;  %v6861_v59 = vld [vmem:[#allocation10 + $0x810] sm:$0xff]  ;;  %v6914_v31 = vld [vmem:[#allocation10 + $0x9b8] sm:$0xff]  ;;  %v12173_v42 = vld [vmem:[#allocation2 + $0x42] sm:$0xff] }
 0x2ef   :  { %7834 = vmatprep.mubr.f32.mxu1 %v5760_v9  ;;  %10596 = vmatpush3.bf16.msra.mxu1 %v10595_v40  ;;  %v5884_v9 = vld [vmem:[#allocation2 + $0x50] sm:$0xff]  ;;  %v10609_v40 = vpack.c.bf16 %v6880_v15, %v6879_v20  ;;  %v12187_v20 = vld [vmem:[#allocation2 + $0x62] sm:$0xff] }
 0x2f0   :  { %7685 = vmatmul.mubr.f32.gmra.mrb[94].mxu0 %v10965_v53  ;;  %10598 = vmatprep.subr.bf16.mxu1 %v10597_v8  ;;  %v6896_v8 = vld [vmem:[#allocation10 + $0x928] sm:$0xff]  ;;  %v6913_v53 = vld [vmem:[#allocation10 + $0x9b0] sm:$0xff]  ;;  %v12189_v15 = vld [vmem:[#allocation12] ss:$0 sm:$0xff] }
 0x2f1   :  { %7689 = vmatprep.mubr.f32.mxu0 %v12116_v49  ;;  %10564 = vmatpush3.bf16.msra.mxu0 %v10563_v2  ;;  %v10607_v2 = vpack.c.bf16 %v6862_v48, %v6861_v59  ;;  %v6886_v59 = vld [vmem:[#allocation10 + $0x8d8] sm:$0xff]  ;;  %v12184_v48 = vld [vmem:[#allocation2 + $0x63] sm:$0xff] }
 0x2f2   :  { %10566 = vmatprep.subr.bf16.mxu0 %v10565_v25  ;;  %7835 = vmatmul.mubr.f32.gmra.mrb[96].mxu1 %v12119_v41  ;;  %v6863_v25 = vld [vmem:[#allocation10 + $0x820] sm:$0xff] }
 0x2f3   :  { %7839 = vmatprep.mubr.f32.mxu1 %v11935_v30  ;;  %10600 = vmatpush3.bf16.msra.mxu1 %v10599_v54  ;;  %v12720_v30 = vld [vmem:[#allocation18_spill] sm:$0xff]  ;;  %v10611_v54 = vpack.c.bf16 %v6864_v34, %v6863_v25 }
 0x2f4   :  { %7690 = vmatmul.mubr.f32.gmra.mrb[96].mxu0 %v12121_v61  ;;  %10634 = vmatprep.subr.bf16.mxu1 %v10633_v62  ;;  %v6865_v62 = vld [vmem:[#allocation10 + $0x830] sm:$0xff] }
 0x2f5   :  { %7694 = vmatprep.mubr.f32.mxu0 %v12063_v44  ;;  %10568 = vmatpush3.bf16.msra.mxu0 %v10567_v10  ;;  %v6877_v44 = vld [vmem:[#allocation10 + $0x890] sm:$0xff]  ;;  %v5885_v10 = vld [vmem:[#allocation2 + $0x60] sm:$0xff] }
 0x2f6   :  { %10602 = vmatprep.subr.bf16.mxu0 %v10601_v47  ;;  %7840 = vmatmul.mubr.f32.gmra.mrb[98].mxu1 %v11943_v27  ;;  %v12723_v27 = vld [vmem:[#allocation21_spill] sm:$0xff]  ;;  %v10613_v47 = vpack.c.bf16 %v6882_v18, %v6881_v45  ;;  %v12193_v45 = vld [vmem:[#allocation2 + $0x73] sm:$0xff] }
 0x2f7   :  { %7844 = vmatprep.mubr.f32.mxu1 %v11947_v36  ;;  %v5768_v36 = vld [vmem:[#allocation2 + $0x151] sm:$0xff] }
 0x2f8   :  { %7695 = vmatmul.mubr.f32.gmra.mrb[98].mxu0 %v11926_v39  ;;  %v12721_v39 = vld [vmem:[#allocation19_spill] sm:$0xff] }
 0x2f9   :  { %7699 = vmatprep.mubr.f32.mxu0 %v12069_v16  ;;  %v6878_v16 = vld [vmem:[#allocation10 + $0x898] sm:$0xff] }
 0x2fa   :  { %7845 = vmatmul.mubr.f32.gmra.mrb[100].mxu1 %v11955_v29  ;;  %v12724_v29 = vld [vmem:[#allocation22_spill] sm:$0xff]  ;;  %v10605_v7 = vpack.c.bf16 %v6878_v16, %v6877_v44 }
 0x2fb   :  { %7849 = vmatprep.mubr.f32.mxu1 %v11961_v14  ;;  %v12153_v14 = vld [vmem:[#allocation2 + $0x144] sm:$0xff] }
 0x2fc   :  { %7700 = vmatmul.mubr.f32.gmra.mrb[100].mxu0 %v11938_v11  ;;  %v12722_v11 = vld [vmem:[#allocation20_spill] sm:$0xff] }
 0x2fd   :  { %7704 = vmatprep.mubr.f32.mxu0 %v12075_v46  ;;  %v5817_v46 = vld [vmem:[#allocation2 + $0x23] sm:$0xff] }
 0x2fe   :  { %7850 = vmatmul.mubr.f32.gmra.mrb[102].mxu1 %v11967_v5  ;;  %v12156_v5 = vld [vmem:[#allocation2 + $0x143] sm:$0xff] }
 0x2ff   :  { %7854 = vmatprep.mubr.f32.mxu1 %v11973_v28  ;;  %v12158_v28 = vld [vmem:[#allocation2 + $0x150] sm:$0xff] }
 0x300   :  { %7705 = vmatmul.mubr.f32.gmra.mrb[102].mxu0 %v12720_v30  ;;  %v6866_v30 = vld [vmem:[#allocation10 + $0x838] sm:$0xff] }
 0x301   :  { %7709 = vmatprep.mubr.f32.mxu0 %v12081_v58  ;;  %v6909_v58 = vld [vmem:[#allocation10 + $0x990] sm:$0xff]  ;;  %v10615_v44 = vpack.c.bf16 %v6866_v30, %v6865_v62 }
 0x302   :  { %7855 = vmatmul.mubr.f32.gmra.mrb[104].mxu1 %v11979_v56  ;;  %v5882_v56 = vld [vmem:[#allocation2 + $0x30] sm:$0xff] }
 0x303   :  { %7859 = vmatprep.mubr.f32.mxu1 %v11985_v60  ;;  %v6859_v60 = vld [vmem:[#allocation10 + $0x800] sm:$0xff] }
 0x304   :  { %7710 = vmatmul.mubr.f32.gmra.mrb[104].mxu0 %v12721_v39  ;;  %v6897_v39 = vld [vmem:[#allocation10 + $0x930] sm:$0xff] }
 0x305   :  { %7714 = vmatprep.mubr.f32.mxu0 %v12087_v12  ;;  %v6910_v12 = vld [vmem:[#allocation10 + $0x998] sm:$0xff] }
 0x306   :  { %7860 = vmatmul.mubr.f32.gmra.mrb[106].mxu1 %v11991_v3  ;;  %v6860_v3 = vld [vmem:[#allocation10 + $0x808] sm:$0xff]  ;;  %v10637_v52 = vpack.c.bf16 %v6910_v12, %v6909_v58  ;;  %v6867_v58 = vld [vmem:[#allocation10 + $0x840] sm:$0xff] }
 0x307   :  { %7864 = vmatprep.mubr.f32.mxu1 %v11997_v6  ;;  %v6891_v6 = vld [vmem:[#allocation10 + $0x900] sm:$0xff]  ;;  %v6868_v12 = vld [vmem:[#allocation10 + $0x848] sm:$0xff] }
 0x308   :  { %7715 = vmatmul.mubr.f32.gmra.mrb[106].mxu0 %v12722_v11  ;;  %v10645_v11 = vpack.c.bf16 %v6914_v31, %v6913_v53 }
 0x309   :  { %7719 = vmatprep.mubr.f32.mxu0 %v12093_v38  ;;  %v5785_v38 = vld [vmem:[#allocation2 + $0x22] sm:$0xff] }
 0x30a   :  { %7865 = vmatmul.mubr.f32.gmra.mrb[108].mxu1 %v12003_v57  ;;  %v6892_v57 = vld [vmem:[#allocation10 + $0x908] sm:$0xff] }
 0x30b   :  { %7869 = vmatprep.mubr.f32.mxu1 %v12100_v17  ;;  %v10603_v17 = vpack.c.bf16 %v6860_v3, %v6859_v60  ;;  %v6915_v60 = vld [vmem:[#allocation10 + $0x9c0] sm:$0xff]  ;;  %v6916_v3 = vld [vmem:[#allocation10 + $0x9c8] sm:$0xff] }
 0x30c   :  { %7720 = vmatmul.mubr.f32.gmra.mrb[108].mxu0 %v12723_v27  ;;  %v6898_v27 = vld [vmem:[#allocation10 + $0x938] sm:$0xff] }
 0x30d   :  { %7724 = vmatprep.mubr.f32.mxu0 %v12102_v33  ;;  %v10635_v33 = vpack.c.bf16 %v6892_v57, %v6891_v6  ;;  %v12180_v6 = vld [vmem:[#allocation2 + $0x52] sm:$0xff]  ;;  %v10647_v16 = vpack.c.bf16 %v6898_v27, %v6897_v39  ;;  %v6903_v27 = vld [vmem:[#allocation10 + $0x960] sm:$0xff] }
 0x30e   :  { %7870 = vmatmul.mubr.f32.gmra.mrb[110].mxu1 %v12097_v35  ;;  %v5883_v35 = vld [vmem:[#allocation2 + $0x40] sm:$0xff]  ;;  %v5886_v57 = vld [vmem:[#allocation2 + $0x70] sm:$0xff] }
 0x30f   :  { %7874 = vmatprep.mubr.f32.mxu1 %v5768_v36  ;;  %v6883_v36 = vld [vmem:[#allocation10 + $0x8c0] sm:$0xff] }
 0x310   :  { %7725 = vmatmul.mubr.f32.gmra.mrb[110].mxu0 %v12724_v29  ;;  %v6884_v29 = vld [vmem:[#allocation10 + $0x8c8] sm:$0xff] }
 0x311   :  { %7729 = vmatprep.mubr.f32.mxu0 %v12153_v14 }
 0x312   :  { %7875 = vmatmul.mubr.f32.gmra.mrb[112].mxu1 %v12158_v28 }
 0x313   :  { %8089 = vmatprep.mubr.f32.mxu1 %v5882_v56  ;;  %v12177_v56 = vld [vmem:[#allocation2 + $0x53] sm:$0xff] }
 0x314   :  { %7730 = vmatmul.mubr.f32.gmra.mrb[112].mxu0 %v12156_v5 }
 0x315   :  { %7944 = vmatprep.mubr.f32.mxu0 %v5817_v46  ;;  %v10617_v46 = vpack.c.bf16 %v6884_v29, %v6883_v36 }
 0x316   :  { %8090 = vmatmul.mubr.f32.vlgmr.msra.gmra.mrb[114].mxu1 %v12018_v37  ;;  %v10639_v37 = vpack.c.bf16 %v6894_v1, %v6893_v19  ;;  %v6918_v1 = vld [vmem:[#allocation10 + $0x9d8] sm:$0xff] }
 0x317   :  { %8094 = vmatprep.mubr.f32.mxu1 %v5883_v35  ;;  %10636 = vmatpush3.bf16.msra.mxu1 %v10635_v33  ;;  %v6900_v33 = vld [vmem:[#allocation10 + $0x948] sm:$0xff] }
 0x318   :  { %7945 = vmatmul.mubr.f32.vlgmr.msra.gmra.mrb[114].mxu0 %v5785_v38  ;;  %10638 = vmatprep.subr.bf16.mxu1 %v10637_v52  ;;  %v6899_v38 = vld [vmem:[#allocation10 + $0x940] sm:$0xff]  ;;  %v6917_v52 = vld [vmem:[#allocation10 + $0x9d0] sm:$0xff] }
 0x319   :  { %7949 = vmatprep.mubr.f32.mxu0 %v12163_v4  ;;  %10604 = vmatpush3.bf16.msra.mxu0 %v10603_v17  ;;  %v10649_v17 = vpack.c.bf16 %v6916_v3, %v6915_v60  ;;  %v10651_v26 = vpack.c.bf16 %v6900_v33, %v6899_v38  ;;  %v10653_v34 = vpack.c.bf16 %v6918_v1, %v6917_v52  ;;  %v9289_v53 = vpop.f32.mrb[18].mxu1  ;;  %v6904_v60 = vld [vmem:[#allocation10 + $0x968] sm:$0xff]  ;;  %v6889_v3 = vld [vmem:[#allocation10 + $0x8f0] sm:$0xff]  ;;  %v5889_v38 = vld [vmem:[#allocation2 + $0xa0] sm:$0xff] }
 0x31a   :  { %10606 = vmatprep.subr.bf16.mxu0 %v10605_v7  ;;  %8095 = vmatmul.mubr.f32.gmra.mrb[116].mxu1 %v12024_v55  ;;  %v10643_v55 = vpack.c.bf16 %v6896_v8, %v6895_v23  ;;  %v6885_v7 = vld [vmem:[#allocation10 + $0x8d0] sm:$0xff]  ;;  %v6902_v23 = vld [vmem:[#allocation10 + $0x958] sm:$0xff]  ;;  %v6888_v8 = vld [vmem:[#allocation10 + $0x8e8] sm:$0xff] }
 0x31b   :  { %8099 = vmatprep.mubr.f32.mxu1 %v5884_v9  ;;  %10640 = vmatpush3.bf16.msra.mxu1 %v10639_v37  ;;  %v10621_v9 = vpack.c.bf16 %v6886_v59, %v6885_v7  ;;  %v6870_v37 = vld [vmem:[#allocation10 + $0x858] sm:$0xff]  ;;  %v10659_v7 = vpack.c.bf16 %v6904_v60, %v6903_v27  ;;  %v6905_v52 = vld [vmem:[#allocation10 + $0x970] sm:$0xff]  ;;  %v5857_v60 = vld [vmem:[#allocation2 + $0xe4] sm:$0xff] }
 0x31c   :  { %7950 = vmatmul.mubr.f32.gmra.mrb[116].mxu0 %v12166_v22  ;;  %10642 = vmatprep.subr.bf16.mxu1 %v10641_v0  ;;  %v6887_v0 = vld [vmem:[#allocation10 + $0x8e0] sm:$0xff] }
 0x31d   :  { %7954 = vmatprep.mubr.f32.mxu0 %v12170_v51  ;;  %10608 = vmatpush3.bf16.msra.mxu0 %v10607_v2  ;;  %v6869_v2 = vld [vmem:[#allocation10 + $0x850] sm:$0xff]  ;;  %v10625_v39 = vpack.c.bf16 %v6888_v8, %v6887_v0 }
 0x31e   :  { %10610 = vmatprep.subr.bf16.mxu0 %v10609_v40  ;;  %8100 = vmatmul.mubr.f32.gmra.mrb[118].mxu1 %v12030_v63  ;;  %v9209_v63 = vpop.f32.mrb[18].mxu0  ;;  %v6901_v40 = vld [vmem:[#allocation10 + $0x950] sm:$0xff] }
 0x31f   :  { %8104 = vmatprep.mubr.f32.mxu1 %v5885_v10  ;;  %10644 = vmatpush3.bf16.msra.mxu1 %v10643_v55  ;;  %v9210_v35 = vpop.f32.mrb[19].mxu0  ;;  %v6919_v10 = vld [vmem:[#allocation10 + $0x9e0] sm:$0xff]  ;;  %v9290_v55 = vpop.f32.mrb[19].mxu1  ;;  %v10655_v30 = vpack.c.bf16 %v6902_v23, %v6901_v40  ;;  %v6972_v23 = vld [vmem:[#allocation10 + $0xb88] sm:$0xff] }
 0x320   :  { %7955 = vmatmul.mubr.f32.gmra.mrb[118].mxu0 %v12173_v42  ;;  %10646 = vmatprep.subr.bf16.mxu1 %v10645_v11  ;;  %v9211_v19 = vadd.f32 %v9210_v35, %v9209_v63  ;;  %v9212_v21 = vpop.f32.mrb[20].mxu0  ;;  %v9291_v62 = vadd.f32 %v9290_v55, %v9289_v53  ;;  %v6871_v11 = vld [vmem:[#allocation10 + $0x860] sm:$0xff]  ;;  %v12215_v53 = vld [vmem:[#allocation2 + $0x94] sm:$0xff] }
 0x321   :  { %7959 = vmatprep.mubr.f32.mxu0 %v12177_v56  ;;  %10612 = vmatpush3.bf16.msra.mxu0 %v10611_v54  ;;  %v9213_v25 = vpop.f32.mrb[21].mxu0  ;;  %v6920_v54 = vld [vmem:[#allocation10 + $0x9e8] sm:$0xff] }
 0x322   :  { %10614 = vmatprep.subr.bf16.mxu0 %v10613_v47  ;;  %8105 = vmatmul.mubr.f32.gmra.mrb[120].mxu1 %v12036_v50  ;;  %v10619_v50 = vpack.c.bf16 %v6868_v12, %v6867_v58  ;;  %v7077_v18 = vadd.f32 %v9211_v19, %v12189_v15  ;;  %v9214_v31 = vadd.f32 %v9213_v25, %v9212_v21  ;;  %v9215_v36 = vpop.f32.mrb[22].mxu0  ;;  %v6921_v58 = vld [vmem:[#allocation10 + $0x9f0] sm:$0xff]  ;;  %v6922_v12 = vld [vmem:[#allocation10 + $0x9f8] sm:$0xff] }
 0x323   :  { %8109 = vmatprep.mubr.f32.mxu1 %v5886_v57  ;;  %10648 = vmatpush3.bf16.msra.mxu1 %v10647_v16  ;;  %v10623_v47 = vpack.c.bf16 %v6870_v37, %v6869_v2  ;;  %v10657_v29 = vpack.c.bf16 %v6920_v54, %v6919_v10  ;;  %v6890_v57 = vld [vmem:[#allocation10 + $0x8f8] sm:$0xff]  ;;  %v9292_v16 = vpop.f32.mrb[20].mxu1  ;;  %v6873_v19 = vld [vmem:[#allocation10 + $0x870] sm:$0xff] }
 0x324   :  { %7960 = vmatmul.mubr.f32.gmra.mrb[120].mxu0 %v12180_v6  ;;  %10650 = vmatprep.subr.bf16.mxu1 %v10649_v17  ;;  %v7082_v63 = vadd.f32 %v9214_v31, %v12189_v15  ;;  %v10629_v59 = vpack.c.bf16 %v6890_v57, %v6889_v3  ;;  %v6906_v21 = vld [vmem:[#allocation10 + $0x978] sm:$0xff]  ;;  %v12217_v10 = vld [vmem:[#allocation2 + $0x92] sm:$0xff]  ;;  %v5793_v3 = vld [vmem:[#allocation2 + $0xe2] sm:$0xff] }
 0x325   :  { %7964 = vmatprep.mubr.f32.mxu0 %v12184_v48  ;;  %10616 = vmatpush3.bf16.msra.mxu0 %v10615_v44  ;;  %v12202_v44 = vadd.f32 %v9291_v62, %v7077_v18  ;;  %v12211_v2 = vld [vmem:[#allocation2 + $0x93] sm:$0xff]  ;;  %v5891_v57 = vld [vmem:[#allocation2 + $0x100] sm:$0xff] }
 0x326   :  { %10618 = vmatprep.subr.bf16.mxu0 %v10617_v46  ;;  %8110 = vmatmul.mubr.f32.gmra.mrb[122].mxu1 %v12042_v43  ;;  %v12198_v43 = vld [vmem:[#allocation2 + $0x72] sm:$0xff]  ;;  %v9216_v46 = vpop.f32.mrb[23].mxu0 }
 0x327   :  { %8114 = vmatprep.mubr.f32.mxu1 %v12048_v13  ;;  %10652 = vmatpush3.bf16.msra.mxu1 %v10651_v26  ;;  %v6872_v13 = vld [vmem:[#allocation10 + $0x868] sm:$0xff]  ;;  %v9217_v35 = vadd.f32 %v9216_v46, %v9215_v36  ;;  %v9218_v1 = vpop.f32.mrb[24].mxu0  ;;  %v12226_v46 = vld [vmem:[#allocation2 + $0xf3] sm:$0xff] }
 0x328   :  { %7965 = vmatmul.mubr.f32.gmra.mrb[122].mxu0 %v12187_v20  ;;  %10654 = vmatprep.subr.bf16.mxu1 %v10653_v34  ;;  %v10627_v17 = vpack.c.bf16 %v6872_v13, %v6871_v11  ;;  %v6940_v26 = vld [vmem:[#allocation10 + $0xa88] sm:$0xff]  ;;  %v9219_v25 = vpop.f32.mrb[25].mxu0  ;;  %v6971_v34 = vld [vmem:[#allocation10 + $0xb80] sm:$0xff] }
 0x329   :  { %7969 = vmatprep.mubr.f32.mxu0 %v12193_v45  ;;  %10620 = vmatpush3.bf16.msra.mxu0 %v10619_v50  ;;  %v10661_v50 = vpack.c.bf16 %v6922_v12, %v6921_v58  ;;  %v7087_v37 = vadd.f32 %v9217_v35, %v12189_v15  ;;  %v9220_v0 = vadd.f32 %v9219_v25, %v9218_v1  ;;  %v5890_v54 = vld [vmem:[#allocation2 + $0xf0] sm:$0xff]  ;;  %v9221_v55 = vpop.f32.mrb[26].mxu0  ;;  %v12244_v25 = vld [vmem:[#allocation2 + $0x102] sm:$0xff] }
 0x32a   :  { %10622 = vmatprep.subr.bf16.mxu0 %v10621_v9  ;;  %8115 = vmatmul.mubr.f32.gmra.mrb[124].mxu1 %v12054_v32  ;;  %v9293_v32 = vpop.f32.mrb[21].mxu1  ;;  %v9222_v13 = vpop.f32.mrb[27].mxu0 }
 0x32b   :  { %8119 = vmatprep.mubr.f32.mxu1 %v12119_v41  ;;  %v9294_v33 = vadd.f32 %v9293_v32, %v9292_v16  ;;  %10656 = vmatpush3.bf16.msra.mxu1 %v10655_v30  ;;  %v6874_v41 = vld [vmem:[#allocation10 + $0x878] sm:$0xff]  ;;  %v9295_v40 = vpop.f32.mrb[22].mxu1  ;;  %v5825_v30 = vld [vmem:[#allocation2 + $0xe3] sm:$0xff]  ;;  %v9223_v36 = vadd.f32 %v9222_v13, %v9221_v55  ;;  %v5894_v55 = vld [vmem:[#allocation2 + $0x130] sm:$0xff] }
 0x32c   :  { %7970 = vmatmul.mubr.f32.gmra.mrb[124].mxu0 %v12198_v43  ;;  %10658 = vmatprep.subr.bf16.mxu1 %v10657_v29  ;;  %v10631_v8 = vpack.c.bf16 %v6874_v41, %v6873_v19 }
 0x32d   :  { %7974 = vmatprep.mubr.f32.mxu0 %v12121_v61  ;;  %10624 = vmatpush3.bf16.msra.mxu0 %v10623_v47  ;;  %v6939_v61 = vld [vmem:[#allocation10 + $0xa80] sm:$0xff]  ;;  %v12209_v9 = vadd.f32 %v9294_v33, %v7082_v63  ;;  %v10697_v47 = vpack.c.bf16 %v6972_v23, %v6971_v34  ;;  %v9224_v63 = vpop.f32.mrb[28].mxu0  ;;  %v7097_v58 = vadd.f32 %v9223_v36, %v12189_v15  ;;  %v12230_v33 = vld [vmem:[#allocation2 + $0xf4] sm:$0xff] }
 0x32e   :  { %10626 = vmatprep.subr.bf16.mxu0 %v10625_v39  ;;  %8120 = vmatmul.mubr.f32.gmra.mrb[126].mxu1 %v12116_v49  ;;  %v9296_v49 = vpop.f32.mrb[23].mxu1  ;;  %v10665_v31 = vpack.c.bf16 %v6940_v26, %v6939_v61  ;;  %v7092_v39 = vadd.f32 %v9220_v0, %v12189_v15  ;;  %v9225_v32 = vpop.f32.mrb[29].mxu0  ;;  %v5893_v34 = vld [vmem:[#allocation2 + $0x120] sm:$0xff] }
 0x32f   :  { %8124 = vmatprep.mubr.f32.mxu1 %v5889_v38  ;;  %v9297_v18 = vadd.f32 %v9296_v49, %v9295_v40  ;;  %10660 = vmatpush3.bf16.msra.mxu1 %v10659_v7  ;;  %v9298_v11 = vpop.f32.mrb[24].mxu1  ;;  %v9226_v35 = vadd.f32 %v9225_v32, %v9224_v63  ;;  %v12232_v7 = vld [vmem:[#allocation2 + $0xf2] sm:$0xff]  ;;  %v12242_v40 = vld [vmem:[#allocation2 + $0x104] sm:$0xff] }
 0x330   :  { %7975 = vmatmul.mubr.f32.gmra.mrb[126].mxu0 %v12045_v24  ;;  %v10663_v24 = vpack.c.bf16 %v6906_v21, %v6905_v52  ;;  %10662 = vmatprep.subr.bf16.mxu1 %v10661_v50  ;;  %v9299_v27 = vpop.f32.mrb[25].mxu1  ;;  %v12238_v52 = vld [vmem:[#allocation2 + $0x103] sm:$0xff]  ;;  %v12250_v49 = vld [vmem:[#allocation2 + $0x113] sm:$0xff] }
 0x331   :  { %7979 = vmatprep.mubr.f32.mxu0 %v12211_v2  ;;  %10628 = vmatpush3.bf16.msra.mxu0 %v10627_v17  ;;  %v12221_v62 = vadd.f32 %v9297_v18, %v7087_v37  ;;  %v9300_v29 = vadd.f32 %v9299_v27, %v9298_v11  ;;  %v9301_v12 = vpop.f32.mrb[26].mxu1  ;;  %v7102_v1 = vadd.f32 %v9226_v35, %v12189_v15  ;;  %v12265_v11 = vld [vmem:[#allocation2 + $0x124] sm:$0xff]  ;;  %v12277_v35 = vld [vmem:[#allocation2 + $0x132] sm:$0xff] }
 0x332   :  { %10630 = vmatprep.subr.bf16.mxu0 %v10629_v59  ;;  %8125 = vmatmul.mubr.f32.gmra.mrb[128].mxu1 %v12215_v53  ;;  %v9302_v38 = vpop.f32.mrb[27].mxu1  ;;  %v5892_v59 = vld [vmem:[#allocation2 + $0x110] sm:$0xff]  ;;  %v12267_v27 = vld [vmem:[#allocation2 + $0x122] sm:$0xff] }
 0x333   :  { %8129 = vmatprep.mubr.f32.mxu1 %v5890_v54  ;;  %10664 = vmatpush3.bf16.msra.mxu1 %v10663_v24  ;;  %v12224_v16 = vadd.f32 %v9300_v29, %v7092_v39  ;;  %v9303_v17 = vadd.f32 %v9302_v38, %v9301_v12  ;;  %v9227_v19 = vpop.f32.mrb[30].mxu0  ;;  %v9304_v50 = vpop.f32.mrb[28].mxu1  ;;  %v12256_v54 = vld [vmem:[#allocation2 + $0x112] sm:$0xff]  ;;  %v5895_v29 = vld [vmem:[#allocation2 + $0x140] sm:$0xff] }
 0x334   :  { %7980 = vmatmul.mubr.f32.gmra.mrb[128].mxu0 %v12217_v10  ;;  %10698 = vmatprep.subr.bf16.mxu1 %v10697_v47  ;;  %v9228_v21 = vpop.f32.mrb[31].mxu0  ;;  %v9305_v61 = vpop.f32.mrb[29].mxu1  ;;  %v12274_v12 = vld [vmem:[#allocation2 + $0x134] sm:$0xff] }
 0x335   :  { %7984 = vmatprep.mubr.f32.mxu0 %v5825_v30  ;;  %10632 = vmatpush3.bf16.msra.mxu0 %v10631_v8  ;;  %v12236_v41 = vadd.f32 %v9303_v17, %v7097_v58  ;;  %v9229_v26 = vadd.f32 %v9228_v21, %v9227_v19  ;;  %v9306_v37 = vadd.f32 %v9305_v61, %v9304_v50  ;;  %v12262_v30 = vld [vmem:[#allocation2 + $0x123] sm:$0xff] }
 0x336   :  { %10666 = vmatprep.subr.bf16.mxu0 %v10665_v31  ;;  %8130 = vmatmul.mubr.f32.gmra.mrb[130].mxu1 %v5857_v60  ;;  %v12254_v31 = vld [vmem:[#allocation2 + $0x114] sm:$0xff] }
 0x337   :  { %8134 = vmatprep.mubr.f32.mxu1 %v5891_v57  ;;  %v12248_v23 = vadd.f32 %v9306_v37, %v7102_v1  ;;  %v7107_v0 = vadd.f32 %v9229_v26, %v12189_v15  ;;  %v12271_v57 = vld [vmem:[#allocation2 + $0x133] sm:$0xff]  ;;  %v12286_v37 = vld [vmem:[#allocation2 + $0x142] sm:$0xff] }
 0x338   :  { %7985 = vmatmul.mubr.f32.gmra.mrb[130].mxu0 %v5793_v3  ;;  %12726 = vst [vmem:[#allocation19_spill] sm:$0xff] %v12286_v37 }
 0x339   :  { %7989 = vmatprep.mubr.f32.mxu0 %v12226_v46 }
 0x33a   :  { %8135 = vmatmul.mubr.f32.gmra.mrb[132].mxu1 %v12230_v33 }
 0x33b   :  { %8139 = vmatprep.mubr.f32.mxu1 %v5892_v59 }
 0x33c   :  { %7990 = vmatmul.mubr.f32.gmra.mrb[132].mxu0 %v12232_v7  ;;  %v9307_v8 = vpop.f32.mrb[30].mxu1 }
 0x33d   :  { %7994 = vmatprep.mubr.f32.mxu0 %v12238_v52  ;;  %v9308_v18 = vpop.f32.mrb[31].mxu1 }
 0x33e   :  { %8140 = vmatmul.mubr.f32.gmra.mrb[134].mxu1 %v12242_v40  ;;  %v9309_v24 = vadd.f32 %v9308_v18, %v9307_v8 }
 0x33f   :  { %8144 = vmatprep.mubr.f32.mxu1 %v5893_v34 }
 0x340   :  { %7995 = vmatmul.mubr.f32.gmra.mrb[134].mxu0 %v12244_v25  ;;  %v12260_v47 = vadd.f32 %v9309_v24, %v7107_v0  ;;  %v5897_v0 = vld [vmem:[#allocation2 + $0x160] sm:$0xff] }
 0x341   :  { %7999 = vmatprep.mubr.f32.mxu0 %v12250_v49 }
 0x342   :  { %8145 = vmatmul.mubr.f32.gmra.mrb[136].mxu1 %v12254_v31 }
 0x343   :  { %8149 = vmatprep.mubr.f32.mxu1 %v5894_v55  ;;  %v12295_v55 = vld [vmem:[#allocation2 + $0x152] sm:$0xff] }
 0x344   :  { %8000 = vmatmul.mubr.f32.gmra.mrb[136].mxu0 %v12256_v54  ;;  %12729 = vst [vmem:[#allocation22_spill] sm:$0xff] %v12295_v55 }
 0x345   :  { %8004 = vmatprep.mubr.f32.mxu0 %v12262_v30  ;;  %v9310_v39 = vpop.f32.mrb[32].mxu1 }
 0x346   :  { %v9311_v36 = vpop.f32.mrb[33].mxu1  ;;  %8150 = vmatmul.mubr.f32.gmra.mrb[138].mxu1 %v12265_v11 }
 0x347   :  { %v9230_v13 = vpop.f32.mrb[32].mxu0  ;;  %v9312_v3 = vadd.f32 %v9311_v36, %v9310_v39  ;;  %8154 = vmatprep.mubr.f32.mxu1 %v5895_v29  ;;  %v12297_v39 = vld [vmem:[#allocation2 + $0x154] sm:$0xff]  ;;  %v6924_v29 = vld [vmem:[#allocation10 + $0xa08] sm:$0xff] }
 0x348   :  { %v9231_v60 = vpop.f32.mrb[33].mxu0  ;;  %8005 = vmatmul.mubr.f32.gmra.mrb[138].mxu0 %v12267_v27  ;;  %12730 = vst [vmem:[#allocation23_spill] sm:$0xff] %v12297_v39 }
 0x349   :  { %v9232_v63 = vadd.f32 %v9231_v60, %v9230_v13  ;;  %8009 = vmatprep.mubr.f32.mxu0 %v12271_v57  ;;  %v9313_v58 = vpop.f32.mrb[34].mxu1  ;;  %v6010_v13 = vld [vmem:[#allocation2 + $0x34] sm:$0xff]  ;;  %v6955_v60 = vld [vmem:[#allocation10 + $0xb00] sm:$0xff] }
 0x34a   :  { %v9314_v17 = vpop.f32.mrb[35].mxu1  ;;  %8155 = vmatmul.mubr.f32.gmra.mrb[140].mxu1 %v12274_v12 }
 0x34b   :  { %v7112_v32 = vadd.f32 %v9232_v63, %v12189_v15  ;;  %v9233_v38 = vpop.f32.mrb[34].mxu0  ;;  %v9315_v19 = vadd.f32 %v9314_v17, %v9313_v58  ;;  %8159 = vmatprep.mubr.f32.mxu1 %v12158_v28  ;;  %v12290_v28 = vld [vmem:[#allocation2 + $0x153] sm:$0xff] }
 0x34c   :  { %v9234_v59 = vpop.f32.mrb[35].mxu0  ;;  %8010 = vmatmul.mubr.f32.gmra.mrb[140].mxu0 %v12277_v35  ;;  %12727 = vst [vmem:[#allocation20_spill] sm:$0xff] %v12290_v28  ;;  %v6942_v17 = vld [vmem:[#allocation10 + $0xa98] sm:$0xff] }
 0x34d   :  { %v12282_v1 = vadd.f32 %v9312_v3, %v7112_v32  ;;  %v9235_v50 = vadd.f32 %v9234_v59, %v9233_v38  ;;  %8014 = vmatprep.mubr.f32.mxu0 %v12156_v5  ;;  %v9316_v21 = vpop.f32.mrb[36].mxu1  ;;  %v6956_v32 = vld [vmem:[#allocation10 + $0xb08] sm:$0xff]  ;;  %v6941_v38 = vld [vmem:[#allocation10 + $0xa90] sm:$0xff] }
 0x34e   :  { %v9317_v34 = vpop.f32.mrb[37].mxu1  ;;  %8160 = vmatmul.mubr.f32.gmra.mrb[142].mxu1 %v12153_v14  ;;  %v6923_v14 = vld [vmem:[#allocation10 + $0xa00] sm:$0xff] }
 0x34f   :  { %12725 = vst [vmem:[#allocation18_spill] sm:$0xff] %v12282_v1  ;;  %v7117_v61 = vadd.f32 %v9235_v50, %v12189_v15  ;;  %v9236_v26 = vpop.f32.mrb[36].mxu0  ;;  %v9318_v18 = vadd.f32 %v9317_v34, %v9316_v21  ;;  %8164 = vmatprep.mubr.f32.mxu1 %v5897_v0  ;;  %v6973_v50 = vld [vmem:[#allocation10 + $0xb90] sm:$0xff]  ;;  %v6974_v21 = vld [vmem:[#allocation10 + $0xb98] sm:$0xff]  ;;  %v6011_v0 = vld [vmem:[#allocation2 + $0x44] sm:$0xff] }
 0x350   :  { %v9237_v8 = vpop.f32.mrb[37].mxu0  ;;  %8015 = vmatmul.mubr.f32.gmra.mrb[142].mxu0 %v12286_v37  ;;  %v5914_v34 = vld [vmem:[#allocation2 + $0x31] sm:$0xff]  ;;  %v6926_v1 = vld [vmem:[#allocation10 + $0xa18] sm:$0xff] }
 0x351   :  { %v12292_v24 = vadd.f32 %v9315_v19, %v7117_v61  ;;  %v9238_v5 = vadd.f32 %v9237_v8, %v9236_v26  ;;  %8019 = vmatprep.mubr.f32.mxu0 %v12290_v28  ;;  %v9319_v36 = vpop.f32.mrb[38].mxu1  ;;  %v10667_v8 = vpack.c.bf16 %v6924_v29, %v6923_v14  ;;  %v10699_v28 = vpack.c.bf16 %v6956_v32, %v6955_v60  ;;  %v6957_v37 = vld [vmem:[#allocation10 + $0xb10] sm:$0xff]  ;;  %v6975_v14 = vld [vmem:[#allocation10 + $0xba0] sm:$0xff]  ;;  %v6976_v29 = vld [vmem:[#allocation10 + $0xba8] sm:$0xff] }
 0x352   :  { %v9320_v58 = vpop.f32.mrb[39].mxu1  ;;  %8165 = vmatmul.mubr.f32.gmra.mrb[144].mxu1 %v12297_v39  ;;  %v6925_v39 = vld [vmem:[#allocation10 + $0xa10] sm:$0xff] }
 0x353   :  { %12728 = vst [vmem:[#allocation21_spill] sm:$0xff] %v12292_v24  ;;  %v7122_v3 = vadd.f32 %v9238_v5, %v12189_v15  ;;  %v9239_v63 = vpop.f32.mrb[38].mxu0  ;;  %v9321_v19 = vadd.f32 %v9320_v58, %v9319_v36  ;;  %8379 = vmatprep.mubr.f32.mxu1 %v6010_v13  ;;  %v10669_v24 = vpack.c.bf16 %v6942_v17, %v6941_v38  ;;  %v6944_v58 = vld [vmem:[#allocation10 + $0xaa8] sm:$0xff]  ;;  %v12310_v38 = vld [vmem:[#allocation2 + $0x41] sm:$0xff]  ;;  %v6012_v17 = vld [vmem:[#allocation2 + $0x54] sm:$0xff] }
 0x354   :  { %v9240_v59 = vpop.f32.mrb[39].mxu0  ;;  %8020 = vmatmul.mubr.f32.gmra.mrb[144].mxu0 %v12295_v55 }
 0x355   :  { %v12302_v61 = vadd.f32 %v9318_v18, %v7122_v3  ;;  %v9241_v26 = vadd.f32 %v9240_v59, %v9239_v63  ;;  %8234 = vmatprep.mubr.f32.mxu0 %v12166_v22  ;;  %v9322_v5 = vpop.f32.mrb[40].mxu1  ;;  %v10701_v18 = vpack.c.bf16 %v6974_v21, %v6973_v50  ;;  %v6958_v3 = vld [vmem:[#allocation10 + $0xb18] sm:$0xff]  ;;  %v6943_v63 = vld [vmem:[#allocation10 + $0xaa0] sm:$0xff] }
 0x356   :  { %v9323_v13 = vpop.f32.mrb[41].mxu1  ;;  %8380 = vmatmul.mubr.f32.vlgmr.msra.gmra.mrb[146].mxu1 %v12163_v4  ;;  %v10671_v4 = vpack.c.bf16 %v6926_v1, %v6925_v39  ;;  %v10703_v21 = vpack.c.bf16 %v6958_v3, %v6957_v37  ;;  %v6977_v37 = vld [vmem:[#allocation10 + $0xbb0] sm:$0xff] }
 0x357   :  { %v7127_v55 = vadd.f32 %v9241_v26, %v12189_v15  ;;  %v9242_v36 = vpop.f32.mrb[40].mxu0  ;;  %v9324_v59 = vadd.f32 %v9323_v13, %v9322_v5  ;;  %8384 = vmatprep.mubr.f32.mxu1 %v6011_v0  ;;  %10700 = vmatpush3.bf16.msra.mxu1 %v10699_v28  ;;  %v10673_v26 = vpack.c.bf16 %v6944_v58, %v6943_v63  ;;  %v6928_v5 = vld [vmem:[#allocation10 + $0xa28] sm:$0xff]  ;;  %v6959_v0 = vld [vmem:[#allocation10 + $0xb20] sm:$0xff] }
 0x358   :  { %v9243_v22 = vpop.f32.mrb[41].mxu0  ;;  %8235 = vmatmul.mubr.f32.vlgmr.msra.gmra.mrb[146].mxu0 %v5914_v34  ;;  %v6927_v34 = vld [vmem:[#allocation10 + $0xa20] sm:$0xff]  ;;  %10702 = vmatprep.subr.bf16.mxu1 %v10701_v18  ;;  %v12318_v63 = vld [vmem:[#allocation2 + $0x51] sm:$0xff] }
 0x359   :  { %v12307_v60 = vadd.f32 %v9321_v19, %v7127_v55  ;;  %v9244_v32 = vadd.f32 %v9243_v22, %v9242_v36  ;;  %8239 = vmatprep.mubr.f32.mxu0 %v12173_v42  ;;  %10668 = vmatpush3.bf16.msra.mxu0 %v10667_v8  ;;  %v9325_v50 = vpop.f32.mrb[42].mxu1  ;;  %v10705_v42 = vpack.c.bf16 %v6976_v29, %v6975_v14  ;;  %v6960_v8 = vld [vmem:[#allocation10 + $0xb28] sm:$0xff]  ;;  %v6945_v36 = vld [vmem:[#allocation10 + $0xab0] sm:$0xff]  ;;  %v6946_v22 = vld [vmem:[#allocation10 + $0xab8] sm:$0xff] }
 0x35a   :  { %10670 = vmatprep.subr.bf16.mxu0 %v10669_v24  ;;  %v9326_v19 = vpop.f32.mrb[43].mxu1  ;;  %8385 = vmatmul.mubr.f32.gmra.mrb[148].mxu1 %v12170_v51  ;;  %v6978_v24 = vld [vmem:[#allocation10 + $0xbb8] sm:$0xff]  ;;  %v6013_v51 = vld [vmem:[#allocation2 + $0x64] sm:$0xff]  ;;  %v10675_v18 = vpack.c.bf16 %v6928_v5, %v6927_v34  ;;  %v10707_v14 = vpack.c.bf16 %v6960_v8, %v6959_v0  ;;  %v10677_v29 = vpack.c.bf16 %v6946_v22, %v6945_v36 }
 0x35b   :  { %v7132_v13 = vadd.f32 %v9244_v32, %v12189_v15  ;;  %v9245_v55 = vpop.f32.mrb[42].mxu0  ;;  %v9327_v28 = vadd.f32 %v9326_v19, %v9325_v50  ;;  %8389 = vmatprep.mubr.f32.mxu1 %v6012_v17  ;;  %10704 = vmatpush3.bf16.msra.mxu1 %v10703_v21  ;;  %v6929_v32 = vld [vmem:[#allocation10 + $0xa30] sm:$0xff]  ;;  %v6930_v50 = vld [vmem:[#allocation10 + $0xa38] sm:$0xff]  ;;  %v6980_v5 = vld [vmem:[#allocation10 + $0xbc8] sm:$0xff] }
 0x35c   :  { %v9246_v1 = vpop.f32.mrb[43].mxu0  ;;  %8240 = vmatmul.mubr.f32.gmra.mrb[148].mxu0 %v12310_v38  ;;  %v6961_v17 = vld [vmem:[#allocation10 + $0xb30] sm:$0xff]  ;;  %10706 = vmatprep.subr.bf16.mxu1 %v10705_v42  ;;  %v12326_v36 = vld [vmem:[#allocation2 + $0x61] sm:$0xff]  ;;  %v10679_v42 = vpack.c.bf16 %v6930_v50, %v6929_v32 }
 0x35d   :  { %v12315_v39 = vadd.f32 %v9324_v59, %v7132_v13  ;;  %v9247_v3 = vadd.f32 %v9246_v1, %v9245_v55  ;;  %8244 = vmatprep.mubr.f32.mxu0 %v12180_v6  ;;  %10672 = vmatpush3.bf16.msra.mxu0 %v10671_v4  ;;  %v9328_v58 = vpop.f32.mrb[44].mxu1  ;;  %v10709_v6 = vpack.c.bf16 %v6978_v24, %v6977_v37  ;;  %v6962_v55 = vld [vmem:[#allocation10 + $0xb38] sm:$0xff]  ;;  %v6947_v1 = vld [vmem:[#allocation10 + $0xac0] sm:$0xff]  ;;  %v6948_v4 = vld [vmem:[#allocation10 + $0xac8] sm:$0xff] }
 0x35e   :  { %10674 = vmatprep.subr.bf16.mxu0 %v10673_v26  ;;  %v9329_v13 = vpop.f32.mrb[45].mxu1  ;;  %8390 = vmatmul.mubr.f32.gmra.mrb[150].mxu1 %v12177_v56  ;;  %v6979_v26 = vld [vmem:[#allocation10 + $0xbc0] sm:$0xff]  ;;  %v6014_v56 = vld [vmem:[#allocation2 + $0x74] sm:$0xff]  ;;  %v10711_v37 = vpack.c.bf16 %v6962_v55, %v6961_v17  ;;  %v10681_v24 = vpack.c.bf16 %v6948_v4, %v6947_v1 }
 0x35f   :  { %v7137_v19 = vadd.f32 %v9247_v3, %v12189_v15  ;;  %v9248_v59 = vpop.f32.mrb[44].mxu0  ;;  %v9330_v21 = vadd.f32 %v9329_v13, %v9328_v58  ;;  %8394 = vmatprep.mubr.f32.mxu1 %v6013_v51  ;;  %10708 = vmatpush3.bf16.msra.mxu1 %v10707_v14  ;;  %v6931_v3 = vld [vmem:[#allocation10 + $0xa40] sm:$0xff]  ;;  %v6932_v58 = vld [vmem:[#allocation10 + $0xa48] sm:$0xff]  ;;  %v6982_v50 = vld [vmem:[#allocation10 + $0xbd8] sm:$0xff] }
 0x360   :  { %v9249_v34 = vpop.f32.mrb[45].mxu0  ;;  %8245 = vmatmul.mubr.f32.gmra.mrb[150].mxu0 %v12318_v63  ;;  %v6963_v51 = vld [vmem:[#allocation10 + $0xb40] sm:$0xff]  ;;  %10710 = vmatprep.subr.bf16.mxu1 %v10709_v6  ;;  %v12334_v1 = vld [vmem:[#allocation2 + $0x71] sm:$0xff]  ;;  %v10683_v6 = vpack.c.bf16 %v6932_v58, %v6931_v3 }
 0x361   :  { %v12323_v0 = vadd.f32 %v9327_v28, %v7137_v19  ;;  %v9250_v8 = vadd.f32 %v9249_v34, %v9248_v59  ;;  %8249 = vmatprep.mubr.f32.mxu0 %v12187_v20  ;;  %10676 = vmatpush3.bf16.msra.mxu0 %v10675_v18  ;;  %v9331_v22 = vpop.f32.mrb[46].mxu1  ;;  %v10713_v20 = vpack.c.bf16 %v6980_v5, %v6979_v26  ;;  %v6964_v59 = vld [vmem:[#allocation10 + $0xb48] sm:$0xff]  ;;  %v6949_v34 = vld [vmem:[#allocation10 + $0xad0] sm:$0xff]  ;;  %v6950_v18 = vld [vmem:[#allocation10 + $0xad8] sm:$0xff] }
 0x362   :  { %10678 = vmatprep.subr.bf16.mxu0 %v10677_v29  ;;  %v9332_v19 = vpop.f32.mrb[47].mxu1  ;;  %8395 = vmatmul.mubr.f32.gmra.mrb[152].mxu1 %v12184_v48  ;;  %v6981_v29 = vld [vmem:[#allocation10 + $0xbd0] sm:$0xff]  ;;  %v6015_v48 = vld [vmem:[#allocation2 + $0x84] sm:$0xff]  ;;  %v10715_v26 = vpack.c.bf16 %v6964_v59, %v6963_v51  ;;  %v10685_v5 = vpack.c.bf16 %v6950_v18, %v6949_v34 }
 0x363   :  { %v7142_v13 = vadd.f32 %v9250_v8, %v12189_v15  ;;  %v9251_v28 = vpop.f32.mrb[46].mxu0  ;;  %v9333_v14 = vadd.f32 %v9332_v19, %v9331_v22  ;;  %8399 = vmatprep.mubr.f32.mxu1 %v6014_v56  ;;  %10712 = vmatpush3.bf16.msra.mxu1 %v10711_v37  ;;  %v6933_v8 = vld [vmem:[#allocation10 + $0xa50] sm:$0xff]  ;;  %v6934_v22 = vld [vmem:[#allocation10 + $0xa58] sm:$0xff]  ;;  %v6983_v58 = vld [vmem:[#allocation10 + $0xbe0] sm:$0xff] }
 0x364   :  { %v9252_v32 = vpop.f32.mrb[47].mxu0  ;;  %8250 = vmatmul.mubr.f32.gmra.mrb[152].mxu0 %v12326_v36  ;;  %v6965_v56 = vld [vmem:[#allocation10 + $0xb50] sm:$0xff]  ;;  %10714 = vmatprep.subr.bf16.mxu1 %v10713_v20  ;;  %v6984_v51 = vld [vmem:[#allocation10 + $0xbe8] sm:$0xff]  ;;  %v10687_v18 = vpack.c.bf16 %v6934_v22, %v6933_v8  ;;  %v6986_v22 = vld [vmem:[#allocation10 + $0xbf8] sm:$0xff] }
 0x365   :  { %v12331_v17 = vadd.f32 %v9330_v21, %v7142_v13  ;;  %v9253_v55 = vadd.f32 %v9252_v32, %v9251_v28  ;;  %8254 = vmatprep.mubr.f32.mxu0 %v12198_v43  ;;  %10680 = vmatpush3.bf16.msra.mxu0 %v10679_v42  ;;  %v9334_v4 = vpop.f32.mrb[48].mxu1  ;;  %v10717_v43 = vpack.c.bf16 %v6982_v50, %v6981_v29  ;;  %v6966_v28 = vld [vmem:[#allocation10 + $0xb58] sm:$0xff]  ;;  %v6951_v32 = vld [vmem:[#allocation10 + $0xae0] sm:$0xff]  ;;  %v6952_v42 = vld [vmem:[#allocation10 + $0xae8] sm:$0xff] }
 0x366   :  { %10682 = vmatprep.subr.bf16.mxu0 %v10681_v24  ;;  %v9335_v13 = vpop.f32.mrb[49].mxu1  ;;  %8400 = vmatmul.mubr.f32.gmra.mrb[154].mxu1 %v12193_v45  ;;  %v12339_v24 = vld [vmem:[#allocation2 + $0x82] sm:$0xff]  ;;  %v10719_v50 = vpack.c.bf16 %v6966_v28, %v6965_v56  ;;  %v12355_v28 = vld [vmem:[#allocation2 + $0x91] sm:$0xff] }
 0x367   :  { %v7147_v19 = vadd.f32 %v9253_v55, %v12189_v15  ;;  %v9254_v21 = vpop.f32.mrb[48].mxu0  ;;  %v9336_v37 = vadd.f32 %v9335_v13, %v9334_v4  ;;  %12731 = vst [vmem:[#allocation24_spill] sm:$0xff] %v12339_v24  ;;  %8404 = vmatprep.mubr.f32.mxu1 %v6015_v48  ;;  %v12344_v45 = vld [vmem:[#allocation2 + $0x81] sm:$0xff]  ;;  %10716 = vmatpush3.bf16.msra.mxu1 %v10715_v26  ;;  %v6936_v48 = vld [vmem:[#allocation10 + $0xa68] sm:$0xff] }
 0x368   :  { %v9255_v3 = vpop.f32.mrb[49].mxu0  ;;  %8255 = vmatmul.mubr.f32.gmra.mrb[154].mxu0 %v12334_v1  ;;  %v12346_v20 = vld [vmem:[#allocation2 + $0x83] sm:$0xff]  ;;  %v10689_v55 = vpack.c.bf16 %v6952_v42, %v6951_v32  ;;  %10718 = vmatprep.subr.bf16.mxu1 %v10717_v43 }
 0x369   :  { %v12341_v59 = vadd.f32 %v9333_v14, %v7147_v19  ;;  %v9256_v34 = vadd.f32 %v9255_v3, %v9254_v21  ;;  %8259 = vmatprep.mubr.f32.mxu0 %v12339_v24  ;;  %10684 = vmatpush3.bf16.msra.mxu0 %v10683_v6  ;;  %v9449_v29 = vpop.f32.mrb[50].mxu1  ;;  %v6935_v4 = vld [vmem:[#allocation10 + $0xa60] sm:$0xff]  ;;  %v10721_v3 = vpack.c.bf16 %v6984_v51, %v6983_v58  ;;  %v6968_v24 = vld [vmem:[#allocation10 + $0xb68] sm:$0xff]  ;;  %v6954_v6 = vld [vmem:[#allocation10 + $0xaf8] sm:$0xff] }
 0x36a   :  { %10686 = vmatprep.subr.bf16.mxu0 %v10685_v5  ;;  %v6967_v13 = vld [vmem:[#allocation10 + $0xb60] sm:$0xff]  ;;  %v9450_v21 = vpop.f32.mrb[51].mxu1  ;;  %8405 = vmatmul.mubr.f32.gmra.mrb[156].mxu1 %v12346_v20  ;;  %v6985_v5 = vld [vmem:[#allocation10 + $0xbf0] sm:$0xff]  ;;  %v10691_v32 = vpack.c.bf16 %v6936_v48, %v6935_v4 }
 0x36b   :  { %12732 = vst [vmem:[#allocation25_spill] sm:$0xff] %v12341_v59  ;;  %v7152_v14 = vadd.f32 %v9256_v34, %v12189_v15  ;;  %v9369_v19 = vpop.f32.mrb[50].mxu0  ;;  %v6953_v59 = vld [vmem:[#allocation10 + $0xaf0] sm:$0xff]  ;;  %v9451_v26 = vadd.f32 %v9450_v21, %v9449_v29  ;;  %8409 = vmatprep.mubr.f32.mxu1 %v12215_v53  ;;  %v6017_v43 = vld [vmem:[#allocation2 + $0xa4] sm:$0xff]  ;;  %10720 = vmatpush3.bf16.msra.mxu1 %v10719_v50  ;;  %v6938_v29 = vld [vmem:[#allocation10 + $0xa78] sm:$0xff] }
 0x36c   :  { %v9370_v8 = vpop.f32.mrb[51].mxu0  ;;  %8260 = vmatmul.mubr.f32.gmra.mrb[156].mxu0 %v12344_v45  ;;  %v10723_v58 = vpack.c.bf16 %v6968_v24, %v6967_v13  ;;  %v10693_v51 = vpack.c.bf16 %v6954_v6, %v6953_v59  ;;  %v6937_v34 = vld [vmem:[#allocation10 + $0xa70] sm:$0xff]  ;;  %10722 = vmatprep.subr.bf16.mxu1 %v10721_v3  ;;  %v12360_v24 = vld [vmem:[#allocation2 + $0xa2] sm:$0xff] }
 0x36d   :  { %v12352_v56 = vadd.f32 %v9336_v37, %v7152_v14  ;;  %v9371_v15 = vadd.f32 %v9370_v8, %v9369_v19  ;;  %8264 = vmatprep.mubr.f32.mxu0 %v12217_v10  ;;  %10688 = vmatpush3.bf16.msra.mxu0 %v10687_v18  ;;  %v9452_v42 = vpop.f32.mrb[52].mxu1  ;;  %v6969_v53 = vld [vmem:[#allocation10 + $0xb70] sm:$0xff]  ;;  %v10725_v10 = vpack.c.bf16 %v6986_v22, %v6985_v5  ;;  %v6970_v19 = vld [vmem:[#allocation10 + $0xb78] sm:$0xff]  ;;  %v6987_v8 = vld [vmem:[#allocation10 + $0xc00] sm:$0xff] }
 0x36e   :  { %10690 = vmatprep.subr.bf16.mxu0 %v10689_v55  ;;  %v9453_v14 = vpop.f32.mrb[53].mxu1  ;;  %8410 = vmatmul.mubr.f32.gmra.mrb[158].mxu1 %v12211_v2  ;;  %v6988_v18 = vld [vmem:[#allocation10 + $0xc08] sm:$0xff]  ;;  %v10727_v13 = vpack.c.bf16 %v6970_v19, %v6969_v53  ;;  %v12370_v22 = vld [vmem:[#allocation2 + $0xa1] sm:$0xff] }
 0x36f   :  { %v7367_v21 = vadd.f32 %v9371_v15, %v12202_v44  ;;  %v9372_v37 = vpop.f32.mrb[52].mxu0  ;;  %v9454_v50 = vadd.f32 %v9453_v14, %v9452_v42  ;;  %8414 = vmatprep.mubr.f32.mxu1 %v6017_v43  ;;  %v10695_v44 = vpack.c.bf16 %v6938_v29, %v6937_v34  ;;  %v12365_v48 = vld [vmem:[#allocation2 + $0xa3] sm:$0xff]  ;;  %10724 = vmatpush3.bf16.msra.mxu1 %v10723_v58  ;;  %v5922_v34 = vld [vmem:[#allocation2 + $0xf1] sm:$0xff] }
 0x370   :  { %v9373_v4 = vpop.f32.mrb[53].mxu0  ;;  %8265 = vmatmul.mubr.f32.gmra.mrb[158].mxu0 %v12355_v28  ;;  %v12367_v3 = vpack.c.bf16 %v6988_v18, %v6987_v8  ;;  %10726 = vmatprep.subr.bf16.mxu1 %v10725_v10  ;;  %v12387_v10 = vld [vmem:[#allocation2 + $0x101] sm:$0xff] }
 0x371   :  { %v12362_v59 = vadd.f32 %v9451_v26, %v7367_v21  ;;  %v9374_v55 = vadd.f32 %v9373_v4, %v9372_v37  ;;  %8269 = vmatprep.mubr.f32.mxu0 %v12360_v24  ;;  %10692 = vmatpush3.bf16.msra.mxu0 %v10691_v32  ;;  %v9455_v2 = vpop.f32.mrb[54].mxu1 }
 0x372   :  { %10694 = vmatprep.subr.bf16.mxu0 %v10693_v51  ;;  %v9456_v26 = vpop.f32.mrb[55].mxu1  ;;  %8415 = vmatmul.mubr.f32.gmra.mrb[160].mxu1 %v12365_v48 }
 0x373   :  { %v7372_v6 = vadd.f32 %v9374_v55, %v12209_v9  ;;  %v9375_v5 = vpop.f32.mrb[54].mxu0  ;;  %v9457_v43 = vadd.f32 %v9456_v26, %v9455_v2  ;;  %8419 = vmatprep.mubr.f32.mxu1 %v12230_v33  ;;  %10728 = vmatpush3.bf16.msra.mxu1 %v10727_v13 }
 0x374   :  { %v9376_v15 = vpop.f32.mrb[55].mxu0  ;;  %8270 = vmatmul.mubr.f32.gmra.mrb[160].mxu0 %v12370_v22  ;;  %10761 = vmatprep.subr.bf16.mxu1 %v12367_v3 }
 0x375   :  { %v12375_v32 = vadd.f32 %v9454_v50, %v7372_v6  ;;  %v9377_v42 = vadd.f32 %v9376_v15, %v9375_v5  ;;  %8274 = vmatprep.mubr.f32.mxu0 %v12232_v7  ;;  %10696 = vmatpush3.bf16.msra.mxu0 %v10695_v44  ;;  %v9458_v9 = vpop.f32.mrb[56].mxu1  ;;  %v12396_v50 = vld [vmem:[#allocation2 + $0x111] sm:$0xff]  ;;  %v12405_v6 = vld [vmem:[#allocation2 + $0x121] sm:$0xff] }
 0x376   :  { %10730 = vmatprep.subr.bf16.mxu0 %v12367_v3  ;;  %v9459_v29 = vpop.f32.mrb[57].mxu1  ;;  %8420 = vmatmul.mubr.f32.gmra.mrb[162].mxu1 %v12226_v46 }
 0x377   :  { %v7377_v58 = vadd.f32 %v9377_v42, %v12221_v62  ;;  %v9378_v51 = vpop.f32.mrb[56].mxu0  ;;  %v9460_v53 = vadd.f32 %v9459_v29, %v9458_v9  ;;  %8424 = vmatprep.mubr.f32.mxu1 %v12242_v40  ;;  %v12414_v42 = vld [vmem:[#allocation2 + $0x131] sm:$0xff]  ;;  %v12424_v29 = vld [vmem:[#allocation2 + $0x143] sm:$0xff] }
 0x378   :  { %v9379_v33 = vpop.f32.mrb[57].mxu0  ;;  %8275 = vmatmul.mubr.f32.gmra.mrb[162].mxu0 %v5922_v34  ;;  %v12733_v34 = vld [vmem:[#allocation19_spill] sm:$0xff] }
 0x379   :  { %v12383_v7 = vadd.f32 %v9457_v43, %v7377_v58  ;;  %v9380_v21 = vadd.f32 %v9379_v33, %v9378_v51  ;;  %8279 = vmatprep.mubr.f32.mxu0 %v12244_v25  ;;  %v9461_v37 = vpop.f32.mrb[58].mxu1  ;;  %v12734_v33 = vld [vmem:[#allocation18_spill] sm:$0xff] }
 0x37a   :  { %v9462_v19 = vpop.f32.mrb[59].mxu1  ;;  %8425 = vmatmul.mubr.f32.gmra.mrb[164].mxu1 %v12238_v52 }
 0x37b   :  { %v7382_v62 = vadd.f32 %v9380_v21, %v12224_v16  ;;  %v9381_v14 = vpop.f32.mrb[58].mxu0  ;;  %v9463_v8 = vadd.f32 %v9462_v19, %v9461_v37  ;;  %8429 = vmatprep.mubr.f32.mxu1 %v12254_v31  ;;  %v12735_v19 = vld [vmem:[#allocation23_spill] sm:$0xff] }
 0x37c   :  { %v9382_v46 = vpop.f32.mrb[59].mxu0  ;;  %8280 = vmatmul.mubr.f32.gmra.mrb[164].mxu0 %v12387_v10 }
 0x37d   :  { %v12392_v40 = vadd.f32 %v9460_v53, %v7382_v62  ;;  %v9383_v18 = vadd.f32 %v9382_v46, %v9381_v14  ;;  %8284 = vmatprep.mubr.f32.mxu0 %v12256_v54  ;;  %v9464_v25 = vpop.f32.mrb[60].mxu1 }
 0x37e   :  { %v9465_v55 = vpop.f32.mrb[61].mxu1  ;;  %8430 = vmatmul.mubr.f32.gmra.mrb[166].mxu1 %v12250_v49 }
 0x37f   :  { %v7387_v16 = vadd.f32 %v9383_v18, %v12236_v41  ;;  %v9384_v4 = vpop.f32.mrb[60].mxu0  ;;  %v9466_v44 = vadd.f32 %v9465_v55, %v9464_v25  ;;  %8434 = vmatprep.mubr.f32.mxu1 %v12265_v11  ;;  %v12736_v18 = vld [vmem:[#allocation22_spill] sm:$0xff] }
 0x380   :  { %v9385_v52 = vpop.f32.mrb[61].mxu0  ;;  %8285 = vmatmul.mubr.f32.gmra.mrb[166].mxu0 %v12396_v50 }
 0x381   :  { %v12401_v31 = vadd.f32 %v9463_v8, %v7387_v16  ;;  %v9386_v2 = vadd.f32 %v9385_v52, %v9384_v4  ;;  %8289 = vmatprep.mubr.f32.mxu0 %v12267_v27  ;;  %v9467_v54 = vpop.f32.mrb[62].mxu1  ;;  %v12737_v16 = vld [vmem:[#allocation21_spill] sm:$0xff]  ;;  %v12436_v52 = vld [vmem:[#allocation2 + $0x151] sm:$0xff] }
 0x382   :  { %v9468_v5 = vpop.f32.mrb[63].mxu1  ;;  %8435 = vmatmul.mubr.f32.gmra.mrb[168].mxu1 %v12262_v30  ;;  %v12417_v30 = vld [vmem:[#allocation2 + $0x144] sm:$0xff] }
 0x383   :  { %v7392_v41 = vadd.f32 %v9386_v2, %v12248_v23  ;;  %v9387_v13 = vpop.f32.mrb[62].mxu0  ;;  %v9469_v26 = vadd.f32 %v9468_v5, %v9467_v54  ;;  %8439 = vmatprep.mubr.f32.mxu1 %v12274_v12  ;;  %v12738_v2 = vld [vmem:[#allocation20_spill] sm:$0xff]  ;;  %v12439_v54 = vld [vmem:[#allocation2 + $0x164] sm:$0xff] }
 0x384   :  { %v9388_v49 = vpop.f32.mrb[63].mxu0  ;;  %8290 = vmatmul.mubr.f32.gmra.mrb[168].mxu0 %v12405_v6  ;;  %v12442_v5 = vld [vmem:[#allocation2 + $0x162] sm:$0xff] }
 0x385   :  { %v12410_v11 = vadd.f32 %v9466_v44, %v7392_v41  ;;  %v9389_v15 = vadd.f32 %v9388_v49, %v9387_v13  ;;  %8294 = vmatprep.mubr.f32.mxu0 %v12277_v35  ;;  %v9470_v27 = vpop.f32.mrb[64].mxu1 }
 0x386   :  { %v9471_v9 = vpop.f32.mrb[65].mxu1  ;;  %8440 = vmatmul.mubr.f32.gmra.mrb[170].mxu1 %v12271_v57  ;;  %v12427_v57 = vld [vmem:[#allocation2 + $0x141] sm:$0xff] }
 0x387   :  { %v7397_v23 = vadd.f32 %v9389_v15, %v12260_v47  ;;  %v9390_v43 = vpop.f32.mrb[64].mxu0  ;;  %v9472_v12 = vadd.f32 %v9471_v9, %v9470_v27  ;;  %8444 = vmatprep.mubr.f32.mxu1 %v12417_v30  ;;  %v12448_v27 = vld [vmem:[#allocation2 + $0x161] sm:$0xff] }
 0x388   :  { %v9391_v58 = vpop.f32.mrb[65].mxu0  ;;  %8295 = vmatmul.mubr.f32.gmra.mrb[170].mxu0 %v12414_v42 }
 0x389   :  { %v12421_v51 = vadd.f32 %v9469_v26, %v7397_v23  ;;  %v9392_v35 = vadd.f32 %v9391_v58, %v9390_v43  ;;  %8299 = vmatprep.mubr.f32.mxu0 %v12733_v34  ;;  %v9473_v47 = vpop.f32.mrb[66].mxu1  ;;  %v12450_v23 = vld [vmem:[#allocation2 + $0x163] sm:$0xff]  ;;  %v6990_v34 = vld [vmem:[#allocation10 + $0xc18] sm:$0xff] }
 0x38a   :  { %v9474_v37 = vpop.f32.mrb[67].mxu1  ;;  %8445 = vmatmul.mubr.f32.gmra.mrb[172].mxu1 %v12424_v29 }
 0x38b   :  { %v7402_v53 = vadd.f32 %v9392_v35, %v12734_v33  ;;  %v9393_v21 = vpop.f32.mrb[66].mxu0  ;;  %v9475_v14 = vadd.f32 %v9474_v37, %v9473_v47  ;;  %8449 = vmatprep.mubr.f32.mxu1 %v12735_v19  ;;  %v6989_v35 = vld [vmem:[#allocation10 + $0xc10] sm:$0xff] }
 0x38c   :  { %v9394_v62 = vpop.f32.mrb[67].mxu0  ;;  %8300 = vmatmul.mubr.f32.gmra.mrb[172].mxu0 %v12427_v57 }
 0x38d   :  { %v12432_v46 = vadd.f32 %v9472_v12, %v7402_v53  ;;  %v9395_v8 = vadd.f32 %v9394_v62, %v9393_v21  ;;  %8304 = vmatprep.mubr.f32.mxu0 %v12736_v18  ;;  %v9476_v25 = vpop.f32.mrb[68].mxu1  ;;  %v6139_v12 = vld [vmem:[#allocation2 + $0x43] sm:$0xff] }
 0x38e   :  { %v9477_v44 = vpop.f32.mrb[69].mxu1  ;;  %8450 = vmatmul.mubr.f32.gmra.mrb[174].mxu1 %v12738_v2  ;;  %v6043_v62 = vld [vmem:[#allocation2 + $0x40] sm:$0xff] }
 0x38f   :  { %v7407_v4 = vadd.f32 %v9395_v8, %v12737_v16  ;;  %v9396_v55 = vpop.f32.mrb[68].mxu0  ;;  %v9478_v13 = vadd.f32 %v9477_v44, %v9476_v25  ;;  %8454 = vmatprep.mubr.f32.mxu1 %v12439_v54  ;;  %v6140_v25 = vld [vmem:[#allocation2 + $0x53] sm:$0xff]  ;;  %v6991_v16 = vld [vmem:[#allocation10 + $0xc20] sm:$0xff] }
 0x390   :  { %v9397_v41 = vpop.f32.mrb[69].mxu0  ;;  %8305 = vmatmul.mubr.f32.gmra.mrb[174].mxu0 %v12436_v52 }
 0x391   :  { %v12445_v49 = vadd.f32 %v9475_v14, %v7407_v4  ;;  %v9398_v26 = vadd.f32 %v9397_v41, %v9396_v55  ;;  %8309 = vmatprep.mubr.f32.mxu0 %v12442_v5  ;;  %v9479_v15 = vpop.f32.mrb[70].mxu1  ;;  %v10733_v14 = vpack.c.bf16 %v6990_v34, %v6989_v35  ;;  %v6992_v4 = vld [vmem:[#allocation10 + $0xc28] sm:$0xff]  ;;  %v6994_v35 = vld [vmem:[#allocation10 + $0xc38] sm:$0xff] }
 0x392   :  { %v9480_v58 = vpop.f32.mrb[71].mxu1  ;;  %8455 = vmatmul.mubr.f32.gmra.mrb[176].mxu1 %v12450_v23 }
 0x393   :  { %v7412_v43 = vadd.f32 %v9398_v26, %v12302_v61  ;;  %v9399_v9 = vpop.f32.mrb[70].mxu0  ;;  %v9481_v33 = vadd.f32 %v9480_v58, %v9479_v15  ;;  %8669 = vmatprep.mubr.f32.mxu1 %v6139_v12  ;;  %v6107_v61 = vld [vmem:[#allocation2 + $0x42] sm:$0xff]  ;;  %v10737_v26 = vpack.c.bf16 %v6992_v4, %v6991_v16  ;;  %v6993_v12 = vld [vmem:[#allocation10 + $0xc30] sm:$0xff] }
 0x394   :  { %v9400_v47 = vpop.f32.mrb[71].mxu0  ;;  %8310 = vmatmul.mubr.f32.gmra.mrb[176].mxu0 %v12448_v27  ;;  %v6141_v58 = vld [vmem:[#allocation2 + $0x63] sm:$0xff] }
 0x395   :  { %v12455_v53 = vadd.f32 %v9478_v13, %v7412_v43  ;;  %v9401_v21 = vadd.f32 %v9400_v47, %v9399_v9  ;;  %8524 = vmatprep.mubr.f32.mxu0 %v12310_v38  ;;  %v9482_v37 = vpop.f32.mrb[72].mxu1  ;;  %v6044_v38 = vld [vmem:[#allocation2 + $0x50] sm:$0xff] }
 0x396   :  { %v9483_v18 = vpop.f32.mrb[73].mxu1  ;;  %8670 = vmatmul.mubr.f32.vlgmr.msra.gmra.mrb[178].mxu1 %v6107_v61  ;;  %v6108_v13 = vld [vmem:[#allocation2 + $0x52] sm:$0xff] }
 0x397   :  { %v7417_v19 = vadd.f32 %v9401_v21, %v12307_v60  ;;  %v9402_v8 = vpop.f32.mrb[72].mxu0  ;;  %v9484_v44 = vadd.f32 %v9483_v18, %v9482_v37  ;;  %8674 = vmatprep.mubr.f32.mxu1 %v6140_v25  ;;  %10769 = vmatpush3.bf16.msra.mxu1 %v12367_v3  ;;  %v6045_v21 = vld [vmem:[#allocation2 + $0x60] sm:$0xff]  ;;  %v10741_v37 = vpack.c.bf16 %v6994_v35, %v6993_v12  ;;  %v6996_v25 = vld [vmem:[#allocation10 + $0xc48] sm:$0xff] }
 0x398   :  { %v9403_v55 = vpop.f32.mrb[73].mxu0  ;;  %8525 = vmatmul.mubr.f32.vlgmr.msra.gmra.mrb[178].mxu0 %v6043_v62  ;;  %10762 = vmatprep.subr.bf16.mxu1 %v10733_v14  ;;  %v6995_v18 = vld [vmem:[#allocation10 + $0xc40] sm:$0xff] }
 0x399   :  { %v12459_v2 = vadd.f32 %v9481_v33, %v7417_v19  ;;  %v9404_v41 = vadd.f32 %v9403_v55, %v9402_v8  ;;  %8529 = vmatprep.mubr.f32.mxu0 %v12318_v63  ;;  %10732 = vmatpush3.bf16.msra.mxu0 %v12367_v3  ;;  %v9485_v60 = vpop.f32.mrb[74].mxu1  ;;  %v6142_v8 = vld [vmem:[#allocation2 + $0x73] sm:$0xff] }
 0x39a   :  { %10734 = vmatprep.subr.bf16.mxu0 %v10733_v14  ;;  %v9486_v9 = vpop.f32.mrb[75].mxu1  ;;  %8675 = vmatmul.mubr.f32.gmra.mrb[180].mxu1 %v6108_v13 }
 0x39b   :  { %v7422_v15 = vadd.f32 %v9404_v41, %v12315_v39  ;;  %v9405_v43 = vpop.f32.mrb[74].mxu0  ;;  %v9487_v63 = vadd.f32 %v9486_v9, %v9485_v60  ;;  %8679 = vmatprep.mubr.f32.mxu1 %v6141_v58  ;;  %v6109_v39 = vld [vmem:[#allocation2 + $0x62] sm:$0xff]  ;;  %10770 = vmatpush3.bf16.msra.mxu1 %v10733_v14 }
 0x39c   :  { %v9406_v34 = vpop.f32.mrb[75].mxu0  ;;  %8530 = vmatmul.mubr.f32.gmra.mrb[180].mxu0 %v6044_v38  ;;  %10763 = vmatprep.subr.bf16.mxu1 %v10737_v26  ;;  %v6046_v38 = vld [vmem:[#allocation2 + $0x70] sm:$0xff] }
 0x39d   :  { %v12465_v47 = vadd.f32 %v9484_v44, %v7422_v15  ;;  %v9407_v3 = vadd.f32 %v9406_v34, %v9405_v43  ;;  %8534 = vmatprep.mubr.f32.mxu0 %v12326_v36  ;;  %10736 = vmatpush3.bf16.msra.mxu0 %v10733_v14  ;;  %v9488_v33 = vpop.f32.mrb[76].mxu1  ;;  %v6110_v44 = vld [vmem:[#allocation2 + $0x72] sm:$0xff]  ;;  %v6998_v43 = vld [vmem:[#allocation10 + $0xc58] sm:$0xff] }
 0x39e   :  { %10738 = vmatprep.subr.bf16.mxu0 %v10737_v26  ;;  %v9489_v19 = vpop.f32.mrb[77].mxu1  ;;  %8680 = vmatmul.mubr.f32.gmra.mrb[182].mxu1 %v6109_v39  ;;  %v6997_v15 = vld [vmem:[#allocation10 + $0xc50] sm:$0xff]  ;;  %v12739_v34 = vld [vmem:[#allocation25_spill] sm:$0xff] }
 0x39f   :  { %v7427_v62 = vadd.f32 %v9407_v3, %v12323_v0  ;;  %v9408_v61 = vpop.f32.mrb[76].mxu0  ;;  %v9490_v4 = vadd.f32 %v9489_v19, %v9488_v33  ;;  %8684 = vmatprep.mubr.f32.mxu1 %v6142_v8  ;;  %10771 = vmatpush3.bf16.msra.mxu1 %v10737_v26  ;;  %v10745_v0 = vpack.c.bf16 %v6996_v25, %v6995_v18  ;;  %v6144_v39 = vld [vmem:[#allocation2 + $0x93] sm:$0xff] }
 0x3a0   :  { %v9409_v16 = vpop.f32.mrb[77].mxu0  ;;  %8535 = vmatmul.mubr.f32.gmra.mrb[182].mxu0 %v6045_v21  ;;  %10764 = vmatprep.subr.bf16.mxu1 %v10741_v37  ;;  %v10749_v35 = vpack.c.bf16 %v6998_v43, %v6997_v15  ;;  %v12740_v21 = vld [vmem:[#allocation24_spill] sm:$0xff] }
 0x3a1   :  { %v12469_v36 = vadd.f32 %v9487_v63, %v7427_v62  ;;  %v9410_v55 = vadd.f32 %v9409_v16, %v9408_v61  ;;  %8539 = vmatprep.mubr.f32.mxu0 %v12334_v1  ;;  %10740 = vmatpush3.bf16.msra.mxu0 %v10737_v26  ;;  %v9491_v14 = vpop.f32.mrb[78].mxu1  ;;  %v7000_v62 = vld [vmem:[#allocation10 + $0xc68] sm:$0xff]  ;;  %v6112_v18 = vld [vmem:[#allocation2 + $0x92] sm:$0xff] }
 0x3a2   :  { %10742 = vmatprep.subr.bf16.mxu0 %v10741_v37  ;;  %v9492_v13 = vpop.f32.mrb[79].mxu1  ;;  %8685 = vmatmul.mubr.f32.gmra.mrb[184].mxu1 %v6110_v44  ;;  %v7001_v44 = vld [vmem:[#allocation10 + $0xc70] sm:$0xff] }
 0x3a3   :  { %v7432_v41 = vadd.f32 %v9410_v55, %v12331_v17  ;;  %v9411_v60 = vpop.f32.mrb[78].mxu0  ;;  %v9493_v58 = vadd.f32 %v9492_v13, %v9491_v14  ;;  %8689 = vmatprep.mubr.f32.mxu1 %v12346_v20  ;;  %v6047_v17 = vld [vmem:[#allocation2 + $0x80] sm:$0xff]  ;;  %10772 = vmatpush3.bf16.msra.mxu1 %v10741_v37  ;;  %v6048_v55 = vld [vmem:[#allocation2 + $0x90] sm:$0xff] }
 0x3a4   :  { %v9412_v9 = vpop.f32.mrb[79].mxu0  ;;  %8540 = vmatmul.mubr.f32.gmra.mrb[184].mxu0 %v6046_v38  ;;  %10765 = vmatprep.subr.bf16.mxu1 %v10745_v0  ;;  %v6999_v20 = vld [vmem:[#allocation10 + $0xc60] sm:$0xff] }
 0x3a5   :  { %v12474_v1 = vadd.f32 %v9490_v4, %v7432_v41  ;;  %v9413_v12 = vadd.f32 %v9412_v9, %v9411_v60  ;;  %8544 = vmatprep.mubr.f32.mxu0 %v12344_v45  ;;  %10744 = vmatpush3.bf16.msra.mxu0 %v10741_v37  ;;  %v9494_v26 = vpop.f32.mrb[80].mxu1  ;;  %v10753_v25 = vpack.c.bf16 %v7000_v62, %v6999_v20  ;;  %v7002_v41 = vld [vmem:[#allocation10 + $0xc78] sm:$0xff] }
 0x3a6   :  { %10746 = vmatprep.subr.bf16.mxu0 %v10745_v0  ;;  %v9495_v33 = vpop.f32.mrb[81].mxu1  ;;  %8690 = vmatmul.mubr.f32.gmra.mrb[186].mxu1 %v12740_v21  ;;  %v6049_v9 = vld [vmem:[#allocation2 + $0xa0] sm:$0xff] }
 0x3a7   :  { %v7437_v63 = vadd.f32 %v9413_v12, %v12739_v34  ;;  %v9414_v3 = vpop.f32.mrb[80].mxu0  ;;  %v9496_v19 = vadd.f32 %v9495_v33, %v9494_v26  ;;  %8694 = vmatprep.mubr.f32.mxu1 %v6144_v39  ;;  %10773 = vmatpush3.bf16.msra.mxu1 %v10745_v0  ;;  %v6146_v12 = vld [vmem:[#allocation2 + $0xb3] sm:$0xff]  ;;  %v6147_v21 = vld [vmem:[#allocation2 + $0x103] sm:$0xff] }
 0x3a8   :  { %v9415_v61 = vpop.f32.mrb[81].mxu0  ;;  %8545 = vmatmul.mubr.f32.gmra.mrb[186].mxu0 %v6047_v17  ;;  %10766 = vmatprep.subr.bf16.mxu1 %v10749_v35  ;;  %v6082_v17 = vld [vmem:[#allocation2 + $0xb1] sm:$0xff] }
 0x3a9   :  { %v12479_v45 = vadd.f32 %v9493_v58, %v7437_v63  ;;  %v9416_v8 = vadd.f32 %v9415_v61, %v9414_v3  ;;  %8549 = vmatprep.mubr.f32.mxu0 %v12355_v28  ;;  %10748 = vmatpush3.bf16.msra.mxu0 %v10745_v0  ;;  %v9609_v37 = vpop.f32.mrb[82].mxu1  ;;  %v6114_v63 = vld [vmem:[#allocation2 + $0xb2] sm:$0xff] }
 0x3aa   :  { %10750 = vmatprep.subr.bf16.mxu0 %v10749_v35  ;;  %v9610_v14 = vpop.f32.mrb[83].mxu1  ;;  %8695 = vmatmul.mubr.f32.gmra.mrb[188].mxu1 %v6112_v18  ;;  %v6051_v18 = vld [vmem:[#allocation2 + $0x100] sm:$0xff] }
 0x3ab   :  { %v7442_v16 = vadd.f32 %v9416_v8, %v12352_v56  ;;  %v9529_v4 = vpop.f32.mrb[82].mxu0  ;;  %v9611_v38 = vadd.f32 %v9610_v14, %v9609_v37  ;;  %8699 = vmatprep.mubr.f32.mxu1 %v12365_v48  ;;  %10774 = vmatpush3.bf16.msra.mxu1 %v10749_v35  ;;  %v10757_v56 = vpack.c.bf16 %v7002_v41, %v7001_v44  ;;  %v6115_v8 = vld [vmem:[#allocation2 + $0x102] sm:$0xff]  ;;  %v6116_v41 = vld [vmem:[#allocation2 + $0x112] sm:$0xff] }
 0x3ac   :  { %v9530_v60 = vpop.f32.mrb[83].mxu0  ;;  %8550 = vmatmul.mubr.f32.gmra.mrb[188].mxu0 %v6048_v55  ;;  %10767 = vmatprep.subr.bf16.mxu1 %v10753_v25 }
 0x3ad   :  { %v12484_v28 = vadd.f32 %v9496_v19, %v7442_v16  ;;  %v9531_v13 = vadd.f32 %v9530_v60, %v9529_v4  ;;  %8554 = vmatprep.mubr.f32.mxu0 %v12370_v22  ;;  %10752 = vmatpush3.bf16.msra.mxu0 %v10749_v35  ;;  %v9612_v0 = vpop.f32.mrb[84].mxu1  ;;  %v6148_v16 = vld [vmem:[#allocation2 + $0x113] sm:$0xff] }
 0x3ae   :  { %10754 = vmatprep.subr.bf16.mxu0 %v10753_v25  ;;  %v9613_v58 = vpop.f32.mrb[85].mxu1  ;;  %8700 = vmatmul.mubr.f32.gmra.mrb[190].mxu1 %v12360_v24  ;;  %v6050_v24 = vld [vmem:[#allocation2 + $0xb0] sm:$0xff] }
 0x3af   :  { %v7657_v15 = vadd.f32 %v9531_v13, %v12362_v59  ;;  %v9532_v43 = vpop.f32.mrb[84].mxu0  ;;  %v9614_v26 = vadd.f32 %v9613_v58, %v9612_v0  ;;  %8704 = vmatprep.mubr.f32.mxu1 %v6146_v12  ;;  %10775 = vmatpush3.bf16.msra.mxu1 %v10753_v25  ;;  %v6149_v0 = vld [vmem:[#allocation2 + $0x123] sm:$0xff] }
 0x3b0   :  { %v9533_v48 = vpop.f32.mrb[85].mxu0  ;;  %8555 = vmatmul.mubr.f32.gmra.mrb[190].mxu0 %v6049_v9  ;;  %10768 = vmatprep.subr.bf16.mxu1 %v10757_v56 }
 0x3b1   :  { %v12489_v22 = vadd.f32 %v9611_v38, %v7657_v15  ;;  %v9534_v34 = vadd.f32 %v9533_v48, %v9532_v43  ;;  %8559 = vmatprep.mubr.f32.mxu0 %v6082_v17  ;;  %10756 = vmatpush3.bf16.msra.mxu0 %v10753_v25  ;;  %v9615_v35 = vpop.f32.mrb[86].mxu1  ;;  %v6150_v17 = vld [vmem:[#allocation2 + $0x133] sm:$0xff] }
 0x3b2   :  { %10758 = vmatprep.subr.bf16.mxu0 %v10757_v56  ;;  %v9616_v33 = vpop.f32.mrb[87].mxu1  ;;  %8705 = vmatmul.mubr.f32.gmra.mrb[192].mxu1 %v6114_v63 }
 0x3b3   :  { %v7662_v59 = vadd.f32 %v9534_v34, %v12375_v32  ;;  %v9535_v3 = vpop.f32.mrb[86].mxu0  ;;  %v9617_v20 = vadd.f32 %v9616_v33, %v9615_v35  ;;  %8709 = vmatprep.mubr.f32.mxu1 %v6147_v21  ;;  %10776 = vmatpush3.bf16.msra.mxu1 %v10757_v56 }
 0x3b4   :  { %v9536_v39 = vpop.f32.mrb[87].mxu0  ;;  %8560 = vmatmul.mubr.f32.gmra.mrb[192].mxu0 %v6050_v24 }
 0x3b5   :  { %v12492_v62 = vadd.f32 %v9614_v26, %v7662_v59  ;;  %v9537_v61 = vadd.f32 %v9536_v39, %v9535_v3  ;;  %8564 = vmatprep.mubr.f32.mxu0 %v12387_v10  ;;  %10760 = vmatpush3.bf16.msra.mxu0 %v10757_v56  ;;  %v9618_v19 = vpop.f32.mrb[88].mxu1 }
 0x3b6   :  { %v9619_v25 = vpop.f32.mrb[89].mxu1  ;;  %8710 = vmatmul.mubr.f32.gmra.mrb[194].mxu1 %v6115_v8 }
 0x3b7   :  { %v7667_v32 = vadd.f32 %v9537_v61, %v12383_v7  ;;  %v9538_v37 = vpop.f32.mrb[88].mxu0  ;;  %v9620_v55 = vadd.f32 %v9619_v25, %v9618_v19  ;;  %8714 = vmatprep.mubr.f32.mxu1 %v6148_v16  ;;  %v6052_v7 = vld [vmem:[#allocation2 + $0x110] sm:$0xff] }
 0x3b8   :  { %v9539_v4 = vpop.f32.mrb[89].mxu0  ;;  %8565 = vmatmul.mubr.f32.gmra.mrb[194].mxu0 %v6051_v18  ;;  %v6152_v25 = vld [vmem:[#allocation2 + $0x153] sm:$0xff] }
 0x3b9   :  { %v12496_v14 = vadd.f32 %v9617_v20, %v7667_v32  ;;  %v9540_v44 = vadd.f32 %v9539_v4, %v9538_v37  ;;  %8569 = vmatprep.mubr.f32.mxu0 %v12396_v50  ;;  %v9621_v10 = vpop.f32.mrb[90].mxu1  ;;  %v6117_v50 = vld [vmem:[#allocation2 + $0x122] sm:$0xff] }
 0x3ba   :  { %v9622_v13 = vpop.f32.mrb[91].mxu1  ;;  %8715 = vmatmul.mubr.f32.gmra.mrb[196].mxu1 %v6116_v41 }
 0x3bb   :  { %v7672_v60 = vadd.f32 %v9540_v44, %v12392_v40  ;;  %v9541_v38 = vpop.f32.mrb[90].mxu0  ;;  %v9623_v15 = vadd.f32 %v9622_v13, %v9621_v10  ;;  %8719 = vmatprep.mubr.f32.mxu1 %v6149_v0  ;;  %v6053_v40 = vld [vmem:[#allocation2 + $0x120] sm:$0xff] }
 0x3bc   :  { %v9542_v56 = vpop.f32.mrb[91].mxu0  ;;  %8570 = vmatmul.mubr.f32.gmra.mrb[196].mxu0 %v6052_v7 }
 0x3bd   :  { %v12500_v43 = vadd.f32 %v9620_v55, %v7672_v60  ;;  %v9543_v9 = vadd.f32 %v9542_v56, %v9541_v38  ;;  %8574 = vmatprep.mubr.f32.mxu0 %v12405_v6  ;;  %v9624_v58 = vpop.f32.mrb[92].mxu1  ;;  %v6118_v6 = vld [vmem:[#allocation2 + $0x132] sm:$0xff] }
 0x3be   :  { %v9625_v26 = vpop.f32.mrb[93].mxu1  ;;  %8720 = vmatmul.mubr.f32.gmra.mrb[198].mxu1 %v6117_v50 }
 0x3bf   :  { %v7677_v12 = vadd.f32 %v9543_v9, %v12401_v31  ;;  %v9544_v48 = vpop.f32.mrb[92].mxu0  ;;  %v9626_v35 = vadd.f32 %v9625_v26, %v9624_v58  ;;  %8724 = vmatprep.mubr.f32.mxu1 %v6150_v17  ;;  %v6054_v31 = vld [vmem:[#allocation2 + $0x130] sm:$0xff]  ;;  %v6057_v9 = vld [vmem:[#allocation2 + $0x160] sm:$0xff] }
 0x3c0   :  { %v9545_v34 = vpop.f32.mrb[93].mxu0  ;;  %8575 = vmatmul.mubr.f32.gmra.mrb[198].mxu0 %v6053_v40  ;;  %v6154_v58 = vld [vmem:[#allocation2 + $0x173] sm:$0xff] }
 0x3c1   :  { %v12504_v63 = vadd.f32 %v9623_v15, %v7677_v12  ;;  %v9546_v59 = vadd.f32 %v9545_v34, %v9544_v48  ;;  %8579 = vmatprep.mubr.f32.mxu0 %v12414_v42  ;;  %v9627_v3 = vpop.f32.mrb[94].mxu1  ;;  %v6119_v42 = vld [vmem:[#allocation2 + $0x142] sm:$0xff]  ;;  %v6090_v48 = vld [vmem:[#allocation2 + $0x171] sm:$0xff] }
 0x3c2   :  { %v9628_v21 = vpop.f32.mrb[95].mxu1  ;;  %8725 = vmatmul.mubr.f32.gmra.mrb[200].mxu1 %v6118_v6  ;;  %v6058_v34 = vld [vmem:[#allocation2 + $0x170] sm:$0xff]  ;;  %v6171_v6 = vld [vmem:[#allocation2 + $0x44] sm:$0xff] }
 0x3c3   :  { %v7682_v24 = vadd.f32 %v9546_v59, %v12410_v11  ;;  %v9547_v33 = vpop.f32.mrb[94].mxu0  ;;  %v9629_v20 = vadd.f32 %v9628_v21, %v9627_v3  ;;  %8729 = vmatprep.mubr.f32.mxu1 %v12424_v29  ;;  %v6055_v11 = vld [vmem:[#allocation2 + $0x140] sm:$0xff]  ;;  %v6180_v21 = vld [vmem:[#allocation2 + $0x114] sm:$0xff] }
 0x3c4   :  { %v9548_v39 = vpop.f32.mrb[95].mxu0  ;;  %8580 = vmatmul.mubr.f32.gmra.mrb[200].mxu0 %v6054_v31  ;;  %v6179_v59 = vld [vmem:[#allocation2 + $0x104] sm:$0xff] }
 0x3c5   :  { %v12509_v61 = vadd.f32 %v9626_v35, %v7682_v24  ;;  %v9549_v19 = vadd.f32 %v9548_v39, %v9547_v33  ;;  %8584 = vmatprep.mubr.f32.mxu0 %v12427_v57  ;;  %v9630_v8 = vpop.f32.mrb[96].mxu1  ;;  %v6120_v57 = vld [vmem:[#allocation2 + $0x152] sm:$0xff] }
 0x3c6   :  { %v9631_v18 = vpop.f32.mrb[97].mxu1  ;;  %8730 = vmatmul.mubr.f32.gmra.mrb[202].mxu1 %v6119_v42 }
 0x3c7   :  { %v7687_v32 = vadd.f32 %v9549_v19, %v12421_v51  ;;  %v9550_v37 = vpop.f32.mrb[96].mxu0  ;;  %v9632_v4 = vadd.f32 %v9631_v18, %v9630_v8  ;;  %8734 = vmatprep.mubr.f32.mxu1 %v6152_v25  ;;  %v6056_v51 = vld [vmem:[#allocation2 + $0x150] sm:$0xff]  ;;  %v6181_v8 = vld [vmem:[#allocation2 + $0x124] sm:$0xff] }
 0x3c8   :  { %v9551_v16 = vpop.f32.mrb[97].mxu0  ;;  %8585 = vmatmul.mubr.f32.gmra.mrb[202].mxu0 %v6055_v11 }
 0x3c9   :  { %v12513_v55 = vadd.f32 %v9629_v20, %v7687_v32  ;;  %v9552_v29 = vadd.f32 %v9551_v16, %v9550_v37  ;;  %8589 = vmatprep.mubr.f32.mxu0 %v12436_v52  ;;  %v9633_v44 = vpop.f32.mrb[98].mxu1  ;;  %v6173_v37 = vld [vmem:[#allocation2 + $0x64] sm:$0xff]  ;;  %v6182_v16 = vld [vmem:[#allocation2 + $0x134] sm:$0xff] }
 0x3ca   :  { %v9634_v60 = vpop.f32.mrb[99].mxu1  ;;  %8735 = vmatmul.mubr.f32.gmra.mrb[204].mxu1 %v6120_v57 }
 0x3cb   :  { %v7692_v10 = vadd.f32 %v9552_v29, %v12432_v46  ;;  %v9553_v41 = vpop.f32.mrb[98].mxu0  ;;  %v9635_v7 = vadd.f32 %v9634_v60, %v9633_v44  ;;  %8739 = vmatprep.mubr.f32.mxu1 %v12450_v23 }
 0x3cc   :  { %v9554_v38 = vpop.f32.mrb[99].mxu0  ;;  %8590 = vmatmul.mubr.f32.gmra.mrb[204].mxu0 %v6056_v51 }
 0x3cd   :  { %v12518_v13 = vadd.f32 %v9632_v4, %v7692_v10  ;;  %v9555_v0 = vadd.f32 %v9554_v38, %v9553_v41  ;;  %8594 = vmatprep.mubr.f32.mxu0 %v12448_v27  ;;  %v9636_v56 = vpop.f32.mrb[100].mxu1  ;;  %v6122_v27 = vld [vmem:[#allocation2 + $0x172] sm:$0xff]  ;;  %v6175_v41 = vld [vmem:[#allocation2 + $0x84] sm:$0xff] }
 0x3ce   :  { %v9637_v46 = vpop.f32.mrb[101].mxu1  ;;  %8740 = vmatmul.mubr.f32.gmra.mrb[206].mxu1 %v12442_v5 }
 0x3cf   :  { %v7697_v52 = vadd.f32 %v9555_v0, %v12445_v49  ;;  %v9556_v15 = vpop.f32.mrb[100].mxu0  ;;  %v9638_v12 = vadd.f32 %v9637_v46, %v9636_v56  ;;  %8744 = vmatprep.mubr.f32.mxu1 %v6154_v58  ;;  %v6177_v46 = vld [vmem:[#allocation2 + $0xa4] sm:$0xff] }
 0x3d0   :  { %v9557_v50 = vpop.f32.mrb[101].mxu0  ;;  %8595 = vmatmul.mubr.f32.gmra.mrb[206].mxu0 %v6057_v9 }
 0x3d1   :  { %v12523_v23 = vadd.f32 %v9635_v7, %v7697_v52  ;;  %v9558_v40 = vadd.f32 %v9557_v50, %v9556_v15  ;;  %8599 = vmatprep.mubr.f32.mxu0 %v6090_v48  ;;  %v9639_v26 = vpop.f32.mrb[102].mxu1  ;;  %v6184_v7 = vld [vmem:[#allocation2 + $0x154] sm:$0xff] }
 0x3d2   :  { %v9640_v35 = vpop.f32.mrb[103].mxu1  ;;  %8745 = vmatmul.mubr.f32.gmra.mrb[208].mxu1 %v6122_v27 }
 0x3d3   :  { %v7702_v17 = vadd.f32 %v9558_v40, %v12455_v53  ;;  %v9559_v49 = vpop.f32.mrb[102].mxu0  ;;  %v9641_v3 = vadd.f32 %v9640_v35, %v9639_v26  ;;  %10213 = vmatprep.mubr.f32.mxu1 %v6179_v59  ;;  %v6172_v53 = vld [vmem:[#allocation2 + $0x54] sm:$0xff] }
 0x3d4   :  { %v9560_v5 = vpop.f32.mrb[103].mxu0  ;;  %8600 = vmatmul.mubr.f32.gmra.mrb[208].mxu0 %v6058_v34 }
 0x3d5   :  { %v12526_v24 = vadd.f32 %v9638_v12, %v7702_v17  ;;  %v9561_v33 = vadd.f32 %v9560_v5, %v9559_v49  ;;  %10201 = vmatprep.mubr.f32.mxu0 %v6171_v6  ;;  %v9642_v31 = vpop.f32.mrb[104].mxu1  ;;  %v6186_v12 = vld [vmem:[#allocation2 + $0x174] sm:$0xff] }
 0x3d6   :  { %v9643_v19 = vpop.f32.mrb[105].mxu1  ;;  %10214 = vmatmul.mubr.f32.vlgmr.msra.gmra.mrb[210].mxu1 %v6180_v21 }
 0x3d7   :  { %v7707_v39 = vadd.f32 %v9561_v33, %v12459_v2  ;;  %v9562_v20 = vpop.f32.mrb[104].mxu0  ;;  %v9644_v32 = vadd.f32 %v9643_v19, %v9642_v31  ;;  %10216 = vmatprep.mubr.f32.mxu1 %v6181_v8  ;;  %v6174_v2 = vld [vmem:[#allocation2 + $0x74] sm:$0xff] }
 0x3d8   :  { %v9563_v42 = vpop.f32.mrb[105].mxu0  ;;  %10202 = vmatmul.mubr.f32.vlgmr.msra.gmra.mrb[210].mxu0 %v6172_v53 }
 0x3d9   :  { %v12529_v11 = vadd.f32 %v9641_v3, %v7707_v39  ;;  %v9564_v18 = vadd.f32 %v9563_v42, %v9562_v20  ;;  %10204 = vmatprep.mubr.f32.mxu0 %v6173_v37  ;;  %v9645_v25 = vpop.f32.mrb[106].mxu1 }
 0x3da   :  { %v9646_v44 = vpop.f32.mrb[107].mxu1  ;;  %10217 = vmatmul.mubr.f32.gmra.mrb[212].mxu1 %v6182_v16 }
 0x3db   :  { %v7712_v4 = vadd.f32 %v9564_v18, %v12465_v47  ;;  %v9565_v29 = vpop.f32.mrb[106].mxu0  ;;  %v9647_v10 = vadd.f32 %v9646_v44, %v9645_v25  ;;  %10219 = vmatprep.mubr.f32.mxu1 %v12417_v30  ;;  %v6176_v47 = vld [vmem:[#allocation2 + $0x94] sm:$0xff] }
 0x3dc   :  { %v9566_v57 = vpop.f32.mrb[107].mxu0  ;;  %10205 = vmatmul.mubr.f32.gmra.mrb[212].mxu0 %v6174_v2 }
 0x3dd   :  { %v12533_v51 = vadd.f32 %v9644_v32, %v7712_v4  ;;  %v9567_v60 = vadd.f32 %v9566_v57, %v9565_v29  ;;  %10207 = vmatprep.mubr.f32.mxu0 %v6175_v41  ;;  %v9648_v38 = vpop.f32.mrb[108].mxu1 }
 0x3de   :  { %v9649_v52 = vpop.f32.mrb[109].mxu1  ;;  %10220 = vmatmul.mubr.f32.gmra.mrb[214].mxu1 %v6184_v7 }
 0x3df   :  { %v7717_v0 = vadd.f32 %v9567_v60, %v12469_v36  ;;  %v9568_v56 = vpop.f32.mrb[108].mxu0  ;;  %v9650_v9 = vadd.f32 %v9649_v52, %v9648_v38  ;;  %10222 = vmatprep.mubr.f32.mxu1 %v12439_v54  ;;  %v6178_v36 = vld [vmem:[#allocation2 + $0xb4] sm:$0xff] }
 0x3e0   :  { %v9569_v15 = vpop.f32.mrb[109].mxu0  ;;  %10208 = vmatmul.mubr.f32.gmra.mrb[214].mxu0 %v6176_v47 }
 0x3e1   :  { %v12537_v58 = vadd.f32 %v9647_v10, %v7717_v0  ;;  %v9570_v30 = vadd.f32 %v9569_v15, %v9568_v56  ;;  %10210 = vmatprep.mubr.f32.mxu0 %v6177_v46  ;;  %v9651_v50 = vpop.f32.mrb[110].mxu1 }
 0x3e2   :  { %v9652_v26 = vpop.f32.mrb[111].mxu1  ;;  %10223 = vmatmul.mubr.f32.gmra.mrb[216].mxu1 %v6186_v12 }
 0x3e3   :  { %v7722_v48 = vadd.f32 %v9570_v30, %v12474_v1  ;;  %v9571_v40 = vpop.f32.mrb[110].mxu0  ;;  %v9653_v17 = vadd.f32 %v9652_v26, %v9651_v50 }
 0x3e4   :  { %v9572_v27 = vpop.f32.mrb[111].mxu0  ;;  %10211 = vmatmul.mubr.f32.gmra.mrb[216].mxu0 %v6178_v36 }
 0x3e5   :  { %v12540_v49 = vadd.f32 %v9650_v9, %v7722_v48  ;;  %v9573_v34 = vadd.f32 %v9572_v27, %v9571_v40  ;;  %v9654_v35 = vpop.f32.mrb[112].mxu1 }
 0x3e6   :  { %v9655_v5 = vpop.f32.mrb[113].mxu1 }
 0x3e7   :  { %v7727_v54 = vadd.f32 %v9573_v34, %v12479_v45  ;;  %v9574_v59 = vpop.f32.mrb[112].mxu0  ;;  %v9656_v6 = vadd.f32 %v9655_v5, %v9654_v35 }
 0x3e8   :  { %v9575_v3 = vpop.f32.mrb[113].mxu0 }
 0x3e9   :  { %v12543_v33 = vadd.f32 %v9653_v17, %v7727_v54  ;;  %v9576_v1 = vadd.f32 %v9575_v3, %v9574_v59  ;;  %v9769_v31 = vpop.f32.mrb[114].mxu1 }
 0x3ea   :  { %v9770_v20 = vpop.f32.mrb[115].mxu1 }
 0x3eb   :  { %v7732_v21 = vadd.f32 %v9576_v1, %v12484_v28  ;;  %v9689_v39 = vpop.f32.mrb[114].mxu0  ;;  %v9771_v19 = vadd.f32 %v9770_v20, %v9769_v31 }
 0x3ec   :  { %v9690_v53 = vpop.f32.mrb[115].mxu0 }
 0x3ed   :  { %v12546_v8 = vadd.f32 %v9656_v6, %v7732_v21  ;;  %v9691_v42 = vadd.f32 %v9690_v53, %v9689_v39  ;;  %v9772_v32 = vpop.f32.mrb[116].mxu1 }
 0x3ee   :  { %v9773_v18 = vpop.f32.mrb[117].mxu1 }
 0x3ef   :  { %v7947_v45 = vadd.f32 %v9691_v42, %v12489_v22  ;;  %v9692_v37 = vpop.f32.mrb[116].mxu0  ;;  %v9774_v16 = vadd.f32 %v9773_v18, %v9772_v32 }
 0x3f0   :  { %v9693_v25 = vpop.f32.mrb[117].mxu0 }
 0x3f1   :  { %v12549_v4 = vadd.f32 %v9771_v19, %v7947_v45  ;;  %v9694_v29 = vadd.f32 %v9693_v25, %v9692_v37  ;;  %v9775_v2 = vpop.f32.mrb[118].mxu1 }
 0x3f2   :  { %v9776_v57 = vpop.f32.mrb[119].mxu1 }
 0x3f3   :  { %v7952_v28 = vadd.f32 %v9694_v29, %v12492_v62  ;;  %v9695_v44 = vpop.f32.mrb[118].mxu0  ;;  %v9777_v41 = vadd.f32 %v9776_v57, %v9775_v2 }
 0x3f4   :  { %v9696_v10 = vpop.f32.mrb[119].mxu0 }
 0x3f5   :  { %v12552_v60 = vadd.f32 %v9774_v16, %v7952_v28  ;;  %v9697_v38 = vadd.f32 %v9696_v10, %v9695_v44  ;;  %v9778_v7 = vpop.f32.mrb[120].mxu1 }
 0x3f6   :  { %v9779_v56 = vpop.f32.mrb[121].mxu1 }
 0x3f7   :  { %v7957_v22 = vadd.f32 %v9697_v38, %v12496_v14  ;;  %v9698_v0 = vpop.f32.mrb[120].mxu0  ;;  %v9780_v52 = vadd.f32 %v9779_v56, %v9778_v7 }
 0x3f8   :  { %v9699_v47 = vpop.f32.mrb[121].mxu0 }
 0x3f9   :  { %v12555_v15 = vadd.f32 %v9777_v41, %v7957_v22  ;;  %v9700_v9 = vadd.f32 %v9699_v47, %v9698_v0  ;;  %v9781_v46 = vpop.f32.mrb[122].mxu1 }
 0x3fa   :  { %v9782_v50 = vpop.f32.mrb[123].mxu1 }
 0x3fb   :  { %v7962_v62 = vadd.f32 %v9700_v9, %v12500_v43  ;;  %v9701_v30 = vpop.f32.mrb[122].mxu0  ;;  %v9783_v48 = vadd.f32 %v9782_v50, %v9781_v46 }
 0x3fc   :  { %v9702_v12 = vpop.f32.mrb[123].mxu0 }
 0x3fd   :  { %v12558_v40 = vadd.f32 %v9780_v52, %v7962_v62  ;;  %v9703_v36 = vadd.f32 %v9702_v12, %v9701_v30  ;;  %v9784_v26 = vpop.f32.mrb[124].mxu1 }
 0x3fe   :  { %v9785_v17 = vpop.f32.mrb[125].mxu1 }
 0x3ff   :  { %v7967_v14 = vadd.f32 %v9703_v36, %v12504_v63  ;;  %v9704_v27 = vpop.f32.mrb[124].mxu0  ;;  %v9786_v35 = vadd.f32 %v9785_v17, %v9784_v26 }
 0x400   :  { %v9705_v34 = vpop.f32.mrb[125].mxu0 }
 0x401   :  { %v12561_v54 = vadd.f32 %v9783_v48, %v7967_v14  ;;  %v9706_v59 = vadd.f32 %v9705_v34, %v9704_v27  ;;  %v9787_v5 = vpop.f32.mrb[126].mxu1 }
 0x402   :  { %v9788_v6 = vpop.f32.mrb[127].mxu1 }
 0x403   :  { %v7972_v43 = vadd.f32 %v9706_v59, %v12509_v61  ;;  %v9707_v3 = vpop.f32.mrb[126].mxu0  ;;  %v9789_v31 = vadd.f32 %v9788_v6, %v9787_v5 }
 0x404   :  { %v9708_v1 = vpop.f32.mrb[127].mxu0 }
 0x405   :  { %v12564_v21 = vadd.f32 %v9786_v35, %v7972_v43  ;;  %v9709_v39 = vadd.f32 %v9708_v1, %v9707_v3  ;;  %v9790_v20 = vpop.f32.mrb[128].mxu1 }
 0x406   :  { %v9791_v19 = vpop.f32.mrb[129].mxu1 }
 0x407   :  { %v7977_v63 = vadd.f32 %v9709_v39, %v12513_v55  ;;  %v9710_v53 = vpop.f32.mrb[128].mxu0  ;;  %v9792_v32 = vadd.f32 %v9791_v19, %v9790_v20 }
 0x408   :  { %v9711_v42 = vpop.f32.mrb[129].mxu0 }
 0x409   :  { %v12567_v45 = vadd.f32 %v9789_v31, %v7977_v63  ;;  %v9712_v37 = vadd.f32 %v9711_v42, %v9710_v53  ;;  %v9793_v18 = vpop.f32.mrb[130].mxu1 }
 0x40a   :  { %v9794_v16 = vpop.f32.mrb[131].mxu1 }
 0x40b   :  { %v7982_v61 = vadd.f32 %v9712_v37, %v12518_v13  ;;  %v9713_v25 = vpop.f32.mrb[130].mxu0  ;;  %v9795_v2 = vadd.f32 %v9794_v16, %v9793_v18 }
 0x40c   :  { %v9714_v29 = vpop.f32.mrb[131].mxu0 }
 0x40d   :  { %v12570_v28 = vadd.f32 %v9792_v32, %v7982_v61  ;;  %v9715_v44 = vadd.f32 %v9714_v29, %v9713_v25  ;;  %v9796_v57 = vpop.f32.mrb[132].mxu1 }
 0x40e   :  { %v9797_v41 = vpop.f32.mrb[133].mxu1 }
 0x40f   :  { %v7987_v55 = vadd.f32 %v9715_v44, %v12523_v23  ;;  %v9716_v10 = vpop.f32.mrb[132].mxu0  ;;  %v9798_v7 = vadd.f32 %v9797_v41, %v9796_v57 }
 0x410   :  { %v9717_v38 = vpop.f32.mrb[133].mxu0 }
 0x411   :  { %v12573_v22 = vadd.f32 %v9795_v2, %v7987_v55  ;;  %v9718_v0 = vadd.f32 %v9717_v38, %v9716_v10  ;;  %v9799_v56 = vpop.f32.mrb[134].mxu1 }
 0x412   :  { %v9800_v52 = vpop.f32.mrb[135].mxu1 }
 0x413   :  { %v7992_v13 = vadd.f32 %v9718_v0, %v12526_v24  ;;  %v9719_v47 = vpop.f32.mrb[134].mxu0  ;;  %v9801_v46 = vadd.f32 %v9800_v52, %v9799_v56 }
 0x414   :  { %v9720_v9 = vpop.f32.mrb[135].mxu0 }
 0x415   :  { %v12576_v62 = vadd.f32 %v9798_v7, %v7992_v13  ;;  %v9721_v30 = vadd.f32 %v9720_v9, %v9719_v47  ;;  %v9802_v50 = vpop.f32.mrb[136].mxu1 }
 0x416   :  { %v9803_v48 = vpop.f32.mrb[137].mxu1 }
 0x417   :  { %v7997_v23 = vadd.f32 %v9721_v30, %v12529_v11  ;;  %v9722_v12 = vpop.f32.mrb[136].mxu0  ;;  %v9804_v26 = vadd.f32 %v9803_v48, %v9802_v50 }
 0x418   :  { %v9723_v36 = vpop.f32.mrb[137].mxu0 }
 0x419   :  { %v12579_v14 = vadd.f32 %v9801_v46, %v7997_v23  ;;  %v9724_v27 = vadd.f32 %v9723_v36, %v9722_v12  ;;  %v9805_v17 = vpop.f32.mrb[138].mxu1 }
 0x41a   :  { %v9806_v35 = vpop.f32.mrb[139].mxu1 }
 0x41b   :  { %v8002_v24 = vadd.f32 %v9724_v27, %v12533_v51  ;;  %v9725_v34 = vpop.f32.mrb[138].mxu0  ;;  %v9807_v5 = vadd.f32 %v9806_v35, %v9805_v17 }
 0x41c   :  { %v9726_v59 = vpop.f32.mrb[139].mxu0 }
 0x41d   :  { %v12582_v43 = vadd.f32 %v9804_v26, %v8002_v24  ;;  %v9727_v3 = vadd.f32 %v9726_v59, %v9725_v34  ;;  %v9808_v6 = vpop.f32.mrb[140].mxu1 }
 0x41e   :  { %v9809_v31 = vpop.f32.mrb[141].mxu1 }
 0x41f   :  { %v8007_v11 = vadd.f32 %v9727_v3, %v12537_v58  ;;  %v9728_v1 = vpop.f32.mrb[140].mxu0  ;;  %v9810_v20 = vadd.f32 %v9809_v31, %v9808_v6 }
 0x420   :  { %v9729_v39 = vpop.f32.mrb[141].mxu0 }
 0x421   :  { %v12585_v63 = vadd.f32 %v9807_v5, %v8007_v11  ;;  %v9730_v53 = vadd.f32 %v9729_v39, %v9728_v1  ;;  %v9811_v19 = vpop.f32.mrb[142].mxu1 }
 0x422   :  { %v9812_v32 = vpop.f32.mrb[143].mxu1 }
 0x423   :  { %v8012_v51 = vadd.f32 %v9730_v53, %v12540_v49  ;;  %v9731_v42 = vpop.f32.mrb[142].mxu0  ;;  %v9813_v18 = vadd.f32 %v9812_v32, %v9811_v19 }
 0x424   :  { %v9732_v37 = vpop.f32.mrb[143].mxu0 }
 0x425   :  { %v12588_v61 = vadd.f32 %v9810_v20, %v8012_v51  ;;  %v9733_v25 = vadd.f32 %v9732_v37, %v9731_v42  ;;  %v9814_v16 = vpop.f32.mrb[144].mxu1 }
 0x426   :  { %v9815_v2 = vpop.f32.mrb[145].mxu1 }
 0x427   :  { %v8017_v58 = vadd.f32 %v9733_v25, %v12543_v33  ;;  %v9734_v29 = vpop.f32.mrb[144].mxu0  ;;  %v9816_v57 = vadd.f32 %v9815_v2, %v9814_v16 }
 0x428   :  { %v9735_v44 = vpop.f32.mrb[145].mxu0 }
 0x429   :  { %v12591_v55 = vadd.f32 %v9813_v18, %v8017_v58  ;;  %v9736_v10 = vadd.f32 %v9735_v44, %v9734_v29  ;;  %v9929_v41 = vpop.f32.mrb[146].mxu1 }
 0x42a   :  { %v9930_v7 = vpop.f32.mrb[147].mxu1 }
 0x42b   :  { %v8022_v49 = vadd.f32 %v9736_v10, %v12546_v8  ;;  %v9849_v38 = vpop.f32.mrb[146].mxu0  ;;  %v9931_v56 = vadd.f32 %v9930_v7, %v9929_v41 }
 0x42c   :  { %v9850_v0 = vpop.f32.mrb[147].mxu0 }
 0x42d   :  { %v12594_v13 = vadd.f32 %v9816_v57, %v8022_v49  ;;  %v9851_v47 = vadd.f32 %v9850_v0, %v9849_v38  ;;  %v9932_v52 = vpop.f32.mrb[148].mxu1 }
 0x42e   :  { %v9933_v46 = vpop.f32.mrb[149].mxu1 }
 0x42f   :  { %v8237_v33 = vadd.f32 %v9851_v47, %v12549_v4  ;;  %v9852_v9 = vpop.f32.mrb[148].mxu0  ;;  %v9934_v50 = vadd.f32 %v9933_v46, %v9932_v52 }
 0x430   :  { %v9853_v30 = vpop.f32.mrb[149].mxu0 }
 0x431   :  { %v12597_v23 = vadd.f32 %v9931_v56, %v8237_v33  ;;  %v9854_v12 = vadd.f32 %v9853_v30, %v9852_v9  ;;  %v9935_v48 = vpop.f32.mrb[150].mxu1 }
 0x432   :  { %v9936_v26 = vpop.f32.mrb[151].mxu1 }
 0x433   :  { %v8242_v8 = vadd.f32 %v9854_v12, %v12552_v60  ;;  %v9855_v36 = vpop.f32.mrb[150].mxu0  ;;  %v9937_v17 = vadd.f32 %v9936_v26, %v9935_v48 }
 0x434   :  { %v9856_v27 = vpop.f32.mrb[151].mxu0 }
 0x435   :  { %v12600_v24 = vadd.f32 %v9934_v50, %v8242_v8  ;;  %v9857_v34 = vadd.f32 %v9856_v27, %v9855_v36  ;;  %v9938_v35 = vpop.f32.mrb[152].mxu1 }
 0x436   :  { %v9939_v5 = vpop.f32.mrb[153].mxu1 }
 0x437   :  { %v8247_v4 = vadd.f32 %v9857_v34, %v12555_v15  ;;  %v9858_v59 = vpop.f32.mrb[152].mxu0  ;;  %v9940_v6 = vadd.f32 %v9939_v5, %v9938_v35 }
 0x438   :  { %v9859_v3 = vpop.f32.mrb[153].mxu0 }
 0x439   :  { %v12603_v11 = vadd.f32 %v9937_v17, %v8247_v4  ;;  %v9860_v1 = vadd.f32 %v9859_v3, %v9858_v59  ;;  %v9941_v31 = vpop.f32.mrb[154].mxu1 }
 0x43a   :  { %v9942_v20 = vpop.f32.mrb[155].mxu1 }
 0x43b   :  { %v8252_v60 = vadd.f32 %v9860_v1, %v12558_v40  ;;  %v9861_v39 = vpop.f32.mrb[154].mxu0  ;;  %v9943_v19 = vadd.f32 %v9942_v20, %v9941_v31 }
 0x43c   :  { %v9862_v53 = vpop.f32.mrb[155].mxu0 }
 0x43d   :  { %v12606_v51 = vadd.f32 %v9940_v6, %v8252_v60  ;;  %v9863_v42 = vadd.f32 %v9862_v53, %v9861_v39  ;;  %v9944_v32 = vpop.f32.mrb[156].mxu1 }
 0x43e   :  { %v9945_v18 = vpop.f32.mrb[157].mxu1 }
 0x43f   :  { %v8257_v15 = vadd.f32 %v9863_v42, %v12561_v54  ;;  %v9864_v37 = vpop.f32.mrb[156].mxu0  ;;  %v9946_v16 = vadd.f32 %v9945_v18, %v9944_v32 }
 0x440   :  { %v9865_v25 = vpop.f32.mrb[157].mxu0 }
 0x441   :  { %v12609_v58 = vadd.f32 %v9943_v19, %v8257_v15  ;;  %v9866_v29 = vadd.f32 %v9865_v25, %v9864_v37  ;;  %v9947_v2 = vpop.f32.mrb[158].mxu1 }
 0x442   :  { %v9948_v57 = vpop.f32.mrb[159].mxu1 }
 0x443   :  { %v8262_v40 = vadd.f32 %v9866_v29, %v12564_v21  ;;  %v9867_v44 = vpop.f32.mrb[158].mxu0  ;;  %v9949_v41 = vadd.f32 %v9948_v57, %v9947_v2 }
 0x444   :  { %v9868_v10 = vpop.f32.mrb[159].mxu0 }
 0x445   :  { %v12612_v49 = vadd.f32 %v9946_v16, %v8262_v40  ;;  %v9869_v38 = vadd.f32 %v9868_v10, %v9867_v44  ;;  %v9950_v7 = vpop.f32.mrb[160].mxu1 }
 0x446   :  { %v9951_v56 = vpop.f32.mrb[161].mxu1 }
 0x447   :  { %v8267_v54 = vadd.f32 %v9869_v38, %v12567_v45  ;;  %v9870_v0 = vpop.f32.mrb[160].mxu0  ;;  %v9952_v52 = vadd.f32 %v9951_v56, %v9950_v7 }
 0x448   :  { %v9871_v47 = vpop.f32.mrb[161].mxu0 }
 0x449   :  { %v12615_v33 = vadd.f32 %v9949_v41, %v8267_v54  ;;  %v9872_v9 = vadd.f32 %v9871_v47, %v9870_v0  ;;  %v9953_v46 = vpop.f32.mrb[162].mxu1 }
 0x44a   :  { %v9954_v50 = vpop.f32.mrb[163].mxu1 }
 0x44b   :  { %v8272_v21 = vadd.f32 %v9872_v9, %v12570_v28  ;;  %v9873_v30 = vpop.f32.mrb[162].mxu0  ;;  %v9955_v48 = vadd.f32 %v9954_v50, %v9953_v46 }
 0x44c   :  { %v9874_v12 = vpop.f32.mrb[163].mxu0 }
 0x44d   :  { %v12618_v8 = vadd.f32 %v9952_v52, %v8272_v21  ;;  %v9875_v36 = vadd.f32 %v9874_v12, %v9873_v30  ;;  %v9956_v26 = vpop.f32.mrb[164].mxu1 }
 0x44e   :  { %v9957_v17 = vpop.f32.mrb[165].mxu1 }
 0x44f   :  { %v8277_v45 = vadd.f32 %v9875_v36, %v12573_v22  ;;  %v9876_v27 = vpop.f32.mrb[164].mxu0  ;;  %v9958_v35 = vadd.f32 %v9957_v17, %v9956_v26 }
 0x450   :  { %v9877_v34 = vpop.f32.mrb[165].mxu0 }
 0x451   :  { %v12621_v4 = vadd.f32 %v9955_v48, %v8277_v45  ;;  %v9878_v59 = vadd.f32 %v9877_v34, %v9876_v27  ;;  %v9959_v5 = vpop.f32.mrb[166].mxu1 }
 0x452   :  { %v9960_v6 = vpop.f32.mrb[167].mxu1 }
 0x453   :  { %v8282_v28 = vadd.f32 %v9878_v59, %v12576_v62  ;;  %v9879_v3 = vpop.f32.mrb[166].mxu0  ;;  %v9961_v31 = vadd.f32 %v9960_v6, %v9959_v5 }
 0x454   :  { %v9880_v1 = vpop.f32.mrb[167].mxu0 }
 0x455   :  { %v12624_v60 = vadd.f32 %v9958_v35, %v8282_v28  ;;  %v9881_v39 = vadd.f32 %v9880_v1, %v9879_v3  ;;  %v9962_v20 = vpop.f32.mrb[168].mxu1 }
 0x456   :  { %v9963_v19 = vpop.f32.mrb[169].mxu1 }
 0x457   :  { %v8287_v22 = vadd.f32 %v9881_v39, %v12579_v14  ;;  %v9882_v53 = vpop.f32.mrb[168].mxu0  ;;  %v9964_v32 = vadd.f32 %v9963_v19, %v9962_v20 }
 0x458   :  { %v9883_v42 = vpop.f32.mrb[169].mxu0 }
 0x459   :  { %v12627_v15 = vadd.f32 %v9961_v31, %v8287_v22  ;;  %v9884_v37 = vadd.f32 %v9883_v42, %v9882_v53  ;;  %v9965_v18 = vpop.f32.mrb[170].mxu1 }
 0x45a   :  { %v9966_v16 = vpop.f32.mrb[171].mxu1 }
 0x45b   :  { %v8292_v62 = vadd.f32 %v9884_v37, %v12582_v43  ;;  %v9885_v25 = vpop.f32.mrb[170].mxu0  ;;  %v9967_v2 = vadd.f32 %v9966_v16, %v9965_v18 }
 0x45c   :  { %v9886_v29 = vpop.f32.mrb[171].mxu0 }
 0x45d   :  { %v12630_v40 = vadd.f32 %v9964_v32, %v8292_v62  ;;  %v9887_v44 = vadd.f32 %v9886_v29, %v9885_v25  ;;  %v9968_v57 = vpop.f32.mrb[172].mxu1 }
 0x45e   :  { %v9969_v41 = vpop.f32.mrb[173].mxu1 }
 0x45f   :  { %v8297_v14 = vadd.f32 %v9887_v44, %v12585_v63  ;;  %v9888_v10 = vpop.f32.mrb[172].mxu0  ;;  %v9970_v7 = vadd.f32 %v9969_v41, %v9968_v57 }
 0x460   :  { %v9889_v38 = vpop.f32.mrb[173].mxu0 }
 0x461   :  { %v12633_v54 = vadd.f32 %v9967_v2, %v8297_v14  ;;  %v9890_v0 = vadd.f32 %v9889_v38, %v9888_v10  ;;  %v9971_v56 = vpop.f32.mrb[174].mxu1 }
 0x462   :  { %v9972_v52 = vpop.f32.mrb[175].mxu1 }
 0x463   :  { %v8302_v43 = vadd.f32 %v9890_v0, %v12588_v61  ;;  %v9891_v47 = vpop.f32.mrb[174].mxu0  ;;  %v9973_v46 = vadd.f32 %v9972_v52, %v9971_v56 }
 0x464   :  { %v9892_v9 = vpop.f32.mrb[175].mxu0 }
 0x465   :  { %v12636_v21 = vadd.f32 %v9970_v7, %v8302_v43  ;;  %v9893_v30 = vadd.f32 %v9892_v9, %v9891_v47  ;;  %v9974_v50 = vpop.f32.mrb[176].mxu1 }
 0x466   :  { %v9975_v48 = vpop.f32.mrb[177].mxu1 }
 0x467   :  { %v8307_v63 = vadd.f32 %v9893_v30, %v12591_v55  ;;  %v9894_v12 = vpop.f32.mrb[176].mxu0  ;;  %v9976_v26 = vadd.f32 %v9975_v48, %v9974_v50 }
 0x468   :  { %v9895_v36 = vpop.f32.mrb[177].mxu0 }
 0x469   :  { %v12639_v45 = vadd.f32 %v9973_v46, %v8307_v63  ;;  %v9896_v27 = vadd.f32 %v9895_v36, %v9894_v12  ;;  %v10089_v17 = vpop.f32.mrb[178].mxu1 }
 0x46a   :  { %v10090_v35 = vpop.f32.mrb[179].mxu1 }
 0x46b   :  { %v8312_v61 = vadd.f32 %v9896_v27, %v12594_v13  ;;  %v10009_v34 = vpop.f32.mrb[178].mxu0  ;;  %v10091_v5 = vadd.f32 %v10090_v35, %v10089_v17 }
 0x46c   :  { %v10010_v59 = vpop.f32.mrb[179].mxu0 }
 0x46d   :  { %v12642_v28 = vadd.f32 %v9976_v26, %v8312_v61  ;;  %v10011_v3 = vadd.f32 %v10010_v59, %v10009_v34  ;;  %v10092_v6 = vpop.f32.mrb[180].mxu1 }
 0x46e   :  { %v10093_v31 = vpop.f32.mrb[181].mxu1 }
 0x46f   :  { %v8527_v55 = vadd.f32 %v10011_v3, %v12597_v23  ;;  %v10012_v1 = vpop.f32.mrb[180].mxu0  ;;  %v10094_v20 = vadd.f32 %v10093_v31, %v10092_v6 }
 0x470   :  { %v10013_v39 = vpop.f32.mrb[181].mxu0 }
 0x471   :  { %v10014_v22 = vadd.f32 %v10013_v39, %v10012_v1  ;;  %v12645_v53 = vadd.f32 %v10091_v5, %v8527_v55  ;;  %v10095_v19 = vpop.f32.mrb[182].mxu1 }
 0x472   :  { %v10096_v32 = vpop.f32.mrb[183].mxu1 }
 0x473   :  { %v8532_v13 = vadd.f32 %v10014_v22, %v12600_v24  ;;  %v10015_v42 = vpop.f32.mrb[182].mxu0  ;;  %v10097_v18 = vadd.f32 %v10096_v32, %v10095_v19 }
 0x474   :  { %v10016_v37 = vpop.f32.mrb[183].mxu0 }
 0x475   :  { %v10017_v62 = vadd.f32 %v10016_v37, %v10015_v42  ;;  %v12648_v25 = vadd.f32 %v10094_v20, %v8532_v13  ;;  %v10098_v16 = vpop.f32.mrb[184].mxu1 }
 0x476   :  { %v10099_v2 = vpop.f32.mrb[185].mxu1 }
 0x477   :  { %v8537_v23 = vadd.f32 %v10017_v62, %v12603_v11  ;;  %v10018_v29 = vpop.f32.mrb[184].mxu0  ;;  %v10100_v57 = vadd.f32 %v10099_v2, %v10098_v16 }
 0x478   :  { %v10019_v44 = vpop.f32.mrb[185].mxu0 }
 0x479   :  { %v10020_v14 = vadd.f32 %v10019_v44, %v10018_v29  ;;  %v12651_v10 = vadd.f32 %v10097_v18, %v8537_v23  ;;  %v10101_v41 = vpop.f32.mrb[186].mxu1 }
 0x47a   :  { %v10102_v7 = vpop.f32.mrb[187].mxu1 }
 0x47b   :  { %v8542_v24 = vadd.f32 %v10020_v14, %v12606_v51  ;;  %v10021_v38 = vpop.f32.mrb[186].mxu0  ;;  %v10103_v56 = vadd.f32 %v10102_v7, %v10101_v41 }
 0x47c   :  { %v10022_v0 = vpop.f32.mrb[187].mxu0 }
 0x47d   :  { %v10023_v43 = vadd.f32 %v10022_v0, %v10021_v38  ;;  %v12654_v47 = vadd.f32 %v10100_v57, %v8542_v24  ;;  %v10104_v52 = vpop.f32.mrb[188].mxu1 }
 0x47e   :  { %v10105_v46 = vpop.f32.mrb[189].mxu1 }
 0x47f   :  { %v8547_v11 = vadd.f32 %v10023_v43, %v12609_v58  ;;  %v10024_v9 = vpop.f32.mrb[188].mxu0  ;;  %v10106_v50 = vadd.f32 %v10105_v46, %v10104_v52 }
 0x480   :  { %v10025_v30 = vpop.f32.mrb[189].mxu0 }
 0x481   :  { %v10026_v63 = vadd.f32 %v10025_v30, %v10024_v9  ;;  %v12657_v12 = vadd.f32 %v10103_v56, %v8547_v11  ;;  %v10107_v48 = vpop.f32.mrb[190].mxu1 }
 0x482   :  { %v10108_v26 = vpop.f32.mrb[191].mxu1 }
 0x483   :  { %v8552_v51 = vadd.f32 %v10026_v63, %v12612_v49  ;;  %v10027_v36 = vpop.f32.mrb[190].mxu0  ;;  %v10109_v17 = vadd.f32 %v10108_v26, %v10107_v48 }
 0x484   :  { %v10028_v27 = vpop.f32.mrb[191].mxu0 }
 0x485   :  { %v10029_v61 = vadd.f32 %v10028_v27, %v10027_v36  ;;  %v12660_v34 = vadd.f32 %v10106_v50, %v8552_v51  ;;  %v10110_v35 = vpop.f32.mrb[192].mxu1 }
 0x486   :  { %v10111_v5 = vpop.f32.mrb[193].mxu1 }
 0x487   :  { %v8557_v58 = vadd.f32 %v10029_v61, %v12615_v33  ;;  %v10030_v59 = vpop.f32.mrb[192].mxu0  ;;  %v10112_v6 = vadd.f32 %v10111_v5, %v10110_v35 }
 0x488   :  { %v10031_v3 = vpop.f32.mrb[193].mxu0 }
 0x489   :  { %v10032_v55 = vadd.f32 %v10031_v3, %v10030_v59  ;;  %v12663_v1 = vadd.f32 %v10109_v17, %v8557_v58  ;;  %v10113_v31 = vpop.f32.mrb[194].mxu1 }
 0x48a   :  { %v10114_v20 = vpop.f32.mrb[195].mxu1 }
 0x48b   :  { %v8562_v49 = vadd.f32 %v10032_v55, %v12618_v8  ;;  %v10033_v39 = vpop.f32.mrb[194].mxu0  ;;  %v10115_v19 = vadd.f32 %v10114_v20, %v10113_v31 }
 0x48c   :  { %v10034_v22 = vpop.f32.mrb[195].mxu0 }
 0x48d   :  { %v10035_v13 = vadd.f32 %v10034_v22, %v10033_v39  ;;  %v12666_v42 = vadd.f32 %v10112_v6, %v8562_v49  ;;  %v10116_v32 = vpop.f32.mrb[196].mxu1 }
 0x48e   :  { %v10117_v18 = vpop.f32.mrb[197].mxu1 }
 0x48f   :  { %v8567_v33 = vadd.f32 %v10035_v13, %v12621_v4  ;;  %v10036_v37 = vpop.f32.mrb[196].mxu0  ;;  %v10118_v16 = vadd.f32 %v10117_v18, %v10116_v32 }
 0x490   :  { %v10037_v62 = vpop.f32.mrb[197].mxu0 }
 0x491   :  { %v10038_v23 = vadd.f32 %v10037_v62, %v10036_v37  ;;  %v8712_v29 = vadd.f32 %v10115_v19, %v8567_v33  ;;  %v10119_v2 = vpop.f32.mrb[198].mxu1 }
 0x492   :  { %v10120_v57 = vpop.f32.mrb[199].mxu1 }
 0x493   :  { %v8572_v44 = vadd.f32 %v10038_v23, %v12624_v60  ;;  %v10039_v8 = vpop.f32.mrb[198].mxu0  ;;  %v10121_v41 = vadd.f32 %v10120_v57, %v10119_v2 }
 0x494   :  { %v10040_v14 = vpop.f32.mrb[199].mxu0 }
 0x495   :  { %v10041_v24 = vadd.f32 %v10040_v14, %v10039_v8  ;;  %v8717_v38 = vadd.f32 %v10118_v16, %v8572_v44  ;;  %v10122_v7 = vpop.f32.mrb[200].mxu1 }
 0x496   :  { %v10123_v4 = vpop.f32.mrb[201].mxu1 }
 0x497   :  { %v8577_v0 = vadd.f32 %v10041_v24, %v12627_v15  ;;  %v10042_v56 = vpop.f32.mrb[200].mxu0  ;;  %v10124_v52 = vadd.f32 %v10123_v4, %v10122_v7 }
 0x498   :  { %v10043_v43 = vpop.f32.mrb[201].mxu0 }
 0x499   :  { %v10044_v11 = vadd.f32 %v10043_v43, %v10042_v56  ;;  %v8722_v9 = vadd.f32 %v10121_v41, %v8577_v0  ;;  %v10125_v46 = vpop.f32.mrb[202].mxu1 }
 0x49a   :  { %v10126_v60 = vpop.f32.mrb[203].mxu1 }
 0x49b   :  { %v8582_v30 = vadd.f32 %v10044_v11, %v12630_v40  ;;  %v10045_v50 = vpop.f32.mrb[202].mxu0  ;;  %v10127_v48 = vadd.f32 %v10126_v60, %v10125_v46 }
 0x49c   :  { %v10046_v63 = vpop.f32.mrb[203].mxu0 }
 0x49d   :  { %v10047_v51 = vadd.f32 %v10046_v63, %v10045_v50  ;;  %v8727_v36 = vadd.f32 %v10124_v52, %v8582_v30  ;;  %v10128_v26 = vpop.f32.mrb[204].mxu1 }
 0x49e   :  { %v10129_v15 = vpop.f32.mrb[205].mxu1 }
 0x49f   :  { %v8587_v27 = vadd.f32 %v10047_v51, %v12633_v54  ;;  %v10048_v17 = vpop.f32.mrb[204].mxu0  ;;  %v10130_v35 = vadd.f32 %v10129_v15, %v10128_v26 }
 0x4a0   :  { %v10049_v61 = vpop.f32.mrb[205].mxu0 }
 0x4a1   :  { %v10050_v58 = vadd.f32 %v10049_v61, %v10048_v17  ;;  %v8732_v59 = vadd.f32 %v10127_v48, %v8587_v27  ;;  %v10131_v5 = vpop.f32.mrb[206].mxu1 }
 0x4a2   :  { %v10132_v40 = vpop.f32.mrb[207].mxu1 }
 0x4a3   :  { %v8592_v3 = vadd.f32 %v10050_v58, %v12636_v21  ;;  %v10051_v6 = vpop.f32.mrb[206].mxu0  ;;  %v10133_v31 = vadd.f32 %v10132_v40, %v10131_v5 }
 0x4a4   :  { %v10052_v55 = vpop.f32.mrb[207].mxu0 }
 0x4a5   :  { %v10053_v49 = vadd.f32 %v10052_v55, %v10051_v6  ;;  %v8737_v39 = vadd.f32 %v10130_v35, %v8592_v3  ;;  %v10134_v20 = vpop.f32.mrb[208].mxu1 }
 0x4a6   :  { %v10135_v54 = vpop.f32.mrb[209].mxu1 }
 0x4a7   :  { %v8597_v22 = vadd.f32 %v10053_v49, %v12639_v45  ;;  %v10054_v19 = vpop.f32.mrb[208].mxu0  ;;  %v10136_v32 = vadd.f32 %v10135_v54, %v10134_v20 }
 0x4a8   :  { %v10055_v13 = vpop.f32.mrb[209].mxu0 }
 0x4a9   :  { %v10056_v33 = vadd.f32 %v10055_v13, %v10054_v19  ;;  %v8742_v37 = vadd.f32 %v10133_v31, %v8597_v22  ;;  %v10215_v18 = vpop.f32.mrb[210].mxu1 }
 0x4aa   :  { %v8862_v21 = vadd.f32 %v10215_v18, %v8717_v38  ;;  %v8856_v23 = vpop.f32.mrb[211].mxu1 }
 0x4ab   :  { %v8602_v62 = vadd.f32 %v10056_v33, %v12642_v28  ;;  %v10203_v16 = vpop.f32.mrb[210].mxu0  ;;  %v8857_v8 = vadd.f32 %v8856_v23, %v8712_v29 }
 0x4ac   :  { %v8822_v2 = vadd.f32 %v10203_v16, %v12648_v25  ;;  %v8816_v44 = vpop.f32.mrb[211].mxu0  ;;  %8904 = vst [vmem:[#allocation13 + $0x48] sm:$0xff] %v8862_v21 }
 0x4ad   :  { %v8817_v57 = vadd.f32 %v8816_v44, %v12645_v53  ;;  %v8747_v45 = vadd.f32 %v10136_v32, %v8602_v62  ;;  %8903 = vst [vmem:[#allocation13 + $0x40] sm:$0xff] %v8857_v8  ;;  %v10218_v14 = vpop.f32.mrb[212].mxu1 }
 0x4ae   :  { %8896 = vst [vmem:[#allocation13 + $0x8] sm:$0xff] %v8822_v2  ;;  %v8872_v24 = vadd.f32 %v10218_v14, %v8727_v36  ;;  %v8866_v7 = vpop.f32.mrb[213].mxu1 }
 0x4af   :  { %8895 = vst [vmem:[#allocation13] sm:$0xff] %v8817_v57  ;;  %v10206_v41 = vpop.f32.mrb[212].mxu0  ;;  %v8867_v38 = vadd.f32 %v8866_v7, %v8722_v9 }
 0x4b0   :  { %v8832_v28 = vadd.f32 %v10206_v41, %v12654_v47  ;;  %v8826_v0 = vpop.f32.mrb[213].mxu0  ;;  %8906 = vst [vmem:[#allocation13 + $0x58] sm:$0xff] %v8872_v24 }
 0x4b1   :  { %v8827_v56 = vadd.f32 %v8826_v0, %v12651_v10  ;;  %8905 = vst [vmem:[#allocation13 + $0x50] sm:$0xff] %v8867_v38  ;;  %v10221_v25 = vpop.f32.mrb[214].mxu1 }
 0x4b2   :  { %8898 = vst [vmem:[#allocation13 + $0x18] sm:$0xff] %v8832_v28  ;;  %v8882_v29 = vadd.f32 %v10221_v25, %v8737_v39  ;;  %v8876_v4 = vpop.f32.mrb[215].mxu1 }
 0x4b3   :  { %8897 = vst [vmem:[#allocation13 + $0x10] sm:$0xff] %v8827_v56  ;;  %v10209_v53 = vpop.f32.mrb[214].mxu0  ;;  %v8877_v11 = vadd.f32 %v8876_v4, %v8732_v59 }
 0x4b4   :  { %v8842_v43 = vadd.f32 %v10209_v53, %v12660_v34  ;;  %v8836_v52 = vpop.f32.mrb[215].mxu0  ;;  %8908 = vst [vmem:[#allocation13 + $0x68] sm:$0xff] %v8882_v29 }
 0x4b5   :  { %v8837_v46 = vadd.f32 %v8836_v52, %v12657_v12  ;;  %8907 = vst [vmem:[#allocation13 + $0x60] sm:$0xff] %v8877_v11  ;;  %v10224_v47 = vpop.f32.mrb[216].mxu1 }
 0x4b6   :  { %8900 = vst [vmem:[#allocation13 + $0x28] sm:$0xff] %v8842_v43  ;;  %v8892_v9 = vadd.f32 %v10224_v47, %v8747_v45  ;;  %v8886_v30 = vpop.f32.mrb[217].mxu1 }
 0x4b7   :  { %8899 = vst [vmem:[#allocation13 + $0x20] sm:$0xff] %v8837_v46  ;;  %v10212_v10 = vpop.f32.mrb[216].mxu0  ;;  %v8887_v63 = vadd.f32 %v8886_v30, %v8742_v37 }
 0x4b8   :  { %v8852_v50 = vadd.f32 %v10212_v10, %v12666_v42  ;;  %v8846_v60 = vpop.f32.mrb[217].mxu0  ;;  %8910 = vst [vmem:[#allocation13 + $0x78] sm:$0xff] %v8892_v9 }
 0x4b9   :  { %v8847_v34 = vadd.f32 %v8846_v60, %v12663_v1  ;;  %8909 = vst [vmem:[#allocation13 + $0x70] sm:$0xff] %v8887_v63 }
 0x4ba   :  { %8902 = vst [vmem:[#allocation13 + $0x38] sm:$0xff] %v8852_v50 }
 0x4bb   :  { %8901 = vst [vmem:[#allocation13 + $0x30] sm:$0xff] %v8847_v34 }
 0x4bc   :  { %11087 = shalt.err (!%p11084_p2)
}
 0x4bd   :  { %s11088_s9 = scalar_lea.hbm %s12704_s5, 2048 }
 0x4be   :  { %p11089_p3 = scmp.ne.s32.totalorder %s12704_s5, %s11088_s9  ;;  %p11092_p4 = scmp.lt.u32.totalorder %s11088_s9, %s12704_s5 }
 0x4c0   :  { %p11094_p5 = pnand %p11092_p4, %p11089_p3 }
 0x4c2   :  { %11097 = shalt.err (!%p11094_p5)
}
 0x4c3   :  { %8922 = dma.vmem_to_hbm [thread:$0]  %s8917_s30, 2048, %s12704_s5, [#allocation6], %s11111_s18, %s11111_s18, %s11112_s19  }
 0x4c4   :  { %11104 = dma.done.wait [#allocation6], 2048  }
 0x4c5   :  { %11105 = vsyncadd [#allocation6], 4294965248 }
 0x4c6   :  { %8926 = vsyncpa [#allocation5], 1 }
 0x4c7   :  { %8927 = vsyncpa [#allocation8], 1 }
 0x4c8   :  { %8928 = vsyncpa [#allocation11], 1 }
 0x4c9   :  { %8929 = vsyncpa [#allocation6], 1 }

</bundles_post_ra>
